<compile_context>
chip_gen: v6e
topology: v6e:2x2x1
jax: 0.10.0
libtpu: 0.0.40
codegen_flags: <defaults>
</compile_context>

<pallas_src>
import jax
import jax.numpy as jnp
from jax import lax
from jax.experimental import pallas as pl
from jax.experimental.pallas import tpu as pltpu

_LANE = 128


# ---------------------------------------------------------------------------
# Fused kernel: conv1+BN+ReLU -> conv2+BN -> residual -> ReLU
# ---------------------------------------------------------------------------
def _simple_resblock_kernel(x_ref, w1_ref, s1_ref, b1_ref, w2_ref, s2_ref,
                            b2_ref, o_ref, y1p_ref, c1_ref, c2_ref, skip_ref):
    # x_ref: (1, H+4, W+2, Cp) bf16, pre-padded (2 rows / 1 col each side).
    W = x_ref.shape[2] - 2
    Cp = x_ref.shape[3]                    # in-channels, padded to 128*k
    Cop = w1_ref.shape[1]                  # out-channels, padded to 128*k
    TH = o_ref.shape[1] // W               # output rows per grid step
    M1 = (TH + 2) * W                      # conv1 rows (incl. +-1 halo row)
    M2 = TH * W                            # conv2 / output rows

    h = pl.program_id(1)
    h0 = pl.multiple_of(h * TH, TH)

    # ---- conv1 (3x3, pad 1) for image rows [h0-1, h0+TH+1):
    #      im2col into lane-aligned bf16 scratch, ONE K = 9*Cp MXU contraction.
    for kh in range(3):
        for kw in range(3):
            t = kh * 3 + kw
            patch = x_ref[0, pl.ds(h0 + kh, TH + 2), kw:kw + W, :]
            c1_ref[:, t * Cp:(t + 1) * Cp] = patch.reshape(M1, Cp)
    y1 = jnp.dot(c1_ref[...], w1_ref[...], preferred_element_type=jnp.float32)
    y1 = jnp.maximum(y1 * s1_ref[...] + b1_ref[...], 0.0)        # BN1 + ReLU (f32)

    # Residual skip (interior rows only) parked in f32 VMEM: ends y1's vreg
    # live range before conv2's im2col and dot run.
    skip_ref[...] = y1[W:W + M2, :]

    # Padded y1 tile for conv2 (bf16, cast once on store).  Only the two pad
    # columns (every step) and the out-of-image halo rows (boundary tiles) are
    # zeroed; the interior is fully overwritten.
    y1p_ref[:, 1:W + 1, :] = y1.reshape(TH + 2, W, Cop).astype(y1p_ref.dtype)
    zcol = jnp.zeros((TH + 2, 1, Cop), y1p_ref.dtype)
    y1p_ref[:, 0:1, :] = zcol
    y1p_ref[:, W + 1:W + 2, :] = zcol

    zrow = jnp.zeros((1, W + 2, Cop), y1p_ref.dtype)

    @pl.when(h == 0)                       # halo row above the image -> conv2 zero pad
    def _():
        y1p_ref[0:1, :, :] = zrow

    @pl.when(h == pl.num_programs(1) - 1)  # halo row below the image -> conv2 zero pad
    def _():
        y1p_ref[TH + 1:TH + 2, :, :] = zrow

    # ---- conv2 (3x3, pad 1) for image rows [h0, h0+TH):
    #      im2col from the padded y1 tile, ONE K = 9*Cop MXU contraction.
    for kh in range(3):
        for kw in range(3):
            t = kh * 3 + kw
            patch = y1p_ref[kh:kh + TH, kw:kw + W, :]
            c2_ref[:, t * Cop:(t + 1) * Cop] = patch.reshape(M2, Cop)
    y2 = jnp.dot(c2_ref[...], w2_ref[...], preferred_element_type=jnp.float32)
    y2 = y2 * s2_ref[...] + b2_ref[...]                           # BN2 (no act)

    # ---- residual + final ReLU; lane-dense (TH*W, Cop) store ----------------
    o_ref[0] = jnp.maximum(y2 + skip_ref[...], 0.0).astype(o_ref.dtype)


# ---------------------------------------------------------------------------
# Wrapper
# ---------------------------------------------------------------------------
def _vmem_limit_bytes():
    # Generation-aware VMEM limit: 3/4 of capacity, >=24 MiB headroom.
    try:
        cap = pltpu.get_tpu_info().vmem_capacity_bytes
    except Exception:
        cap = 64 * 1024 * 1024
    return int(max(32 * 1024 * 1024,
                   min(3 * cap // 4, cap - 24 * 1024 * 1024)))


def simple_resblock_forward(x, params, *, tile_h=8, compute_dtype=jnp.bfloat16):
    """x: (N, H, W, Cin) float32 channels-last.  Returns (N, H, W, Cout)."""
    w1, s1, b1, w2, s2, b2 = params
    N, H, W, Cin = x.shape
    Cout = w1.shape[-1]
    assert w1.shape == (3, 3, Cin, Cout) and w2.shape == (3, 3, Cout, Cout)
    assert H % tile_h == 0 and tile_h % 8 == 0, \
        "tile_h must divide H and be a multiple of 8"
    # NOTE: tune tile_h per generation (larger on 128 MiB v5e/v6e, smaller on
    # 64 MiB v7x); halo recompute fraction is 2/(tile_h+2).

    rnd_up = lambda c: ((c + _LANE - 1) // _LANE) * _LANE
    Cp, Cop = rnd_up(Cin), rnd_up(Cout)

    # Pre-pad x: +2 rows / +1 col each side (conv1 pad plus one halo row for
    # conv2's receptive field), channel-pad to a lane multiple, cast to bf16
    # once here (halves input DMA bytes, removes the in-kernel padded copy).
    xp = jnp.pad(x, ((0, 0), (2, 2), (1, 1), (0, Cp - Cin))).astype(compute_dtype)

    # Conv weights as tap-major (9*C, C') matrices with zero rows/cols for the
    # padded channels, bf16 for the MXU.
    w1m = jnp.pad(w1, ((0, 0), (0, 0), (0, Cp - Cin), (0, Cop - Cout)))
    w1m = w1m.reshape(9 * Cp, Cop).astype(compute_dtype)
    w2m = jnp.pad(w2, ((0, 0), (0, 0), (0, Cop - Cout), (0, Cop - Cout)))
    w2m = w2m.reshape(9 * Cop, Cop).astype(compute_dtype)
    pad_c = lambda a: jnp.pad(a, ((0, 0), (0, Cop - Cout)))
    s1p, b1p, s2p, b2p = pad_c(s1), pad_c(b1), pad_c(s2), pad_c(b2)

    n_h = H // tile_h

    def full(a):
        nd = a.ndim
        return pl.BlockSpec(a.shape, lambda n, h, _nd=nd: (0,) * _nd)

    out = pl.pallas_call(
        _simple_resblock_kernel,
        out_shape=jax.ShapeDtypeStruct((N, H * W, Cop), x.dtype),
        grid_spec=pltpu.PrefetchScalarGridSpec(
            num_scalar_prefetch=0,
            grid=(N, n_h),
            in_specs=[
                # Whole padded image per batch element; block index ignores h,
                # so the input is only re-DMA'd when n changes.
                pl.BlockSpec((1, H + 4, W + 2, Cp), lambda n, h: (n, 0, 0, 0)),
                full(w1m), full(s1p), full(b1p),
                full(w2m), full(s2p), full(b2p),
            ],
            out_specs=pl.BlockSpec((1, tile_h * W, Cop),
                                   lambda n, h: (n, h, 0)),
            scratch_shapes=[
                pltpu.VMEM((tile_h + 2, W + 2, Cop), compute_dtype),      # padded y1 tile
                pltpu.VMEM(((tile_h + 2) * W, 9 * Cp), compute_dtype),    # im2col conv1
                pltpu.VMEM((tile_h * W, 9 * Cop), compute_dtype),         # im2col conv2
                pltpu.VMEM((tile_h * W, Cop), jnp.float32),               # f32 residual skip
            ]),
        compiler_params=pltpu.CompilerParams(
            dimension_semantics=("parallel", "parallel"),
            vmem_limit_bytes=_vmem_limit_bytes()),
    )(xp, w1m, s1p, b1p, w2m, s2p, b2p)
    return out.reshape(N, H, W, Cop)[..., :Cout]


# ---------------------------------------------------------------------------
# Pure-JAX reference (independent: lax.conv_general_dilated).  Conv operands
# are quantized to bf16 like the kernel's MXU inputs; accumulation / BN /
# residual are f32.
# ---------------------------------------------------------------------------
def simple_resblock_reference(x, params):
    w1, s1, b1, w2, s2, b2 = params
    dn = ("NHWC", "HWIO", "NHWC")
    q = lambda a: a.astype(jnp.bfloat16).astype(jnp.float32)

    y1 = lax.conv_general_dilated(q(x), q(w1), (1, 1), [(1, 1), (1, 1)],
                                  dimension_numbers=dn,
                                  precision=lax.Precision.HIGHEST)
    y1 = jnp.maximum(y1 * s1 + b1, 0.0)
    y2 = lax.conv_general_dilated(q(y1), q(w2), (1, 1), [(1, 1), (1, 1)],
                                  dimension_numbers=dn,
                                  precision=lax.Precision.HIGHEST)
    y2 = y2 * s2 + b2
    return jnp.maximum(y1 + y2, 0.0)


# ---------------------------------------------------------------------------
# Deterministic synthetic parameters (BN folded to inference scale/shift)
# ---------------------------------------------------------------------------
def make_params(key, in_ch, out_ch):
    k = jax.random.split(key, 4)
    eps = 1e-5

    def bn_fold(kk, c):
        kg, kb, km, kv = jax.random.split(kk, 4)
        gamma = jax.random.uniform(kg, (1, c), jnp.float32, 0.5, 1.5)
        beta = 0.1 * jax.random.normal(kb, (1, c), jnp.float32)
        mean = 0.1 * jax.random.normal(km, (1, c), jnp.float32)
        var = jax.random.uniform(kv, (1, c), jnp.float32, 0.5, 1.5)
        scale = gamma / jnp.sqrt(var + eps)
        return scale, beta - mean * scale

    w1 = jax.random.normal(k[0], (3, 3, in_ch, out_ch), jnp.float32) * (9 * in_ch) ** -0.5
    s1, b1 = bn_fold(k[1], out_ch)
    w2 = jax.random.normal(k[2], (3, 3, out_ch, out_ch), jnp.float32) * (9 * out_ch) ** -0.5
    s2, b2 = bn_fold(k[3], out_ch)
    return (w1, s1, b1, w2, s2, b2)


if __name__ == "__main__":
    key = jax.random.PRNGKey(0)
    k_x, k_p = jax.random.split(key)

    # SimpleResBlock(in_ch=64, out_ch=128) on a small clip frame.
    N, Cin, H, W = 2, 64, 32, 32
    Cout = 128

    # PyTorch-layout input (NCHW), transposed to NHWC for the kernel.
    x_nchw = jax.random.normal(k_x, (N, Cin, H, W), jnp.float32)
    x = jnp.transpose(x_nchw, (0, 2, 3, 1))

    params = make_params(k_p, Cin, Cout)

    y = jax.block_until_ready(simple_resblock_forward(x, params, tile_h=8))
    y_ref = simple_resblock_reference(x, params)

    assert y.shape == (N, H, W, Cout)
    err = jnp.max(jnp.abs(y - y_ref))
    assert jnp.allclose(y, y_ref, atol=1e-2, rtol=1e-2), f"mismatch vs reference: {err}"

    print("KERNEL_OK")
</pallas_src>

<mosaic_0001>
module attributes {stable_mosaic.version = 11 : i64} {
  func.func @_simple_resblock_kernel(%arg0: i32, %arg1: i32, %arg2: memref<1x36x34x128xbf16, #tpu.memory_space<vmem>>, %arg3: memref<1152x128xbf16, #tpu.memory_space<vmem>>, %arg4: memref<1x128xf32, #tpu.memory_space<vmem>>, %arg5: memref<1x128xf32, #tpu.memory_space<vmem>>, %arg6: memref<1152x128xbf16, #tpu.memory_space<vmem>>, %arg7: memref<1x128xf32, #tpu.memory_space<vmem>>, %arg8: memref<1x128xf32, #tpu.memory_space<vmem>>, %arg9: memref<1x256x128xf32, #tpu.memory_space<vmem>>, %arg10: memref<10x34x128xbf16, #tpu.memory_space<vmem>>, %arg11: memref<320x1152xbf16, #tpu.memory_space<vmem>>, %arg12: memref<256x1152xbf16, #tpu.memory_space<vmem>>, %arg13: memref<256x128xf32, #tpu.memory_space<vmem>>) attributes {dimension_semantics = [#tpu.dimension_semantics<parallel>, #tpu.dimension_semantics<parallel>], iteration_bounds = array<i64: 2, 4>, scalar_prefetch = 0 : i64, scratch_operands = 4 : i64, tpu.core_type = #tpu.core_type<tc>, window_params = [{transform_indices = @transform_0, window_bounds = array<i64: 1, 36, 34, 128>}, {pipeline_mode = #tpu.pipeline_mode<synchronous>, transform_indices = @transform_1, window_bounds = array<i64: 1152, 128>}, {pipeline_mode = #tpu.pipeline_mode<synchronous>, transform_indices = @transform_2, window_bounds = array<i64: 1, 128>}, {pipeline_mode = #tpu.pipeline_mode<synchronous>, transform_indices = @transform_3, window_bounds = array<i64: 1, 128>}, {pipeline_mode = #tpu.pipeline_mode<synchronous>, transform_indices = @transform_4, window_bounds = array<i64: 1152, 128>}, {pipeline_mode = #tpu.pipeline_mode<synchronous>, transform_indices = @transform_5, window_bounds = array<i64: 1, 128>}, {pipeline_mode = #tpu.pipeline_mode<synchronous>, transform_indices = @transform_6, window_bounds = array<i64: 1, 128>}, {transform_indices = @transform_7, window_bounds = array<i64: 1, 256, 128>}]} {
    %c8_i32 = arith.constant 8 : i32
    %0 = arith.muli %arg1, %c8_i32 : i32
    %1 = tpu.assume_multiple %0, 8 : i32
    %c0_i32 = arith.constant 0 : i32
    %2 = arith.addi %1, %c0_i32 : i32
    %c0 = arith.constant 0 : index
    %3 = arith.index_cast %2 : i32 to index
    %c0_0 = arith.constant 0 : index
    %c0_1 = arith.constant 0 : index
    %4 = vector.load %arg2[%c0, %3, %c0_0, %c0_1] : memref<1x36x34x128xbf16, #tpu.memory_space<vmem>>, vector<1x10x32x128xbf16>
    %5 = vector.shape_cast %4 : vector<1x10x32x128xbf16> to vector<10x32x128xbf16>
    %6 = vector.shape_cast %5 : vector<10x32x128xbf16> to vector<320x128xbf16>
    %c0_2 = arith.constant 0 : index
    %c0_3 = arith.constant 0 : index
    %7 = vector.load %arg11[%c0_2, %c0_3] : memref<320x1152xbf16, #tpu.memory_space<vmem>>, vector<320x128xbf16>
    tpu.vector_store %arg11[%c0_2, %c0_3], %6 {strides = array<i32>} : memref<320x1152xbf16, #tpu.memory_space<vmem>>, vector<320x128xbf16>,
    %c0_i32_4 = arith.constant 0 : i32
    %8 = arith.addi %1, %c0_i32_4 : i32
    %c0_5 = arith.constant 0 : index
    %9 = arith.index_cast %8 : i32 to index
    %c1 = arith.constant 1 : index
    %c0_6 = arith.constant 0 : index
    %10 = vector.load %arg2[%c0_5, %9, %c1, %c0_6] : memref<1x36x34x128xbf16, #tpu.memory_space<vmem>>, vector<1x10x32x128xbf16>
    %11 = vector.shape_cast %10 : vector<1x10x32x128xbf16> to vector<10x32x128xbf16>
    %12 = vector.shape_cast %11 : vector<10x32x128xbf16> to vector<320x128xbf16>
    %c0_7 = arith.constant 0 : index
    %c128 = arith.constant 128 : index
    %13 = vector.load %arg11[%c0_7, %c128] : memref<320x1152xbf16, #tpu.memory_space<vmem>>, vector<320x128xbf16>
    tpu.vector_store %arg11[%c0_7, %c128], %12 {strides = array<i32>} : memref<320x1152xbf16, #tpu.memory_space<vmem>>, vector<320x128xbf16>,
    %c0_i32_8 = arith.constant 0 : i32
    %14 = arith.addi %1, %c0_i32_8 : i32
    %c0_9 = arith.constant 0 : index
    %15 = arith.index_cast %14 : i32 to index
    %c2 = arith.constant 2 : index
    %c0_10 = arith.constant 0 : index
    %16 = vector.load %arg2[%c0_9, %15, %c2, %c0_10] : memref<1x36x34x128xbf16, #tpu.memory_space<vmem>>, vector<1x10x32x128xbf16>
    %17 = vector.shape_cast %16 : vector<1x10x32x128xbf16> to vector<10x32x128xbf16>
    %18 = vector.shape_cast %17 : vector<10x32x128xbf16> to vector<320x128xbf16>
    %c0_11 = arith.constant 0 : index
    %c256 = arith.constant 256 : index
    %19 = vector.load %arg11[%c0_11, %c256] : memref<320x1152xbf16, #tpu.memory_space<vmem>>, vector<320x128xbf16>
    tpu.vector_store %arg11[%c0_11, %c256], %18 {strides = array<i32>} : memref<320x1152xbf16, #tpu.memory_space<vmem>>, vector<320x128xbf16>,
    %c1_i32 = arith.constant 1 : i32
    %20 = arith.addi %1, %c1_i32 : i32
    %c0_12 = arith.constant 0 : index
    %21 = arith.index_cast %20 : i32 to index
    %c0_13 = arith.constant 0 : index
    %c0_14 = arith.constant 0 : index
    %22 = vector.load %arg2[%c0_12, %21, %c0_13, %c0_14] : memref<1x36x34x128xbf16, #tpu.memory_space<vmem>>, vector<1x10x32x128xbf16>
    %23 = vector.shape_cast %22 : vector<1x10x32x128xbf16> to vector<10x32x128xbf16>
    %24 = vector.shape_cast %23 : vector<10x32x128xbf16> to vector<320x128xbf16>
    %c0_15 = arith.constant 0 : index
    %c384 = arith.constant 384 : index
    %25 = vector.load %arg11[%c0_15, %c384] : memref<320x1152xbf16, #tpu.memory_space<vmem>>, vector<320x128xbf16>
    tpu.vector_store %arg11[%c0_15, %c384], %24 {strides = array<i32>} : memref<320x1152xbf16, #tpu.memory_space<vmem>>, vector<320x128xbf16>,
    %c1_i32_16 = arith.constant 1 : i32
    %26 = arith.addi %1, %c1_i32_16 : i32
    %c0_17 = arith.constant 0 : index
    %27 = arith.index_cast %26 : i32 to index
    %c1_18 = arith.constant 1 : index
    %c0_19 = arith.constant 0 : index
    %28 = vector.load %arg2[%c0_17, %27, %c1_18, %c0_19] : memref<1x36x34x128xbf16, #tpu.memory_space<vmem>>, vector<1x10x32x128xbf16>
    %29 = vector.shape_cast %28 : vector<1x10x32x128xbf16> to vector<10x32x128xbf16>
    %30 = vector.shape_cast %29 : vector<10x32x128xbf16> to vector<320x128xbf16>
    %c0_20 = arith.constant 0 : index
    %c512 = arith.constant 512 : index
    %31 = vector.load %arg11[%c0_20, %c512] : memref<320x1152xbf16, #tpu.memory_space<vmem>>, vector<320x128xbf16>
    tpu.vector_store %arg11[%c0_20, %c512], %30 {strides = array<i32>} : memref<320x1152xbf16, #tpu.memory_space<vmem>>, vector<320x128xbf16>,
    %c1_i32_21 = arith.constant 1 : i32
    %32 = arith.addi %1, %c1_i32_21 : i32
    %c0_22 = arith.constant 0 : index
    %33 = arith.index_cast %32 : i32 to index
    %c2_23 = arith.constant 2 : index
    %c0_24 = arith.constant 0 : index
    %34 = vector.load %arg2[%c0_22, %33, %c2_23, %c0_24] : memref<1x36x34x128xbf16, #tpu.memory_space<vmem>>, vector<1x10x32x128xbf16>
    %35 = vector.shape_cast %34 : vector<1x10x32x128xbf16> to vector<10x32x128xbf16>
    %36 = vector.shape_cast %35 : vector<10x32x128xbf16> to vector<320x128xbf16>
    %c0_25 = arith.constant 0 : index
    %c640 = arith.constant 640 : index
    %37 = vector.load %arg11[%c0_25, %c640] : memref<320x1152xbf16, #tpu.memory_space<vmem>>, vector<320x128xbf16>
    tpu.vector_store %arg11[%c0_25, %c640], %36 {strides = array<i32>} : memref<320x1152xbf16, #tpu.memory_space<vmem>>, vector<320x128xbf16>,
    %c2_i32 = arith.constant 2 : i32
    %38 = arith.addi %1, %c2_i32 : i32
    %c0_26 = arith.constant 0 : index
    %39 = arith.index_cast %38 : i32 to index
    %c0_27 = arith.constant 0 : index
    %c0_28 = arith.constant 0 : index
    %40 = vector.load %arg2[%c0_26, %39, %c0_27, %c0_28] : memref<1x36x34x128xbf16, #tpu.memory_space<vmem>>, vector<1x10x32x128xbf16>
    %41 = vector.shape_cast %40 : vector<1x10x32x128xbf16> to vector<10x32x128xbf16>
    %42 = vector.shape_cast %41 : vector<10x32x128xbf16> to vector<320x128xbf16>
    %c0_29 = arith.constant 0 : index
    %c768 = arith.constant 768 : index
    %43 = vector.load %arg11[%c0_29, %c768] : memref<320x1152xbf16, #tpu.memory_space<vmem>>, vector<320x128xbf16>
    tpu.vector_store %arg11[%c0_29, %c768], %42 {strides = array<i32>} : memref<320x1152xbf16, #tpu.memory_space<vmem>>, vector<320x128xbf16>,
    %c2_i32_30 = arith.constant 2 : i32
    %44 = arith.addi %1, %c2_i32_30 : i32
    %c0_31 = arith.constant 0 : index
    %45 = arith.index_cast %44 : i32 to index
    %c1_32 = arith.constant 1 : index
    %c0_33 = arith.constant 0 : index
    %46 = vector.load %arg2[%c0_31, %45, %c1_32, %c0_33] : memref<1x36x34x128xbf16, #tpu.memory_space<vmem>>, vector<1x10x32x128xbf16>
    %47 = vector.shape_cast %46 : vector<1x10x32x128xbf16> to vector<10x32x128xbf16>
    %48 = vector.shape_cast %47 : vector<10x32x128xbf16> to vector<320x128xbf16>
    %c0_34 = arith.constant 0 : index
    %c896 = arith.constant 896 : index
    %49 = vector.load %arg11[%c0_34, %c896] : memref<320x1152xbf16, #tpu.memory_space<vmem>>, vector<320x128xbf16>
    tpu.vector_store %arg11[%c0_34, %c896], %48 {strides = array<i32>} : memref<320x1152xbf16, #tpu.memory_space<vmem>>, vector<320x128xbf16>,
    %c2_i32_35 = arith.constant 2 : i32
    %50 = arith.addi %1, %c2_i32_35 : i32
    %c0_36 = arith.constant 0 : index
    %51 = arith.index_cast %50 : i32 to index
    %c2_37 = arith.constant 2 : index
    %c0_38 = arith.constant 0 : index
    %52 = vector.load %arg2[%c0_36, %51, %c2_37, %c0_38] : memref<1x36x34x128xbf16, #tpu.memory_space<vmem>>, vector<1x10x32x128xbf16>
    %53 = vector.shape_cast %52 : vector<1x10x32x128xbf16> to vector<10x32x128xbf16>
    %54 = vector.shape_cast %53 : vector<10x32x128xbf16> to vector<320x128xbf16>
    %c0_39 = arith.constant 0 : index
    %c1024 = arith.constant 1024 : index
    %55 = vector.load %arg11[%c0_39, %c1024] : memref<320x1152xbf16, #tpu.memory_space<vmem>>, vector<320x128xbf16>
    tpu.vector_store %arg11[%c0_39, %c1024], %54 {strides = array<i32>} : memref<320x1152xbf16, #tpu.memory_space<vmem>>, vector<320x128xbf16>,
    %c0_40 = arith.constant 0 : index
    %c0_41 = arith.constant 0 : index
    %56 = vector.load %arg11[%c0_40, %c0_41] : memref<320x1152xbf16, #tpu.memory_space<vmem>>, vector<320x1152xbf16>
    %c0_42 = arith.constant 0 : index
    %c0_43 = arith.constant 0 : index
    %57 = vector.load %arg3[%c0_42, %c0_43] : memref<1152x128xbf16, #tpu.memory_space<vmem>>, vector<1152x128xbf16>
    %cst = arith.constant dense<0.000000e+00> : vector<320x128xf32>
    %58 = tpu.matmul %56, %57, %cst {dimension_numbers = #tpu.dot_dimension_numbers<[1], [0], [0], [1], [0, 0, 1, 1], [], []>} : vector<320x1152xbf16>, vector<1152x128xbf16>, vector<320x128xf32> -> vector<320x128xf32>
    %c0_44 = arith.constant 0 : index
    %c0_45 = arith.constant 0 : index
    %59 = vector.load %arg4[%c0_44, %c0_45] : memref<1x128xf32, #tpu.memory_space<vmem>>, vector<1x128xf32>
    %60 = vector.broadcast %59 : vector<1x128xf32> to vector<320x128xf32>
    %61 = arith.mulf %58, %60 : vector<320x128xf32>
    %c0_46 = arith.constant 0 : index
    %c0_47 = arith.constant 0 : index
    %62 = vector.load %arg5[%c0_46, %c0_47] : memref<1x128xf32, #tpu.memory_space<vmem>>, vector<1x128xf32>
    %63 = vector.broadcast %62 : vector<1x128xf32> to vector<320x128xf32>
    %64 = arith.addf %61, %63 : vector<320x128xf32>
    %cst_48 = arith.constant 0.000000e+00 : f32
    %65 = vector.broadcast %cst_48 : f32 to vector<320x128xf32>
    %66 = arith.maximumf %64, %65 : vector<320x128xf32>
    %67 = vector.extract_strided_slice %66 {offsets = [32, 0], sizes = [256, 128], strides = [1, 1]} : vector<320x128xf32> to vector<256x128xf32>
    %c0_49 = arith.constant 0 : index
    %c0_50 = arith.constant 0 : index
    %68 = vector.load %arg13[%c0_49, %c0_50] : memref<256x128xf32, #tpu.memory_space<vmem>>, vector<256x128xf32>
    tpu.vector_store %arg13[%c0_49, %c0_50], %67 {strides = array<i32>} : memref<256x128xf32, #tpu.memory_space<vmem>>, vector<256x128xf32>,
    %69 = vector.shape_cast %66 : vector<320x128xf32> to vector<10x32x128xf32>
    %70 = arith.truncf %69 : vector<10x32x128xf32> to vector<10x32x128xbf16>
    %c0_51 = arith.constant 0 : index
    %c1_52 = arith.constant 1 : index
    %c0_53 = arith.constant 0 : index
    %71 = vector.load %arg10[%c0_51, %c1_52, %c0_53] : memref<10x34x128xbf16, #tpu.memory_space<vmem>>, vector<10x32x128xbf16>
    tpu.vector_store %arg10[%c0_51, %c1_52, %c0_53], %70 {strides = array<i32>} : memref<10x34x128xbf16, #tpu.memory_space<vmem>>, vector<10x32x128xbf16>,
    %cst_54 = arith.constant 0.000000e+00 : bf16
    %72 = vector.broadcast %cst_54 : bf16 to vector<10x1x128xbf16>
    %c0_55 = arith.constant 0 : index
    %c0_56 = arith.constant 0 : index
    %c0_57 = arith.constant 0 : index
    %73 = vector.load %arg10[%c0_55, %c0_56, %c0_57] : memref<10x34x128xbf16, #tpu.memory_space<vmem>>, vector<10x1x128xbf16>
    tpu.vector_store %arg10[%c0_55, %c0_56, %c0_57], %72 {strides = array<i32>} : memref<10x34x128xbf16, #tpu.memory_space<vmem>>, vector<10x1x128xbf16>,
    %c0_58 = arith.constant 0 : index
    %c33 = arith.constant 33 : index
    %c0_59 = arith.constant 0 : index
    %74 = vector.load %arg10[%c0_58, %c33, %c0_59] : memref<10x34x128xbf16, #tpu.memory_space<vmem>>, vector<10x1x128xbf16>
    tpu.vector_store %arg10[%c0_58, %c33, %c0_59], %72 {strides = array<i32>} : memref<10x34x128xbf16, #tpu.memory_space<vmem>>, vector<10x1x128xbf16>,
    %cst_60 = arith.constant 0.000000e+00 : bf16
    %75 = vector.broadcast %cst_60 : bf16 to vector<1x34x128xbf16>
    %c0_i32_61 = arith.constant 0 : i32
    %76 = arith.cmpi eq, %arg1, %c0_i32_61 : i32
    %77 = arith.extui %76 : i1 to i32
    %c0_i32_62 = arith.constant 0 : i32
    %78 = arith.cmpi ne, %77, %c0_i32_62 : i32
    scf.if %78 {
      %c0_124 = arith.constant 0 : index
      %c0_125 = arith.constant 0 : index
      %c0_126 = arith.constant 0 : index
      %125 = vector.load %arg10[%c0_124, %c0_125, %c0_126] : memref<10x34x128xbf16, #tpu.memory_space<vmem>>, vector<1x34x128xbf16>
      tpu.vector_store %arg10[%c0_124, %c0_125, %c0_126], %75 {strides = array<i32>} : memref<10x34x128xbf16, #tpu.memory_space<vmem>>, vector<1x34x128xbf16>,
    } else {
    }
    %c3_i32 = arith.constant 3 : i32
    %79 = arith.cmpi eq, %arg1, %c3_i32 : i32
    %80 = arith.extui %79 : i1 to i32
    %c0_i32_63 = arith.constant 0 : i32
    %81 = arith.cmpi ne, %80, %c0_i32_63 : i32
    scf.if %81 {
      %c9 = arith.constant 9 : index
      %c0_124 = arith.constant 0 : index
      %c0_125 = arith.constant 0 : index
      %125 = vector.load %arg10[%c9, %c0_124, %c0_125] : memref<10x34x128xbf16, #tpu.memory_space<vmem>>, vector<1x34x128xbf16>
      tpu.vector_store %arg10[%c9, %c0_124, %c0_125], %75 {strides = array<i32>} : memref<10x34x128xbf16, #tpu.memory_space<vmem>>, vector<1x34x128xbf16>,
    } else {
    }
    %c0_64 = arith.constant 0 : index
    %c0_65 = arith.constant 0 : index
    %c0_66 = arith.constant 0 : index
    %82 = vector.load %arg10[%c0_64, %c0_65, %c0_66] : memref<10x34x128xbf16, #tpu.memory_space<vmem>>, vector<8x32x128xbf16>
    %83 = vector.shape_cast %82 : vector<8x32x128xbf16> to vector<256x128xbf16>
    %c0_67 = arith.constant 0 : index
    %c0_68 = arith.constant 0 : index
    %84 = vector.load %arg12[%c0_67, %c0_68] : memref<256x1152xbf16, #tpu.memory_space<vmem>>, vector<256x128xbf16>
    tpu.vector_store %arg12[%c0_67, %c0_68], %83 {strides = array<i32>} : memref<256x1152xbf16, #tpu.memory_space<vmem>>, vector<256x128xbf16>,
    %c0_69 = arith.constant 0 : index
    %c1_70 = arith.constant 1 : index
    %c0_71 = arith.constant 0 : index
    %85 = vector.load %arg10[%c0_69, %c1_70, %c0_71] : memref<10x34x128xbf16, #tpu.memory_space<vmem>>, vector<8x32x128xbf16>
    %86 = vector.shape_cast %85 : vector<8x32x128xbf16> to vector<256x128xbf16>
    %c0_72 = arith.constant 0 : index
    %c128_73 = arith.constant 128 : index
    %87 = vector.load %arg12[%c0_72, %c128_73] : memref<256x1152xbf16, #tpu.memory_space<vmem>>, vector<256x128xbf16>
    tpu.vector_store %arg12[%c0_72, %c128_73], %86 {strides = array<i32>} : memref<256x1152xbf16, #tpu.memory_space<vmem>>, vector<256x128xbf16>,
    %c0_74 = arith.constant 0 : index
    %c2_75 = arith.constant 2 : index
    %c0_76 = arith.constant 0 : index
    %88 = vector.load %arg10[%c0_74, %c2_75, %c0_76] : memref<10x34x128xbf16, #tpu.memory_space<vmem>>, vector<8x32x128xbf16>
    %89 = vector.shape_cast %88 : vector<8x32x128xbf16> to vector<256x128xbf16>
    %c0_77 = arith.constant 0 : index
    %c256_78 = arith.constant 256 : index
    %90 = vector.load %arg12[%c0_77, %c256_78] : memref<256x1152xbf16, #tpu.memory_space<vmem>>, vector<256x128xbf16>
    tpu.vector_store %arg12[%c0_77, %c256_78], %89 {strides = array<i32>} : memref<256x1152xbf16, #tpu.memory_space<vmem>>, vector<256x128xbf16>,
    %c1_79 = arith.constant 1 : index
    %c0_80 = arith.constant 0 : index
    %c0_81 = arith.constant 0 : index
    %91 = vector.load %arg10[%c1_79, %c0_80, %c0_81] : memref<10x34x128xbf16, #tpu.memory_space<vmem>>, vector<8x32x128xbf16>
    %92 = vector.shape_cast %91 : vector<8x32x128xbf16> to vector<256x128xbf16>
    %c0_82 = arith.constant 0 : index
    %c384_83 = arith.constant 384 : index
    %93 = vector.load %arg12[%c0_82, %c384_83] : memref<256x1152xbf16, #tpu.memory_space<vmem>>, vector<256x128xbf16>
    tpu.vector_store %arg12[%c0_82, %c384_83], %92 {strides = array<i32>} : memref<256x1152xbf16, #tpu.memory_space<vmem>>, vector<256x128xbf16>,
    %c1_84 = arith.constant 1 : index
    %c1_85 = arith.constant 1 : index
    %c0_86 = arith.constant 0 : index
    %94 = vector.load %arg10[%c1_84, %c1_85, %c0_86] : memref<10x34x128xbf16, #tpu.memory_space<vmem>>, vector<8x32x128xbf16>
    %95 = vector.shape_cast %94 : vector<8x32x128xbf16> to vector<256x128xbf16>
    %c0_87 = arith.constant 0 : index
    %c512_88 = arith.constant 512 : index
    %96 = vector.load %arg12[%c0_87, %c512_88] : memref<256x1152xbf16, #tpu.memory_space<vmem>>, vector<256x128xbf16>
    tpu.vector_store %arg12[%c0_87, %c512_88], %95 {strides = array<i32>} : memref<256x1152xbf16, #tpu.memory_space<vmem>>, vector<256x128xbf16>,
    %c1_89 = arith.constant 1 : index
    %c2_90 = arith.constant 2 : index
    %c0_91 = arith.constant 0 : index
    %97 = vector.load %arg10[%c1_89, %c2_90, %c0_91] : memref<10x34x128xbf16, #tpu.memory_space<vmem>>, vector<8x32x128xbf16>
    %98 = vector.shape_cast %97 : vector<8x32x128xbf16> to vector<256x128xbf16>
    %c0_92 = arith.constant 0 : index
    %c640_93 = arith.constant 640 : index
    %99 = vector.load %arg12[%c0_92, %c640_93] : memref<256x1152xbf16, #tpu.memory_space<vmem>>, vector<256x128xbf16>
    tpu.vector_store %arg12[%c0_92, %c640_93], %98 {strides = array<i32>} : memref<256x1152xbf16, #tpu.memory_space<vmem>>, vector<256x128xbf16>,
    %c2_94 = arith.constant 2 : index
    %c0_95 = arith.constant 0 : index
    %c0_96 = arith.constant 0 : index
    %100 = vector.load %arg10[%c2_94, %c0_95, %c0_96] : memref<10x34x128xbf16, #tpu.memory_space<vmem>>, vector<8x32x128xbf16>
    %101 = vector.shape_cast %100 : vector<8x32x128xbf16> to vector<256x128xbf16>
    %c0_97 = arith.constant 0 : index
    %c768_98 = arith.constant 768 : index
    %102 = vector.load %arg12[%c0_97, %c768_98] : memref<256x1152xbf16, #tpu.memory_space<vmem>>, vector<256x128xbf16>
    tpu.vector_store %arg12[%c0_97, %c768_98], %101 {strides = array<i32>} : memref<256x1152xbf16, #tpu.memory_space<vmem>>, vector<256x128xbf16>,
    %c2_99 = arith.constant 2 : index
    %c1_100 = arith.constant 1 : index
    %c0_101 = arith.constant 0 : index
    %103 = vector.load %arg10[%c2_99, %c1_100, %c0_101] : memref<10x34x128xbf16, #tpu.memory_space<vmem>>, vector<8x32x128xbf16>
    %104 = vector.shape_cast %103 : vector<8x32x128xbf16> to vector<256x128xbf16>
    %c0_102 = arith.constant 0 : index
    %c896_103 = arith.constant 896 : index
    %105 = vector.load %arg12[%c0_102, %c896_103] : memref<256x1152xbf16, #tpu.memory_space<vmem>>, vector<256x128xbf16>
    tpu.vector_store %arg12[%c0_102, %c896_103], %104 {strides = array<i32>} : memref<256x1152xbf16, #tpu.memory_space<vmem>>, vector<256x128xbf16>,
    %c2_104 = arith.constant 2 : index
    %c2_105 = arith.constant 2 : index
    %c0_106 = arith.constant 0 : index
    %106 = vector.load %arg10[%c2_104, %c2_105, %c0_106] : memref<10x34x128xbf16, #tpu.memory_space<vmem>>, vector<8x32x128xbf16>
    %107 = vector.shape_cast %106 : vector<8x32x128xbf16> to vector<256x128xbf16>
    %c0_107 = arith.constant 0 : index
    %c1024_108 = arith.constant 1024 : index
    %108 = vector.load %arg12[%c0_107, %c1024_108] : memref<256x1152xbf16, #tpu.memory_space<vmem>>, vector<256x128xbf16>
    tpu.vector_store %arg12[%c0_107, %c1024_108], %107 {strides = array<i32>} : memref<256x1152xbf16, #tpu.memory_space<vmem>>, vector<256x128xbf16>,
    %c0_109 = arith.constant 0 : index
    %c0_110 = arith.constant 0 : index
    %109 = vector.load %arg12[%c0_109, %c0_110] : memref<256x1152xbf16, #tpu.memory_space<vmem>>, vector<256x1152xbf16>
    %c0_111 = arith.constant 0 : index
    %c0_112 = arith.constant 0 : index
    %110 = vector.load %arg6[%c0_111, %c0_112] : memref<1152x128xbf16, #tpu.memory_space<vmem>>, vector<1152x128xbf16>
    %cst_113 = arith.constant dense<0.000000e+00> : vector<256x128xf32>
    %111 = tpu.matmul %109, %110, %cst_113 {dimension_numbers = #tpu.dot_dimension_numbers<[1], [0], [0], [1], [0, 0, 1, 1], [], []>} : vector<256x1152xbf16>, vector<1152x128xbf16>, vector<256x128xf32> -> vector<256x128xf32>
    %c0_114 = arith.constant 0 : index
    %c0_115 = arith.constant 0 : index
    %112 = vector.load %arg7[%c0_114, %c0_115] : memref<1x128xf32, #tpu.memory_space<vmem>>, vector<1x128xf32>
    %113 = vector.broadcast %112 : vector<1x128xf32> to vector<256x128xf32>
    %114 = arith.mulf %111, %113 : vector<256x128xf32>
    %c0_116 = arith.constant 0 : index
    %c0_117 = arith.constant 0 : index
    %115 = vector.load %arg8[%c0_116, %c0_117] : memref<1x128xf32, #tpu.memory_space<vmem>>, vector<1x128xf32>
    %116 = vector.broadcast %115 : vector<1x128xf32> to vector<256x128xf32>
    %117 = arith.addf %114, %116 : vector<256x128xf32>
    %c0_118 = arith.constant 0 : index
    %c0_119 = arith.constant 0 : index
    %118 = vector.load %arg13[%c0_118, %c0_119] : memref<256x128xf32, #tpu.memory_space<vmem>>, vector<256x128xf32>
    %119 = arith.addf %117, %118 : vector<256x128xf32>
    %cst_120 = arith.constant 0.000000e+00 : f32
    %120 = vector.broadcast %cst_120 : f32 to vector<256x128xf32>
    %121 = arith.maximumf %119, %120 : vector<256x128xf32>
    %c0_121 = arith.constant 0 : index
    %c0_122 = arith.constant 0 : index
    %c0_123 = arith.constant 0 : index
    %122 = vector.load %arg9[%c0_121, %c0_122, %c0_123] : memref<1x256x128xf32, #tpu.memory_space<vmem>>, vector<1x256x128xf32>
    %123 = vector.shape_cast %122 : vector<1x256x128xf32> to vector<256x128xf32>
    %124 = vector.shape_cast %121 : vector<256x128xf32> to vector<1x256x128xf32>
    tpu.vector_store %arg9[%c0_121, %c0_122, %c0_123], %124 {strides = array<i32>} : memref<1x256x128xf32, #tpu.memory_space<vmem>>, vector<1x256x128xf32>,
    return
  }
  func.func @transform_0(%arg0: i32, %arg1: i32) -> (i32, i32, i32, i32) {
    %c0_i32 = arith.constant 0 : i32
    %c0_i32_0 = arith.constant 0 : i32
    %c0_i32_1 = arith.constant 0 : i32
    %c0_i32_2 = arith.constant 0 : i32
    return %arg0, %c0_i32, %c0_i32_0, %c0_i32_1 : i32, i32, i32, i32
  }
  func.func @transform_1(%arg0: i32, %arg1: i32) -> (i32, i32) {
    %c0_i32 = arith.constant 0 : i32
    %c0_i32_0 = arith.constant 0 : i32
    %c0_i32_1 = arith.constant 0 : i32
    return %c0_i32, %c0_i32_0 : i32, i32
  }
  func.func @transform_2(%arg0: i32, %arg1: i32) -> (i32, i32) {
    %c0_i32 = arith.constant 0 : i32
    %c0_i32_0 = arith.constant 0 : i32
    %c0_i32_1 = arith.constant 0 : i32
    return %c0_i32, %c0_i32_0 : i32, i32
  }
  func.func @transform_3(%arg0: i32, %arg1: i32) -> (i32, i32) {
    %c0_i32 = arith.constant 0 : i32
    %c0_i32_0 = arith.constant 0 : i32
    %c0_i32_1 = arith.constant 0 : i32
    return %c0_i32, %c0_i32_0 : i32, i32
  }
  func.func @transform_4(%arg0: i32, %arg1: i32) -> (i32, i32) {
    %c0_i32 = arith.constant 0 : i32
    %c0_i32_0 = arith.constant 0 : i32
    %c0_i32_1 = arith.constant 0 : i32
    return %c0_i32, %c0_i32_0 : i32, i32
  }
  func.func @transform_5(%arg0: i32, %arg1: i32) -> (i32, i32) {
    %c0_i32 = arith.constant 0 : i32
    %c0_i32_0 = arith.constant 0 : i32
    %c0_i32_1 = arith.constant 0 : i32
    return %c0_i32, %c0_i32_0 : i32, i32
  }
  func.func @transform_6(%arg0: i32, %arg1: i32) -> (i32, i32) {
    %c0_i32 = arith.constant 0 : i32
    %c0_i32_0 = arith.constant 0 : i32
    %c0_i32_1 = arith.constant 0 : i32
    return %c0_i32, %c0_i32_0 : i32, i32
  }
  func.func @transform_7(%arg0: i32, %arg1: i32) -> (i32, i32, i32) {
    %c0_i32 = arith.constant 0 : i32
    %c0_i32_0 = arith.constant 0 : i32
    return %arg0, %arg1, %c0_i32 : i32, i32, i32
  }
}

</mosaic_0001>

<bundles_post_ra>
// kernel: tpu_custom_call.1
= control target key start
LH: loop header
LB: loop body
LE: loop exit
PB: predicated region body
PF: predicated region fallthrough
CT: control target
= control target key end

     0   :  { %12 = vsyncpa [#allocation7], 0  ;;  %s17443_s0 = inlined_call_operand.vmem [shape: bf16[2,36,34,128], index: 0, kind: input, shape index: {}]   ;;  %s17444_s1 = inlined_call_operand.vmem [shape: bf16[1152,128], index: 1, kind: input, shape index: {}]   ;;  %s17445_s2 = inlined_call_operand.vmem [shape: f32[1,128], index: 2, kind: input, shape index: {}]   ;;  %s17446_s3 = inlined_call_operand.vmem [shape: f32[1,128], index: 3, kind: input, shape index: {}]   ;;  %s17447_s4 = inlined_call_operand.vmem [shape: bf16[1152,128], index: 4, kind: input, shape index: {}]   ;;  %s17448_s5 = inlined_call_operand.vmem [shape: f32[1,128], index: 5, kind: input, shape index: {}]   ;;  %s17449_s6 = inlined_call_operand.vmem [shape: f32[1,128], index: 6, kind: input, shape index: {}]   ;;  %s17450_s7 = inlined_call_operand.hbm [shape: f32[2,1024,128], index: 7, kind: output, shape index: {}]  }
   0x1   :  { %14 = vsyncpa [#allocation7 + $0x1], 0  ;;  %s13917_s24 = smov 0   ;;  %s13919_s25 = smov 0  }
   0x2   :  { %s13921_s26 = smov 0   ;;  %s13923_s27 = smov 0  }
   0x3   :  { %s13925_s28 = smov 0   ;;  %s13927_s29 = smov 0  }
   0x4   :  { %s13929_s30 = smov 0   ;;  %s13931_s8 = smov 0  }
   0x5 LB: > { %s11607_s9 = sadd.s32 4294967295, %s13869_s8   ;;  %s11608_s10 = sadd.s32 4294967294, %s13869_s8   ;;  %s13869_s8 = sphi %s13931_s8, %s20_s8   ;;  %s13865_s30 = sphi %s13929_s30, %s17581_s30   ;;  %s13861_s29 = sphi %s13927_s29, %s17580_s29   ;;  %s13857_s28 = sphi %s13925_s28, %s17579_s28   ;;  %s13853_s27 = sphi %s13923_s27, %s17578_s27   ;;  %s13849_s26 = sphi %s13921_s26, %s17577_s26   ;;  %s13845_s25 = sphi %s13919_s25, %s17576_s25   ;;  %s13841_s24 = sphi %s13917_s24, %s17575_s24  }
   0x6   : > { %s29_s11 = sadd.s32 1, %s13861_s29  ;;  %s32_s12 = sadd.s32 1, %s13865_s30 }
   0x7   : > { %p30_p0 = scmp.ge.s32.totalorder %s29_s11, 4  ;;  %p203_p1 = scmp.ne.s32.totalorder %s13849_s26, %s13845_s25 }
   0x8   : > { %p204_p2 = scmp.eq.s32.totalorder %s11607_s9, 7  ;;  %p209_p5 = scmp.ne.s32.totalorder %s13845_s25, %s13841_s24 }
   0x9   : > { %s17583_s11 = smov (%p30_p0, %s29_s11), 0  ;;  %s17585_s12 = smov (!%p30_p0, %s32_s12), %s13865_s30 }
   0xa   : > { %17459 = sst [smem:[#allocation9_spill]] %s17583_s11  ;;  %s189_s13 = ssub.s32 %s13861_s29, %s17583_s11 }
   0xb   : > { %p13968_p3 = por %p204_p2, %p203_p1  ;;  %p34_p4 = scmp.ge.s32.totalorder %s17585_s12, 2 }
   0xc   : > { %p210_p6 = scmp.eq.s32.totalorder %s11608_s10, 7  ;;  %p11611_p7 = scmp.ge.s32.totalorder %s13869_s8, 1 }
   0xd   : > { %s17587_s12 = smov (%p34_p4, %s17585_s12), 0  ;;  %p254_p9 = scmp.lt.s32.totalorder %s13869_s8, 9 }
   0xe   : > { %17461 = sst [smem:[#allocation10_spill]] %s17587_s12  ;;  %p13977_p8 = por %p210_p6, %p209_p5 }
   0xf   : > { %s188_s16 = ssub.s32 %s13865_s30, %s17587_s12  ;;  %s193_s17 = sadd.s32 1, %s13849_s26 }
  0x10   : > { %s190_s18 = sor.u32 %s189_s13, %s188_s16  ;;  %p255_p10 = pnand %p11611_p7, %p254_p9 }
  0x11   : > { %p191_p11 = scmp.eq.s32.totalorder %s190_s18, 0 }
  0x12   : > { %258 = sbr.rel (%p255_p10) target bundleno = 1493 (0x5d5), region = 48 }
  0x13   : > { %s13986_s19 = scalar_select %p191_p11, %s13849_s26, %s193_s17  }
  0x17   : > { %s17451_s20 = sand.u32 1, %s13845_s25   ;;  %v13871_v0 = vmov 0   ;;  %v13197_v1 = vld [vmem:[%s17444_s1 + $0x38] sm:$0xff]   ;;  %v13199_v3 = vld [vmem:[%s17444_s1 + $0x30] sm:$0xff]   ;;  %v13201_v5 = vld [vmem:[%s17444_s1 + $0x28] sm:$0xff]   ;;  %p286_p12 = scmp.lt.s32.totalorder %s13857_s28, 1 }
  0x18   : > { %s13991_s21 = sshll.u32 %s17451_s20, 8  ;;  %4887 = vmatprep.subr.bf16.mxu0 %v13871_v0  ;;  %5080 = vmatprep.subr.bf16.mxu1 %v13871_v0  ;;  %v13198_v2 = vld [vmem:[%s17444_s1 + $0xb8] sm:$0xff]   ;;  %v13200_v4 = vld [vmem:[%s17444_s1 + $0xb0] sm:$0xff]   ;;  %v13202_v6 = vld [vmem:[%s17444_s1 + $0xa8] sm:$0xff]   ;;  %s12475_s20 = smul.u32 160, %s13853_s27  ;;  %vm1050_vm0 = vcmask 1042432  }
  0x19   : > { %4888 = vmatpush1.bf16.msra.mxu0 %v13197_v1  ;;  %5081 = vmatpush1.bf16.msra.mxu1 %v13198_v2  ;;  %v13203_v7 = vld [vmem:[%s17444_s1 + $0x20] sm:$0xff]   ;;  %v13205_v9 = vld [vmem:[%s17444_s1 + $0x18] sm:$0xff]   ;;  %v13207_v11 = vld [vmem:[%s17444_s1 + $0x10] sm:$0xff]   ;;  %s287_s17 = scalar_select %p286_p12, %s13857_s28, 1  ;;  %vm1051_vm1 = vcmask 1046532   ;;  %v17463_v41 = vmov 0 }
  0x1a   : > { %4889 = vmatprep.subr.bf16.mxu0 %v13871_v0  ;;  %5082 = vmatprep.subr.bf16.mxu1 %v13871_v0  ;;  %v13204_v8 = vld [vmem:[%s17444_s1 + $0xa0] sm:$0xff]   ;;  %v13206_v10 = vld [vmem:[%s17444_s1 + $0x98] sm:$0xff]   ;;  %v13208_v12 = vld [vmem:[%s17444_s1 + $0x90] sm:$0xff]   ;;  %vm427_vm2 = vsmask.f32 3328  ;;  %v17466_v44 = vmov 0 }
  0x1b   : > { %v13209_v13 = vld [vmem:[%s17444_s1 + $0x8] sm:$0xff]   ;;  %s13120_s10 = smul.u32 720, %s287_s17  ;;  %v13211_v15 = vld [vmem:[%s17444_s1] sm:$0xff]   ;;  %v13213_v17 = vld [vmem:[%s17444_s1 + $0x78] sm:$0xff]   ;;  %vm428_vm3 = vsmask.f32 7440 }
  0x1c   : > { %v13210_v14 = vld [vmem:[%s17444_s1 + $0x88] sm:$0xff]   ;;  %v13212_v16 = vld [vmem:[%s17444_s1 + $0x80] sm:$0xff]   ;;  %v13214_v18 = vld [vmem:[%s17444_s1 + $0xf8] sm:$0xff]   ;;  %vm6138_vm6 = vsmask.f32 256  ;;  %vm6541_vm8 = vcmask 1043456  }
  0x1d   : > { %4890 = vmatpush1.bf16.msra.mxu0 %v13199_v3  ;;  %5083 = vmatpush1.bf16.msra.mxu1 %v13200_v4  ;;  %s290_s23 = scalar_lea.vmem %s17443_s0, %s13120_s10  ;;  %v13215_v21 = vld [vmem:[%s17444_s1 + $0x70] sm:$0xff]   ;;  %vm14091_vm4 = vmor %vm1050_vm0, %vm1051_vm1  ;;  %v13217_v43 = vld [vmem:[%s17444_s1 + $0x68] sm:$0xff]   ;;  %vm6139_vm7 = vsmask.f32 4368  ;;  %vm6542_vm9 = vsmask.f32 7938 }
  0x1e   : > { %4891 = vmatprep.subr.bf16.mxu0 %v13871_v0  ;;  %5084 = vmatprep.subr.bf16.mxu1 %v13871_v0  ;;  %s14063_s13 = scalar_lea.vmem %s290_s23, %s12475_s20  ;;  %v13216_v25 = vld [vmem:[%s17444_s1 + $0xf0] sm:$0xff]   ;;  %v17464_v41 = vsel %vm14091_vm4, 4294967295, %v17463_v41  ;;  %vm14101_vm5 = vmor %vm427_vm2, %vm428_vm3  ;;  %v13218_v53 = vld [vmem:[%s17444_s1 + $0xe8] sm:$0xff]   ;;  %vm6550_vm10 = vcmask 1040384   ;;  %s15936_s9 = scalar_lea.vmem [#allocation6], %s13991_s21 }
  0x1f   : > { %v297_v19 = vld [vmem:[%s14063_s13] sm:$0xf]  ;;  %v298_v20 = vld [vmem:[%s14063_s13 + $0x4] sm:$0xf]  ;;  %v379_v24 = vld [vmem:[%s14063_s13 + $0x8] sm:$0xf] }
  0x20   : > { %337 = vst [vmem:[#allocation3] sm:$0xf] %v297_v19  ;;  %338 = vst [vmem:[#allocation3 + $0x24] sm:$0xf] %v298_v20  ;;  %v377_v22 = vld [vmem:[%s14063_s13] sm:$0xf] }
  0x21   : > { %4892 = vmatpush1.bf16.msra.mxu0 %v13201_v5  ;;  %5085 = vmatpush1.bf16.msra.mxu1 %v13202_v6  ;;  %v378_v23 = vld [vmem:[%s14063_s13 + $0x4] sm:$0xf]  ;;  %v431_v26 = vshrl.u32 %v377_v22, 16  ;;  %v434_v27 = vshll.u32 %v377_v22, 16  ;;  %v450_v30 = vshll.u32 %v379_v24, 16  ;;  %v454_v31 = vshrl.u32 %v379_v24, 16  ;;  %vm15573_vm11 = vmand %vm6541_vm8, %vm6542_vm9 }
  0x22   : > { %4893 = vmatprep.subr.bf16.mxu0 %v13871_v0  ;;  %5086 = vmatprep.subr.bf16.mxu1 %v13871_v0  ;;  %v440_v28 = vshll.u32 %v378_v23, 16  ;;  %v444_v29 = vshrl.u32 %v378_v23, 16  ;;  %v950_v32 = vld [vmem:[%s14063_s13] sm:$0xe]  ;;  %v951_v35 = vld [vmem:[%s14063_s13 + $0x4] sm:$0xf]  ;;  %vm15580_vm12 = vmor %vm6138_vm6, %vm6139_vm7 }
  0x23   : > { %v433_v33 = vrot.slane %v431_v26, 4  ;;  %v436_v34 = vrot.slane %v434_v27, 5  ;;  %v952_v36 = vld [vmem:[%s14063_s13 + $0x8] sm:$0xf]  ;;  %v452_v39 = vrot.slane %v450_v30, 5  ;;  %v456_v40 = vrot.slane %v454_v31, 4  ;;  %vm15587_vm13 = vmand %vm6550_vm10, %vm6138_vm6 }
  0x24   : > { %v442_v37 = vrot.slane %v440_v28, 5  ;;  %v446_v38 = vrot.slane %v444_v29, 4  ;;  %17465 = vst [vmem:[#allocation11_spill] sm:$0xff] %v17464_v41  ;;  %v11629_v42 = vld [vmem:[%s14063_s13 + $0x14] sm:$0xf]  ;;  %v17467_v44 = vsel %vm14101_vm5, 4294967295, %v17466_v44  ;;  %vm15616_vm14 = vmand %vm6550_vm10, %vm6542_vm9 }
  0x25   : > { %4894 = vmatpush1.bf16.msra.mxu0 %v13203_v7  ;;  %5087 = vmatpush1.bf16.msra.mxu1 %v13204_v8  ;;  %17468 = vst [vmem:[#allocation12_spill] sm:$0xff] %v17467_v44  ;;  %v437_v45 = vor.u32 %v436_v34, %v433_v33  ;;  %v11617_v46 = vrot.slane %v950_v32, 9  ;;  %v1055_v47 = vrot.slane %v951_v35, 5  ;;  %v1058_v48 = vrot.slane %v952_v36, 5  ;;  %v11630_v49 = vld [vmem:[%s14063_s13 + $0x18] sm:$0xf] }
  0x26   : > { %4895 = vmatprep.subr.bf16.mxu0 %v13871_v0  ;;  %5088 = vmatprep.subr.bf16.mxu1 %v13871_v0  ;;  %1307 = vst [vmem:[#allocation3 + $0xc] sm:$0xf] %v11629_v42  ;;  %v447_v50 = vor.u32 %v446_v38, %v442_v37  ;;  %v457_v51 = vor.u32 %v456_v40, %v452_v39  ;;  %1308 = vst [vmem:[#allocation3 + $0x30] sm:$0xf] %v11630_v49  ;;  %v299_v52 = vld [vmem:[%s14063_s13 + $0x8] sm:$0xf] }
  0x27   : > { %v438_v54 = vrot.slane %v437_v45, 4  ;;  %v1056_v55 = vsel %vm14091_vm4, %v11617_v46, %v1055_v47  ;;  %v1057_v56 = vrot.slane %v1055_v47, 4  ;;  %v1060_v57 = vrot.slane %v1058_v48, 4  ;;  %v300_v58 = vld [vmem:[%s14063_s13 + $0xc] sm:$0xf]  ;;  %v13219_v59 = vld [vmem:[%s17444_s1 + $0x60] sm:$0xff]  }
  0x28   : > { %339 = vst [vmem:[#allocation3 + $0x48] sm:$0xf] %v299_v52  ;;  %v448_v60 = vrot.slane %v447_v50, 4  ;;  %v458_v61 = vrot.slane %v457_v51, 4  ;;  %1223 = vst [vmem:[#allocation3 + $0x8] sm:$0xf] %v1056_v55 }
  0x29   : > { %4896 = vmatpush1.bf16.msra.mxu0 %v13205_v9  ;;  %5089 = vmatpush1.bf16.msra.mxu1 %v13206_v10  ;;  %340 = vst [vmem:[#allocation3 + $0x6c] sm:$0xf] %v300_v58  ;;  %v380_v62 = vld [vmem:[%s14063_s13 + $0xc] sm:$0xf]  ;;  %v381_v63 = vld [vmem:[%s14063_s13 + $0x10] sm:$0x1]  ;;  %v443_v1 = vsel %vm14101_vm5, %v438_v54, %v442_v37  ;;  %v1059_v2 = vsel %vm14091_vm4, %v1057_v56, %v1058_v48 }
  0x2a   : > { %4897 = vmatprep.subr.bf16.mxu0 %v13871_v0  ;;  %5090 = vmatprep.subr.bf16.mxu1 %v13871_v0  ;;  %v460_v3 = vshll.u32 %v380_v62, 16  ;;  %v464_v4 = vshrl.u32 %v380_v62, 16  ;;  %v953_v5 = vld [vmem:[%s14063_s13 + $0xc] sm:$0xf]  ;;  %v954_v6 = vld [vmem:[%s14063_s13 + $0x10] sm:$0x1]  ;;  %v453_v8 = vsel %vm14101_vm5, %v448_v60, %v452_v39 }
  0x2b   : > { %v13220_v7 = vld [vmem:[%s17444_s1 + $0xe0] sm:$0xff]   ;;  %910 = vst [vmem:[#allocation3 + $0x4] sm:$0xf] %v443_v1  ;;  %1224 = vst [vmem:[#allocation3 + $0x2c] sm:$0xf] %v1059_v2  ;;  %v470_v9 = vshll.u32 %v381_v63, 16 }
  0x2c   : > { %v1061_v10 = vrot.slane %v953_v5, 5  ;;  %911 = vst [vmem:[#allocation3 + $0x28] sm:$0xf] %v453_v8  ;;  %v301_v19 = vld [vmem:[%s14063_s13 + $0x14] sm:$0xf]  ;;  %v13222_v31 = vld [vmem:[%s17444_s1 + $0xd8] sm:$0xff]  }
  0x2d   : > { %4898 = vmatpush1.bf16.msra.mxu0 %v13207_v11  ;;  %5091 = vmatpush1.bf16.msra.mxu1 %v13208_v12  ;;  %v1064_v11 = vrot.slane %v954_v6, 5  ;;  %v11631_v12 = vld [vmem:[%s14063_s13 + $0x1c] sm:$0xf]  ;;  %v302_v22 = vld [vmem:[%s14063_s13 + $0x18] sm:$0xf]  ;;  %v13223_v35 = vld [vmem:[%s17444_s1 + $0x50] sm:$0xff]  }
  0x2e   : > { %4899 = vmatprep.subr.bf16.mxu0 %v13871_v0  ;;  %5092 = vmatprep.subr.bf16.mxu1 %v13871_v0  ;;  %1309 = vst [vmem:[#allocation3 + $0x54] sm:$0xf] %v11631_v12  ;;  %341 = vst [vmem:[#allocation3 + $0x90] sm:$0xf] %v301_v19  ;;  %v382_v23 = vld [vmem:[%s14063_s13 + $0x14] sm:$0xf] }
  0x2f   : > { %v383_v24 = vld [vmem:[%s14063_s13 + $0x18] sm:$0xf]  ;;  %342 = vst [vmem:[#allocation3 + $0xb4] sm:$0xf] %v302_v22  ;;  %v14149_v27 = vld [vmem:[%s14063_s13 + $0x1c] sm:$0xf] }
  0x30   : > { %v475_v28 = vshrl.u32 %v382_v23, 16  ;;  %v478_v29 = vshll.u32 %v382_v23, 16  ;;  %v484_v30 = vshll.u32 %v383_v24, 16  ;;  %v488_v33 = vshrl.u32 %v383_v24, 16  ;;  %v955_v39 = vld [vmem:[%s14063_s13 + $0x14] sm:$0xe] }
  0x31   : > { %4900 = vmatpush1.bf16.msra.mxu0 %v13209_v13  ;;  %5093 = vmatpush1.bf16.msra.mxu1 %v13210_v14  ;;  %v462_v13 = vrot.slane %v460_v3, 5  ;;  %v466_v14 = vrot.slane %v464_v4, 4  ;;  %v494_v34 = vshll.u32 %v14149_v27, 16  ;;  %v13224_v40 = vld [vmem:[%s17444_s1 + $0xd0] sm:$0xff]   ;;  %v498_v48 = vshrl.u32 %v14149_v27, 16  ;;  %v13225_v60 = vld [vmem:[%s17444_s1 + $0x48] sm:$0xff]  }
  0x32   : > { %4901 = vmatprep.subr.bf16.mxu0 %v13871_v0  ;;  %5094 = vmatprep.subr.bf16.mxu1 %v13871_v0  ;;  %v477_v36 = vrot.slane %v475_v28, 4  ;;  %v480_v37 = vrot.slane %v478_v29, 5  ;;  %v486_v38 = vrot.slane %v484_v30, 5  ;;  %v11618_v49 = vrot.slane %v955_v39, 9  ;;  %v13234_v50 = vld [vmem:[#allocation3 + $0xc] ss:$36 sps:$4 sm:$0xff]  }
  0x33   : > { %v463_v20 = vsel %vm14101_vm5, %v458_v61, %v462_v13  ;;  %v13231_v45 = vld [vmem:[#allocation3 + $0x4] ss:$36 sps:$4 sm:$0xff]   ;;  %v14166_v47 = vrot.slane %v494_v34, 5  ;;  %v956_v52 = vld [vmem:[%s14063_s13 + $0x18] sm:$0xf]  ;;  %5112 = vmatprep.mubr.bf16.mxu1 %v13234_v50  ;;  %v500_v8 = vrot.slane %v498_v48, 4 }
  0x34   : > { %912 = vst [vmem:[#allocation3 + $0x4c] sm:$0xf] %v463_v20  ;;  %v481_v46 = vor.u32 %v480_v37, %v477_v36  ;;  %4919 = vmatprep.mubr.bf16.mxu0 %v13231_v45  ;;  %v1068_v55 = vrot.slane %v956_v52, 5  ;;  %v13226_v61 = vld [vmem:[%s17444_s1 + $0xc8] sm:$0xff]   ;;  %v303_v3 = vld [vmem:[%s14063_s13 + $0x1c] sm:$0xf] }
  0x35   : > { %4902 = vmatpush1.bf16.msra.mxu0 %v13211_v15  ;;  %5095 = vmatpush1.bf16.msra.mxu1 %v13212_v16  ;;  %v11632_v15 = vld [vmem:[%s14063_s13 + $0x20] sm:$0xf]  ;;  %v472_v16 = vrot.slane %v470_v9, 5  ;;  %343 = vst [vmem:[#allocation3 + $0xd8] sm:$0xf] %v303_v3  ;;  %v13235_v36 = vld [vmem:[%s17444_s1 + $0x138] sm:$0xff]  }
  0x36   : > { %4903 = vmatprep.subr.bf16.mxu0 %v13871_v0  ;;  %5096 = vmatprep.subr.bf16.mxu1 %v13871_v0  ;;  %1310 = vst [vmem:[#allocation3 + $0x78] sm:$0xf] %v11632_v15  ;;  %v482_v54 = vrot.slane %v481_v46, 4  ;;  %v1069_v63 = vsel %vm14091_vm4, %v11618_v49, %v1068_v55  ;;  %v1070_v1 = vrot.slane %v1068_v55, 4  ;;  %v304_v4 = vld [vmem:[%s14063_s13 + $0x20] sm:$0xf] }
  0x37   : > { %1227 = vst [vmem:[#allocation3 + $0x98] sm:$0xf] %v1069_v63  ;;  %344 = vst [vmem:[#allocation3 + $0xfc] sm:$0xf] %v304_v4  ;;  %v385_v6 = vld [vmem:[%s14063_s13 + $0x20] sm:$0xf] }
  0x38   : > { %v487_v62 = vsel %vm14101_vm5, %v482_v54, %v486_v38  ;;  %v13227_v9 = vld [vmem:[%s17444_s1 + $0x40] sm:$0xff]   ;;  %v13229_v19 = vld [vmem:[#allocation3] ss:$36 sps:$4 sm:$0xff]   ;;  %v11636_v23 = vld [vmem:[%s14063_s13 + $0x34] sm:$0xf]  ;;  %p12225_p13 = scmp.ne.s32.totalorder %s13853_s27, 0 }
  0x39   : > { %4904 = vmatpush2.bf16.msra.mxu0 %v13213_v17  ;;  %5097 = vmatpush2.bf16.msra.mxu1 %v13214_v18  ;;  %v1062_v17 = vsel %vm14091_vm4, %v1060_v57, %v1061_v10  ;;  %v1063_v18 = vrot.slane %v1061_v10, 4  ;;  %v11633_v57 = vld [vmem:[%s14063_s13 + $0x28] sm:$0xf]  ;;  %914 = vst [vmem:[#allocation3 + $0x94] sm:$0xf] %v487_v62  ;;  %v504_v10 = vshll.u32 %v385_v6, 16 }
  0x3a   : > { %4905 = vmatprep.subr.bf16.mxu0 %v13871_v0  ;;  %5098 = vmatprep.subr.bf16.mxu1 %v13871_v0  ;;  %1225 = vst [vmem:[#allocation3 + $0x50] sm:$0xf] %v1062_v17  ;;  %1311 = vst [vmem:[#allocation3 + $0x9c] sm:$0xf] %v11633_v57  ;;  %v958_v15 = vld [vmem:[%s14063_s13 + $0x20] sm:$0xf] }
  0x3b   : > { %v1065_v26 = vsel %vm14091_vm4, %v1063_v18, %v1064_v11  ;;  %v508_v11 = vshrl.u32 %v385_v6, 16  ;;  %v11635_v17 = vld [vmem:[%s14063_s13 + $0x30] sm:$0xf]  ;;  %v13228_v18 = vld [vmem:[%s17444_s1 + $0xc0] sm:$0xff]   ;;  %v506_v20 = vrot.slane %v504_v10, 5  ;;  %v1074_v22 = vrot.slane %v958_v15, 5 }
  0x3c   : > { %1226 = vst [vmem:[#allocation3 + $0x74] sm:$0xf] %v1065_v26  ;;  %1313 = vst [vmem:[#allocation3 + $0xe4] sm:$0xf] %v11635_v17  ;;  %v13232_v24 = vld [vmem:[#allocation3 + $0x8] ss:$36 sps:$4 sm:$0xff]  }
  0x3d   : > { %4906 = vmatpush2.bf16.msra.mxu0 %v13215_v21  ;;  %5099 = vmatpush2.bf16.msra.mxu1 %v13216_v25  ;;  %v467_v21 = vor.u32 %v466_v14, %v462_v13  ;;  %v13221_v25 = vld [vmem:[%s17444_s1 + $0x58] sm:$0xff]   ;;  %v501_v14 = vor.u32 %v500_v8, %v14166_v47  ;;  %1314 = vst [vmem:[#allocation3 + $0x108] sm:$0xf] %v11636_v23  ;;  %v305_v27 = vld [vmem:[%s14063_s13 + $0x28] sm:$0xf]  ;;  %v3201_v48 = vld [vmem:[#allocation3 + $0x48] sm:$0xff] }
  0x3e   : > { %4907 = vmatprep.subr.bf16.mxu0 %v13871_v0  ;;  %5100 = vmatprep.subr.bf16.mxu1 %v13871_v0  ;;  %v306_v28 = vld [vmem:[%s14063_s13 + $0x2c] sm:$0xf]  ;;  %v13238_v29 = vld [vmem:[#allocation3 + $0x54] ss:$36 sps:$4 sm:$0xff]   ;;  %345 = vst [vmem:[#allocation3 + $0x120] sm:$0xf] %v305_v27 }
  0x3f   : > { %v468_v32 = vrot.slane %v467_v21, 4  ;;  %v510_v21 = vrot.slane %v508_v11, 4  ;;  %346 = vst [vmem:[#allocation3 + $0x144] sm:$0xf] %v306_v28  ;;  %v387_v34 = vld [vmem:[%s14063_s13 + $0x28] sm:$0xf] }
  0x40   : > { %v519_v39 = vshrl.u32 %v387_v34, 16  ;;  %v389_v45 = vld [vmem:[%s14063_s13 + $0x30] sm:$0xf]  ;;  %v11638_v3 = vld [vmem:[%s14063_s13 + $0x40] sm:$0xf]  ;;  %v3211_v28 = vld [vmem:[#allocation3 + $0x90] sm:$0xff] }
  0x41   : > { %4908 = vmatpush2.bf16.msra.mxu0 %v13217_v43  ;;  %5101 = vmatpush2.bf16.msra.mxu1 %v13218_v53  ;;  %v473_v42 = vsel %vm14101_vm5, %v468_v32, %v472_v16  ;;  %v490_v43 = vrot.slane %v488_v33, 4  ;;  %v957_v53 = vld [vmem:[%s14063_s13 + $0x1c] sm:$0xf]  ;;  %v959_v16 = vld [vmem:[%s14063_s13 + $0x24] sm:$0x1]  ;;  %v511_v30 = vor.u32 %v510_v21, %v506_v20  ;;  %v1076_v33 = vrot.slane %v1074_v22, 4 }
  0x42   : > { %4909 = vmatprep.subr.bf16.mxu0 %v13871_v0  ;;  %5102 = vmatprep.subr.bf16.mxu1 %v13871_v0  ;;  %913 = vst [vmem:[#allocation3 + $0x70] sm:$0xf] %v473_v42  ;;  %v1071_v56 = vrot.slane %v957_v53, 5  ;;  %v1077_v26 = vrot.slane %v959_v16, 5  ;;  %v13241_v49 = vld [vmem:[%s17444_s1 + $0x130] sm:$0xff]   ;;  %v521_v50 = vrot.slane %v519_v39, 4 }
  0x43   : > { %v491_v51 = vor.u32 %v490_v43, %v486_v38  ;;  %v512_v42 = vrot.slane %v511_v30, 4  ;;  %v538_v57 = vshll.u32 %v389_v45, 16  ;;  %1316 = vst [vmem:[#allocation3 + $0x150] sm:$0xf] %v11638_v3  ;;  %v390_v15 = vld [vmem:[%s14063_s13 + $0x34] sm:$0xf] }
  0x44   : > { %v1072_v5 = vsel %vm14091_vm4, %v1070_v1, %v1071_v56  ;;  %v1073_v13 = vrot.slane %v1071_v56, 4  ;;  %v1078_v43 = vsel %vm14091_vm4, %v1076_v33, %v1077_v26  ;;  %v960_v56 = vld [vmem:[%s14063_s13 + $0x28] sm:$0xe]  ;;  %v391_v23 = vld [vmem:[%s14063_s13 + $0x38] sm:$0x1]  ;;  %v13257_v30 = vld [vmem:[%s17444_s1 + $0x120] sm:$0xff]  }
  0x45   : > { %4910 = vmatpush2.bf16.msra.mxu0 %v13219_v59  ;;  %5103 = vmatpush2.bf16.msra.mxu1 %v13220_v7  ;;  %v492_v58 = vrot.slane %v491_v51, 4  ;;  %v11634_v59 = vld [vmem:[%s14063_s13 + $0x2c] sm:$0xf]  ;;  %v386_v7 = vld [vmem:[%s14063_s13 + $0x24] sm:$0x1]  ;;  %v11619_v63 = vrot.slane %v960_v56, 9 }
  0x46   : > { %4911 = vmatprep.subr.bf16.mxu0 %v13871_v0  ;;  %5104 = vmatprep.subr.bf16.mxu1 %v13871_v0  ;;  %1312 = vst [vmem:[#allocation3 + $0xc0] sm:$0xf] %v11634_v59  ;;  %1228 = vst [vmem:[#allocation3 + $0xbc] sm:$0xf] %v1072_v5  ;;  %v514_v12 = vshll.u32 %v386_v7, 16  ;;  %v1075_v32 = vsel %vm14091_vm4, %v1073_v13, %v1074_v22  ;;  %v540_v7 = vrot.slane %v538_v57, 5 }
  0x47   : > { %v497_v2 = vsel %vm14101_vm5, %v492_v58, %v14166_v47  ;;  %1229 = vst [vmem:[#allocation3 + $0xe0] sm:$0xf] %v1075_v32  ;;  %1230 = vst [vmem:[#allocation3 + $0x104] sm:$0xf] %v1078_v43  ;;  %v542_v58 = vshrl.u32 %v389_v45, 16  ;;  %v548_v22 = vshll.u32 %v390_v15, 16 }
  0x48   : > { %915 = vst [vmem:[#allocation3 + $0xb8] sm:$0xf] %v497_v2  ;;  %v961_v59 = vld [vmem:[%s14063_s13 + $0x2c] sm:$0xf]  ;;  %v11637_v2 = vld [vmem:[%s14063_s13 + $0x3c] sm:$0xf] }
  0x49   : > { %4912 = vmatpush2.bf16.msra.mxu0 %v13221_v25  ;;  %5105 = vmatpush2.bf16.msra.mxu1 %v13222_v31  ;;  %v502_v25 = vrot.slane %v501_v14, 4  ;;  %v516_v31 = vrot.slane %v514_v12, 5  ;;  %v13236_v37 = vld [vmem:[#allocation3 + $0x4c] ss:$36 sps:$4 sm:$0xff]   ;;  %v1081_v1 = vrot.slane %v961_v59, 5  ;;  %v544_v16 = vrot.slane %v542_v58, 4 }
  0x4a   : > { %4913 = vmatprep.subr.bf16.mxu0 %v13871_v0  ;;  %5106 = vmatprep.subr.bf16.mxu1 %v13871_v0  ;;  %v3206_v51 = vld [vmem:[#allocation3 + $0x6c] sm:$0xff]  ;;  %1315 = vst [vmem:[#allocation3 + $0x12c] sm:$0xf] %v11637_v2  ;;  %v307_v13 = vld [vmem:[%s14063_s13 + $0x30] sm:$0xf]  ;;  %v558_v32 = vshll.u32 %v391_v23, 16 }
  0x4b   : > { %v507_v38 = vsel %vm14101_vm5, %v502_v25, %v506_v20  ;;  %v517_v52 = vsel %vm14101_vm5, %v512_v42, %v516_v31  ;;  %v11940_v4 = vcombine.low %v3201_v48, %v3206_v51  ;;  %v13240_v5 = vld [vmem:[#allocation3 + $0x50] ss:$36 sps:$4 sm:$0xff]   ;;  %v1082_v11 = vsel %vm14091_vm4, %v11619_v63, %v1081_v1  ;;  %v308_v14 = vld [vmem:[%s14063_s13 + $0x34] sm:$0xf]  ;;  %347 = vst [vmem:[#allocation3 + $0x168] sm:$0xf] %v307_v13 }
  0x4c   : > { %916 = vst [vmem:[#allocation3 + $0xdc] sm:$0xf] %v507_v38  ;;  %917 = vst [vmem:[#allocation3 + $0x100] sm:$0xf] %v517_v52  ;;  %v1083_v12 = vrot.slane %v1081_v1, 4  ;;  %v552_v25 = vshrl.u32 %v390_v15, 16 }
  0x4d   : > { %4914 = vmatpush2.bf16.msra.mxu0 %v13223_v35  ;;  %5107 = vmatpush2.bf16.msra.mxu1 %v13224_v40  ;;  %v388_v35 = vld [vmem:[%s14063_s13 + $0x2c] sm:$0xf]  ;;  %v522_v40 = vshll.u32 %v387_v34, 16  ;;  %1231 = vst [vmem:[#allocation3 + $0x128] sm:$0xf] %v1082_v11  ;;  %v550_v31 = vrot.slane %v548_v22, 5 }
  0x4e   : > { %4915 = vmatprep.subr.bf16.mxu0 %v13871_v0  ;;  %5108 = vmatprep.subr.bf16.mxu1 %v13871_v0  ;;  %v528_v46 = vshll.u32 %v388_v35, 16  ;;  %v532_v47 = vshrl.u32 %v388_v35, 16  ;;  %v13244_v17 = vld [vmem:[#allocation3 + $0x9c] ss:$36 sps:$4 sm:$0xff]   ;;  %348 = vst [vmem:[#allocation3 + $0x18c] sm:$0xf] %v308_v14 }
  0x4f   : > { %v524_v53 = vrot.slane %v522_v40, 5  ;;  %v13242_v6 = vld [vmem:[#allocation3 + $0x94] ss:$36 sps:$4 sm:$0xff]   ;;  %v963_v26 = vld [vmem:[%s14063_s13 + $0x34] sm:$0xf]  ;;  %v554_v35 = vrot.slane %v552_v25, 4 }
  0x50   : > { %v530_v54 = vrot.slane %v528_v46, 5  ;;  %v534_v55 = vrot.slane %v532_v47, 4  ;;  %v1087_v33 = vrot.slane %v963_v26, 5  ;;  %v560_v38 = vrot.slane %v558_v32, 5  ;;  %v11640_v43 = vld [vmem:[%s14063_s13 + $0x48] sm:$0xf] }
  0x51   : > { %4916 = vmatpush2.bf16.msra.mxu0 %v13225_v60  ;;  %5109 = vmatpush2.bf16.msra.mxu1 %v13226_v61  ;;  %v962_v60 = vld [vmem:[%s14063_s13 + $0x30] sm:$0xf]  ;;  %v525_v61 = vor.u32 %v524_v53, %v521_v50  ;;  %v13292_v45 = vld [vmem:[%s17444_s1 + $0x1b8] sm:$0xff]   ;;  %v13246_v46 = vld [vmem:[#allocation3 + $0x98] ss:$36 sps:$4 sm:$0xff]  }
  0x52   : > { %4917 = vmatprep.subr.bf16.mxu0 %v13871_v0  ;;  %5110 = vmatprep.subr.bf16.mxu1 %v13871_v0  ;;  %v535_v62 = vor.u32 %v534_v55, %v530_v54  ;;  %v1084_v8 = vrot.slane %v962_v60, 5  ;;  %v1089_v40 = vrot.slane %v1087_v33, 4  ;;  %1318 = vst [vmem:[#allocation3 + $0x198] sm:$0xf] %v11640_v43  ;;  %v309_v50 = vld [vmem:[%s14063_s13 + $0x3c] sm:$0xf] }
  0x53   : > { %v13248_v47 = vld [vmem:[#allocation3 + $0xdc] ss:$36 sps:$4 sm:$0xff]   ;;  %v310_v53 = vld [vmem:[%s14063_s13 + $0x40] sm:$0xf]  ;;  %349 = vst [vmem:[#allocation3 + $0x1b0] sm:$0xf] %v309_v50 }
  0x54   : > { %v536_v10 = vrot.slane %v535_v62, 4  ;;  %v1085_v21 = vsel %vm14091_vm4, %v1083_v12, %v1084_v8  ;;  %v1086_v27 = vrot.slane %v1084_v8, 4  ;;  %350 = vst [vmem:[#allocation3 + $0x1d4] sm:$0xf] %v310_v53  ;;  %v393_v56 = vld [vmem:[%s14063_s13 + $0x40] sm:$0xf] }
  0x55   : > { %4918 = vmatpush2.bf16.msra.mxu0 %v13227_v9  ;;  %5111 = vmatpush2.bf16.msra.mxu1 %v13228_v18  ;;  %v526_v9 = vrot.slane %v525_v61, 4  ;;  %v13247_v18 = vld [vmem:[%s17444_s1 + $0x128] sm:$0xff]   ;;  %1232 = vst [vmem:[#allocation3 + $0x14c] sm:$0xf] %v1085_v21  ;;  %v394_v57 = vld [vmem:[%s14063_s13 + $0x44] sm:$0xf] }
  0x56   : > { %5273 = vmatprep.subr.bf16.mxu0 %v13871_v0  ;;  %5466 = vmatprep.subr.bf16.mxu1 %v13871_v0  ;;  %v541_v20 = vsel %vm14101_vm5, %v536_v10, %v540_v7  ;;  %v1088_v39 = vsel %vm14091_vm4, %v1086_v27, %v1087_v33  ;;  %v13250_v59 = vld [vmem:[#allocation3 + $0xe4] ss:$36 sps:$4 sm:$0xff]   ;;  %v13264_v60 = vld [vmem:[%s17444_s1 + $0x118] sm:$0xff]   ;;  %v572_v62 = vshll.u32 %v393_v56, 16  ;;  %v3221_v63 = vld [vmem:[#allocation3 + $0xd8] sm:$0xff] }
  0x57   : > { %919 = vst [vmem:[#allocation3 + $0x148] sm:$0xf] %v541_v20  ;;  %1233 = vst [vmem:[#allocation3 + $0x170] sm:$0xf] %v1088_v39  ;;  %v3226_v1 = vld [vmem:[#allocation3 + $0xfc] sm:$0xff] }
  0x58   : > { %4920 = vmatmul.mubr.bf16.vlgmr.msra.gmra.mxu0 %v13229_v19  ;;  %5113 = vmatmul.mubr.bf16.vlgmr.msra.gmra.mxu1 %v13232_v24  ;;  %v531_v19 = vsel %vm14101_vm5, %v526_v9, %v530_v54  ;;  %v545_v24 = vor.u32 %v544_v16, %v540_v7  ;;  %v392_v54 = vld [vmem:[%s14063_s13 + $0x3c] sm:$0xf]  ;;  %v582_v7 = vshll.u32 %v394_v57, 16  ;;  %v586_v9 = vshrl.u32 %v394_v57, 16  ;;  %v966_v10 = vld [vmem:[%s14063_s13 + $0x40] sm:$0xf] }
  0x59   : > { %5274 = vmatpush1.bf16.msra.mxu0 %v13235_v36  ;;  %4927 = vmatprep.mubr.bf16.mxu0 %v13236_v37  ;;  %918 = vst [vmem:[#allocation3 + $0x124] sm:$0xf] %v531_v19  ;;  %v964_v36 = vld [vmem:[%s14063_s13 + $0x38] sm:$0x1]  ;;  %v11639_v37 = vld [vmem:[%s14063_s13 + $0x44] sm:$0xf] }
  0x5a   : > { %5120 = vmatprep.mubr.bf16.mxu1 %v13238_v29  ;;  %5275 = vmatprep.subr.bf16.mxu0 %v13871_v0  ;;  %v3216_v29 = vld [vmem:[#allocation3 + $0xb4] sm:$0xff]  ;;  %v546_v34 = vrot.slane %v545_v24, 4  ;;  %v1090_v42 = vrot.slane %v964_v36, 5  ;;  %1317 = vst [vmem:[#allocation3 + $0x174] sm:$0xf] %v11639_v37  ;;  %v563_v58 = vshrl.u32 %v392_v54, 16 }
  0x5b   : > { %v11949_v51 = vcombine.low %v3211_v28, %v3216_v29  ;;  %5467 = vmatpush1.bf16.msra.mxu1 %v13292_v45  ;;  %v566_v61 = vshll.u32 %v392_v54, 16  ;;  %v965_v8 = vld [vmem:[%s14063_s13 + $0x3c] sm:$0xe]  ;;  %v967_v11 = vld [vmem:[%s14063_s13 + $0x44] sm:$0xf]  ;;  %v1094_v15 = vrot.slane %v966_v10, 5 }
  0x5c   : > { %v551_v48 = vsel %vm14101_vm5, %v546_v34, %v550_v31  ;;  %v1091_v52 = vsel %vm14091_vm4, %v1089_v40, %v1090_v42  ;;  %5468 = vmatprep.subr.bf16.mxu1 %v13871_v0  ;;  %v565_v3 = vrot.slane %v563_v58, 4  ;;  %v11620_v12 = vrot.slane %v965_v8, 9  ;;  %v11641_v16 = vld [vmem:[%s14063_s13 + $0x50] sm:$0xf]  ;;  %v13252_v19 = vld [vmem:[#allocation3 + $0xe0] ss:$36 sps:$4 sm:$0xff]  }
  0x5d   : > { %5276 = vmatpush1.bf16.msra.mxu0 %v13241_v49  ;;  %v555_v49 = vor.u32 %v554_v35, %v550_v31  ;;  %920 = vst [vmem:[#allocation3 + $0x16c] sm:$0xf] %v551_v48  ;;  %1234 = vst [vmem:[#allocation3 + $0x194] sm:$0xf] %v1091_v52  ;;  %v1097_v21 = vrot.slane %v967_v11, 5  ;;  %v584_v26 = vrot.slane %v582_v7, 5 }
  0x5e   : > { %5277 = vmatprep.subr.bf16.mxu0 %v13871_v0  ;;  %v11642_v22 = vld [vmem:[%s14063_s13 + $0x54] sm:$0xf]  ;;  %1319 = vst [vmem:[#allocation3 + $0x1bc] sm:$0xf] %v11641_v16  ;;  %v1095_v27 = vsel %vm14091_vm4, %v11620_v12, %v1094_v15  ;;  %v1096_v28 = vrot.slane %v1094_v15, 4  ;;  %v13276_v35 = vld [vmem:[%s17444_s1 + $0x108] sm:$0xff]  }
  0x5f   : > { %v556_v55 = vrot.slane %v555_v49, 4  ;;  %v13255_v23 = vld [vmem:[#allocation3 + $0x12c] ss:$36 sps:$4 sm:$0xff]   ;;  %1320 = vst [vmem:[#allocation3 + $0x1e0] sm:$0xf] %v11642_v22  ;;  %v14302_v37 = vld [vmem:[#allocation3 + $0x144] sm:$0xff] }
  0x60   : > { %4928 = vmatmul.mubr.bf16.gmra.mxu0 %v11940_v4  ;;  %5121 = vmatmul.mubr.bf16.gmra.mxu1 %v13240_v5  ;;  %v568_v4 = vrot.slane %v566_v61, 5  ;;  %v574_v5 = vrot.slane %v572_v62, 5  ;;  %v13253_v20 = vld [vmem:[#allocation3 + $0x124] ss:$36 sps:$4 sm:$0xff]   ;;  %1235 = vst [vmem:[#allocation3 + $0x1b8] sm:$0xf] %v1095_v27 }
  0x61   : > { %4935 = vmatprep.mubr.bf16.mxu0 %v13242_v6  ;;  %5128 = vmatprep.mubr.bf16.mxu1 %v13244_v17  ;;  %v561_v2 = vsel %vm14101_vm5, %v556_v55, %v560_v38  ;;  %v576_v6 = vshrl.u32 %v393_v56, 16  ;;  %v13270_v17 = vld [vmem:[%s17444_s1 + $0x110] sm:$0xff]   ;;  %v311_v29 = vld [vmem:[%s14063_s13 + $0x44] sm:$0xf]  ;;  %v312_v33 = vld [vmem:[%s14063_s13 + $0x48] sm:$0xf]  ;;  %v1098_v38 = vsel %vm14091_vm4, %v1096_v28, %v1097_v21 }
  0x62   : > { %5278 = vmatpush1.bf16.msra.mxu0 %v13247_v18  ;;  %921 = vst [vmem:[#allocation3 + $0x190] sm:$0xf] %v561_v2  ;;  %v569_v13 = vor.u32 %v568_v4, %v565_v3  ;;  %v11958_v18 = vcombine.low %v3221_v63, %v3226_v1  ;;  %351 = vst [vmem:[#allocation3 + $0x1f8] sm:$0xf] %v311_v29  ;;  %v395_v34 = vld [vmem:[%s14063_s13 + $0x48] sm:$0xf] }
  0x63   : > { %5279 = vmatprep.subr.bf16.mxu0 %v13871_v0  ;;  %v578_v14 = vrot.slane %v576_v6, 4  ;;  %v14300_v36 = vld [vmem:[#allocation3 + $0x120] sm:$0xff]  ;;  %352 = vst [vmem:[#allocation3 + $0x21c] sm:$0xf] %v312_v33  ;;  %v592_v42 = vshll.u32 %v395_v34, 16  ;;  %v1099_v43 = vrot.slane %v1097_v21, 4 }
  0x64   : > { %v570_v24 = vrot.slane %v569_v13, 4  ;;  %v396_v39 = vld [vmem:[%s14063_s13 + $0x4c] sm:$0x1]  ;;  %1236 = vst [vmem:[#allocation3 + $0x1dc] sm:$0xf] %v1098_v38  ;;  %v13286_v57 = vld [vmem:[%s17444_s1 + $0x100] sm:$0xff]   ;;  %v11967_v1 = vcombine.low %v14300_v36, %v14302_v37 }
  0x65   : > { %v579_v25 = vor.u32 %v578_v14, %v574_v5  ;;  %v968_v48 = vld [vmem:[%s14063_s13 + $0x48] sm:$0xf]  ;;  %v969_v49 = vld [vmem:[%s14063_s13 + $0x4c] sm:$0x1]  ;;  %v11643_v54 = vld [vmem:[%s14063_s13 + $0x58] sm:$0xf] }
  0x66   : > { %5280 = vmatpush1.bf16.msra.mxu0 %v13257_v30  ;;  %v588_v30 = vrot.slane %v586_v9, 4  ;;  %v575_v31 = vsel %vm14101_vm5, %v570_v24, %v574_v5  ;;  %v1100_v52 = vrot.slane %v968_v48, 5  ;;  %v1103_v53 = vrot.slane %v969_v49, 5  ;;  %v11644_v56 = vld [vmem:[%s14063_s13 + $0x5c] sm:$0xf] }
  0x67   : > { %5281 = vmatprep.subr.bf16.mxu0 %v13871_v0  ;;  %v580_v32 = vrot.slane %v579_v25, 4  ;;  %922 = vst [vmem:[#allocation3 + $0x1b4] sm:$0xf] %v575_v31  ;;  %1321 = vst [vmem:[#allocation3 + $0x204] sm:$0xf] %v11643_v54  ;;  %v13294_v16 = vld [vmem:[%s17444_s1 + $0x178] sm:$0xff]  }
  0x68   : > { %4936 = vmatmul.mubr.bf16.gmra.mxu0 %v11949_v51  ;;  %5129 = vmatmul.mubr.bf16.gmra.mxu1 %v13246_v46  ;;  %v589_v40 = vor.u32 %v588_v30, %v584_v26  ;;  %v596_v46 = vshrl.u32 %v395_v34, 16  ;;  %v594_v51 = vrot.slane %v592_v42, 5  ;;  %v13258_v58 = vld [vmem:[#allocation3 + $0x128] ss:$36 sps:$4 sm:$0xff]   ;;  %v1101_v61 = vsel %vm14091_vm4, %v1099_v43, %v1100_v52  ;;  %1322 = vst [vmem:[#allocation3 + $0x228] sm:$0xf] %v11644_v56 }
  0x69   : > { %4943 = vmatprep.mubr.bf16.mxu0 %v13248_v47  ;;  %5136 = vmatprep.mubr.bf16.mxu1 %v13250_v59  ;;  %v585_v45 = vsel %vm14101_vm5, %v580_v32, %v584_v26  ;;  %v602_v47 = vshll.u32 %v396_v39, 16  ;;  %v13259_v59 = vld [vmem:[#allocation3 + $0x16c] ss:$36 sps:$4 sm:$0xff]   ;;  %v1102_v62 = vrot.slane %v1100_v52, 4  ;;  %v313_v63 = vld [vmem:[%s14063_s13 + $0x50] sm:$0xf] }
  0x6a   : > { %5282 = vmatpush1.bf16.msra.mxu0 %v13264_v60  ;;  %923 = vst [vmem:[#allocation3 + $0x1d8] sm:$0xf] %v585_v45  ;;  %v590_v50 = vrot.slane %v589_v40, 4  ;;  %v598_v55 = vrot.slane %v596_v46, 4  ;;  %v13261_v2 = vld [vmem:[#allocation3 + $0x174] ss:$36 sps:$4 sm:$0xff]  }
  0x6b   : > { %5283 = vmatprep.subr.bf16.mxu0 %v13871_v0  ;;  %v604_v4 = vrot.slane %v602_v47, 5  ;;  %1237 = vst [vmem:[#allocation3 + $0x200] sm:$0xf] %v1101_v61  ;;  %v314_v5 = vld [vmem:[%s14063_s13 + $0x54] sm:$0xf]  ;;  %v1104_v7 = vsel %vm14091_vm4, %v1102_v62, %v1103_v53 }
  0x6c   : > { %v595_v60 = vsel %vm14101_vm5, %v590_v50, %v594_v51  ;;  %v599_v3 = vor.u32 %v598_v55, %v594_v51  ;;  %353 = vst [vmem:[#allocation3 + $0x240] sm:$0xf] %v313_v63  ;;  %v397_v6 = vld [vmem:[%s14063_s13 + $0x50] sm:$0xf]  ;;  %354 = vst [vmem:[#allocation3 + $0x264] sm:$0xf] %v314_v5 }
  0x6d   : > { %924 = vst [vmem:[#allocation3 + $0x1fc] sm:$0xf] %v595_v60  ;;  %v398_v8 = vld [vmem:[%s14063_s13 + $0x54] sm:$0xf]  ;;  %v399_v9 = vld [vmem:[%s14063_s13 + $0x58] sm:$0xf] }
  0x6e   : > { %5284 = vmatpush1.bf16.msra.mxu0 %v13270_v17  ;;  %v607_v10 = vshrl.u32 %v397_v6, 16  ;;  %v610_v11 = vshll.u32 %v397_v6, 16  ;;  %v600_v12 = vrot.slane %v599_v3, 4  ;;  %1238 = vst [vmem:[#allocation3 + $0x224] sm:$0xf] %v1104_v7  ;;  %v616_v13 = vshll.u32 %v398_v8, 16 }
  0x6f   : > { %5285 = vmatprep.subr.bf16.mxu0 %v13871_v0  ;;  %v620_v14 = vshrl.u32 %v398_v8, 16  ;;  %v626_v15 = vshll.u32 %v399_v9, 16  ;;  %v13300_v17 = vld [vmem:[%s17444_s1 + $0x1b0] sm:$0xff]   ;;  %v630_v26 = vshrl.u32 %v399_v9, 16  ;;  %v972_v31 = vld [vmem:[%s14063_s13 + $0x58] sm:$0xf] }
  0x70   : > { %4944 = vmatmul.mubr.bf16.gmra.mxu0 %v11958_v18  ;;  %5137 = vmatmul.mubr.bf16.gmra.mxu1 %v13252_v19  ;;  %v609_v18 = vrot.slane %v607_v10, 4  ;;  %v3241_v19 = vld [vmem:[#allocation3 + $0x168] sm:$0xff]  ;;  %v605_v21 = vsel %vm14101_vm5, %v600_v12, %v604_v4  ;;  %v612_v22 = vrot.slane %v610_v11, 5  ;;  %v11645_v34 = vld [vmem:[%s14063_s13 + $0x64] sm:$0xf]  ;;  %v1110_v37 = vrot.slane %v972_v31, 5 }
  0x71   : > { %4951 = vmatprep.mubr.bf16.mxu0 %v13253_v20  ;;  %5144 = vmatprep.mubr.bf16.mxu1 %v13255_v23  ;;  %v3246_v20 = vld [vmem:[#allocation3 + $0x18c] sm:$0xff]  ;;  %v618_v23 = vrot.slane %v616_v13, 5  ;;  %v622_v24 = vrot.slane %v620_v14, 4  ;;  %925 = vst [vmem:[#allocation3 + $0x220] sm:$0xf] %v605_v21  ;;  %v628_v25 = vrot.slane %v626_v15, 5 }
  0x72   : > { %5286 = vmatpush1.bf16.msra.mxu0 %v13276_v35  ;;  %5469 = vmatpush1.bf16.msra.mxu1 %v13300_v17  ;;  %v970_v27 = vld [vmem:[%s14063_s13 + $0x50] sm:$0xe]  ;;  %v971_v28 = vld [vmem:[%s14063_s13 + $0x54] sm:$0xf]  ;;  %v613_v29 = vor.u32 %v612_v22, %v609_v18  ;;  %v11976_v35 = vcombine.low %v3241_v19, %v3246_v20  ;;  %v13263_v36 = vld [vmem:[#allocation3 + $0x170] ss:$36 sps:$4 sm:$0xff]  }
  0x73   : > { %5287 = vmatprep.subr.bf16.mxu0 %v13871_v0  ;;  %v623_v30 = vor.u32 %v622_v24, %v618_v23  ;;  %v11621_v32 = vrot.slane %v970_v27, 9  ;;  %v1107_v33 = vrot.slane %v971_v28, 5  ;;  %v11646_v38 = vld [vmem:[%s14063_s13 + $0x68] sm:$0xf]  ;;  %1323 = vst [vmem:[#allocation3 + $0x24c] sm:$0xf] %v11645_v34  ;;  %5470 = vmatprep.subr.bf16.mxu1 %v13871_v0 }
  0x74   : > { %v632_v39 = vrot.slane %v630_v26, 4  ;;  %v614_v40 = vrot.slane %v613_v29, 4  ;;  %1324 = vst [vmem:[#allocation3 + $0x270] sm:$0xf] %v11646_v38  ;;  %v315_v46 = vld [vmem:[%s14063_s13 + $0x58] sm:$0xf] }
  0x75   : > { %v624_v42 = vrot.slane %v623_v30, 4  ;;  %v1108_v43 = vsel %vm14091_vm4, %v11621_v32, %v1107_v33  ;;  %v1109_v45 = vrot.slane %v1107_v33, 4  ;;  %v13301_v47 = vld [vmem:[%s17444_s1 + $0x170] sm:$0xff]   ;;  %v13265_v48 = vld [vmem:[#allocation3 + $0x1b4] ss:$36 sps:$4 sm:$0xff]   ;;  %v1112_v51 = vrot.slane %v1110_v37, 4 }
  0x76   : > { %5288 = vmatpush1.bf16.msra.mxu0 %v13286_v57  ;;  %v13267_v49 = vld [vmem:[#allocation3 + $0x1bc] ss:$36 sps:$4 sm:$0xff]   ;;  %1239 = vst [vmem:[#allocation3 + $0x248] sm:$0xf] %v1108_v43  ;;  %355 = vst [vmem:[#allocation3 + $0x288] sm:$0xf] %v315_v46  ;;  %v633_v50 = vor.u32 %v632_v39, %v628_v25  ;;  %v619_v52 = vsel %vm14101_vm5, %v614_v40, %v618_v23 }
  0x77   : > { %5289 = vmatprep.subr.bf16.mxu0 %v13871_v0  ;;  %v629_v53 = vsel %vm14101_vm5, %v624_v42, %v628_v25  ;;  %v1111_v54 = vsel %vm14091_vm4, %v1109_v45, %v1110_v37  ;;  %v316_v55 = vld [vmem:[%s14063_s13 + $0x5c] sm:$0xf]  ;;  %v401_v57 = vld [vmem:[%s14063_s13 + $0x60] sm:$0x1]  ;;  %926 = vst [vmem:[#allocation3 + $0x244] sm:$0xf] %v619_v52 }
  0x78   : > { %4952 = vmatmul.mubr.bf16.gmra.mxu0 %v11967_v1  ;;  %5145 = vmatmul.mubr.bf16.gmra.mxu1 %v13258_v58  ;;  %v400_v56 = vld [vmem:[%s14063_s13 + $0x5c] sm:$0xf]  ;;  %927 = vst [vmem:[#allocation3 + $0x268] sm:$0xf] %v629_v53  ;;  %1240 = vst [vmem:[#allocation3 + $0x26c] sm:$0xf] %v1111_v54 }
  0x79   : > { %4959 = vmatprep.mubr.bf16.mxu0 %v13259_v59  ;;  %5152 = vmatprep.mubr.bf16.mxu1 %v13261_v2  ;;  %356 = vst [vmem:[#allocation3 + $0x2ac] sm:$0xf] %v316_v55  ;;  %v634_v58 = vrot.slane %v633_v50, 4  ;;  %v636_v59 = vshll.u32 %v400_v56, 16  ;;  %v640_v60 = vshrl.u32 %v400_v56, 16  ;;  %v646_v61 = vshll.u32 %v401_v57, 16 }
  0x7a   : > { %5290 = vmatpush2.bf16.msra.mxu0 %v13294_v16  ;;  %v973_v62 = vld [vmem:[%s14063_s13 + $0x5c] sm:$0xf]  ;;  %v974_v2 = vld [vmem:[%s14063_s13 + $0x60] sm:$0x1]  ;;  %v11647_v7 = vld [vmem:[%s14063_s13 + $0x6c] sm:$0xf] }
  0x7b   : > { %5291 = vmatprep.subr.bf16.mxu0 %v13871_v0  ;;  %v3251_v63 = vld [vmem:[#allocation3 + $0x1b0] sm:$0xff]  ;;  %v1113_v3 = vrot.slane %v973_v62, 5  ;;  %v638_v4 = vrot.slane %v636_v59, 5  ;;  %v642_v5 = vrot.slane %v640_v60, 4  ;;  %v648_v6 = vrot.slane %v646_v61, 5  ;;  %v13307_v8 = vld [vmem:[%s17444_s1 + $0x1a8] sm:$0xff]  }
  0x7c   : > { %v3256_v1 = vld [vmem:[#allocation3 + $0x1d4] sm:$0xff]  ;;  %v1116_v11 = vrot.slane %v974_v2, 5  ;;  %v11648_v12 = vld [vmem:[%s14063_s13 + $0x70] sm:$0xf]  ;;  %1325 = vst [vmem:[#allocation3 + $0x294] sm:$0xf] %v11647_v7  ;;  %5471 = vmatpush1.bf16.msra.mxu1 %v13307_v8 }
  0x7d   : > { %v1114_v9 = vsel %vm14091_vm4, %v1112_v51, %v1113_v3  ;;  %v1115_v10 = vrot.slane %v1113_v3, 4  ;;  %v13269_v13 = vld [vmem:[#allocation3 + $0x1b8] ss:$36 sps:$4 sm:$0xff]   ;;  %v639_v15 = vsel %vm14101_vm5, %v634_v58, %v638_v4  ;;  %v643_v16 = vor.u32 %v642_v5, %v638_v4  ;;  %1326 = vst [vmem:[#allocation3 + $0x2b8] sm:$0xf] %v11648_v12  ;;  %5472 = vmatprep.subr.bf16.mxu1 %v13871_v0  ;;  %v13308_v50 = vld [vmem:[%s17444_s1 + $0x168] sm:$0xff]  }
  0x7e   : > { %5292 = vmatpush2.bf16.msra.mxu0 %v13301_v47  ;;  %v13271_v14 = vld [vmem:[#allocation3 + $0x1fc] ss:$36 sps:$4 sm:$0xff]   ;;  %1241 = vst [vmem:[#allocation3 + $0x290] sm:$0xf] %v1114_v9  ;;  %v11985_v19 = vcombine.low %v3251_v63, %v3256_v1  ;;  %928 = vst [vmem:[#allocation3 + $0x28c] sm:$0xf] %v639_v15 }
  0x7f   : > { %5293 = vmatprep.subr.bf16.mxu0 %v13871_v0  ;;  %v317_v17 = vld [vmem:[%s14063_s13 + $0x64] sm:$0xf]  ;;  %v318_v18 = vld [vmem:[%s14063_s13 + $0x68] sm:$0xf]  ;;  %v1117_v20 = vsel %vm14091_vm4, %v1115_v10, %v1116_v11  ;;  %v644_v23 = vrot.slane %v643_v16, 4  ;;  %v3276_v4 = vld [vmem:[#allocation3 + $0x264] sm:$0xff] }
  0x80   : > { %4960 = vmatmul.mubr.bf16.gmra.mxu0 %v11976_v35  ;;  %5153 = vmatmul.mubr.bf16.gmra.mxu1 %v13263_v36  ;;  %357 = vst [vmem:[#allocation3 + $0x2d0] sm:$0xf] %v317_v17  ;;  %358 = vst [vmem:[#allocation3 + $0x2f4] sm:$0xf] %v318_v18  ;;  %v402_v21 = vld [vmem:[%s14063_s13 + $0x64] sm:$0xf] }
  0x81   : > { %4967 = vmatprep.mubr.bf16.mxu0 %v13265_v48  ;;  %5160 = vmatprep.mubr.bf16.mxu1 %v13267_v49  ;;  %v403_v22 = vld [vmem:[%s14063_s13 + $0x68] sm:$0xf]  ;;  %1242 = vst [vmem:[#allocation3 + $0x2b4] sm:$0xf] %v1117_v20  ;;  %v404_v24 = vld [vmem:[%s14063_s13 + $0x6c] sm:$0xf]  ;;  %v649_v32 = vsel %vm14101_vm5, %v644_v23, %v648_v6 }
  0x82   : > { %v651_v25 = vshrl.u32 %v402_v21, 16  ;;  %v654_v26 = vshll.u32 %v402_v21, 16  ;;  %v660_v27 = vshll.u32 %v403_v22, 16  ;;  %v13273_v28 = vld [vmem:[#allocation3 + $0x204] ss:$36 sps:$4 sm:$0xff]   ;;  %v664_v29 = vshrl.u32 %v403_v22, 16  ;;  %5294 = vmatpush2.bf16.msra.mxu0 %v13308_v50 }
  0x83   : > { %v670_v30 = vshll.u32 %v404_v24, 16  ;;  %v3261_v31 = vld [vmem:[#allocation3 + $0x1f8] sm:$0xff]  ;;  %929 = vst [vmem:[#allocation3 + $0x2b0] sm:$0xf] %v649_v32  ;;  %v674_v39 = vshrl.u32 %v404_v24, 16  ;;  %5295 = vmatprep.subr.bf16.mxu0 %v13871_v0  ;;  %v3271_v3 = vld [vmem:[#allocation3 + $0x240] sm:$0xff] }
  0x84   : > { %v653_v33 = vrot.slane %v651_v25, 4  ;;  %v3266_v34 = vld [vmem:[#allocation3 + $0x21c] sm:$0xff]  ;;  %v656_v35 = vrot.slane %v654_v26, 5  ;;  %v662_v36 = vrot.slane %v660_v27, 5  ;;  %v666_v37 = vrot.slane %v664_v29, 4 }
  0x85   : > { %v975_v38 = vld [vmem:[%s14063_s13 + $0x64] sm:$0xe]  ;;  %v976_v40 = vld [vmem:[%s14063_s13 + $0x68] sm:$0xf]  ;;  %v977_v42 = vld [vmem:[%s14063_s13 + $0x6c] sm:$0xf]  ;;  %v11994_v55 = vcombine.low %v3261_v31, %v3266_v34 }
  0x86   : > { %v11622_v43 = vrot.slane %v975_v38, 9  ;;  %v657_v45 = vor.u32 %v656_v35, %v653_v33  ;;  %v667_v46 = vor.u32 %v666_v37, %v662_v36  ;;  %v672_v47 = vrot.slane %v670_v30, 5  ;;  %v11649_v49 = vld [vmem:[%s14063_s13 + $0x78] sm:$0xf]  ;;  %v13275_v51 = vld [vmem:[#allocation3 + $0x200] ss:$36 sps:$4 sm:$0xff]  }
  0x87   : > { %v1120_v48 = vrot.slane %v976_v40, 5  ;;  %v1123_v52 = vrot.slane %v977_v42, 5  ;;  %v11650_v53 = vld [vmem:[%s14063_s13 + $0x7c] sm:$0xf]  ;;  %1327 = vst [vmem:[#allocation3 + $0x2dc] sm:$0xf] %v11649_v49 }
  0x88   : > { %4968 = vmatmul.mubr.bf16.gmra.mxu0 %v11985_v19  ;;  %5161 = vmatmul.mubr.bf16.gmra.mxu1 %v13269_v13  ;;  %v676_v54 = vrot.slane %v674_v39, 4  ;;  %v13277_v56 = vld [vmem:[#allocation3 + $0x244] ss:$36 sps:$4 sm:$0xff]   ;;  %v13279_v57 = vld [vmem:[#allocation3 + $0x24c] ss:$36 sps:$4 sm:$0xff]   ;;  %v658_v58 = vrot.slane %v657_v45, 4 }
  0x89   : > { %4975 = vmatprep.mubr.bf16.mxu0 %v13271_v14  ;;  %5168 = vmatprep.mubr.bf16.mxu1 %v13273_v28  ;;  %v1121_v59 = vsel %vm14091_vm4, %v11622_v43, %v1120_v48  ;;  %1328 = vst [vmem:[#allocation3 + $0x300] sm:$0xf] %v11650_v53  ;;  %v668_v60 = vrot.slane %v667_v46, 4  ;;  %v1122_v61 = vrot.slane %v1120_v48, 4  ;;  %v319_v1 = vld [vmem:[%s14063_s13 + $0x6c] sm:$0xf]  ;;  %v12003_v28 = vcombine.low %v3271_v3, %v3276_v4 }
  0x8a   : > { %1243 = vst [vmem:[#allocation3 + $0x2d8] sm:$0xf] %v1121_v59  ;;  %v677_v62 = vor.u32 %v676_v54, %v672_v47  ;;  %v663_v63 = vsel %vm14101_vm5, %v658_v58, %v662_v36  ;;  %v320_v2 = vld [vmem:[%s14063_s13 + $0x70] sm:$0xf]  ;;  %359 = vst [vmem:[#allocation3 + $0x318] sm:$0xf] %v319_v1 }
  0x8b   : > { %v673_v5 = vsel %vm14101_vm5, %v668_v60, %v672_v47  ;;  %930 = vst [vmem:[#allocation3 + $0x2d4] sm:$0xf] %v663_v63  ;;  %v1124_v6 = vsel %vm14091_vm4, %v1122_v61, %v1123_v52  ;;  %360 = vst [vmem:[#allocation3 + $0x33c] sm:$0xf] %v320_v2  ;;  %v405_v7 = vld [vmem:[%s14063_s13 + $0x70] sm:$0xf] }
  0x8c   : > { %v678_v8 = vrot.slane %v677_v62, 4  ;;  %931 = vst [vmem:[#allocation3 + $0x2f8] sm:$0xf] %v673_v5  ;;  %1244 = vst [vmem:[#allocation3 + $0x2fc] sm:$0xf] %v1124_v6  ;;  %v680_v10 = vshll.u32 %v405_v7, 16 }
  0x8d   : > { %v406_v9 = vld [vmem:[%s14063_s13 + $0x74] sm:$0x1]  ;;  %v684_v11 = vshrl.u32 %v405_v7, 16  ;;  %v978_v12 = vld [vmem:[%s14063_s13 + $0x70] sm:$0xf]  ;;  %v1125_v15 = vrot.slane %v1123_v52, 4 }
  0x8e   : > { %v690_v13 = vshll.u32 %v406_v9, 16  ;;  %v979_v14 = vld [vmem:[%s14063_s13 + $0x74] sm:$0x1]  ;;  %v1126_v16 = vrot.slane %v978_v12, 5  ;;  %v13314_v17 = vld [vmem:[%s17444_s1 + $0x1a0] sm:$0xff]   ;;  %v682_v18 = vrot.slane %v680_v10, 5 }
  0x8f   : > { %v686_v19 = vrot.slane %v684_v11, 4  ;;  %v1129_v20 = vrot.slane %v979_v14, 5  ;;  %v11651_v21 = vld [vmem:[%s14063_s13 + $0x80] sm:$0xf]  ;;  %v13281_v23 = vld [vmem:[#allocation3 + $0x248] ss:$36 sps:$4 sm:$0xff]   ;;  %5473 = vmatpush1.bf16.msra.mxu1 %v13314_v17 }
  0x90   : > { %4976 = vmatmul.mubr.bf16.gmra.mxu0 %v11994_v55  ;;  %5169 = vmatmul.mubr.bf16.gmra.mxu1 %v13275_v51  ;;  %v13319_v22 = vld [vmem:[%s17444_s1 + $0x160] sm:$0xff]   ;;  %v13282_v24 = vld [vmem:[#allocation3 + $0x28c] ss:$36 sps:$4 sm:$0xff]   ;;  %v1127_v25 = vsel %vm14091_vm4, %v1125_v15, %v1126_v16  ;;  %v1128_v26 = vrot.slane %v1126_v16, 4  ;;  %1329 = vst [vmem:[#allocation3 + $0x324] sm:$0xf] %v11651_v21  ;;  %v683_v30 = vsel %vm14101_vm5, %v678_v8, %v682_v18 }
  0x91   : > { %4983 = vmatprep.mubr.bf16.mxu0 %v13277_v56  ;;  %5176 = vmatprep.mubr.bf16.mxu1 %v13279_v57  ;;  %v11652_v27 = vld [vmem:[%s14063_s13 + $0x84] sm:$0xf]  ;;  %v13284_v29 = vld [vmem:[#allocation3 + $0x294] ss:$36 sps:$4 sm:$0xff]   ;;  %v687_v31 = vor.u32 %v686_v19, %v682_v18  ;;  %v692_v32 = vrot.slane %v690_v13, 5  ;;  %v3281_v42 = vld [vmem:[#allocation3 + $0x288] sm:$0xff] }
  0x92   : > { %1245 = vst [vmem:[#allocation3 + $0x320] sm:$0xf] %v1127_v25  ;;  %1330 = vst [vmem:[#allocation3 + $0x348] sm:$0xf] %v11652_v27  ;;  %5296 = vmatpush2.bf16.msra.mxu0 %v13319_v22  ;;  %5474 = vmatprep.subr.bf16.mxu1 %v13871_v0  ;;  %v1130_v33 = vsel %vm14091_vm4, %v1128_v26, %v1129_v20  ;;  %v321_v34 = vld [vmem:[%s14063_s13 + $0x78] sm:$0xf] }
  0x93   : > { %932 = vst [vmem:[#allocation3 + $0x31c] sm:$0xf] %v683_v30  ;;  %v322_v35 = vld [vmem:[%s14063_s13 + $0x7c] sm:$0xf]  ;;  %5297 = vmatprep.subr.bf16.mxu0 %v13871_v0  ;;  %v688_v36 = vrot.slane %v687_v31, 4  ;;  %v3286_v43 = vld [vmem:[#allocation3 + $0x2ac] sm:$0xff] }
  0x94   : > { %1246 = vst [vmem:[#allocation3 + $0x344] sm:$0xf] %v1130_v33  ;;  %361 = vst [vmem:[#allocation3 + $0x360] sm:$0xf] %v321_v34  ;;  %v407_v37 = vld [vmem:[%s14063_s13 + $0x78] sm:$0xf]  ;;  %v12012_v62 = vcombine.low %v3281_v42, %v3286_v43 }
  0x95   : > { %362 = vst [vmem:[#allocation3 + $0x384] sm:$0xf] %v322_v35  ;;  %v408_v38 = vld [vmem:[%s14063_s13 + $0x7c] sm:$0xf]  ;;  %v695_v39 = vshrl.u32 %v407_v37, 16  ;;  %v698_v40 = vshll.u32 %v407_v37, 16  ;;  %v693_v45 = vsel %vm14101_vm5, %v688_v36, %v692_v32 }
  0x96   : > { %v409_v46 = vld [vmem:[%s14063_s13 + $0x80] sm:$0xf]  ;;  %933 = vst [vmem:[#allocation3 + $0x340] sm:$0xf] %v693_v45  ;;  %v704_v49 = vshll.u32 %v408_v38, 16  ;;  %v708_v50 = vshrl.u32 %v408_v38, 16 }
  0x97   : > { %v697_v47 = vrot.slane %v695_v39, 4  ;;  %v700_v48 = vrot.slane %v698_v40, 5  ;;  %v980_v51 = vld [vmem:[%s14063_s13 + $0x78] sm:$0xe]  ;;  %v714_v52 = vshll.u32 %v409_v46, 16  ;;  %v718_v53 = vshrl.u32 %v409_v46, 16 }
  0x98   : > { %4984 = vmatmul.mubr.bf16.gmra.mxu0 %v12003_v28  ;;  %5177 = vmatmul.mubr.bf16.gmra.mxu1 %v13281_v23  ;;  %v981_v54 = vld [vmem:[%s14063_s13 + $0x7c] sm:$0xf]  ;;  %v982_v55 = vld [vmem:[%s14063_s13 + $0x80] sm:$0xf]  ;;  %v706_v58 = vrot.slane %v704_v49, 5  ;;  %v710_v59 = vrot.slane %v708_v50, 4 }
  0x99   : > { %4991 = vmatprep.mubr.bf16.mxu0 %v13282_v24  ;;  %5184 = vmatprep.mubr.bf16.mxu1 %v13284_v29  ;;  %v13287_v56 = vld [vmem:[#allocation3 + $0x290] ss:$36 sps:$4 sm:$0xff]   ;;  %v701_v57 = vor.u32 %v700_v48, %v697_v47  ;;  %v11623_v60 = vrot.slane %v980_v51, 9  ;;  %v11653_v61 = vld [vmem:[%s14063_s13 + $0x8c] sm:$0xf]  ;;  %v1133_v1 = vrot.slane %v981_v54, 5 }
  0x9a   : > { %v13288_v63 = vld [vmem:[#allocation3 + $0x2d4] ss:$36 sps:$4 sm:$0xff]   ;;  %v1136_v2 = vrot.slane %v982_v55, 5  ;;  %v11654_v3 = vld [vmem:[%s14063_s13 + $0x90] sm:$0xf]  ;;  %v711_v6 = vor.u32 %v710_v59, %v706_v58  ;;  %v716_v7 = vrot.slane %v714_v52, 5 }
  0x9b   : > { %1331 = vst [vmem:[#allocation3 + $0x36c] sm:$0xf] %v11653_v61  ;;  %v13290_v4 = vld [vmem:[#allocation3 + $0x2dc] ss:$36 sps:$4 sm:$0xff]   ;;  %v702_v5 = vrot.slane %v701_v57, 4  ;;  %v1134_v8 = vsel %vm14091_vm4, %v11623_v60, %v1133_v1  ;;  %v1135_v9 = vrot.slane %v1133_v1, 4 }
  0x9c   : > { %1332 = vst [vmem:[#allocation3 + $0x390] sm:$0xf] %v11654_v3  ;;  %v720_v10 = vrot.slane %v718_v53, 4  ;;  %v712_v12 = vrot.slane %v711_v6, 4  ;;  %1247 = vst [vmem:[#allocation3 + $0x368] sm:$0xf] %v1134_v8 }
  0x9d   : > { %v707_v11 = vsel %vm14101_vm5, %v702_v5, %v706_v58  ;;  %v3291_v13 = vld [vmem:[#allocation3 + $0x2d0] sm:$0xff]  ;;  %v1137_v15 = vsel %vm14091_vm4, %v1135_v9, %v1136_v2  ;;  %v323_v16 = vld [vmem:[%s14063_s13 + $0x80] sm:$0xf]  ;;  %v1138_v18 = vrot.slane %v1136_v2, 4  ;;  %v324_v20 = vld [vmem:[%s14063_s13 + $0x84] sm:$0xf] }
  0x9e   : > { %v3296_v14 = vld [vmem:[#allocation3 + $0x2f4] sm:$0xff]  ;;  %934 = vst [vmem:[#allocation3 + $0x364] sm:$0xf] %v707_v11  ;;  %v721_v17 = vor.u32 %v720_v10, %v716_v7  ;;  %v717_v19 = vsel %vm14101_vm5, %v712_v12, %v716_v7  ;;  %1248 = vst [vmem:[#allocation3 + $0x38c] sm:$0xf] %v1137_v15  ;;  %v13326_v45 = vld [vmem:[%s17444_s1 + $0x190] sm:$0xff]  }
  0x9f   : > { %363 = vst [vmem:[#allocation3 + $0x3a8] sm:$0xf] %v323_v16  ;;  %v410_v21 = vld [vmem:[%s14063_s13 + $0x84] sm:$0xf]  ;;  %v411_v22 = vld [vmem:[%s14063_s13 + $0x88] sm:$0x1]  ;;  %v12021_v34 = vcombine.low %v3291_v13, %v3296_v14 }
  0xa0   : > { %4992 = vmatmul.mubr.bf16.gmra.mxu0 %v12012_v62  ;;  %5185 = vmatmul.mubr.bf16.gmra.mxu1 %v13287_v56  ;;  %935 = vst [vmem:[#allocation3 + $0x388] sm:$0xf] %v717_v19  ;;  %364 = vst [vmem:[#allocation3 + $0x3cc] sm:$0xf] %v324_v20  ;;  %v722_v23 = vrot.slane %v721_v17, 4  ;;  %v724_v24 = vshll.u32 %v410_v21, 16 }
  0xa1   : > { %4999 = vmatprep.mubr.bf16.mxu0 %v13288_v63  ;;  %5192 = vmatprep.mubr.bf16.mxu1 %v13290_v4  ;;  %v728_v25 = vshrl.u32 %v410_v21, 16  ;;  %v734_v26 = vshll.u32 %v411_v22, 16  ;;  %v983_v27 = vld [vmem:[%s14063_s13 + $0x84] sm:$0xf]  ;;  %v984_v30 = vld [vmem:[%s14063_s13 + $0x88] sm:$0x1] }
  0xa2   : > { %v13293_v28 = vld [vmem:[#allocation3 + $0x2d8] ss:$36 sps:$4 sm:$0xff]   ;;  %v1139_v31 = vrot.slane %v983_v27, 5  ;;  %v11655_v32 = vld [vmem:[%s14063_s13 + $0x94] sm:$0xf]  ;;  %v13321_v33 = vld [vmem:[%s17444_s1 + $0x198] sm:$0xff]  }
  0xa3   : > { %v13295_v29 = vld [vmem:[#allocation3 + $0x31c] ss:$36 sps:$4 sm:$0xff]   ;;  %v13297_v35 = vld [vmem:[#allocation3 + $0x324] ss:$36 sps:$4 sm:$0xff]   ;;  %v726_v36 = vrot.slane %v724_v24, 5  ;;  %v730_v37 = vrot.slane %v728_v25, 4  ;;  %5475 = vmatpush1.bf16.msra.mxu1 %v13321_v33 }
  0xa4   : > { %v1142_v38 = vrot.slane %v984_v30, 5  ;;  %v11656_v39 = vld [vmem:[%s14063_s13 + $0x98] sm:$0xf]  ;;  %1333 = vst [vmem:[#allocation3 + $0x3b4] sm:$0xf] %v11655_v32  ;;  %v14454_v40 = vld [vmem:[#allocation3 + $0x318] sm:$0xff]  ;;  %v1140_v42 = vsel %vm14091_vm4, %v1138_v18, %v1139_v31  ;;  %5476 = vmatprep.subr.bf16.mxu1 %v13871_v0 }
  0xa5   : > { %v1141_v43 = vrot.slane %v1139_v31, 4  ;;  %1334 = vst [vmem:[#allocation3 + $0x3d8] sm:$0xf] %v11656_v39  ;;  %v727_v46 = vsel %vm14101_vm5, %v722_v23, %v726_v36  ;;  %v731_v47 = vor.u32 %v730_v37, %v726_v36  ;;  %v736_v48 = vrot.slane %v734_v26, 5  ;;  %1249 = vst [vmem:[#allocation3 + $0x3b0] sm:$0xf] %v1140_v42 }
  0xa6   : > { %v325_v49 = vld [vmem:[%s14063_s13 + $0x8c] sm:$0xf]  ;;  %v326_v50 = vld [vmem:[%s14063_s13 + $0x90] sm:$0xf]  ;;  %v3306_v51 = vld [vmem:[#allocation3 + $0x33c] sm:$0xff] }
  0xa7   : > { %936 = vst [vmem:[#allocation3 + $0x3ac] sm:$0xf] %v727_v46  ;;  %v1143_v52 = vsel %vm14091_vm4, %v1141_v43, %v1142_v38  ;;  %365 = vst [vmem:[#allocation3 + $0x3f0] sm:$0xf] %v325_v49  ;;  %v412_v53 = vld [vmem:[%s14063_s13 + $0x8c] sm:$0xf]  ;;  %v12030_v58 = vcombine.low %v14454_v40, %v3306_v51  ;;  %5477 = vmatpush1.bf16.msra.mxu1 %v13326_v45 }
  0xa8   : > { %366 = vst [vmem:[#allocation3 + $0x414] sm:$0xf] %v326_v50  ;;  %v413_v54 = vld [vmem:[%s14063_s13 + $0x90] sm:$0xf]  ;;  %5000 = vmatmul.mubr.bf16.gmra.mxu0 %v12021_v34  ;;  %v732_v55 = vrot.slane %v731_v47, 4  ;;  %5193 = vmatmul.mubr.bf16.gmra.mxu1 %v13293_v28  ;;  %v739_v57 = vshrl.u32 %v412_v53, 16 }
  0xa9   : > { %1250 = vst [vmem:[#allocation3 + $0x3d4] sm:$0xf] %v1143_v52  ;;  %5007 = vmatprep.mubr.bf16.mxu0 %v13295_v29  ;;  %v414_v56 = vld [vmem:[%s14063_s13 + $0x94] sm:$0xf]  ;;  %5200 = vmatprep.mubr.bf16.mxu1 %v13297_v35  ;;  %v742_v60 = vshll.u32 %v412_v53, 16  ;;  %v748_v61 = vshll.u32 %v413_v54, 16 }
  0xaa   : > { %v737_v59 = vsel %vm14101_vm5, %v732_v55, %v736_v48  ;;  %v985_v62 = vld [vmem:[%s14063_s13 + $0x8c] sm:$0xe]  ;;  %v986_v63 = vld [vmem:[%s14063_s13 + $0x90] sm:$0xf]  ;;  %v741_v3 = vrot.slane %v739_v57, 4  ;;  %v752_v4 = vshrl.u32 %v413_v54, 16  ;;  %5478 = vmatprep.subr.bf16.mxu1 %v13871_v0 }
  0xab   : > { %v13299_v1 = vld [vmem:[#allocation3 + $0x320] ss:$36 sps:$4 sm:$0xff]   ;;  %937 = vst [vmem:[#allocation3 + $0x3d0] sm:$0xf] %v737_v59  ;;  %v758_v5 = vshll.u32 %v414_v56, 16  ;;  %v762_v6 = vshrl.u32 %v414_v56, 16 }
  0xac   : > { %v13302_v2 = vld [vmem:[#allocation3 + $0x364] ss:$36 sps:$4 sm:$0xff]   ;;  %v987_v7 = vld [vmem:[%s14063_s13 + $0x94] sm:$0xf]  ;;  %v744_v9 = vrot.slane %v742_v60, 5  ;;  %v750_v10 = vrot.slane %v748_v61, 5 }
  0xad   : > { %v13304_v8 = vld [vmem:[#allocation3 + $0x36c] ss:$36 sps:$4 sm:$0xff]   ;;  %v11624_v11 = vrot.slane %v985_v62, 9  ;;  %v1146_v12 = vrot.slane %v986_v63, 5  ;;  %v11657_v13 = vld [vmem:[%s14063_s13 + $0xa0] sm:$0xf] }
  0xae   : > { %v754_v14 = vrot.slane %v752_v4, 4  ;;  %v1149_v15 = vrot.slane %v987_v7, 5  ;;  %v11658_v16 = vld [vmem:[%s14063_s13 + $0xa4] sm:$0xf]  ;;  %1335 = vst [vmem:[#allocation3 + $0x3fc] sm:$0xf] %v11657_v13  ;;  %v745_v17 = vor.u32 %v744_v9, %v741_v3 }
  0xaf   : > { %v1147_v18 = vsel %vm14091_vm4, %v11624_v11, %v1146_v12  ;;  %v1148_v19 = vrot.slane %v1146_v12, 4  ;;  %1336 = vst [vmem:[#allocation3 + $0x420] sm:$0xf] %v11658_v16  ;;  %v3311_v20 = vld [vmem:[#allocation3 + $0x360] sm:$0xff]  ;;  %v760_v22 = vrot.slane %v758_v5, 5  ;;  %v764_v23 = vrot.slane %v762_v6, 4 }
  0xb0   : > { %v755_v21 = vor.u32 %v754_v14, %v750_v10  ;;  %1251 = vst [vmem:[#allocation3 + $0x3f8] sm:$0xf] %v1147_v18  ;;  %5008 = vmatmul.mubr.bf16.gmra.mxu0 %v12030_v58  ;;  %v3316_v24 = vld [vmem:[#allocation3 + $0x384] sm:$0xff]  ;;  %v746_v25 = vrot.slane %v745_v17, 4  ;;  %5201 = vmatmul.mubr.bf16.gmra.mxu1 %v13299_v1  ;;  %v327_v28 = vld [vmem:[%s14063_s13 + $0x94] sm:$0xf] }
  0xb1   : > { %v1150_v26 = vsel %vm14091_vm4, %v1148_v19, %v1149_v15  ;;  %5015 = vmatprep.mubr.bf16.mxu0 %v13302_v2  ;;  %v328_v29 = vld [vmem:[%s14063_s13 + $0x98] sm:$0xf]  ;;  %v765_v30 = vor.u32 %v764_v23, %v760_v22  ;;  %5208 = vmatprep.mubr.bf16.mxu1 %v13304_v8  ;;  %367 = vst [vmem:[#allocation3 + $0x438] sm:$0xf] %v327_v28  ;;  %v1151_v34 = vrot.slane %v1149_v15, 4  ;;  %v13329_v50 = vld [vmem:[%s17444_s1 + $0x188] sm:$0xff]  }
  0xb2   : > { %v756_v27 = vrot.slane %v755_v21, 4  ;;  %1252 = vst [vmem:[#allocation3 + $0x41c] sm:$0xf] %v1150_v26  ;;  %v13328_v31 = vld [vmem:[%s17444_s1 + $0x158] sm:$0xff]   ;;  %v751_v32 = vsel %vm14101_vm5, %v746_v25, %v750_v10  ;;  %368 = vst [vmem:[#allocation3 + $0x45c] sm:$0xf] %v328_v29  ;;  %v12039_v43 = vcombine.low %v3311_v20, %v3316_v24  ;;  %5479 = vmatpush1.bf16.msra.mxu1 %v13329_v50 }
  0xb3   : > { %v415_v33 = vld [vmem:[%s14063_s13 + $0x98] sm:$0xf]  ;;  %v13306_v35 = vld [vmem:[#allocation3 + $0x368] ss:$36 sps:$4 sm:$0xff]   ;;  %938 = vst [vmem:[#allocation3 + $0x3f4] sm:$0xf] %v751_v32  ;;  %5298 = vmatpush2.bf16.msra.mxu0 %v13328_v31  ;;  %5480 = vmatprep.subr.bf16.mxu1 %v13871_v0 }
  0xb4   : > { %v13309_v36 = vld [vmem:[#allocation3 + $0x3ac] ss:$36 sps:$4 sm:$0xff]   ;;  %v761_v37 = vsel %vm14101_vm5, %v756_v27, %v760_v22  ;;  %v416_v38 = vld [vmem:[%s14063_s13 + $0x9c] sm:$0x1]  ;;  %v766_v39 = vrot.slane %v765_v30, 4  ;;  %v768_v40 = vshll.u32 %v415_v33, 16  ;;  %5299 = vmatprep.subr.bf16.mxu0 %v13871_v0 }
  0xb5   : > { %v988_v42 = vld [vmem:[%s14063_s13 + $0x98] sm:$0xf]  ;;  %v13311_v45 = vld [vmem:[#allocation3 + $0x3b4] ss:$36 sps:$4 sm:$0xff]   ;;  %939 = vst [vmem:[#allocation3 + $0x418] sm:$0xf] %v761_v37 }
  0xb6   : > { %v772_v46 = vshrl.u32 %v415_v33, 16  ;;  %v778_v47 = vshll.u32 %v416_v38, 16  ;;  %v989_v48 = vld [vmem:[%s14063_s13 + $0x9c] sm:$0x1]  ;;  %v1152_v49 = vrot.slane %v988_v42, 5  ;;  %v770_v51 = vrot.slane %v768_v40, 5 }
  0xb7   : > { %v1155_v52 = vrot.slane %v989_v48, 5  ;;  %v11659_v53 = vld [vmem:[%s14063_s13 + $0xa8] sm:$0xf]  ;;  %v11660_v54 = vld [vmem:[%s14063_s13 + $0xac] sm:$0xf]  ;;  %v3321_v59 = vld [vmem:[#allocation3 + $0x3a8] sm:$0xff] }
  0xb8   : > { %v774_v55 = vrot.slane %v772_v46, 4  ;;  %v1153_v56 = vsel %vm14091_vm4, %v1151_v34, %v1152_v49  ;;  %v1154_v57 = vrot.slane %v1152_v49, 4  ;;  %1337 = vst [vmem:[#allocation3 + $0x444] sm:$0xf] %v11659_v53  ;;  %1338 = vst [vmem:[#allocation3 + $0x468] sm:$0xf] %v11660_v54  ;;  %v771_v58 = vsel %vm14101_vm5, %v766_v39, %v770_v51  ;;  %5016 = vmatmul.mubr.bf16.gmra.mxu0 %v12039_v43 }
  0xb9   : > { %1253 = vst [vmem:[#allocation3 + $0x440] sm:$0xf] %v1153_v56  ;;  %v3326_v60 = vld [vmem:[#allocation3 + $0x3cc] sm:$0xff]  ;;  %v780_v62 = vrot.slane %v778_v47, 5  ;;  %940 = vst [vmem:[#allocation3 + $0x43c] sm:$0xf] %v771_v58  ;;  %5209 = vmatmul.mubr.bf16.gmra.mxu1 %v13306_v35  ;;  %5023 = vmatprep.mubr.bf16.mxu0 %v13309_v36 }
  0xba   : > { %v775_v61 = vor.u32 %v774_v55, %v770_v51  ;;  %v1156_v63 = vsel %vm14091_vm4, %v1154_v57, %v1155_v52  ;;  %v329_v1 = vld [vmem:[%s14063_s13 + $0xa0] sm:$0xf]  ;;  %5216 = vmatprep.mubr.bf16.mxu1 %v13311_v45  ;;  %v330_v3 = vld [vmem:[%s14063_s13 + $0xa4] sm:$0xf]  ;;  %v13313_v5 = vld [vmem:[#allocation3 + $0x3b0] ss:$36 sps:$4 sm:$0xff]   ;;  %v12048_v9 = vcombine.low %v3321_v59, %v3326_v60 }
  0xbb   : > { %1254 = vst [vmem:[#allocation3 + $0x464] sm:$0xf] %v1156_v63  ;;  %369 = vst [vmem:[#allocation3 + $0x480] sm:$0xf] %v329_v1  ;;  %v417_v4 = vld [vmem:[%s14063_s13 + $0xa0] sm:$0xf] }
  0xbc   : > { %v776_v2 = vrot.slane %v775_v61, 4  ;;  %v13315_v6 = vld [vmem:[#allocation3 + $0x3f4] ss:$36 sps:$4 sm:$0xff]   ;;  %370 = vst [vmem:[#allocation3 + $0x4a4] sm:$0xf] %v330_v3  ;;  %v783_v8 = vshrl.u32 %v417_v4, 16 }
  0xbd   : > { %v418_v7 = vld [vmem:[%s14063_s13 + $0xa4] sm:$0xf]  ;;  %v419_v12 = vld [vmem:[%s14063_s13 + $0xa8] sm:$0xf]  ;;  %v786_v13 = vshll.u32 %v417_v4, 16  ;;  %v3331_v29 = vld [vmem:[#allocation3 + $0x3f0] sm:$0xff] }
  0xbe   : > { %v13317_v10 = vld [vmem:[#allocation3 + $0x3fc] ss:$36 sps:$4 sm:$0xff]   ;;  %v781_v11 = vsel %vm14101_vm5, %v776_v2, %v780_v62  ;;  %v792_v14 = vshll.u32 %v418_v7, 16  ;;  %v990_v15 = vld [vmem:[%s14063_s13 + $0xa0] sm:$0xe]  ;;  %v785_v16 = vrot.slane %v783_v8, 4 }
  0xbf   : > { %941 = vst [vmem:[#allocation3 + $0x460] sm:$0xf] %v781_v11  ;;  %v796_v17 = vshrl.u32 %v418_v7, 16  ;;  %v802_v18 = vshll.u32 %v419_v12, 16  ;;  %v806_v19 = vshrl.u32 %v419_v12, 16  ;;  %v788_v21 = vrot.slane %v786_v13, 5 }
  0xc0   : > { %v991_v20 = vld [vmem:[%s14063_s13 + $0xa4] sm:$0xf]  ;;  %v794_v22 = vrot.slane %v792_v14, 5  ;;  %v992_v23 = vld [vmem:[%s14063_s13 + $0xa8] sm:$0xf]  ;;  %v11625_v24 = vrot.slane %v990_v15, 9  ;;  %5024 = vmatmul.mubr.bf16.gmra.mxu0 %v12048_v9 }
  0xc1   : > { %v798_v25 = vrot.slane %v796_v17, 4  ;;  %v1159_v26 = vrot.slane %v991_v20, 5  ;;  %v1162_v27 = vrot.slane %v992_v23, 5  ;;  %v13334_v28 = vld [vmem:[%s17444_s1 + $0x180] sm:$0xff]   ;;  %v789_v31 = vor.u32 %v788_v21, %v785_v16  ;;  %5217 = vmatmul.mubr.bf16.gmra.mxu1 %v13313_v5  ;;  %5031 = vmatprep.mubr.bf16.mxu0 %v13315_v6  ;;  %v11661_v37 = vld [vmem:[%s14063_s13 + $0xb4] sm:$0xf] }
  0xc2   : > { %v3336_v30 = vld [vmem:[#allocation3 + $0x414] sm:$0xff]  ;;  %v804_v32 = vrot.slane %v802_v18, 5  ;;  %v808_v33 = vrot.slane %v806_v19, 4  ;;  %v11662_v38 = vld [vmem:[%s14063_s13 + $0xb8] sm:$0xf]  ;;  %v13336_v39 = vld [vmem:[%s17444_s1 + $0x150] sm:$0xff]   ;;  %5224 = vmatprep.mubr.bf16.mxu1 %v13317_v10  ;;  %5481 = vmatpush1.bf16.msra.mxu1 %v13334_v28 }
  0xc3   : > { %v799_v34 = vor.u32 %v798_v25, %v794_v22  ;;  %v1160_v35 = vsel %vm14091_vm4, %v11625_v24, %v1159_v26  ;;  %v1161_v36 = vrot.slane %v1159_v26, 4  ;;  %v790_v40 = vrot.slane %v789_v31, 4  ;;  %1339 = vst [vmem:[#allocation3 + $0x48c] sm:$0xf] %v11661_v37  ;;  %1340 = vst [vmem:[#allocation3 + $0x4b0] sm:$0xf] %v11662_v38  ;;  %5482 = vmatprep.subr.bf16.mxu1 %v13871_v0 }
  0xc4   : > { %1255 = vst [vmem:[#allocation3 + $0x488] sm:$0xf] %v1160_v35  ;;  %v13337_v42 = vld [vmem:[%s17444_s1 + $0x1f8] sm:$0xff]   ;;  %v809_v43 = vor.u32 %v808_v33, %v804_v32  ;;  %v13320_v45 = vld [vmem:[#allocation3 + $0x3f8] ss:$36 sps:$4 sm:$0xff]   ;;  %5300 = vmatpush2.bf16.msra.mxu0 %v13336_v39  ;;  %v12057_v48 = vcombine.low %v3331_v29, %v3336_v30  ;;  %v1164_v53 = vrot.slane %v1162_v27, 4 }
  0xc5   : > { %v800_v46 = vrot.slane %v799_v34, 4  ;;  %v1163_v47 = vsel %vm14091_vm4, %v1161_v36, %v1162_v27  ;;  %v13324_v50 = vld [vmem:[#allocation3 + $0x444] ss:$36 sps:$4 sm:$0xff]   ;;  %v795_v51 = vsel %vm14101_vm5, %v790_v40, %v794_v22  ;;  %5301 = vmatprep.subr.bf16.mxu0 %v13871_v0  ;;  %v331_v55 = vld [vmem:[%s14063_s13 + $0xa8] sm:$0xf]  ;;  %v3341_v60 = vld [vmem:[#allocation3 + $0x438] sm:$0xff] }
  0xc6   : > { %v13322_v49 = vld [vmem:[#allocation3 + $0x43c] ss:$36 sps:$4 sm:$0xff]   ;;  %1256 = vst [vmem:[#allocation3 + $0x4ac] sm:$0xf] %v1163_v47  ;;  %v810_v52 = vrot.slane %v809_v43, 4  ;;  %5483 = vmatpush2.bf16.msra.mxu1 %v13337_v42  ;;  %v13342_v6 = vld [vmem:[%s17444_s1 + $0x1f0] sm:$0xff]  }
  0xc7   : > { %v805_v54 = vsel %vm14101_vm5, %v800_v46, %v804_v32  ;;  %942 = vst [vmem:[#allocation3 + $0x484] sm:$0xf] %v795_v51  ;;  %v332_v56 = vld [vmem:[%s14063_s13 + $0xac] sm:$0xf]  ;;  %371 = vst [vmem:[#allocation3 + $0x4c8] sm:$0xf] %v331_v55  ;;  %5484 = vmatprep.subr.bf16.mxu1 %v13871_v0 }
  0xc8   : > { %943 = vst [vmem:[#allocation3 + $0x4a8] sm:$0xf] %v805_v54  ;;  %372 = vst [vmem:[#allocation3 + $0x4ec] sm:$0xf] %v332_v56  ;;  %v420_v57 = vld [vmem:[%s14063_s13 + $0xac] sm:$0xf]  ;;  %5032 = vmatmul.mubr.bf16.gmra.mxu0 %v12057_v48 }
  0xc9   : > { %v421_v58 = vld [vmem:[%s14063_s13 + $0xb0] sm:$0x1]  ;;  %v993_v59 = vld [vmem:[%s14063_s13 + $0xac] sm:$0xf]  ;;  %v812_v61 = vshll.u32 %v420_v57, 16  ;;  %v816_v62 = vshrl.u32 %v420_v57, 16  ;;  %5225 = vmatmul.mubr.bf16.gmra.mxu1 %v13320_v45  ;;  %5039 = vmatprep.mubr.bf16.mxu0 %v13322_v49 }
  0xca   : > { %v822_v63 = vshll.u32 %v421_v58, 16  ;;  %v994_v1 = vld [vmem:[%s14063_s13 + $0xb0] sm:$0x1]  ;;  %v1165_v2 = vrot.slane %v993_v59, 5  ;;  %v11663_v4 = vld [vmem:[%s14063_s13 + $0xbc] sm:$0xf]  ;;  %5232 = vmatprep.mubr.bf16.mxu1 %v13324_v50  ;;  %5485 = vmatpush2.bf16.msra.mxu1 %v13342_v6 }
  0xcb   : > { %v1168_v3 = vrot.slane %v994_v1, 5  ;;  %v11664_v5 = vld [vmem:[%s14063_s13 + $0xc0] sm:$0xf]  ;;  %v3346_v7 = vld [vmem:[#allocation3 + $0x45c] sm:$0xff]  ;;  %v814_v8 = vrot.slane %v812_v61, 5  ;;  %v818_v9 = vrot.slane %v816_v62, 4  ;;  %5486 = vmatprep.subr.bf16.mxu1 %v13871_v0 }
  0xcc   : > { %v1166_v10 = vsel %vm14091_vm4, %v1164_v53, %v1165_v2  ;;  %1341 = vst [vmem:[#allocation3 + $0x4d4] sm:$0xf] %v11663_v4  ;;  %1342 = vst [vmem:[#allocation3 + $0x4f8] sm:$0xf] %v11664_v5  ;;  %v1167_v11 = vrot.slane %v1165_v2, 4  ;;  %v13344_v12 = vld [vmem:[%s17444_s1 + $0x1e8] sm:$0xff]   ;;  %v12066_v17 = vcombine.low %v3341_v60, %v3346_v7 }
  0xcd   : > { %1257 = vst [vmem:[#allocation3 + $0x4d0] sm:$0xf] %v1166_v10  ;;  %v13327_v13 = vld [vmem:[#allocation3 + $0x440] ss:$36 sps:$4 sm:$0xff]   ;;  %v815_v14 = vsel %vm14101_vm5, %v810_v52, %v814_v8  ;;  %v819_v15 = vor.u32 %v818_v9, %v814_v8  ;;  %v824_v16 = vrot.slane %v822_v63, 5  ;;  %v13350_v60 = vld [vmem:[%s17444_s1 + $0x1e0] sm:$0xff]  }
  0xce   : > { %v13332_v18 = vld [vmem:[#allocation3 + $0x48c] ss:$36 sps:$4 sm:$0xff]   ;;  %944 = vst [vmem:[#allocation3 + $0x4cc] sm:$0xf] %v815_v14  ;;  %v1169_v19 = vsel %vm14091_vm4, %v1167_v11, %v1168_v3  ;;  %v3351_v22 = vld [vmem:[#allocation3 + $0x480] sm:$0xff]  ;;  %5487 = vmatpush2.bf16.msra.mxu1 %v13344_v12 }
  0xcf   : > { %v13330_v20 = vld [vmem:[#allocation3 + $0x484] ss:$36 sps:$4 sm:$0xff]   ;;  %v820_v21 = vrot.slane %v819_v15, 4  ;;  %1258 = vst [vmem:[#allocation3 + $0x4f4] sm:$0xf] %v1169_v19  ;;  %5488 = vmatprep.subr.bf16.mxu1 %v13871_v0  ;;  %v13352_v8 = vld [vmem:[%s17444_s1 + $0x1d8] sm:$0xff]  }
  0xd0   : > { %v3356_v23 = vld [vmem:[#allocation3 + $0x4a4] sm:$0xff]  ;;  %v333_v25 = vld [vmem:[%s14063_s13 + $0xb4] sm:$0xf]  ;;  %v334_v26 = vld [vmem:[%s14063_s13 + $0xb8] sm:$0xf]  ;;  %5040 = vmatmul.mubr.bf16.gmra.mxu0 %v12066_v17 }
  0xd1   : > { %v13345_v24 = vld [vmem:[%s17444_s1 + $0x148] sm:$0xff]   ;;  %v825_v27 = vsel %vm14101_vm5, %v820_v21, %v824_v16  ;;  %373 = vst [vmem:[#allocation3 + $0x510] sm:$0xf] %v333_v25  ;;  %374 = vst [vmem:[#allocation3 + $0x534] sm:$0xf] %v334_v26  ;;  %5233 = vmatmul.mubr.bf16.gmra.mxu1 %v13327_v13  ;;  %5047 = vmatprep.mubr.bf16.mxu0 %v13330_v20  ;;  %v12075_v47 = vcombine.low %v3351_v22, %v3356_v23  ;;  %v13357_v25 = vld [vmem:[%s17444_s1 + $0x140] sm:$0xff]  }
  0xd2   : > { %v422_v28 = vld [vmem:[%s14063_s13 + $0xb4] sm:$0xf]  ;;  %v423_v29 = vld [vmem:[%s14063_s13 + $0xb8] sm:$0xf]  ;;  %v424_v30 = vld [vmem:[%s14063_s13 + $0xbc] sm:$0xf]  ;;  %5240 = vmatprep.mubr.bf16.mxu1 %v13332_v18  ;;  %5302 = vmatpush2.bf16.msra.mxu0 %v13345_v24 }
  0xd3   : > { %945 = vst [vmem:[#allocation3 + $0x4f0] sm:$0xf] %v825_v27  ;;  %v827_v31 = vshrl.u32 %v422_v28, 16  ;;  %v830_v32 = vshll.u32 %v422_v28, 16  ;;  %v836_v33 = vshll.u32 %v423_v29, 16  ;;  %v840_v34 = vshrl.u32 %v423_v29, 16  ;;  %5303 = vmatprep.subr.bf16.mxu0 %v13871_v0  ;;  %5489 = vmatpush2.bf16.msra.mxu1 %v13350_v60 }
  0xd4   : > { %v995_v35 = vld [vmem:[%s14063_s13 + $0xb4] sm:$0xe]  ;;  %v846_v36 = vshll.u32 %v424_v30, 16  ;;  %v850_v37 = vshrl.u32 %v424_v30, 16  ;;  %v996_v38 = vld [vmem:[%s14063_s13 + $0xb8] sm:$0xf]  ;;  %5490 = vmatprep.subr.bf16.mxu1 %v13871_v0 }
  0xd5   : > { %v11626_v39 = vrot.slane %v995_v35, 9  ;;  %v829_v40 = vrot.slane %v827_v31, 4  ;;  %v832_v42 = vrot.slane %v830_v32, 5  ;;  %v838_v43 = vrot.slane %v836_v33, 5  ;;  %v997_v46 = vld [vmem:[%s14063_s13 + $0xbc] sm:$0xf] }
  0xd6   : > { %v842_v45 = vrot.slane %v840_v34, 4  ;;  %v13335_v48 = vld [vmem:[#allocation3 + $0x488] ss:$36 sps:$4 sm:$0xff]   ;;  %v1172_v49 = vrot.slane %v996_v38, 5  ;;  %v1175_v50 = vrot.slane %v997_v46, 5  ;;  %v848_v55 = vrot.slane %v846_v36, 5  ;;  %5304 = vmatpush2.bf16.msra.mxu0 %v13357_v25 }
  0xd7   : > { %v11665_v51 = vld [vmem:[%s14063_s13 + $0xc8] sm:$0xf]  ;;  %v13340_v52 = vld [vmem:[#allocation3 + $0x4d4] ss:$36 sps:$4 sm:$0xff]   ;;  %v833_v53 = vor.u32 %v832_v42, %v829_v40  ;;  %v852_v56 = vrot.slane %v850_v37, 4  ;;  %v3361_v61 = vld [vmem:[#allocation3 + $0x4c8] sm:$0xff]  ;;  %5491 = vmatpush2.bf16.msra.mxu1 %v13352_v8 }
  0xd8   : > { %v843_v54 = vor.u32 %v842_v45, %v838_v43  ;;  %1343 = vst [vmem:[#allocation3 + $0x51c] sm:$0xf] %v11665_v51  ;;  %v1173_v57 = vsel %vm14091_vm4, %v11626_v39, %v1172_v49  ;;  %v1174_v58 = vrot.slane %v1172_v49, 4  ;;  %v11666_v59 = vld [vmem:[%s14063_s13 + $0xcc] sm:$0xf]  ;;  %v1177_v5 = vrot.slane %v1175_v50, 4  ;;  %5048 = vmatmul.mubr.bf16.gmra.mxu0 %v12075_v47  ;;  %5492 = vmatprep.subr.bf16.mxu1 %v13871_v0 }
  0xd9   : > { %v834_v62 = vrot.slane %v833_v53, 4  ;;  %1259 = vst [vmem:[#allocation3 + $0x518] sm:$0xf] %v1173_v57  ;;  %1344 = vst [vmem:[#allocation3 + $0x540] sm:$0xf] %v11666_v59  ;;  %v853_v1 = vor.u32 %v852_v56, %v848_v55  ;;  %5241 = vmatmul.mubr.bf16.gmra.mxu1 %v13335_v48  ;;  %v13358_v30 = vld [vmem:[%s17444_s1 + $0x1d0] sm:$0xff]  }
  0xda   : > { %v844_v63 = vrot.slane %v843_v54, 4  ;;  %v3366_v2 = vld [vmem:[#allocation3 + $0x4ec] sm:$0xff]  ;;  %v1176_v4 = vsel %vm14091_vm4, %v1174_v58, %v1175_v50  ;;  %v335_v9 = vld [vmem:[%s14063_s13 + $0xbc] sm:$0xf]  ;;  %v336_v10 = vld [vmem:[%s14063_s13 + $0xc0] sm:$0xf]  ;;  %5248 = vmatprep.mubr.bf16.mxu1 %v13340_v52 }
  0xdb   : > { %v13338_v3 = vld [vmem:[#allocation3 + $0x4cc] ss:$36 sps:$4 sm:$0xff]   ;;  %v839_v6 = vsel %vm14101_vm5, %v834_v62, %v838_v43  ;;  %1260 = vst [vmem:[#allocation3 + $0x53c] sm:$0xf] %v1176_v4  ;;  %v854_v11 = vrot.slane %v853_v1, 4  ;;  %v12084_v20 = vcombine.low %v3361_v61, %v3366_v2  ;;  %5493 = vmatpush2.bf16.msra.mxu1 %v13358_v30  ;;  %v13360_v40 = vld [vmem:[%s17444_s1 + $0x1c8] sm:$0xff]  }
  0xdc   : > { %v849_v7 = vsel %vm14101_vm5, %v844_v63, %v848_v55  ;;  %5055 = vmatprep.mubr.bf16.mxu0 %v13338_v3  ;;  %946 = vst [vmem:[#allocation3 + $0x514] sm:$0xf] %v839_v6  ;;  %375 = vst [vmem:[#allocation3 + $0x558] sm:$0xf] %v335_v9  ;;  %v425_v12 = vld [vmem:[%s14063_s13 + $0xc0] sm:$0xf]  ;;  %5494 = vmatprep.subr.bf16.mxu1 %v13871_v0 }
  0xdd   : > { %947 = vst [vmem:[#allocation3 + $0x538] sm:$0xf] %v849_v7  ;;  %376 = vst [vmem:[#allocation3 + $0x57c] sm:$0xf] %v336_v10  ;;  %v426_v13 = vld [vmem:[%s14063_s13 + $0xc4] sm:$0x1] }
  0xde   : > { %v998_v14 = vld [vmem:[%s14063_s13 + $0xc0] sm:$0xf]  ;;  %v856_v15 = vshll.u32 %v425_v12, 16  ;;  %v860_v16 = vshrl.u32 %v425_v12, 16  ;;  %v866_v17 = vshll.u32 %v426_v13, 16  ;;  %v14632_v56 = vld [vmem:[%s17444_s1 + $0x238] sm:$0xff]  }
  0xdf   : > { %v999_v18 = vld [vmem:[%s14063_s13 + $0xc4] sm:$0x1]  ;;  %v1178_v19 = vrot.slane %v998_v14, 5  ;;  %v13343_v21 = vld [vmem:[#allocation3 + $0x4d0] ss:$36 sps:$4 sm:$0xff]   ;;  %5495 = vmatpush2.bf16.msra.mxu1 %v13360_v40  ;;  %13016 = vmatprep.subr.bf16.mxu0 %v14632_v56 }
  0xe0   : > { %v1181_v22 = vrot.slane %v999_v18, 5  ;;  %v11667_v23 = vld [vmem:[%s14063_s13 + $0xd0] sm:$0xf]  ;;  %v11668_v24 = vld [vmem:[%s14063_s13 + $0xd4] sm:$0xf]  ;;  %v858_v26 = vrot.slane %v856_v15, 5  ;;  %5056 = vmatmul.mubr.bf16.gmra.mxu0 %v12084_v20  ;;  %5496 = vmatprep.subr.bf16.mxu1 %v13871_v0 }
  0xe1   : > { %v862_v27 = vrot.slane %v860_v16, 4  ;;  %v868_v28 = vrot.slane %v866_v17, 5  ;;  %v1179_v29 = vsel %vm14091_vm4, %v1177_v5, %v1178_v19  ;;  %1345 = vst [vmem:[#allocation3 + $0x564] sm:$0xf] %v11667_v23  ;;  %1346 = vst [vmem:[#allocation3 + $0x588] sm:$0xf] %v11668_v24  ;;  %5249 = vmatmul.mubr.bf16.gmra.mxu1 %v13343_v21 }
  0xe2   : > { %v1180_v31 = vrot.slane %v1178_v19, 4  ;;  %1261 = vst [vmem:[#allocation3 + $0x560] sm:$0xf] %v1179_v29  ;;  %v859_v32 = vsel %vm14101_vm5, %v854_v11, %v858_v26  ;;  %v13348_v34 = vld [vmem:[#allocation3 + $0x51c] ss:$36 sps:$4 sm:$0xff]  }
  0xe3   : > { %v863_v33 = vor.u32 %v862_v27, %v858_v26  ;;  %948 = vst [vmem:[#allocation3 + $0x55c] sm:$0xf] %v859_v32  ;;  %v3371_v36 = vld [vmem:[#allocation3 + $0x510] sm:$0xff]  ;;  %v11669_v42 = vld [vmem:[%s14063_s13 + $0x14] sm:$0xf]  ;;  %5256 = vmatprep.mubr.bf16.mxu1 %v13348_v34  ;;  %v13364_v50 = vld [vmem:[%s17444_s1 + $0x1c0] sm:$0xff]  }
  0xe4   : > { %v1182_v35 = vsel %vm14091_vm4, %v1180_v31, %v1181_v22  ;;  %v3376_v37 = vld [vmem:[#allocation3 + $0x534] sm:$0xff]  ;;  %v11670_v43 = vld [vmem:[%s14063_s13 + $0x18] sm:$0xf]  ;;  %v1398_v47 = vshrl.u32 %v11669_v42, 16  ;;  %v1401_v48 = vshll.u32 %v11669_v42, 16  ;;  %5497 = vmatpush2.bf16.msra.mxu1 %v13364_v50 }
  0xe5   : > { %v13346_v38 = vld [vmem:[#allocation3 + $0x514] ss:$36 sps:$4 sm:$0xff]   ;;  %v864_v39 = vrot.slane %v863_v33, 4  ;;  %1262 = vst [vmem:[#allocation3 + $0x584] sm:$0xf] %v1182_v35  ;;  %v1407_v49 = vshll.u32 %v11670_v43, 16  ;;  %v12093_v57 = vcombine.low %v3371_v36, %v3376_v37 }
  0xe6   : > { %5063 = vmatprep.mubr.bf16.mxu0 %v13346_v38  ;;  %v11671_v46 = vld [vmem:[%s14063_s13 + $0x1c] sm:$0xf]  ;;  %v13351_v51 = vld [vmem:[#allocation3 + $0x518] ss:$36 sps:$4 sm:$0xff]   ;;  %v1411_v52 = vshrl.u32 %v11670_v43, 16  ;;  %v1400_v58 = vrot.slane %v1398_v47, 4 }
  0xe7   : > { %v869_v45 = vsel %vm14101_vm5, %v864_v39, %v868_v28  ;;  %v1417_v53 = vshll.u32 %v11671_v46, 16  ;;  %v1421_v54 = vshrl.u32 %v11671_v46, 16  ;;  %v11719_v55 = vld [vmem:[%s14063_s13 + $0x14] sm:$0xe]  ;;  %v1403_v59 = vrot.slane %v1401_v48, 5 }
  0xe8   : > { %949 = vst [vmem:[#allocation3 + $0x580] sm:$0xf] %v869_v45  ;;  %v1409_v60 = vrot.slane %v1407_v49, 5  ;;  %v11720_v61 = vld [vmem:[%s14063_s13 + $0x18] sm:$0xf]  ;;  %v1413_v62 = vrot.slane %v1411_v52, 4  ;;  %5064 = vmatmul.mubr.bf16.gmra.mxu0 %v12093_v57 }
  0xe9   : > { %v11721_v63 = vld [vmem:[%s14063_s13 + $0x1c] sm:$0xf]  ;;  %v11769_v1 = vrot.slane %v11719_v55, 9  ;;  %v2019_v2 = vrot.slane %v11720_v61, 5  ;;  %v1404_v3 = vor.u32 %v1403_v59, %v1400_v58  ;;  %v13355_v6 = vld [vmem:[#allocation3 + $0x564] ss:$36 sps:$4 sm:$0xff]   ;;  %5257 = vmatmul.mubr.bf16.gmra.mxu1 %v13351_v51 }
  0xea   : > { %v2022_v4 = vrot.slane %v11721_v63, 5  ;;  %v3381_v5 = vld [vmem:[#allocation3 + $0x558] sm:$0xff]  ;;  %v1414_v7 = vor.u32 %v1413_v62, %v1409_v60  ;;  %v1419_v8 = vrot.slane %v1417_v53, 5  ;;  %v1423_v11 = vrot.slane %v1421_v54, 4  ;;  %v11781_v14 = vld [vmem:[%s14063_s13 + $0x28] sm:$0xf]  ;;  %5264 = vmatprep.mubr.bf16.mxu1 %v13355_v6 }
  0xeb   : > { %v2020_v0 = vsel %vm14091_vm4, %v11769_v1, %v2019_v2  ;;  %v2021_v9 = vrot.slane %v2019_v2, 4  ;;  %v1405_v10 = vrot.slane %v1404_v3, 4  ;;  %v11782_v15 = vld [vmem:[%s14063_s13 + $0x2c] sm:$0xf]  ;;  %2271 = vst [vmem:[#allocation3 + $0x18] sm:$0xf] %v11781_v14 }
  0xec   : > { %2187 = vst [vmem:[#allocation3 + $0x14] sm:$0xf] %v2020_v0  ;;  %v1415_v12 = vrot.slane %v1414_v7, 4  ;;  %2272 = vst [vmem:[#allocation3 + $0x3c] sm:$0xf] %v11782_v15  ;;  %v1424_v20 = vor.u32 %v1423_v11, %v1419_v8  ;;  %v2024_v21 = vrot.slane %v2022_v4, 4 }
  0xed   : > { %v2023_v13 = vsel %vm14091_vm4, %v2021_v9, %v2022_v4  ;;  %v1410_v18 = vsel %vm14101_vm5, %v1405_v10, %v1409_v60  ;;  %v11821_v19 = vld [vmem:[%s14063_s13 + $0x28] sm:$0xf]  ;;  %v11822_v25 = vld [vmem:[%s14063_s13 + $0x2c] sm:$0xf]  ;;  %v11823_v26 = vld [vmem:[%s14063_s13 + $0x30] sm:$0xf] }
  0xee   : > { %2188 = vst [vmem:[#allocation3 + $0x38] sm:$0xf] %v2023_v13  ;;  %v13359_v23 = vld [vmem:[#allocation3 + $0x560] ss:$36 sps:$4 sm:$0xff]   ;;  %v1420_v24 = vsel %vm14101_vm5, %v1415_v12, %v1419_v8  ;;  %1877 = vst [vmem:[#allocation3 + $0x10] sm:$0xf] %v1410_v18 }
  0xef   : > { %v3386_v16 = vld [vmem:[#allocation3 + $0x57c] sm:$0xff]  ;;  %v2362_v27 = vshrl.u32 %v11821_v19, 16  ;;  %v2365_v28 = vshll.u32 %v11821_v19, 16  ;;  %1878 = vst [vmem:[#allocation3 + $0x34] sm:$0xf] %v1420_v24  ;;  %v2371_v29 = vshll.u32 %v11822_v25, 16 }
  0xf0   : > { %v13353_v17 = vld [vmem:[#allocation3 + $0x55c] ss:$36 sps:$4 sm:$0xff]   ;;  %v12102_v22 = vcombine.low %v3381_v5, %v3386_v16  ;;  %v2375_v30 = vshrl.u32 %v11822_v25, 16  ;;  %v2381_v31 = vshll.u32 %v11823_v26, 16  ;;  %v2385_v32 = vshrl.u32 %v11823_v26, 16  ;;  %v13381_v24 = vld [vmem:[%s17444_s1 + $0x230] sm:$0xff]  }
  0xf1   : > { %5071 = vmatprep.mubr.bf16.mxu0 %v13353_v17  ;;  %v11672_v33 = vld [vmem:[%s14063_s13 + $0x20] sm:$0xf]  ;;  %v2364_v34 = vrot.slane %v2362_v27, 4  ;;  %v2367_v35 = vrot.slane %v2365_v28, 5  ;;  %v11673_v36 = vld [vmem:[%s14063_s13 + $0x24] sm:$0x1]  ;;  %5265 = vmatmul.mubr.bf16.gmra.mxu1 %v13359_v23 }
  0xf2   : > { %v1425_v37 = vrot.slane %v1424_v20, 4  ;;  %v1427_v38 = vshll.u32 %v11672_v33, 16  ;;  %v2373_v39 = vrot.slane %v2371_v29, 5  ;;  %v2377_v40 = vrot.slane %v2375_v30, 4  ;;  %v11722_v45 = vld [vmem:[%s14063_s13 + $0x20] sm:$0xf]  ;;  %5072 = vmatmul.mubr.bf16.gmra.mxu0 %v12102_v22 }
  0xf3   : > { %v2383_v42 = vrot.slane %v2381_v31, 5  ;;  %v1431_v43 = vshrl.u32 %v11672_v33, 16  ;;  %v2368_v46 = vor.u32 %v2367_v35, %v2364_v34  ;;  %v1437_v48 = vshll.u32 %v11673_v36, 16  ;;  %v11723_v49 = vld [vmem:[%s14063_s13 + $0x24] sm:$0x1] }
  0xf4   : > { %v1429_v47 = vrot.slane %v1427_v38, 5  ;;  %v2025_v50 = vrot.slane %v11722_v45, 5  ;;  %v2378_v51 = vor.u32 %v2377_v40, %v2373_v39  ;;  %v2028_v53 = vrot.slane %v11723_v49, 5  ;;  %v11783_v54 = vld [vmem:[%s14063_s13 + $0x30] sm:$0xf] }
  0xf5   : > { %v1433_v52 = vrot.slane %v1431_v43, 4  ;;  %v11784_v55 = vld [vmem:[%s14063_s13 + $0x34] sm:$0xf]  ;;  %v2369_v57 = vrot.slane %v2368_v46, 4  ;;  %v1439_v59 = vrot.slane %v1437_v48, 5  ;;  %v2387_v3 = vrot.slane %v2385_v32, 4 }
  0xf6   : > { %v1430_v58 = vsel %vm14101_vm5, %v1425_v37, %v1429_v47  ;;  %v2026_v60 = vsel %vm14091_vm4, %v2024_v21, %v2025_v50  ;;  %2273 = vst [vmem:[#allocation3 + $0x60] sm:$0xf] %v11783_v54  ;;  %2274 = vst [vmem:[#allocation3 + $0x84] sm:$0xf] %v11784_v55  ;;  %v11824_v61 = vld [vmem:[%s14063_s13 + $0x34] sm:$0xf] }
  0xf7   : > { %v11825_v62 = vld [vmem:[%s14063_s13 + $0x38] sm:$0x1]  ;;  %v2379_v63 = vrot.slane %v2378_v51, 4  ;;  %v1434_v1 = vor.u32 %v1433_v52, %v1429_v47  ;;  %1879 = vst [vmem:[#allocation3 + $0x58] sm:$0xf] %v1430_v58  ;;  %v2027_v2 = vrot.slane %v2025_v50, 4  ;;  %v2374_v7 = vsel %vm14101_vm5, %v2369_v57, %v2373_v39 }
  0xf8   : > { %2189 = vst [vmem:[#allocation3 + $0x5c] sm:$0xf] %v2026_v60  ;;  %v11674_v4 = vld [vmem:[%s14063_s13 + $0x28] sm:$0xf]  ;;  %v13361_v5 = vld [vmem:[#allocation3 + $0x10] ss:$36 sps:$4 sm:$0xff]   ;;  %v2388_v11 = vor.u32 %v2387_v3, %v2383_v42 }
  0xf9   : > { %v13363_v6 = vld [vmem:[#allocation3 + $0x14] ss:$36 sps:$4 sm:$0xff]   ;;  %v2391_v8 = vshll.u32 %v11824_v61, 16  ;;  %v2384_v0 = vsel %vm14101_vm5, %v2379_v63, %v2383_v42  ;;  %2841 = vst [vmem:[#allocation3 + $0x1c] sm:$0xf] %v2374_v7  ;;  %v1435_v9 = vrot.slane %v1434_v1, 4  ;;  %v2029_v10 = vsel %vm14091_vm4, %v2027_v2, %v2028_v53 }
  0xfa   : > { %v11675_v12 = vld [vmem:[%s14063_s13 + $0x2c] sm:$0xf]  ;;  %v14672_v13 = vld [vmem:[%s14063_s13 + $0x30] sm:$0xf]  ;;  %5305 = vmatprep.mubr.bf16.mxu0 %v13363_v6  ;;  %2842 = vst [vmem:[#allocation3 + $0x40] sm:$0xf] %v2384_v0 }
  0xfb   : > { %2190 = vst [vmem:[#allocation3 + $0x80] sm:$0xf] %v2029_v10  ;;  %v2393_v14 = vrot.slane %v2391_v8, 5  ;;  %v2395_v15 = vshrl.u32 %v11824_v61, 16  ;;  %v2401_v16 = vshll.u32 %v11825_v62, 16  ;;  %v1442_v17 = vshrl.u32 %v11674_v4, 16  ;;  %5306 = vmatmul.mubr.bf16.vlgmr.msra.gmra.mxu0 %v13361_v5 }
  0xfc   : > { %v11724_v18 = vld [vmem:[%s14063_s13 + $0x28] sm:$0xe]  ;;  %v1440_v19 = vsel %vm14101_vm5, %v1435_v9, %v1439_v59  ;;  %v2389_v20 = vrot.slane %v2388_v11, 4  ;;  %v1445_v21 = vshll.u32 %v11674_v4, 16  ;;  %v1451_v22 = vshll.u32 %v11675_v12, 16  ;;  %13017 = vmatpush3.bf16.msra.mxu0 %v14632_v56  ;;  %v13413_v60 = vld [vmem:[%s17444_s1 + $0x220] sm:$0xff]  }
  0xfd   : > { %v11725_v23 = vld [vmem:[%s14063_s13 + $0x2c] sm:$0xf]  ;;  %1880 = vst [vmem:[#allocation3 + $0x7c] sm:$0xf] %v1440_v19  ;;  %v2397_v25 = vrot.slane %v2395_v15, 4  ;;  %v2403_v26 = vrot.slane %v2401_v16, 5  ;;  %13018 = vmatprep.subr.bf16.mxu0 %v13381_v24 }
  0xfe   : > { %v1444_v27 = vrot.slane %v1442_v17, 4  ;;  %v1455_v28 = vshrl.u32 %v11675_v12, 16  ;;  %v14682_v29 = vld [vmem:[%s14063_s13 + $0x30] sm:$0xf]  ;;  %v2394_v30 = vsel %vm14101_vm5, %v2389_v20, %v2393_v14  ;;  %v1447_v31 = vrot.slane %v1445_v21, 5  ;;  %v13397_v56 = vld [vmem:[%s17444_s1 + $0x228] sm:$0xff]  }
  0xff   : > { %v1453_v32 = vrot.slane %v1451_v22, 5  ;;  %v1461_v33 = vshll.u32 %v14672_v13, 16  ;;  %v11785_v34 = vld [vmem:[%s14063_s13 + $0x3c] sm:$0xf]  ;;  %v2398_v35 = vor.u32 %v2397_v25, %v2393_v14  ;;  %2843 = vst [vmem:[#allocation3 + $0x64] sm:$0xf] %v2394_v30 }
 0x100   : > { %v1457_v36 = vrot.slane %v1455_v28, 4  ;;  %v1465_v37 = vshrl.u32 %v14672_v13, 16  ;;  %v11770_v38 = vrot.slane %v11724_v18, 9  ;;  %v11786_v39 = vld [vmem:[%s14063_s13 + $0x40] sm:$0xf]  ;;  %v1448_v40 = vor.u32 %v1447_v31, %v1444_v27  ;;  %13019 = vmatpush3.bf16.msra.mxu0 %v13381_v24  ;;  %v13429_v25 = vld [vmem:[%s17444_s1 + $0x218] sm:$0xff]  }
 0x101   : > { %2275 = vst [vmem:[#allocation3 + $0xa8] sm:$0xf] %v11785_v34  ;;  %v14691_v42 = vrot.slane %v1461_v33, 5  ;;  %v2032_v43 = vrot.slane %v11725_v23, 5  ;;  %v2035_v45 = vrot.slane %v14682_v29, 5  ;;  %v2399_v47 = vrot.slane %v2398_v35, 4  ;;  %13020 = vmatprep.subr.bf16.mxu0 %v13397_v56 }
 0x102   : > { %2276 = vst [vmem:[#allocation3 + $0xcc] sm:$0xf] %v11786_v39  ;;  %v11826_v46 = vld [vmem:[%s14063_s13 + $0x3c] sm:$0xf]  ;;  %v1458_v48 = vor.u32 %v1457_v36, %v1453_v32  ;;  %v11827_v49 = vld [vmem:[%s14063_s13 + $0x40] sm:$0xf] }
 0x103   : > { %v14700_v50 = vld [vmem:[%s14063_s13 + $0x44] sm:$0xf]  ;;  %v1449_v53 = vrot.slane %v1448_v40, 4  ;;  %v2033_v54 = vsel %vm14091_vm4, %v11770_v38, %v2032_v43  ;;  %v2404_v55 = vsel %vm14101_vm5, %v2399_v47, %v2403_v26  ;;  %v2034_v58 = vrot.slane %v2032_v43, 4  ;;  %v11677_v6 = vld [vmem:[%s14063_s13 + $0x34] sm:$0xf] }
 0x104   : > { %v13366_v51 = vld [vmem:[#allocation3 + $0x18] ss:$36 sps:$4 sm:$0xff]   ;;  %v1459_v57 = vrot.slane %v1458_v48, 4  ;;  %2191 = vst [vmem:[#allocation3 + $0xa4] sm:$0xf] %v2033_v54  ;;  %v2406_v59 = vshrl.u32 %v11826_v46, 16  ;;  %13021 = vmatpush3.bf16.msra.mxu0 %v13397_v56 }
 0x105   : > { %v13368_v52 = vld [vmem:[#allocation3 + $0x1c] ss:$36 sps:$4 sm:$0xff]   ;;  %2844 = vst [vmem:[#allocation3 + $0x88] sm:$0xf] %v2404_v55  ;;  %v1454_v63 = vsel %vm14101_vm5, %v1449_v53, %v1453_v32  ;;  %v2409_v1 = vshll.u32 %v11826_v46, 16  ;;  %v2036_v3 = vsel %vm14091_vm4, %v2034_v58, %v2035_v45  ;;  %v2415_v5 = vshll.u32 %v11827_v49, 16  ;;  %13022 = vmatprep.subr.bf16.mxu0 %v13413_v60 }
 0x106   : > { %5498 = vmatprep.mubr.bf16.mxu1 %v13368_v52  ;;  %v13369_v61 = vld [vmem:[#allocation3 + $0x5c] ss:$36 sps:$4 sm:$0xff]   ;;  %v1464_v2 = vsel %vm14101_vm5, %v1459_v57, %v14691_v42  ;;  %1881 = vst [vmem:[#allocation3 + $0xa0] sm:$0xf] %v1454_v63  ;;  %v2408_v4 = vrot.slane %v2406_v59, 4  ;;  %v2419_v8 = vshrl.u32 %v11827_v49, 16 }
 0x107   : > { %v13371_v62 = vld [vmem:[#allocation3 + $0x58] ss:$36 sps:$4 sm:$0xff]   ;;  %5499 = vmatmul.mubr.bf16.vlgmr.msra.gmra.mxu1 %v13366_v51  ;;  %5313 = vmatprep.mubr.bf16.mxu0 %v13369_v61  ;;  %1882 = vst [vmem:[#allocation3 + $0xc4] sm:$0xf] %v1464_v2  ;;  %2192 = vst [vmem:[#allocation3 + $0xc8] sm:$0xf] %v2036_v3 }
 0x108   : > { %v2411_v7 = vrot.slane %v2409_v1, 5  ;;  %v2425_v0 = vshll.u32 %v14700_v50, 16  ;;  %v2429_v9 = vshrl.u32 %v14700_v50, 16  ;;  %5314 = vmatmul.mubr.bf16.gmra.mxu0 %v13371_v62  ;;  %v2417_v10 = vrot.slane %v2415_v5, 5  ;;  %v11678_v11 = vld [vmem:[%s14063_s13 + $0x38] sm:$0x1] }
 0x109   : > { %v1467_v12 = vrot.slane %v1465_v37, 4  ;;  %v1471_v13 = vshll.u32 %v11677_v6, 16  ;;  %v1475_v14 = vshrl.u32 %v11677_v6, 16  ;;  %v2421_v16 = vrot.slane %v2419_v8, 4  ;;  %v11727_v19 = vld [vmem:[%s14063_s13 + $0x34] sm:$0xf]  ;;  %13023 = vmatpush3.bf16.msra.mxu0 %v13413_v60 }
 0x10a   : > { %v2412_v15 = vor.u32 %v2411_v7, %v2408_v4  ;;  %v14720_v17 = vrot.slane %v2425_v0, 5  ;;  %v1481_v18 = vshll.u32 %v11678_v11, 16  ;;  %v11728_v23 = vld [vmem:[%s14063_s13 + $0x38] sm:$0x1]  ;;  %v2037_v24 = vrot.slane %v2035_v45, 4  ;;  %v13445_v40 = vld [vmem:[%s17444_s1 + $0x210] sm:$0xff]   ;;  %13024 = vmatprep.subr.bf16.mxu0 %v13429_v25 }
 0x10b   : > { %v1468_v20 = vor.u32 %v1467_v12, %v14691_v42  ;;  %v1473_v21 = vrot.slane %v1471_v13, 5  ;;  %v1477_v22 = vrot.slane %v1475_v14, 4  ;;  %v2422_v27 = vor.u32 %v2421_v16, %v2417_v10  ;;  %v11787_v30 = vld [vmem:[%s14063_s13 + $0x44] sm:$0xf]  ;;  %v13374_v32 = vld [vmem:[#allocation3 + $0x60] ss:$36 sps:$4 sm:$0xff]  }
 0x10c   : > { %v2413_v26 = vrot.slane %v2412_v15, 4  ;;  %v1483_v28 = vrot.slane %v1481_v18, 5  ;;  %v2038_v29 = vrot.slane %v11727_v19, 5  ;;  %v13372_v31 = vld [vmem:[#allocation3 + $0x64] ss:$36 sps:$4 sm:$0xff]   ;;  %v2041_v47 = vrot.slane %v11728_v23, 5 }
 0x10d   : > { %v1469_v33 = vrot.slane %v1468_v20, 4  ;;  %v1478_v34 = vor.u32 %v1477_v22, %v1473_v21  ;;  %2277 = vst [vmem:[#allocation3 + $0xf0] sm:$0xf] %v11787_v30  ;;  %v2423_v36 = vrot.slane %v2422_v27, 4  ;;  %v11788_v39 = vld [vmem:[%s14063_s13 + $0x48] sm:$0xf]  ;;  %5506 = vmatprep.mubr.bf16.mxu1 %v13372_v31  ;;  %13025 = vmatpush3.bf16.msra.mxu0 %v13429_v25 }
 0x10e   : > { %v2418_v35 = vsel %vm14101_vm5, %v2413_v26, %v2417_v10  ;;  %v2039_v37 = vsel %vm14091_vm4, %v2037_v24, %v2038_v29  ;;  %v2040_v38 = vrot.slane %v2038_v29, 4  ;;  %v13375_v42 = vld [vmem:[#allocation3 + $0xa4] ss:$36 sps:$4 sm:$0xff]   ;;  %2278 = vst [vmem:[#allocation3 + $0x114] sm:$0xf] %v11788_v39  ;;  %v2431_v50 = vrot.slane %v2429_v9, 4  ;;  %13026 = vmatprep.subr.bf16.mxu0 %v13445_v40 }
 0x10f   : > { %v13377_v43 = vld [vmem:[#allocation3 + $0xa0] ss:$36 sps:$4 sm:$0xff]   ;;  %2845 = vst [vmem:[#allocation3 + $0xac] sm:$0xf] %v2418_v35  ;;  %v1474_v45 = vsel %vm14101_vm5, %v1469_v33, %v1473_v21  ;;  %v1479_v46 = vrot.slane %v1478_v34, 4  ;;  %5507 = vmatmul.mubr.bf16.gmra.mxu1 %v13374_v32  ;;  %v2428_v56 = vsel %vm14101_vm5, %v2423_v36, %v14720_v17  ;;  %5321 = vmatprep.mubr.bf16.mxu0 %v13375_v42 }
 0x110   : > { %2193 = vst [vmem:[#allocation3 + $0xec] sm:$0xf] %v2039_v37  ;;  %1883 = vst [vmem:[#allocation3 + $0xe8] sm:$0xf] %v1474_v45  ;;  %v11829_v48 = vld [vmem:[%s14063_s13 + $0x48] sm:$0xf]  ;;  %5322 = vmatmul.mubr.bf16.gmra.mxu0 %v13377_v43  ;;  %v2042_v57 = vsel %vm14091_vm4, %v2040_v38, %v2041_v47  ;;  %v2432_v58 = vor.u32 %v2431_v50, %v14720_v17 }
 0x111   : > { %v11830_v49 = vld [vmem:[%s14063_s13 + $0x4c] sm:$0x1]  ;;  %2846 = vst [vmem:[#allocation3 + $0xd0] sm:$0xf] %v2428_v56  ;;  %v1484_v51 = vsel %vm14101_vm5, %v1479_v46, %v1483_v28  ;;  %v2435_v52 = vshll.u32 %v11829_v48, 16  ;;  %v2439_v53 = vshrl.u32 %v11829_v48, 16  ;;  %13027 = vmatpush3.bf16.msra.mxu0 %v13445_v40 }
 0x112   : > { %v2445_v54 = vshll.u32 %v11830_v49, 16  ;;  %v11679_v55 = vld [vmem:[%s14063_s13 + $0x3c] sm:$0xf]  ;;  %1884 = vst [vmem:[#allocation3 + $0x10c] sm:$0xf] %v1484_v51  ;;  %v2433_v5 = vrot.slane %v2432_v58, 4 }
 0x113   : > { %v11680_v59 = vld [vmem:[%s14063_s13 + $0x40] sm:$0xf]  ;;  %v11681_v60 = vld [vmem:[%s14063_s13 + $0x44] sm:$0xf]  ;;  %v1486_v61 = vshrl.u32 %v11679_v55, 16  ;;  %v1489_v62 = vshll.u32 %v11679_v55, 16 }
 0x114   : > { %2194 = vst [vmem:[#allocation3 + $0x110] sm:$0xf] %v2042_v57  ;;  %v2437_v63 = vrot.slane %v2435_v52, 5  ;;  %v2441_v1 = vrot.slane %v2439_v53, 4  ;;  %v2447_v2 = vrot.slane %v2445_v54, 5  ;;  %v1495_v3 = vshll.u32 %v11680_v59, 16 }
 0x115   : > { %v11729_v4 = vld [vmem:[%s14063_s13 + $0x3c] sm:$0xe]  ;;  %v1488_v6 = vrot.slane %v1486_v61, 4  ;;  %v1491_v7 = vrot.slane %v1489_v62, 5  ;;  %v1499_v8 = vshrl.u32 %v11680_v59, 16  ;;  %v1505_v11 = vshll.u32 %v11681_v60, 16 }
 0x116   : > { %v11730_v0 = vld [vmem:[%s14063_s13 + $0x40] sm:$0xf]  ;;  %v2442_v9 = vor.u32 %v2441_v1, %v2437_v63  ;;  %v1497_v10 = vrot.slane %v1495_v3, 5  ;;  %v1509_v12 = vshrl.u32 %v11681_v60, 16  ;;  %v14755_v13 = vld [vmem:[%s14063_s13 + $0x44] sm:$0xf]  ;;  %v2438_v14 = vsel %vm14101_vm5, %v2433_v5, %v2437_v63 }
 0x117   : > { %v1492_v15 = vor.u32 %v1491_v7, %v1488_v6  ;;  %v1501_v16 = vrot.slane %v1499_v8, 4  ;;  %v11771_v17 = vrot.slane %v11729_v4, 9  ;;  %v11789_v18 = vld [vmem:[%s14063_s13 + $0x50] sm:$0xf]  ;;  %2847 = vst [vmem:[#allocation3 + $0xf4] sm:$0xf] %v2438_v14 }
 0x118   : > { %v2443_v19 = vrot.slane %v2442_v9, 4  ;;  %v1507_v20 = vrot.slane %v1505_v11, 5  ;;  %v2045_v21 = vrot.slane %v11730_v0, 5  ;;  %v2048_v22 = vrot.slane %v14755_v13, 5  ;;  %2279 = vst [vmem:[#allocation3 + $0x138] sm:$0xf] %v11789_v18  ;;  %v5114_v0 = vpop.f32.mrf.mxu1 }
 0x119   : > { %v13378_v23 = vld [vmem:[#allocation3 + $0xac] ss:$36 sps:$4 sm:$0xff]   ;;  %v1493_v25 = vrot.slane %v1492_v15, 4  ;;  %v1502_v26 = vor.u32 %v1501_v16, %v1497_v10  ;;  %v11831_v31 = vld [vmem:[%s14063_s13 + $0x50] sm:$0xf]  ;;  %v1511_v32 = vrot.slane %v1509_v12, 4 }
 0x11a   : > { %v13380_v24 = vld [vmem:[#allocation3 + $0xa8] ss:$36 sps:$4 sm:$0xff]   ;;  %v2448_v27 = vsel %vm14101_vm5, %v2443_v19, %v2447_v2  ;;  %v2046_v28 = vsel %vm14091_vm4, %v11771_v17, %v2045_v21  ;;  %v2047_v29 = vrot.slane %v2045_v21, 4  ;;  %5514 = vmatprep.mubr.bf16.mxu1 %v13378_v23  ;;  %v14773_v39 = vld [vmem:[%s14063_s13 + $0x58] sm:$0xf]  ;;  %v2450_v40 = vshrl.u32 %v11831_v31, 16  ;;  %v4921_v2 = vpop.f32.mrf.mxu0  ;;  %v5116_v16 = vpop.f32.mrf.mxu1 }
 0x11b   : > { %v11790_v30 = vld [vmem:[%s14063_s13 + $0x54] sm:$0xf]  ;;  %2848 = vst [vmem:[#allocation3 + $0x118] sm:$0xf] %v2448_v27  ;;  %v1498_v35 = vsel %vm14101_vm5, %v1493_v25, %v1497_v10  ;;  %v1503_v36 = vrot.slane %v1502_v26, 4  ;;  %5515 = vmatmul.mubr.bf16.gmra.mxu1 %v13380_v24  ;;  %v2453_v42 = vshll.u32 %v11831_v31, 16  ;;  %v1512_v43 = vor.u32 %v1511_v32, %v1507_v20 }
 0x11c   : > { %v13382_v33 = vld [vmem:[#allocation3 + $0xec] ss:$36 sps:$4 sm:$0xff]   ;;  %2195 = vst [vmem:[#allocation3 + $0x134] sm:$0xf] %v2046_v28  ;;  %2280 = vst [vmem:[#allocation3 + $0x15c] sm:$0xf] %v11790_v30  ;;  %v2049_v37 = vsel %vm14091_vm4, %v2047_v29, %v2048_v22  ;;  %v14788_v10 = vadd.f32 %v5114_v0, %v4921_v2  ;;  %v4923_v12 = vpop.f32.mrf.mxu0  ;;  %v5117_v28 = vpop.f32.mrf.mxu1 }
 0x11d   : > { %v13384_v34 = vld [vmem:[#allocation3 + $0xe8] ss:$36 sps:$4 sm:$0xff]   ;;  %1885 = vst [vmem:[#allocation3 + $0x130] sm:$0xf] %v1498_v35  ;;  %5329 = vmatprep.mubr.bf16.mxu0 %v13382_v33  ;;  %v1508_v45 = vsel %vm14101_vm5, %v1503_v36, %v1507_v20  ;;  %2196 = vst [vmem:[#allocation3 + $0x158] sm:$0xf] %v2049_v37 }
 0x11e   : > { %v11832_v38 = vld [vmem:[%s14063_s13 + $0x54] sm:$0xf]  ;;  %v2469_v47 = vshll.u32 %v14773_v39, 16  ;;  %v11682_v48 = vld [vmem:[%s14063_s13 + $0x48] sm:$0xf]  ;;  %5330 = vmatmul.mubr.bf16.gmra.mxu0 %v13384_v34  ;;  %v2452_v50 = vrot.slane %v2450_v40, 4  ;;  %v4924_v25 = vpop.f32.mrf.mxu0 }
 0x11f   : > { %v2459_v46 = vshll.u32 %v11832_v38, 16  ;;  %v2463_v56 = vshrl.u32 %v11832_v38, 16  ;;  %v13461_v49 = vld [vmem:[%s17444_s1 + $0x208] sm:$0xff]   ;;  %1886 = vst [vmem:[#allocation3 + $0x154] sm:$0xf] %v1508_v45  ;;  %v2455_v51 = vrot.slane %v2453_v42, 5  ;;  %v14803_v32 = vadd.f32 %v5117_v28, %v4924_v25 }
 0x120   : > { %v2473_v52 = vshrl.u32 %v14773_v39, 16  ;;  %v11683_v53 = vld [vmem:[%s14063_s13 + $0x4c] sm:$0x1]  ;;  %v1513_v54 = vrot.slane %v1512_v43, 4  ;;  %v14784_v58 = vrot.slane %v2469_v47, 5  ;;  %v1515_v59 = vshll.u32 %v11682_v48, 16  ;;  %13028 = vmatprep.subr.bf16.mxu0 %v13461_v49  ;;  %v4926_v33 = vpop.f32.mrf.mxu0  ;;  %v5119_v39 = vpop.f32.mrf.mxu1 }
 0x121   : > { %v2461_v55 = vrot.slane %v2459_v46, 5  ;;  %v2465_v57 = vrot.slane %v2463_v56, 4  ;;  %v2456_v60 = vor.u32 %v2455_v51, %v2452_v50  ;;  %v1519_v61 = vshrl.u32 %v11682_v48, 16  ;;  %v11732_v63 = vld [vmem:[%s14063_s13 + $0x48] sm:$0xf]  ;;  %13029 = vmatpush3.bf16.msra.mxu0 %v13461_v49 }
 0x122   : > { %v1525_v62 = vshll.u32 %v11683_v53, 16  ;;  %v11733_v1 = vld [vmem:[%s14063_s13 + $0x4c] sm:$0x1]  ;;  %v1517_v4 = vrot.slane %v1515_v59, 5  ;;  %v2050_v5 = vrot.slane %v2048_v22, 4  ;;  %v2051_v6 = vrot.slane %v11732_v63, 5  ;;  %v4929_v47 = vpop.f32.mrf.mxu0 }
 0x123   : > { %v2466_v3 = vor.u32 %v2465_v57, %v2461_v55  ;;  %v13385_v7 = vld [vmem:[#allocation3 + $0xf4] ss:$36 sps:$4 sm:$0xff]   ;;  %v2457_v9 = vrot.slane %v2456_v60, 4  ;;  %v1521_v14 = vrot.slane %v1519_v61, 4  ;;  %v11791_v20 = vld [vmem:[%s14063_s13 + $0x58] sm:$0xf] }
 0x124   : > { %v13387_v8 = vld [vmem:[#allocation3 + $0xf0] ss:$36 sps:$4 sm:$0xff]   ;;  %v1518_v13 = vsel %vm14101_vm5, %v1513_v54, %v1517_v4  ;;  %5522 = vmatprep.mubr.bf16.mxu1 %v13385_v7  ;;  %v1527_v17 = vrot.slane %v1525_v62, 5  ;;  %v2052_v18 = vsel %vm14091_vm4, %v2050_v5, %v2051_v6  ;;  %v2053_v19 = vrot.slane %v2051_v6, 4  ;;  %2281 = vst [vmem:[#allocation3 + $0x180] sm:$0xf] %v11791_v20  ;;  %v4931_v60 = vpop.f32.mrf.mxu0 }
 0x125   : > { %v2467_v11 = vrot.slane %v2466_v3, 4  ;;  %v2462_v15 = vsel %vm14101_vm5, %v2457_v9, %v2461_v55  ;;  %1887 = vst [vmem:[#allocation3 + $0x178] sm:$0xf] %v1518_v13  ;;  %v11792_v21 = vld [vmem:[%s14063_s13 + $0x5c] sm:$0xf]  ;;  %5523 = vmatmul.mubr.bf16.gmra.mxu1 %v13387_v8  ;;  %v1522_v26 = vor.u32 %v1521_v14, %v1517_v4  ;;  %v2054_v27 = vrot.slane %v11733_v1, 5 }
 0x126   : > { %v13388_v22 = vld [vmem:[#allocation3 + $0x134] ss:$36 sps:$4 sm:$0xff]   ;;  %2849 = vst [vmem:[#allocation3 + $0x13c] sm:$0xf] %v2462_v15  ;;  %2197 = vst [vmem:[#allocation3 + $0x17c] sm:$0xf] %v2052_v18  ;;  %v4932_v9 = vpop.f32.mrf.mxu0 }
 0x127   : > { %v13390_v23 = vld [vmem:[#allocation3 + $0x130] ss:$36 sps:$4 sm:$0xff]   ;;  %v2472_v24 = vsel %vm14101_vm5, %v2467_v11, %v14784_v58  ;;  %2282 = vst [vmem:[#allocation3 + $0x1a4] sm:$0xf] %v11792_v21  ;;  %v11835_v30 = vld [vmem:[%s14063_s13 + $0x60] sm:$0x1]  ;;  %5337 = vmatprep.mubr.bf16.mxu0 %v13388_v22  ;;  %v2055_v35 = vsel %vm14091_vm4, %v2053_v19, %v2054_v27 }
 0x128   : > { %2850 = vst [vmem:[#allocation3 + $0x160] sm:$0xf] %v2472_v24  ;;  %v11834_v29 = vld [vmem:[%s14063_s13 + $0x5c] sm:$0xf]  ;;  %v2475_v31 = vrot.slane %v2473_v52, 4  ;;  %v1523_v34 = vrot.slane %v1522_v26, 4  ;;  %5338 = vmatmul.mubr.bf16.gmra.mxu0 %v13390_v23  ;;  %v5122_v52 = vpop.f32.mrf.mxu1  ;;  %v4934_v20 = vpop.f32.mrf.mxu0 }
 0x129   : > { %v2479_v36 = vshll.u32 %v11834_v29, 16  ;;  %v11684_v37 = vld [vmem:[%s14063_s13 + $0x50] sm:$0xf]  ;;  %v11685_v38 = vld [vmem:[%s14063_s13 + $0x54] sm:$0xf]  ;;  %v2483_v42 = vshrl.u32 %v11834_v29, 16  ;;  %v14817_v59 = vadd.f32 %v5122_v52, %v4929_v47 }
 0x12a   : > { %2198 = vst [vmem:[#allocation3 + $0x1a0] sm:$0xf] %v2055_v35  ;;  %v2476_v40 = vor.u32 %v2475_v31, %v14784_v58  ;;  %v2489_v43 = vshll.u32 %v11835_v30, 16  ;;  %v14811_v45 = vld [vmem:[%s14063_s13 + $0x58] sm:$0xf]  ;;  %v1530_v46 = vshrl.u32 %v11684_v37, 16  ;;  %v1528_v56 = vsel %vm14101_vm5, %v1523_v34, %v1527_v17  ;;  %v5124_v4 = vpop.f32.mrf.mxu1 }
 0x12b   : > { %v2481_v48 = vrot.slane %v2479_v36, 5  ;;  %v1533_v49 = vshll.u32 %v11684_v37, 16  ;;  %v1539_v50 = vshll.u32 %v11685_v38, 16  ;;  %v11734_v51 = vld [vmem:[%s14063_s13 + $0x50] sm:$0xe]  ;;  %v2485_v54 = vrot.slane %v2483_v42, 4  ;;  %v4937_v37 = vpop.f32.mrf.mxu0 }
 0x12c   : > { %1888 = vst [vmem:[#allocation3 + $0x19c] sm:$0xf] %v1528_v56  ;;  %v2477_v53 = vrot.slane %v2476_v40, 4  ;;  %v2491_v55 = vrot.slane %v2489_v43, 5  ;;  %v1532_v57 = vrot.slane %v1530_v46, 4  ;;  %v1543_v63 = vshrl.u32 %v11685_v38, 16  ;;  %v5125_v14 = vpop.f32.mrf.mxu1 }
 0x12d   : > { %v11735_v58 = vld [vmem:[%s14063_s13 + $0x54] sm:$0xf]  ;;  %v1535_v61 = vrot.slane %v1533_v49, 5  ;;  %v1541_v62 = vrot.slane %v1539_v50, 5  ;;  %v14820_v1 = vld [vmem:[%s14063_s13 + $0x58] sm:$0xf]  ;;  %v2486_v3 = vor.u32 %v2485_v54, %v2481_v48  ;;  %v14830_v19 = vadd.f32 %v5125_v14, %v4932_v9  ;;  %v4939_v49 = vpop.f32.mrf.mxu0 }
 0x12e   : > { %v2482_v2 = vsel %vm14101_vm5, %v2477_v53, %v2481_v48  ;;  %v1549_v5 = vshll.u32 %v14811_v45, 16  ;;  %v1553_v6 = vshrl.u32 %v14811_v45, 16  ;;  %v11793_v7 = vld [vmem:[%s14063_s13 + $0x64] sm:$0xf]  ;;  %v1545_v12 = vrot.slane %v1543_v63, 4  ;;  %v5127_v27 = vpop.f32.mrf.mxu1 }
 0x12f   : > { %v13391_v8 = vld [vmem:[#allocation3 + $0x13c] ss:$36 sps:$4 sm:$0xff]   ;;  %2851 = vst [vmem:[#allocation3 + $0x184] sm:$0xf] %v2482_v2  ;;  %v1536_v11 = vor.u32 %v1535_v61, %v1532_v57  ;;  %2283 = vst [vmem:[#allocation3 + $0x1c8] sm:$0xf] %v11793_v7  ;;  %v4940_v60 = vpop.f32.mrf.mxu0 }
 0x130   : > { %v13393_v0 = vld [vmem:[#allocation3 + $0x138] ss:$36 sps:$4 sm:$0xff]   ;;  %v2487_v13 = vrot.slane %v2486_v3, 4  ;;  %v14827_v15 = vrot.slane %v1549_v5, 5  ;;  %v11772_v16 = vrot.slane %v11734_v51, 9  ;;  %v2058_v17 = vrot.slane %v11735_v58, 5  ;;  %5530 = vmatprep.mubr.bf16.mxu1 %v13391_v8  ;;  %v5130_v39 = vpop.f32.mrf.mxu1 }
 0x131   : > { %v11794_v18 = vld [vmem:[%s14063_s13 + $0x68] sm:$0xf]  ;;  %v1537_v21 = vrot.slane %v1536_v11, 4  ;;  %v1546_v22 = vor.u32 %v1545_v12, %v1541_v62  ;;  %v2061_v23 = vrot.slane %v14820_v1, 5  ;;  %v11836_v24 = vld [vmem:[%s14063_s13 + $0x64] sm:$0xf]  ;;  %5531 = vmatmul.mubr.bf16.gmra.mxu1 %v13393_v0  ;;  %v14850_v56 = vadd.f32 %v5130_v39, %v4937_v37  ;;  %v4942_v11 = vpop.f32.mrf.mxu0 }
 0x132   : > { %2284 = vst [vmem:[#allocation3 + $0x1ec] sm:$0xf] %v11794_v18  ;;  %v11837_v25 = vld [vmem:[%s14063_s13 + $0x68] sm:$0xf]  ;;  %v2492_v26 = vsel %vm14101_vm5, %v2487_v13, %v2491_v55  ;;  %v2059_v28 = vsel %vm14091_vm4, %v11772_v16, %v2058_v17  ;;  %v2060_v29 = vrot.slane %v2058_v17, 4  ;;  %v2494_v31 = vshrl.u32 %v11836_v24, 16  ;;  %v5132_v54 = vpop.f32.mrf.mxu1 }
 0x133   : > { %v14840_v30 = vld [vmem:[%s14063_s13 + $0x6c] sm:$0xf]  ;;  %v13394_v33 = vld [vmem:[#allocation3 + $0x17c] ss:$36 sps:$4 sm:$0xff]   ;;  %2852 = vst [vmem:[#allocation3 + $0x1a8] sm:$0xf] %v2492_v26  ;;  %v1542_v35 = vsel %vm14101_vm5, %v1537_v21, %v1541_v62 }
 0x134   : > { %v13396_v34 = vld [vmem:[#allocation3 + $0x178] ss:$36 sps:$4 sm:$0xff]   ;;  %v1547_v36 = vrot.slane %v1546_v22, 4  ;;  %2199 = vst [vmem:[#allocation3 + $0x1c4] sm:$0xf] %v2059_v28  ;;  %v2062_v38 = vsel %vm14091_vm4, %v2060_v29, %v2061_v23  ;;  %v2496_v40 = vrot.slane %v2494_v31, 4  ;;  %5345 = vmatprep.mubr.bf16.mxu0 %v13394_v33  ;;  %v5133_v3 = vpop.f32.mrf.mxu1 }
 0x135   : > { %1889 = vst [vmem:[#allocation3 + $0x1c0] sm:$0xf] %v1542_v35  ;;  %v2497_v42 = vshll.u32 %v11836_v24, 16  ;;  %v2503_v43 = vshll.u32 %v11837_v25, 16  ;;  %v11687_v45 = vld [vmem:[%s14063_s13 + $0x5c] sm:$0xf]  ;;  %5346 = vmatmul.mubr.bf16.gmra.mxu0 %v13396_v34  ;;  %v14862_v9 = vadd.f32 %v5133_v3, %v4940_v60 }
 0x136   : > { %v1552_v46 = vsel %vm14101_vm5, %v1547_v36, %v14827_v15  ;;  %2200 = vst [vmem:[#allocation3 + $0x1e8] sm:$0xf] %v2062_v38  ;;  %v2507_v47 = vshrl.u32 %v11837_v25, 16  ;;  %v2513_v48 = vshll.u32 %v14840_v30, 16  ;;  %v11688_v50 = vld [vmem:[%s14063_s13 + $0x60] sm:$0x1]  ;;  %v5135_v20 = vpop.f32.mrf.mxu1  ;;  %v4945_v25 = vpop.f32.mrf.mxu0 }
 0x137   : > { %1890 = vst [vmem:[#allocation3 + $0x1e4] sm:$0xf] %v1552_v46  ;;  %v2499_v51 = vrot.slane %v2497_v42, 5  ;;  %v2505_v52 = vrot.slane %v2503_v43, 5  ;;  %v2517_v53 = vshrl.u32 %v14840_v30, 16  ;;  %v1555_v55 = vrot.slane %v1553_v6, 4 }
 0x138   : > { %v2509_v57 = vrot.slane %v2507_v47, 4  ;;  %v14855_v58 = vrot.slane %v2513_v48, 5  ;;  %v1559_v61 = vshll.u32 %v11687_v45, 16  ;;  %v1563_v62 = vshrl.u32 %v11687_v45, 16  ;;  %v11737_v63 = vld [vmem:[%s14063_s13 + $0x5c] sm:$0xf]  ;;  %v5138_v29 = vpop.f32.mrf.mxu1 }
 0x139   : > { %v11795_v1 = vld [vmem:[%s14063_s13 + $0x6c] sm:$0xf]  ;;  %v2500_v2 = vor.u32 %v2499_v51, %v2496_v40  ;;  %v1556_v4 = vor.u32 %v1555_v55, %v14827_v15  ;;  %v1569_v5 = vshll.u32 %v11688_v50, 16  ;;  %v11738_v7 = vld [vmem:[%s14063_s13 + $0x60] sm:$0x1]  ;;  %v2063_v8 = vrot.slane %v2061_v23, 4  ;;  %v4947_v40 = vpop.f32.mrf.mxu0 }
 0x13a   : > { %v11796_v0 = vld [vmem:[%s14063_s13 + $0x70] sm:$0xf]  ;;  %2285 = vst [vmem:[#allocation3 + $0x210] sm:$0xf] %v11795_v1  ;;  %v2510_v6 = vor.u32 %v2509_v57, %v2505_v52  ;;  %v1561_v12 = vrot.slane %v1559_v61, 5  ;;  %v1565_v13 = vrot.slane %v1563_v62, 4  ;;  %v14877_v39 = vadd.f32 %v5138_v29, %v4945_v25  ;;  %v5140_v47 = vpop.f32.mrf.mxu1 }
 0x13b   : > { %2286 = vst [vmem:[#allocation3 + $0x234] sm:$0xf] %v11796_v0  ;;  %v11839_v14 = vld [vmem:[%s14063_s13 + $0x70] sm:$0xf]  ;;  %v13400_v17 = vld [vmem:[#allocation3 + $0x180] ss:$36 sps:$4 sm:$0xff]  }
 0x13c   : > { %v13398_v16 = vld [vmem:[#allocation3 + $0x184] ss:$36 sps:$4 sm:$0xff]   ;;  %v2501_v18 = vrot.slane %v2500_v2, 4  ;;  %v11840_v15 = vld [vmem:[%s14063_s13 + $0x74] sm:$0x1]  ;;  %v2511_v21 = vrot.slane %v2510_v6, 4  ;;  %v1566_v24 = vor.u32 %v1565_v13, %v1561_v12  ;;  %v5141_v60 = vpop.f32.mrf.mxu1 }
 0x13d   : > { %v1557_v22 = vrot.slane %v1556_v4, 4  ;;  %v1571_v23 = vrot.slane %v1569_v5, 5  ;;  %5538 = vmatprep.mubr.bf16.mxu1 %v13398_v16  ;;  %v2064_v27 = vrot.slane %v11737_v63, 5  ;;  %v2067_v28 = vrot.slane %v11738_v7, 5  ;;  %v11689_v31 = vld [vmem:[%s14063_s13 + $0x64] sm:$0xf] }
 0x13e   : > { %v2506_v26 = vsel %vm14101_vm5, %v2501_v18, %v2505_v52  ;;  %v2519_v30 = vrot.slane %v2517_v53, 4  ;;  %v13477_v33 = vld [vmem:[%s17444_s1 + $0x200] sm:$0xff]   ;;  %5539 = vmatmul.mubr.bf16.gmra.mxu1 %v13400_v17  ;;  %v13401_v34 = vld [vmem:[#allocation3 + $0x1c4] ss:$36 sps:$4 sm:$0xff]   ;;  %v2516_v36 = vsel %vm14101_vm5, %v2511_v21, %v14855_v58  ;;  %v1567_v38 = vrot.slane %v1566_v24, 4  ;;  %v4948_v52 = vpop.f32.mrf.mxu0 }
 0x13f   : > { %v13403_v35 = vld [vmem:[#allocation3 + $0x1c0] ss:$36 sps:$4 sm:$0xff]   ;;  %2853 = vst [vmem:[#allocation3 + $0x1cc] sm:$0xf] %v2506_v26  ;;  %v1562_v37 = vsel %vm14101_vm5, %v1557_v22, %v1561_v12  ;;  %2854 = vst [vmem:[#allocation3 + $0x1f0] sm:$0xf] %v2516_v36  ;;  %v2065_v42 = vsel %vm14091_vm4, %v2063_v8, %v2064_v27  ;;  %13030 = vmatprep.subr.bf16.mxu0 %v13477_v33  ;;  %5353 = vmatprep.mubr.bf16.mxu0 %v13401_v34  ;;  %v5143_v8 = vpop.f32.mrf.mxu1 }
 0x140   : > { %1891 = vst [vmem:[#allocation3 + $0x208] sm:$0xf] %v1562_v37  ;;  %v2066_v43 = vrot.slane %v2064_v27, 4  ;;  %v2520_v45 = vor.u32 %v2519_v30, %v14855_v58  ;;  %v2523_v46 = vshll.u32 %v11839_v14, 16  ;;  %v11690_v48 = vld [vmem:[%s14063_s13 + $0x68] sm:$0xf]  ;;  %v1572_v49 = vsel %vm14101_vm5, %v1567_v38, %v1571_v23  ;;  %13031 = vmatpush3.bf16.msra.mxu0 %v13477_v33  ;;  %v4950_v3 = vpop.f32.mrf.mxu0 }
 0x141   : > { %2201 = vst [vmem:[#allocation3 + $0x20c] sm:$0xf] %v2065_v42  ;;  %v2527_v50 = vshrl.u32 %v11839_v14, 16  ;;  %v2533_v51 = vshll.u32 %v11840_v15, 16  ;;  %v14886_v53 = vld [vmem:[%s14063_s13 + $0x6c] sm:$0xf]  ;;  %5354 = vmatmul.mubr.bf16.gmra.mxu0 %v13403_v35  ;;  %v14891_v2 = vadd.f32 %v5141_v60, %v4948_v52  ;;  %v5146_v25 = vpop.f32.mrf.mxu1 }
 0x142   : > { %v1574_v54 = vshrl.u32 %v11689_v31, 16  ;;  %1892 = vst [vmem:[#allocation3 + $0x22c] sm:$0xf] %v1572_v49  ;;  %v2068_v55 = vsel %vm14091_vm4, %v2066_v43, %v2067_v28  ;;  %v2521_v57 = vrot.slane %v2520_v45, 4  ;;  %v2525_v58 = vrot.slane %v2523_v46, 5  ;;  %v4953_v20 = vpop.f32.mrf.mxu0 }
 0x143   : > { %v1577_v61 = vshll.u32 %v11689_v31, 16  ;;  %v11739_v62 = vld [vmem:[%s14063_s13 + $0x64] sm:$0xe]  ;;  %2202 = vst [vmem:[#allocation3 + $0x230] sm:$0xf] %v2068_v55  ;;  %v2529_v63 = vrot.slane %v2527_v50, 4  ;;  %v14904_v30 = vadd.f32 %v5146_v25, %v4953_v20  ;;  %v5148_v38 = vpop.f32.mrf.mxu1 }
 0x144   : > { %v2535_v1 = vrot.slane %v2533_v51, 5  ;;  %v1576_v4 = vrot.slane %v1574_v54, 4  ;;  %v11740_v5 = vld [vmem:[%s14063_s13 + $0x68] sm:$0xf]  ;;  %v2526_v7 = vsel %vm14101_vm5, %v2521_v57, %v2525_v58  ;;  %v1583_v6 = vshll.u32 %v11690_v48, 16  ;;  %v4955_v31 = vpop.f32.mrf.mxu0 }
 0x145   : > { %v1579_v0 = vrot.slane %v1577_v61, 5  ;;  %v1587_v11 = vshrl.u32 %v11690_v48, 16  ;;  %v14897_v12 = vld [vmem:[%s14063_s13 + $0x6c] sm:$0xf]  ;;  %v11797_v13 = vld [vmem:[%s14063_s13 + $0x78] sm:$0xf]  ;;  %v2530_v14 = vor.u32 %v2529_v63, %v2525_v58  ;;  %v5149_v52 = vpop.f32.mrf.mxu1 }
 0x146   : > { %2855 = vst [vmem:[#allocation3 + $0x214] sm:$0xf] %v2526_v7  ;;  %v1593_v16 = vshll.u32 %v14886_v53, 16  ;;  %v1597_v17 = vshrl.u32 %v14886_v53, 16  ;;  %v11773_v18 = vrot.slane %v11739_v62, 9  ;;  %v1585_v22 = vrot.slane %v1583_v6, 5  ;;  %v4956_v47 = vpop.f32.mrf.mxu0 }
 0x147   : > { %v11798_v15 = vld [vmem:[%s14063_s13 + $0x7c] sm:$0xf]  ;;  %2287 = vst [vmem:[#allocation3 + $0x258] sm:$0xf] %v11797_v13  ;;  %v1580_v21 = vor.u32 %v1579_v0, %v1576_v4  ;;  %v1589_v24 = vrot.slane %v1587_v11, 4  ;;  %v2071_v23 = vrot.slane %v11740_v5, 5  ;;  %v5151_v3 = vpop.f32.mrf.mxu1  ;;  %v14928_v8 = vadd.f32 %v5149_v52, %v4956_v47 }
 0x148   : > { %2288 = vst [vmem:[#allocation3 + $0x27c] sm:$0xf] %v11798_v15  ;;  %v11841_v26 = vld [vmem:[%s14063_s13 + $0x78] sm:$0xf]  ;;  %v13406_v28 = vld [vmem:[#allocation3 + $0x1c8] ss:$36 sps:$4 sm:$0xff]   ;;  %v4958_v58 = vpop.f32.mrf.mxu0 }
 0x149   : > { %v13404_v27 = vld [vmem:[#allocation3 + $0x1cc] ss:$36 sps:$4 sm:$0xff]   ;;  %v2531_v29 = vrot.slane %v2530_v14, 4  ;;  %v1581_v33 = vrot.slane %v1580_v21, 4  ;;  %v1590_v34 = vor.u32 %v1589_v24, %v1585_v22  ;;  %v14906_v35 = vrot.slane %v1593_v16, 5  ;;  %v5154_v20 = vpop.f32.mrf.mxu1 }
 0x14a   : > { %v2072_v36 = vsel %vm14091_vm4, %v11773_v18, %v2071_v23  ;;  %v11842_v37 = vld [vmem:[%s14063_s13 + $0x7c] sm:$0xf]  ;;  %5546 = vmatprep.mubr.bf16.mxu1 %v13404_v27  ;;  %v2073_v42 = vrot.slane %v2071_v23, 4  ;;  %v2074_v43 = vrot.slane %v14897_v12, 5  ;;  %v14915_v45 = vld [vmem:[%s14063_s13 + $0x80] sm:$0xf]  ;;  %v4961_v11 = vpop.f32.mrf.mxu0 }
 0x14b   : > { %v2536_v40 = vsel %vm14101_vm5, %v2531_v29, %v2535_v1  ;;  %2203 = vst [vmem:[#allocation3 + $0x254] sm:$0xf] %v2072_v36  ;;  %v2538_v46 = vshrl.u32 %v11841_v26, 16  ;;  %5547 = vmatmul.mubr.bf16.gmra.mxu1 %v13406_v28  ;;  %v13407_v48 = vld [vmem:[#allocation3 + $0x20c] ss:$36 sps:$4 sm:$0xff]   ;;  %v1586_v50 = vsel %vm14101_vm5, %v1581_v33, %v1585_v22  ;;  %v1591_v51 = vrot.slane %v1590_v34, 4  ;;  %v5156_v33 = vpop.f32.mrf.mxu1 }
 0x14c   : > { %v13409_v49 = vld [vmem:[#allocation3 + $0x208] ss:$36 sps:$4 sm:$0xff]   ;;  %2856 = vst [vmem:[#allocation3 + $0x238] sm:$0xf] %v2536_v40  ;;  %1893 = vst [vmem:[#allocation3 + $0x250] sm:$0xf] %v1586_v50  ;;  %v2075_v53 = vsel %vm14091_vm4, %v2073_v42, %v2074_v43  ;;  %5361 = vmatprep.mubr.bf16.mxu0 %v13407_v48 }
 0x14d   : > { %v2540_v54 = vrot.slane %v2538_v46, 4  ;;  %v2541_v55 = vshll.u32 %v11841_v26, 16  ;;  %v2547_v57 = vshll.u32 %v11842_v37, 16  ;;  %v11692_v60 = vld [vmem:[%s14063_s13 + $0x70] sm:$0xf]  ;;  %v1596_v61 = vsel %vm14101_vm5, %v1591_v51, %v14906_v35  ;;  %5362 = vmatmul.mubr.bf16.gmra.mxu0 %v13409_v49  ;;  %v4963_v26 = vpop.f32.mrf.mxu0  ;;  %v5157_v48 = vpop.f32.mrf.mxu1 }
 0x14e   : > { %2204 = vst [vmem:[#allocation3 + $0x278] sm:$0xf] %v2075_v53  ;;  %v2551_v62 = vshrl.u32 %v11842_v37, 16  ;;  %v2557_v63 = vshll.u32 %v14915_v45, 16  ;;  %v2561_v1 = vshrl.u32 %v14915_v45, 16  ;;  %v1599_v0 = vrot.slane %v1597_v17, 4 }
 0x14f   : > { %v11693_v4 = vld [vmem:[%s14063_s13 + $0x74] sm:$0x1]  ;;  %1894 = vst [vmem:[#allocation3 + $0x274] sm:$0xf] %v1596_v61  ;;  %v2543_v5 = vrot.slane %v2541_v55, 5  ;;  %v2549_v7 = vrot.slane %v2547_v57, 5  ;;  %v4964_v38 = vpop.f32.mrf.mxu0  ;;  %v5159_v3 = vpop.f32.mrf.mxu1 }
 0x150   : > { %v11742_v6 = vld [vmem:[%s14063_s13 + $0x70] sm:$0xf]  ;;  %v2553_v12 = vrot.slane %v2551_v62, 4  ;;  %v14931_v13 = vrot.slane %v2557_v63, 5  ;;  %v1603_v14 = vshll.u32 %v11692_v60, 16  ;;  %v1607_v16 = vshrl.u32 %v11692_v60, 16 }
 0x151   : > { %v11743_v18 = vld [vmem:[%s14063_s13 + $0x74] sm:$0x1]  ;;  %v2544_v15 = vor.u32 %v2543_v5, %v2540_v54  ;;  %v1600_v21 = vor.u32 %v1599_v0, %v14906_v35  ;;  %v1613_v22 = vshll.u32 %v11693_v4, 16  ;;  %v2076_v24 = vrot.slane %v2074_v43, 4  ;;  %v11799_v23 = vld [vmem:[%s14063_s13 + $0x80] sm:$0xf]  ;;  %v4966_v53 = vpop.f32.mrf.mxu0 }
 0x152   : > { %v11800_v25 = vld [vmem:[%s14063_s13 + $0x84] sm:$0xf]  ;;  %v2554_v27 = vor.u32 %v2553_v12, %v2549_v7  ;;  %v1605_v17 = vrot.slane %v1603_v14, 5  ;;  %v1609_v28 = vrot.slane %v1607_v16, 4  ;;  %v2077_v29 = vrot.slane %v11742_v6, 5 }
 0x153   : > { %2289 = vst [vmem:[#allocation3 + $0x2a0] sm:$0xf] %v11799_v23  ;;  %2290 = vst [vmem:[#allocation3 + $0x2c4] sm:$0xf] %v11800_v25  ;;  %v11844_v31 = vld [vmem:[%s14063_s13 + $0x84] sm:$0xf]  ;;  %v14938_v35 = vadd.f32 %v5154_v20, %v4961_v11  ;;  %v14952_v63 = vadd.f32 %v5157_v48, %v4964_v38  ;;  %v4969_v11 = vpop.f32.mrf.mxu0 }
 0x154   : > { %v13410_v34 = vld [vmem:[#allocation3 + $0x214] ss:$36 sps:$4 sm:$0xff]   ;;  %v2545_v37 = vrot.slane %v2544_v15, 4  ;;  %v2555_v40 = vrot.slane %v2554_v27, 4  ;;  %v1601_v42 = vrot.slane %v1600_v21, 4  ;;  %v1610_v43 = vor.u32 %v1609_v28, %v1605_v17  ;;  %v5162_v15 = vpop.f32.mrf.mxu1 }
 0x155   : > { %v13412_v36 = vld [vmem:[#allocation3 + $0x210] ss:$36 sps:$4 sm:$0xff]   ;;  %v1615_v46 = vrot.slane %v1613_v22, 5  ;;  %v11845_v47 = vld [vmem:[%s14063_s13 + $0x88] sm:$0x1]  ;;  %5554 = vmatprep.mubr.bf16.mxu1 %v13410_v34  ;;  %v2078_v50 = vsel %vm14091_vm4, %v2076_v24, %v2077_v29  ;;  %v2079_v51 = vrot.slane %v2077_v29, 4  ;;  %v4971_v23 = vpop.f32.mrf.mxu0 }
 0x156   : > { %v2550_v49 = vsel %vm14101_vm5, %v2545_v37, %v2549_v7  ;;  %v2080_v52 = vrot.slane %v11743_v18, 5  ;;  %v11694_v54 = vld [vmem:[%s14063_s13 + $0x78] sm:$0xf]  ;;  %v11695_v55 = vld [vmem:[%s14063_s13 + $0x7c] sm:$0xf]  ;;  %5555 = vmatmul.mubr.bf16.gmra.mxu1 %v13412_v36  ;;  %v2560_v60 = vsel %vm14101_vm5, %v2555_v40, %v14931_v13  ;;  %v1606_v61 = vsel %vm14101_vm5, %v1601_v42, %v1605_v17  ;;  %v5164_v29 = vpop.f32.mrf.mxu1 }
 0x157   : > { %v13414_v57 = vld [vmem:[#allocation3 + $0x250] ss:$36 sps:$4 sm:$0xff]   ;;  %2857 = vst [vmem:[#allocation3 + $0x25c] sm:$0xf] %v2550_v49  ;;  %v1611_v62 = vrot.slane %v1610_v43, 4  ;;  %v2563_v5 = vrot.slane %v2561_v1, 4  ;;  %v4972_v37 = vpop.f32.mrf.mxu0 }
 0x158   : > { %v13416_v58 = vld [vmem:[#allocation3 + $0x254] ss:$36 sps:$4 sm:$0xff]   ;;  %2205 = vst [vmem:[#allocation3 + $0x29c] sm:$0xf] %v2078_v50  ;;  %2858 = vst [vmem:[#allocation3 + $0x280] sm:$0xf] %v2560_v60  ;;  %v2081_v4 = vsel %vm14091_vm4, %v2079_v51, %v2080_v52  ;;  %v5165_v43 = vpop.f32.mrf.mxu1 }
 0x159   : > { %1895 = vst [vmem:[#allocation3 + $0x298] sm:$0xf] %v1606_v61  ;;  %v2567_v7 = vshll.u32 %v11844_v31, 16  ;;  %v2571_v0 = vshrl.u32 %v11844_v31, 16  ;;  %v14959_v6 = vld [vmem:[%s14063_s13 + $0x80] sm:$0xf]  ;;  %5369 = vmatprep.mubr.bf16.mxu0 %v13416_v58  ;;  %v1616_v12 = vsel %vm14101_vm5, %v1611_v62, %v1615_v46  ;;  %v2564_v45 = vor.u32 %v2563_v5, %v14931_v13  ;;  %v4974_v51 = vpop.f32.mrf.mxu0 }
 0x15a   : > { %2206 = vst [vmem:[#allocation3 + $0x2c0] sm:$0xf] %v2081_v4  ;;  %v2577_v14 = vshll.u32 %v11845_v47, 16  ;;  %v1618_v16 = vshrl.u32 %v11694_v54, 16  ;;  %v1621_v18 = vshll.u32 %v11694_v54, 16  ;;  %5370 = vmatmul.mubr.bf16.gmra.mxu0 %v13414_v57  ;;  %v1627_v22 = vshll.u32 %v11695_v55, 16  ;;  %v5167_v60 = vpop.f32.mrf.mxu1 }
 0x15b   : > { %v11744_v20 = vld [vmem:[%s14063_s13 + $0x78] sm:$0xe]  ;;  %1896 = vst [vmem:[#allocation3 + $0x2bc] sm:$0xf] %v1616_v12  ;;  %v2569_v1 = vrot.slane %v2567_v7, 5  ;;  %v2573_v21 = vrot.slane %v2571_v0, 4  ;;  %v14976_v57 = vadd.f32 %v5162_v15, %v4969_v11  ;;  %v14978_v58 = vadd.f32 %v5165_v43, %v4972_v37  ;;  %v4977_v7 = vpop.f32.mrf.mxu0 }
 0x15c   : > { %v11745_v24 = vld [vmem:[%s14063_s13 + $0x7c] sm:$0xf]  ;;  %v2579_v25 = vrot.slane %v2577_v14, 5  ;;  %v1620_v26 = vrot.slane %v1618_v16, 4  ;;  %v1623_v27 = vrot.slane %v1621_v18, 5  ;;  %v1631_v17 = vshrl.u32 %v11695_v55, 16  ;;  %v5170_v14 = vpop.f32.mrf.mxu1 }
 0x15d   : > { %v14967_v28 = vld [vmem:[%s14063_s13 + $0x80] sm:$0xf]  ;;  %v2565_v31 = vrot.slane %v2564_v45, 4  ;;  %v2574_v33 = vor.u32 %v2573_v21, %v2569_v1  ;;  %v1629_v34 = vrot.slane %v1627_v22, 5  ;;  %v1637_v36 = vshll.u32 %v14959_v6, 16 }
 0x15e   : > { %v1624_v13 = vor.u32 %v1623_v27, %v1620_v26  ;;  %v1633_v38 = vrot.slane %v1631_v17, 4  ;;  %v1641_v40 = vshrl.u32 %v14959_v6, 16  ;;  %v11774_v42 = vrot.slane %v11744_v20, 9  ;;  %v11801_v50 = vld [vmem:[%s14063_s13 + $0x8c] sm:$0xf]  ;;  %v5172_v26 = vpop.f32.mrf.mxu1 }
 0x15f   : > { %v2570_v46 = vsel %vm14101_vm5, %v2565_v31, %v2569_v1  ;;  %v2575_v47 = vrot.slane %v2574_v33, 4  ;;  %v14973_v48 = vrot.slane %v1637_v36, 5  ;;  %v2084_v49 = vrot.slane %v11745_v24, 5  ;;  %v13417_v52 = vld [vmem:[#allocation3 + $0x258] ss:$36 sps:$4 sm:$0xff]   ;;  %v4979_v1 = vpop.f32.mrf.mxu0 }
 0x160   : > { %v13419_v53 = vld [vmem:[#allocation3 + $0x25c] ss:$36 sps:$4 sm:$0xff]   ;;  %2859 = vst [vmem:[#allocation3 + $0x2a4] sm:$0xf] %v2570_v46  ;;  %v1625_v54 = vrot.slane %v1624_v13, 4  ;;  %v1634_v55 = vor.u32 %v1633_v38, %v1629_v34  ;;  %v2087_v4 = vrot.slane %v14967_v28, 5  ;;  %v14995_v45 = vadd.f32 %v5170_v14, %v4977_v7 }
 0x161   : > { %2291 = vst [vmem:[#allocation3 + $0x2e8] sm:$0xf] %v11801_v50  ;;  %v2580_v61 = vsel %vm14101_vm5, %v2575_v47, %v2579_v25  ;;  %v2085_v62 = vsel %vm14091_vm4, %v11774_v42, %v2084_v49  ;;  %v2086_v3 = vrot.slane %v2084_v49, 4  ;;  %v11802_v5 = vld [vmem:[%s14063_s13 + $0x90] sm:$0xf]  ;;  %5562 = vmatprep.mubr.bf16.mxu1 %v13419_v53  ;;  %v1643_v31 = vrot.slane %v1641_v40, 4  ;;  %v4980_v33 = vpop.f32.mrf.mxu0  ;;  %v5173_v42 = vpop.f32.mrf.mxu1 }
 0x162   : > { %v13420_v0 = vld [vmem:[#allocation3 + $0x298] ss:$36 sps:$4 sm:$0xff]   ;;  %2860 = vst [vmem:[#allocation3 + $0x2c8] sm:$0xf] %v2580_v61  ;;  %v1630_v11 = vsel %vm14101_vm5, %v1625_v54, %v1629_v34  ;;  %v1635_v12 = vrot.slane %v1634_v55, 4  ;;  %5563 = vmatmul.mubr.bf16.gmra.mxu1 %v13417_v52  ;;  %v2089_v40 = vrot.slane %v2087_v4, 4  ;;  %v15010_v7 = vadd.f32 %v5173_v42, %v4980_v33 }
 0x163   : > { %v13422_v6 = vld [vmem:[#allocation3 + $0x29c] ss:$36 sps:$4 sm:$0xff]   ;;  %2207 = vst [vmem:[#allocation3 + $0x2e4] sm:$0xf] %v2085_v62  ;;  %2292 = vst [vmem:[#allocation3 + $0x30c] sm:$0xf] %v11802_v5  ;;  %v2088_v16 = vsel %vm14091_vm4, %v2086_v3, %v2087_v4  ;;  %v1644_v47 = vor.u32 %v1643_v31, %v14973_v48  ;;  %v4982_v51 = vpop.f32.mrf.mxu0  ;;  %v5175_v60 = vpop.f32.mrf.mxu1 }
 0x164   : > { %1897 = vst [vmem:[#allocation3 + $0x2e0] sm:$0xf] %v1630_v11  ;;  %v11846_v18 = vld [vmem:[%s14063_s13 + $0x8c] sm:$0xf]  ;;  %v11847_v20 = vld [vmem:[%s14063_s13 + $0x90] sm:$0xf]  ;;  %5377 = vmatprep.mubr.bf16.mxu0 %v13422_v6  ;;  %v1640_v21 = vsel %vm14101_vm5, %v1635_v12, %v14973_v48 }
 0x165   : > { %v14993_v15 = vld [vmem:[%s14063_s13 + $0x94] sm:$0xf]  ;;  %2208 = vst [vmem:[#allocation3 + $0x308] sm:$0xf] %v2088_v16  ;;  %v2582_v22 = vshrl.u32 %v11846_v18, 16  ;;  %v2585_v24 = vshll.u32 %v11846_v18, 16  ;;  %5378 = vmatmul.mubr.bf16.gmra.mxu0 %v13420_v0  ;;  %v4985_v0 = vpop.f32.mrf.mxu0  ;;  %v5178_v14 = vpop.f32.mrf.mxu1 }
 0x166   : > { %v2591_v23 = vshll.u32 %v11847_v20, 16  ;;  %v11697_v25 = vld [vmem:[%s14063_s13 + $0x84] sm:$0xf]  ;;  %1898 = vst [vmem:[#allocation3 + $0x304] sm:$0xf] %v1640_v21  ;;  %v2595_v27 = vshrl.u32 %v11847_v20, 16  ;;  %v15016_v1 = vadd.f32 %v5178_v14, %v4985_v0 }
 0x167   : > { %v2601_v17 = vshll.u32 %v14993_v15, 16  ;;  %v2605_v28 = vshrl.u32 %v14993_v15, 16  ;;  %v11698_v29 = vld [vmem:[%s14063_s13 + $0x88] sm:$0x1]  ;;  %v2584_v34 = vrot.slane %v2582_v22, 4  ;;  %v2587_v36 = vrot.slane %v2585_v24, 5  ;;  %v4987_v21 = vpop.f32.mrf.mxu0 }
 0x168   : > { %v2593_v37 = vrot.slane %v2591_v23, 5  ;;  %v1647_v13 = vshll.u32 %v11697_v25, 16  ;;  %v11747_v38 = vld [vmem:[%s14063_s13 + $0x84] sm:$0xf]  ;;  %v2597_v43 = vrot.slane %v2595_v27, 4  ;;  %v1651_v49 = vshrl.u32 %v11697_v25, 16 }
 0x169   : > { %v15005_v46 = vrot.slane %v2601_v17, 5  ;;  %v11748_v50 = vld [vmem:[%s14063_s13 + $0x88] sm:$0x1]  ;;  %v2588_v52 = vor.u32 %v2587_v36, %v2584_v34  ;;  %v1657_v54 = vshll.u32 %v11698_v29, 16  ;;  %v11803_v55 = vld [vmem:[%s14063_s13 + $0x94] sm:$0xf]  ;;  %v5180_v17 = vpop.f32.mrf.mxu1 }
 0x16a   : > { %v1649_v53 = vrot.slane %v1647_v13, 5  ;;  %v13423_v61 = vld [vmem:[#allocation3 + $0x2a0] ss:$36 sps:$4 sm:$0xff]   ;;  %v2598_v3 = vor.u32 %v2597_v43, %v2593_v37  ;;  %v1645_v5 = vrot.slane %v1644_v47, 4  ;;  %2293 = vst [vmem:[#allocation3 + $0x330] sm:$0xf] %v11803_v55 }
 0x16b   : > { %v13425_v62 = vld [vmem:[#allocation3 + $0x2a4] ss:$36 sps:$4 sm:$0xff]   ;;  %v2589_v48 = vrot.slane %v2588_v52, 4  ;;  %v1653_v6 = vrot.slane %v1651_v49, 4  ;;  %v1659_v11 = vrot.slane %v1657_v54, 5  ;;  %v2090_v12 = vrot.slane %v11747_v38, 5  ;;  %v5181_v49 = vpop.f32.mrf.mxu1 }
 0x16c   : > { %5570 = vmatprep.mubr.bf16.mxu1 %v13425_v62  ;;  %v2599_v16 = vrot.slane %v2598_v3, 4  ;;  %v1650_v4 = vsel %vm14101_vm5, %v1645_v5, %v1649_v53  ;;  %v2093_v18 = vrot.slane %v11748_v50, 5  ;;  %v11804_v20 = vld [vmem:[%s14063_s13 + $0x98] sm:$0xf]  ;;  %v13428_v24 = vld [vmem:[#allocation3 + $0x2e4] ss:$36 sps:$4 sm:$0xff]  }
 0x16d   : > { %v11849_v15 = vld [vmem:[%s14063_s13 + $0x98] sm:$0xf]  ;;  %5571 = vmatmul.mubr.bf16.gmra.mxu1 %v13423_v61  ;;  %v13426_v22 = vld [vmem:[#allocation3 + $0x2e0] ss:$36 sps:$4 sm:$0xff]   ;;  %v2594_v23 = vsel %vm14101_vm5, %v2589_v48, %v2593_v37  ;;  %v1654_v25 = vor.u32 %v1653_v6, %v1649_v53  ;;  %1899 = vst [vmem:[#allocation3 + $0x328] sm:$0xf] %v1650_v4  ;;  %v2091_v26 = vsel %vm14091_vm4, %v2089_v40, %v2090_v12  ;;  %v4988_v37 = vpop.f32.mrf.mxu0  ;;  %v5183_v3 = vpop.f32.mrf.mxu1 }
 0x16e   : > { %v2092_v27 = vrot.slane %v2090_v12, 4  ;;  %2294 = vst [vmem:[#allocation3 + $0x354] sm:$0xf] %v11804_v20  ;;  %v2604_v29 = vsel %vm14101_vm5, %v2599_v16, %v15005_v46  ;;  %2861 = vst [vmem:[#allocation3 + $0x2ec] sm:$0xf] %v2594_v23  ;;  %v2607_v33 = vrot.slane %v2605_v28, 4  ;;  %5385 = vmatprep.mubr.bf16.mxu0 %v13428_v24 }
 0x16f   : > { %2209 = vst [vmem:[#allocation3 + $0x32c] sm:$0xf] %v2091_v26  ;;  %v11850_v31 = vld [vmem:[%s14063_s13 + $0x9c] sm:$0x1]  ;;  %v2611_v34 = vshll.u32 %v11849_v15, 16  ;;  %v2615_v36 = vshrl.u32 %v11849_v15, 16  ;;  %5386 = vmatmul.mubr.bf16.gmra.mxu0 %v13426_v22  ;;  %v4990_v54 = vpop.f32.mrf.mxu0 }
 0x170   : > { %2862 = vst [vmem:[#allocation3 + $0x310] sm:$0xf] %v2604_v29  ;;  %v1655_v13 = vrot.slane %v1654_v25, 4  ;;  %v2094_v38 = vsel %vm14091_vm4, %v2092_v27, %v2093_v18  ;;  %v2621_v42 = vshll.u32 %v11850_v31, 16  ;;  %v11699_v43 = vld [vmem:[%s14063_s13 + $0x8c] sm:$0xf]  ;;  %v2608_v50 = vor.u32 %v2607_v33, %v15005_v46 }
 0x171   : > { %v11700_v47 = vld [vmem:[%s14063_s13 + $0x90] sm:$0xf]  ;;  %2210 = vst [vmem:[#allocation3 + $0x350] sm:$0xf] %v2094_v38  ;;  %v2613_v28 = vrot.slane %v2611_v34, 5  ;;  %v2617_v51 = vrot.slane %v2615_v36, 4  ;;  %v4993_v12 = vpop.f32.mrf.mxu0  ;;  %v15045_v38 = vadd.f32 %v5181_v49, %v4988_v37 }
 0x172   : > { %v11701_v52 = vld [vmem:[%s14063_s13 + $0x94] sm:$0xf]  ;;  %v1662_v53 = vshrl.u32 %v11699_v43, 16  ;;  %v1660_v40 = vsel %vm14101_vm5, %v1655_v13, %v1659_v11  ;;  %v2623_v55 = vrot.slane %v2621_v42, 5  ;;  %v1665_v60 = vshll.u32 %v11699_v43, 16  ;;  %v5186_v11 = vpop.f32.mrf.mxu1 }
 0x173   : > { %v1671_v61 = vshll.u32 %v11700_v47, 16  ;;  %v11749_v62 = vld [vmem:[%s14063_s13 + $0x8c] sm:$0xe]  ;;  %1900 = vst [vmem:[#allocation3 + $0x34c] sm:$0xf] %v1660_v40  ;;  %v2609_v5 = vrot.slane %v2608_v50, 4  ;;  %v2618_v0 = vor.u32 %v2617_v51, %v2613_v28  ;;  %v4995_v25 = vpop.f32.mrf.mxu0 }
 0x174   : > { %v1664_v46 = vrot.slane %v1662_v53, 4  ;;  %v1675_v48 = vshrl.u32 %v11700_v47, 16  ;;  %v11750_v6 = vld [vmem:[%s14063_s13 + $0x90] sm:$0xf]  ;;  %v1667_v14 = vrot.slane %v1665_v60, 5  ;;  %v1681_v4 = vshll.u32 %v11701_v52, 16  ;;  %v5188_v31 = vpop.f32.mrf.mxu1 }
 0x175   : > { %v1673_v16 = vrot.slane %v1671_v61, 5  ;;  %v1685_v18 = vshrl.u32 %v11701_v52, 16  ;;  %v15037_v20 = vld [vmem:[%s14063_s13 + $0x94] sm:$0xf]  ;;  %v2614_v15 = vsel %vm14101_vm5, %v2609_v5, %v2613_v28  ;;  %v2619_v21 = vrot.slane %v2618_v0, 4  ;;  %v4996_v43 = vpop.f32.mrf.mxu0 }
 0x176   : > { %v1677_v22 = vrot.slane %v1675_v48, 4  ;;  %v11775_v24 = vrot.slane %v11749_v62, 9  ;;  %v11805_v23 = vld [vmem:[%s14063_s13 + $0xa0] sm:$0xf]  ;;  %2863 = vst [vmem:[#allocation3 + $0x334] sm:$0xf] %v2614_v15  ;;  %v1668_v26 = vor.u32 %v1667_v14, %v1664_v46  ;;  %v15051_v53 = vadd.f32 %v5186_v11, %v4993_v12  ;;  %v5189_v54 = vpop.f32.mrf.mxu1 }
 0x177   : > { %v1683_v27 = vrot.slane %v1681_v4, 5  ;;  %v2097_v17 = vrot.slane %v11750_v6, 5  ;;  %v2100_v29 = vrot.slane %v15037_v20, 5  ;;  %2295 = vst [vmem:[#allocation3 + $0x378] sm:$0xf] %v11805_v23  ;;  %v2624_v36 = vsel %vm14101_vm5, %v2619_v21, %v2623_v55  ;;  %v4998_v62 = vpop.f32.mrf.mxu0 }
 0x178   : > { %v13430_v33 = vld [vmem:[#allocation3 + $0x2e8] ss:$36 sps:$4 sm:$0xff]   ;;  %v1678_v13 = vor.u32 %v1677_v22, %v1673_v16  ;;  %v1687_v42 = vrot.slane %v1685_v18, 4  ;;  %2864 = vst [vmem:[#allocation3 + $0x358] sm:$0xf] %v2624_v36  ;;  %v1669_v47 = vrot.slane %v1668_v26, 4  ;;  %v15055_v61 = vadd.f32 %v5189_v54, %v4996_v43  ;;  %v5191_v6 = vpop.f32.mrf.mxu1 }
 0x179   : > { %v13432_v34 = vld [vmem:[#allocation3 + $0x2ec] ss:$36 sps:$4 sm:$0xff]   ;;  %v2098_v50 = vsel %vm14091_vm4, %v11775_v24, %v2097_v17  ;;  %v2099_v28 = vrot.slane %v2097_v17, 4  ;;  %v11806_v51 = vld [vmem:[%s14063_s13 + $0xa4] sm:$0xf]  ;;  %v5001_v20 = vpop.f32.mrf.mxu0  ;;  %v2102_v26 = vrot.slane %v2100_v29, 4 }
 0x17a   : > { %v11851_v52 = vld [vmem:[%s14063_s13 + $0xa0] sm:$0xf]  ;;  %5578 = vmatprep.mubr.bf16.mxu1 %v13432_v34  ;;  %v1679_v40 = vrot.slane %v1678_v13, 4  ;;  %2211 = vst [vmem:[#allocation3 + $0x374] sm:$0xf] %v2098_v50  ;;  %v1688_v60 = vor.u32 %v1687_v42, %v1683_v27  ;;  %v1674_v0 = vsel %vm14101_vm5, %v1669_v47, %v1673_v16  ;;  %v5194_v22 = vpop.f32.mrf.mxu1 }
 0x17b   : > { %2296 = vst [vmem:[#allocation3 + $0x39c] sm:$0xf] %v11806_v51  ;;  %v11852_v37 = vld [vmem:[%s14063_s13 + $0xa4] sm:$0xf]  ;;  %v11853_v49 = vld [vmem:[%s14063_s13 + $0xa8] sm:$0xf]  ;;  %5579 = vmatmul.mubr.bf16.gmra.mxu1 %v13430_v33  ;;  %v2101_v46 = vsel %vm14091_vm4, %v2099_v28, %v2100_v29  ;;  %v5003_v17 = vpop.f32.mrf.mxu0 }
 0x17c   : > { %v2626_v55 = vshrl.u32 %v11851_v52, 16  ;;  %v13433_v3 = vld [vmem:[#allocation3 + $0x328] ss:$36 sps:$4 sm:$0xff]   ;;  %v2629_v48 = vshll.u32 %v11851_v52, 16  ;;  %v1684_v12 = vsel %vm14101_vm5, %v1679_v40, %v1683_v27  ;;  %1901 = vst [vmem:[#allocation3 + $0x370] sm:$0xf] %v1674_v0  ;;  %v15064_v27 = vadd.f32 %v5194_v22, %v5001_v20  ;;  %v5196_v42 = vpop.f32.mrf.mxu1 }
 0x17d   : > { %v13435_v5 = vld [vmem:[#allocation3 + $0x32c] ss:$36 sps:$4 sm:$0xff]   ;;  %2212 = vst [vmem:[#allocation3 + $0x398] sm:$0xf] %v2101_v46  ;;  %v2635_v4 = vshll.u32 %v11852_v37, 16  ;;  %v2639_v18 = vshrl.u32 %v11852_v37, 16  ;;  %v5004_v51 = vpop.f32.mrf.mxu0 }
 0x17e   : > { %v2628_v14 = vrot.slane %v2626_v55, 4  ;;  %5393 = vmatprep.mubr.bf16.mxu0 %v13435_v5  ;;  %1902 = vst [vmem:[#allocation3 + $0x394] sm:$0xf] %v1684_v12  ;;  %v2631_v11 = vrot.slane %v2629_v48, 5  ;;  %v2645_v16 = vshll.u32 %v11853_v49, 16  ;;  %v2649_v15 = vshrl.u32 %v11853_v49, 16  ;;  %v5197_v49 = vpop.f32.mrf.mxu1 }
 0x17f   : > { %v1689_v21 = vrot.slane %v1688_v60, 4  ;;  %5394 = vmatmul.mubr.bf16.gmra.mxu0 %v13433_v3  ;;  %v2637_v24 = vrot.slane %v2635_v4, 5  ;;  %v2641_v23 = vrot.slane %v2639_v18, 4  ;;  %v11702_v25 = vld [vmem:[%s14063_s13 + $0x98] sm:$0xf]  ;;  %v15069_v5 = vadd.f32 %v5197_v49, %v5004_v51  ;;  %v5006_v0 = vpop.f32.mrf.mxu0 }
 0x180   : > { %v2632_v31 = vor.u32 %v2631_v11, %v2628_v14  ;;  %v2647_v33 = vrot.slane %v2645_v16, 5  ;;  %v11703_v34 = vld [vmem:[%s14063_s13 + $0x9c] sm:$0x1]  ;;  %v1691_v36 = vshll.u32 %v11702_v25, 16  ;;  %v1695_v13 = vshrl.u32 %v11702_v25, 16  ;;  %v5199_v18 = vpop.f32.mrf.mxu1 }
 0x181   : > { %v13436_v43 = vld [vmem:[#allocation3 + $0x330] ss:$36 sps:$4 sm:$0xff]   ;;  %v2642_v50 = vor.u32 %v2641_v23, %v2637_v24  ;;  %v1701_v28 = vshll.u32 %v11703_v34, 16  ;;  %v2651_v37 = vrot.slane %v2649_v15, 4  ;;  %v11807_v14 = vld [vmem:[%s14063_s13 + $0xa8] sm:$0xf] }
 0x182   : > { %v13438_v47 = vld [vmem:[#allocation3 + $0x334] ss:$36 sps:$4 sm:$0xff]   ;;  %v2633_v52 = vrot.slane %v2632_v31, 4  ;;  %v1693_v54 = vrot.slane %v1691_v36, 5  ;;  %v1697_v40 = vrot.slane %v1695_v13, 4  ;;  %v5202_v31 = vpop.f32.mrf.mxu1 }
 0x183   : > { %v11752_v29 = vld [vmem:[%s14063_s13 + $0x98] sm:$0xf]  ;;  %5586 = vmatprep.mubr.bf16.mxu1 %v13438_v47  ;;  %v2643_v55 = vrot.slane %v2642_v50, 4  ;;  %v1703_v60 = vrot.slane %v1701_v28, 5  ;;  %v11753_v62 = vld [vmem:[%s14063_s13 + $0x9c] sm:$0x1] }
 0x184   : > { %v2103_v3 = vrot.slane %v11752_v29, 5  ;;  %5587 = vmatmul.mubr.bf16.gmra.mxu1 %v13436_v43  ;;  %v2638_v46 = vsel %vm14101_vm5, %v2633_v52, %v2637_v24  ;;  %v1694_v48 = vsel %vm14101_vm5, %v1689_v21, %v1693_v54  ;;  %v1698_v6 = vor.u32 %v1697_v40, %v1693_v54  ;;  %v11808_v4 = vld [vmem:[%s14063_s13 + $0xac] sm:$0xf]  ;;  %v13441_v11 = vld [vmem:[#allocation3 + $0x374] ss:$36 sps:$4 sm:$0xff]   ;;  %v5009_v24 = vpop.f32.mrf.mxu0  ;;  %v5204_v54 = vpop.f32.mrf.mxu1 }
 0x185   : > { %v2106_v12 = vrot.slane %v11753_v62, 5  ;;  %v13439_v20 = vld [vmem:[#allocation3 + $0x370] ss:$36 sps:$4 sm:$0xff]   ;;  %v2648_v16 = vsel %vm14101_vm5, %v2643_v55, %v2647_v33  ;;  %2865 = vst [vmem:[#allocation3 + $0x37c] sm:$0xf] %v2638_v46  ;;  %v2652_v21 = vor.u32 %v2651_v37, %v2647_v33  ;;  %5401 = vmatprep.mubr.bf16.mxu0 %v13441_v11  ;;  %v15090_v52 = vadd.f32 %v5202_v31, %v5009_v24 }
 0x186   : > { %1903 = vst [vmem:[#allocation3 + $0x3b8] sm:$0xf] %v1694_v48  ;;  %v2104_v15 = vsel %vm14091_vm4, %v2102_v26, %v2103_v3  ;;  %v2105_v22 = vrot.slane %v2103_v3, 4  ;;  %2297 = vst [vmem:[#allocation3 + $0x3c0] sm:$0xf] %v11807_v14  ;;  %v1699_v23 = vrot.slane %v1698_v6, 4  ;;  %v5011_v43 = vpop.f32.mrf.mxu0  ;;  %v5205_v48 = vpop.f32.mrf.mxu1 }
 0x187   : > { %2298 = vst [vmem:[#allocation3 + $0x3e4] sm:$0xf] %v11808_v4  ;;  %2866 = vst [vmem:[#allocation3 + $0x3a0] sm:$0xf] %v2648_v16  ;;  %v11854_v25 = vld [vmem:[%s14063_s13 + $0xac] sm:$0xf]  ;;  %5402 = vmatmul.mubr.bf16.gmra.mxu0 %v13439_v20 }
 0x188   : > { %2213 = vst [vmem:[#allocation3 + $0x3bc] sm:$0xf] %v2104_v15  ;;  %v11855_v17 = vld [vmem:[%s14063_s13 + $0xb0] sm:$0x1]  ;;  %v2107_v34 = vsel %vm14091_vm4, %v2105_v22, %v2106_v12  ;;  %v2653_v36 = vrot.slane %v2652_v21, 4  ;;  %v2655_v26 = vshll.u32 %v11854_v25, 16  ;;  %v1704_v33 = vsel %vm14101_vm5, %v1699_v23, %v1703_v60  ;;  %v5012_v62 = vpop.f32.mrf.mxu0  ;;  %v5207_v24 = vpop.f32.mrf.mxu1 }
 0x189   : > { %v2659_v13 = vshrl.u32 %v11854_v25, 16  ;;  %v11704_v42 = vld [vmem:[%s14063_s13 + $0xa0] sm:$0xf]  ;;  %2214 = vst [vmem:[#allocation3 + $0x3e0] sm:$0xf] %v2107_v34  ;;  %v2665_v47 = vshll.u32 %v11855_v17, 16  ;;  %v15100_v34 = vadd.f32 %v5205_v48, %v5012_v62 }
 0x18a   : > { %v11705_v50 = vld [vmem:[%s14063_s13 + $0xa4] sm:$0xf]  ;;  %v11706_v28 = vld [vmem:[%s14063_s13 + $0xa8] sm:$0xf]  ;;  %v1706_v51 = vshrl.u32 %v11704_v42, 16  ;;  %v2657_v40 = vrot.slane %v2655_v26, 5  ;;  %v5014_v11 = vpop.f32.mrf.mxu0 }
 0x18b   : > { %1904 = vst [vmem:[#allocation3 + $0x3dc] sm:$0xf] %v1704_v33  ;;  %v2661_v29 = vrot.slane %v2659_v13, 4  ;;  %v1709_v37 = vshll.u32 %v11704_v42, 16  ;;  %v1715_v49 = vshll.u32 %v11705_v50, 16  ;;  %v2667_v3 = vrot.slane %v2665_v47, 5  ;;  %v5210_v47 = vpop.f32.mrf.mxu1 }
 0x18c   : > { %v11754_v55 = vld [vmem:[%s14063_s13 + $0xa0] sm:$0xe]  ;;  %v1708_v60 = vrot.slane %v1706_v51, 4  ;;  %v1719_v0 = vshrl.u32 %v11705_v50, 16  ;;  %v1725_v46 = vshll.u32 %v11706_v28, 16  ;;  %v2658_v6 = vsel %vm14101_vm5, %v2653_v36, %v2657_v40  ;;  %v5017_v36 = vpop.f32.mrf.mxu0 }
 0x18d   : > { %v2662_v12 = vor.u32 %v2661_v29, %v2657_v40  ;;  %v1711_v14 = vrot.slane %v1709_v37, 5  ;;  %v1717_v4 = vrot.slane %v1715_v49, 5  ;;  %v11755_v18 = vld [vmem:[%s14063_s13 + $0xa4] sm:$0xf]  ;;  %v11809_v20 = vld [vmem:[%s14063_s13 + $0xb4] sm:$0xf]  ;;  %v15108_v29 = vadd.f32 %v5210_v47, %v5017_v36 }
 0x18e   : > { %2867 = vst [vmem:[#allocation3 + $0x3c4] sm:$0xf] %v2658_v6  ;;  %v1721_v16 = vrot.slane %v1719_v0, 4  ;;  %v1729_v15 = vshrl.u32 %v11706_v28, 16  ;;  %v15098_v22 = vld [vmem:[%s14063_s13 + $0xa8] sm:$0xf]  ;;  %v5019_v37 = vpop.f32.mrf.mxu0  ;;  %v5212_v0 = vpop.f32.mrf.mxu1 }
 0x18f   : > { %v11776_v21 = vrot.slane %v11754_v55, 9  ;;  %2299 = vst [vmem:[#allocation3 + $0x408] sm:$0xf] %v11809_v20  ;;  %v13442_v23 = vld [vmem:[#allocation3 + $0x378] ss:$36 sps:$4 sm:$0xff]   ;;  %v2663_v17 = vrot.slane %v2662_v12, 4  ;;  %v1712_v31 = vor.u32 %v1711_v14, %v1708_v60 }
 0x190   : > { %v13444_v25 = vld [vmem:[#allocation3 + $0x37c] ss:$36 sps:$4 sm:$0xff]   ;;  %v1722_v26 = vor.u32 %v1721_v16, %v1717_v4  ;;  %v1727_v13 = vrot.slane %v1725_v46, 5  ;;  %v2110_v42 = vrot.slane %v11755_v18, 5  ;;  %v11810_v43 = vld [vmem:[%s14063_s13 + $0xb8] sm:$0xf]  ;;  %v5020_v18 = vpop.f32.mrf.mxu0 }
 0x191   : > { %v1731_v33 = vrot.slane %v1729_v15, 4  ;;  %5594 = vmatprep.mubr.bf16.mxu1 %v13444_v25  ;;  %v2668_v50 = vsel %vm14101_vm5, %v2663_v17, %v2667_v3  ;;  %v1713_v28 = vrot.slane %v1712_v31, 4  ;;  %v2113_v51 = vrot.slane %v15098_v22, 5  ;;  %2300 = vst [vmem:[#allocation3 + $0x42c] sm:$0xf] %v11810_v43 }
 0x192   : > { %v11856_v54 = vld [vmem:[%s14063_s13 + $0xb4] sm:$0xf]  ;;  %v11857_v40 = vld [vmem:[%s14063_s13 + $0xb8] sm:$0xf]  ;;  %5595 = vmatmul.mubr.bf16.gmra.mxu1 %v13442_v23  ;;  %v13446_v49 = vld [vmem:[#allocation3 + $0x3b8] ss:$36 sps:$4 sm:$0xff]   ;;  %v2111_v60 = vsel %vm14091_vm4, %v11776_v21, %v2110_v42  ;;  %v5022_v31 = vpop.f32.mrf.mxu0 }
 0x193   : > { %v13448_v55 = vld [vmem:[#allocation3 + $0x3bc] ss:$36 sps:$4 sm:$0xff]   ;;  %2868 = vst [vmem:[#allocation3 + $0x3e8] sm:$0xf] %v2668_v50  ;;  %v1723_v62 = vrot.slane %v1722_v26, 4  ;;  %v1732_v3 = vor.u32 %v1731_v33, %v1727_v13  ;;  %v1718_v46 = vsel %vm14101_vm5, %v1713_v28, %v1717_v4  ;;  %v2112_v48 = vrot.slane %v2110_v42, 4  ;;  %v5213_v4 = vpop.f32.mrf.mxu1 }
 0x194   : > { %2215 = vst [vmem:[#allocation3 + $0x404] sm:$0xf] %v2111_v60  ;;  %v15115_v6 = vld [vmem:[%s14063_s13 + $0xbc] sm:$0xf]  ;;  %v2670_v12 = vshrl.u32 %v11856_v54, 16  ;;  %v2673_v14 = vshll.u32 %v11856_v54, 16  ;;  %5409 = vmatprep.mubr.bf16.mxu0 %v13448_v55  ;;  %v5025_v37 = vpop.f32.mrf.mxu0 }
 0x195   : > { %v1728_v20 = vsel %vm14101_vm5, %v1723_v62, %v1727_v13  ;;  %1905 = vst [vmem:[#allocation3 + $0x400] sm:$0xf] %v1718_v46  ;;  %v2679_v11 = vshll.u32 %v11857_v40, 16  ;;  %v2683_v16 = vshrl.u32 %v11857_v40, 16  ;;  %v2689_v15 = vshll.u32 %v15115_v6, 16  ;;  %5410 = vmatmul.mubr.bf16.gmra.mxu0 %v13446_v49  ;;  %v5215_v33 = vpop.f32.mrf.mxu1 }
 0x196   : > { %v11707_v22 = vld [vmem:[%s14063_s13 + $0xac] sm:$0xf]  ;;  %1906 = vst [vmem:[#allocation3 + $0x424] sm:$0xf] %v1728_v20  ;;  %v2114_v21 = vsel %vm14091_vm4, %v2112_v48, %v2113_v51  ;;  %v2672_v24 = vrot.slane %v2670_v12, 4  ;;  %v2675_v23 = vrot.slane %v2673_v14, 5  ;;  %v15129_v12 = vadd.f32 %v5213_v4, %v5020_v18  ;;  %v5027_v14 = vpop.f32.mrf.mxu0 }
 0x197   : > { %v2693_v25 = vshrl.u32 %v15115_v6, 16  ;;  %v11708_v17 = vld [vmem:[%s14063_s13 + $0xb0] sm:$0x1]  ;;  %2216 = vst [vmem:[#allocation3 + $0x428] sm:$0xf] %v2114_v21  ;;  %v2681_v36 = vrot.slane %v2679_v11, 5  ;;  %v5218_v0 = vpop.f32.mrf.mxu1 }
 0x198   : > { %v2685_v26 = vrot.slane %v2683_v16, 4  ;;  %v15125_v13 = vrot.slane %v2689_v15, 5  ;;  %v1733_v42 = vrot.slane %v1732_v3, 4  ;;  %v11757_v43 = vld [vmem:[%s14063_s13 + $0xac] sm:$0xf]  ;;  %v2676_v47 = vor.u32 %v2675_v23, %v2672_v24  ;;  %v5028_v23 = vpop.f32.mrf.mxu0 }
 0x199   : > { %v1735_v50 = vshll.u32 %v11707_v22, 16  ;;  %v1739_v28 = vshrl.u32 %v11707_v22, 16  ;;  %v1745_v54 = vshll.u32 %v11708_v17, 16  ;;  %v11758_v40 = vld [vmem:[%s14063_s13 + $0xb0] sm:$0x1]  ;;  %v2115_v55 = vrot.slane %v2113_v51, 4  ;;  %v5220_v22 = vpop.f32.mrf.mxu1 }
 0x19a   : > { %v2686_v49 = vor.u32 %v2685_v26, %v2681_v36  ;;  %v2116_v62 = vrot.slane %v11757_v43, 5  ;;  %v2119_v60 = vrot.slane %v11758_v40, 5  ;;  %v13449_v46 = vld [vmem:[#allocation3 + $0x3c0] ss:$36 sps:$4 sm:$0xff]   ;;  %v2677_v6 = vrot.slane %v2676_v47, 4 }
 0x19b   : > { %v13451_v48 = vld [vmem:[#allocation3 + $0x3c4] ss:$36 sps:$4 sm:$0xff]   ;;  %v15131_v3 = vadd.f32 %v5218_v0, %v5025_v37  ;;  %v1737_v11 = vrot.slane %v1735_v50, 5  ;;  %v1741_v16 = vrot.slane %v1739_v28, 4  ;;  %v1747_v15 = vrot.slane %v1745_v54, 5  ;;  %v5221_v47 = vpop.f32.mrf.mxu1  ;;  %v5030_v37 = vpop.f32.mrf.mxu0 }
 0x19c   : > { %v2687_v20 = vrot.slane %v2686_v49, 4  ;;  %5602 = vmatprep.mubr.bf16.mxu1 %v13451_v48  ;;  %v2682_v51 = vsel %vm14101_vm5, %v2677_v6, %v2681_v36  ;;  %v2117_v21 = vsel %vm14091_vm4, %v2115_v55, %v2116_v62  ;;  %v2118_v24 = vrot.slane %v2116_v62, 4  ;;  %v11811_v18 = vld [vmem:[%s14063_s13 + $0xbc] sm:$0xf]  ;;  %v11812_v4 = vld [vmem:[%s14063_s13 + $0xc0] sm:$0xf] }
 0x19d   : > { %5603 = vmatmul.mubr.bf16.gmra.mxu1 %v13449_v46  ;;  %2869 = vst [vmem:[#allocation3 + $0x40c] sm:$0xf] %v2682_v51  ;;  %v1738_v31 = vsel %vm14101_vm5, %v1733_v42, %v1737_v11  ;;  %v1742_v26 = vor.u32 %v1741_v16, %v1737_v11  ;;  %2217 = vst [vmem:[#allocation3 + $0x44c] sm:$0xf] %v2117_v21  ;;  %v11859_v36 = vld [vmem:[%s14063_s13 + $0xc0] sm:$0xf]  ;;  %v15148_v42 = vadd.f32 %v5221_v47, %v5028_v23  ;;  %v5223_v46 = vpop.f32.mrf.mxu1 }
 0x19e   : > { %v2692_v17 = vsel %vm14101_vm5, %v2687_v20, %v15125_v13  ;;  %2301 = vst [vmem:[#allocation3 + $0x450] sm:$0xf] %v11811_v18  ;;  %2302 = vst [vmem:[#allocation3 + $0x474] sm:$0xf] %v11812_v4  ;;  %v11860_v43 = vld [vmem:[%s14063_s13 + $0xc4] sm:$0x1]  ;;  %v2120_v54 = vsel %vm14091_vm4, %v2118_v24, %v2119_v60  ;;  %v5033_v60 = vpop.f32.mrf.mxu0 }
 0x19f   : > { %v2695_v33 = vrot.slane %v2693_v25, 4  ;;  %v13452_v50 = vld [vmem:[#allocation3 + $0x400] ss:$36 sps:$4 sm:$0xff]   ;;  %2870 = vst [vmem:[#allocation3 + $0x430] sm:$0xf] %v2692_v17  ;;  %v2699_v40 = vshll.u32 %v11859_v36, 16  ;;  %v5226_v21 = vpop.f32.mrf.mxu1 }
 0x1a0   : > { %v13454_v28 = vld [vmem:[#allocation3 + $0x404] ss:$36 sps:$4 sm:$0xff]   ;;  %1907 = vst [vmem:[#allocation3 + $0x448] sm:$0xf] %v1738_v31  ;;  %v1743_v49 = vrot.slane %v1742_v26, 4  ;;  %v2703_v25 = vshrl.u32 %v11859_v36, 16  ;;  %v5035_v31 = vpop.f32.mrf.mxu0 }
 0x1a1   : > { %2218 = vst [vmem:[#allocation3 + $0x470] sm:$0xf] %v2120_v54  ;;  %v2696_v55 = vor.u32 %v2695_v33, %v15125_v13  ;;  %v2709_v62 = vshll.u32 %v11860_v43, 16  ;;  %v11709_v0 = vld [vmem:[%s14063_s13 + $0xb4] sm:$0xf]  ;;  %5417 = vmatprep.mubr.bf16.mxu0 %v13454_v28  ;;  %v2701_v48 = vrot.slane %v2699_v40, 5 }
 0x1a2   : > { %v11710_v6 = vld [vmem:[%s14063_s13 + $0xb8] sm:$0xf]  ;;  %v11711_v14 = vld [vmem:[%s14063_s13 + $0xbc] sm:$0xf]  ;;  %v1750_v20 = vshrl.u32 %v11709_v0, 16  ;;  %5418 = vmatmul.mubr.bf16.gmra.mxu0 %v13452_v50  ;;  %v1748_v11 = vsel %vm14101_vm5, %v1743_v49, %v1747_v15  ;;  %v2705_v22 = vrot.slane %v2703_v25, 4  ;;  %v5228_v50 = vpop.f32.mrf.mxu1  ;;  %v5036_v49 = vpop.f32.mrf.mxu0 }
 0x1a3   : > { %v2697_v16 = vrot.slane %v2696_v55, 4  ;;  %v2711_v13 = vrot.slane %v2709_v62, 5  ;;  %v11759_v51 = vld [vmem:[%s14063_s13 + $0xb4] sm:$0xe]  ;;  %1908 = vst [vmem:[#allocation3 + $0x46c] sm:$0xf] %v1748_v11 }
 0x1a4   : > { %v1752_v24 = vrot.slane %v1750_v20, 4  ;;  %v1753_v18 = vshll.u32 %v11709_v0, 16  ;;  %v1759_v4 = vshll.u32 %v11710_v6, 16  ;;  %v1763_v23 = vshrl.u32 %v11710_v6, 16  ;;  %v11760_v17 = vld [vmem:[%s14063_s13 + $0xb8] sm:$0xf]  ;;  %v5229_v46 = vpop.f32.mrf.mxu1 }
 0x1a5   : > { %v2702_v26 = vsel %vm14101_vm5, %v2697_v16, %v2701_v48  ;;  %v2706_v36 = vor.u32 %v2705_v22, %v2701_v48  ;;  %v1769_v43 = vshll.u32 %v11711_v14, 16  ;;  %v1773_v15 = vshrl.u32 %v11711_v14, 16  ;;  %v15161_v33 = vld [vmem:[%s14063_s13 + $0xbc] sm:$0xf]  ;;  %v11813_v47 = vld [vmem:[%s14063_s13 + $0xc8] sm:$0xf]  ;;  %v5038_v16 = vpop.f32.mrf.mxu0 }
 0x1a6   : > { %2871 = vst [vmem:[#allocation3 + $0x454] sm:$0xf] %v2702_v26  ;;  %v1755_v28 = vrot.slane %v1753_v18, 5  ;;  %v1761_v54 = vrot.slane %v1759_v4, 5  ;;  %v1765_v40 = vrot.slane %v1763_v23, 4  ;;  %v11777_v37 = vrot.slane %v11759_v51, 9 }
 0x1a7   : > { %2303 = vst [vmem:[#allocation3 + $0x498] sm:$0xf] %v11813_v47  ;;  %v13455_v55 = vld [vmem:[#allocation3 + $0x408] ss:$36 sps:$4 sm:$0xff]   ;;  %v2707_v62 = vrot.slane %v2706_v36, 4  ;;  %v15164_v0 = vadd.f32 %v5226_v21, %v5033_v60  ;;  %v1771_v14 = vrot.slane %v1769_v43, 5  ;;  %v15172_v60 = vadd.f32 %v5229_v46, %v5036_v49  ;;  %v5231_v21 = vpop.f32.mrf.mxu1  ;;  %v5041_v36 = vpop.f32.mrf.mxu0 }
 0x1a8   : > { %v13457_v25 = vld [vmem:[#allocation3 + $0x40c] ss:$36 sps:$4 sm:$0xff]   ;;  %v1756_v48 = vor.u32 %v1755_v28, %v1752_v24  ;;  %v1766_v6 = vor.u32 %v1765_v40, %v1761_v54  ;;  %v2123_v20 = vrot.slane %v11760_v17, 5  ;;  %v11814_v11 = vld [vmem:[%s14063_s13 + $0xcc] sm:$0xf]  ;;  %v2126_v51 = vrot.slane %v15161_v33, 5 }
 0x1a9   : > { %5610 = vmatprep.mubr.bf16.mxu1 %v13457_v25  ;;  %v2712_v22 = vsel %vm14101_vm5, %v2707_v62, %v2711_v13  ;;  %2304 = vst [vmem:[#allocation3 + $0x4bc] sm:$0xf] %v11814_v11  ;;  %v11861_v18 = vld [vmem:[%s14063_s13 + $0xc8] sm:$0xf]  ;;  %v11862_v4 = vld [vmem:[%s14063_s13 + $0xcc] sm:$0xf]  ;;  %v5234_v50 = vpop.f32.mrf.mxu1  ;;  %v5043_v62 = vpop.f32.mrf.mxu0 }
 0x1aa   : > { %v1775_v23 = vrot.slane %v1773_v15, 4  ;;  %5611 = vmatmul.mubr.bf16.gmra.mxu1 %v13455_v55  ;;  %2872 = vst [vmem:[#allocation3 + $0x478] sm:$0xf] %v2712_v22  ;;  %v1757_v24 = vrot.slane %v1756_v48, 4  ;;  %v1767_v17 = vrot.slane %v1766_v6, 4  ;;  %v2124_v31 = vsel %vm14091_vm4, %v11777_v37, %v2123_v20 }
 0x1ab   : > { %v2125_v26 = vrot.slane %v2123_v20, 4  ;;  %v15177_v13 = vld [vmem:[%s14063_s13 + $0xd0] sm:$0xf]  ;;  %v13460_v33 = vld [vmem:[#allocation3 + $0x44c] ss:$36 sps:$4 sm:$0xff]   ;;  %v2714_v15 = vshrl.u32 %v11861_v18, 16  ;;  %v5236_v20 = vpop.f32.mrf.mxu1 }
 0x1ac   : > { %v13458_v43 = vld [vmem:[#allocation3 + $0x448] ss:$36 sps:$4 sm:$0xff]   ;;  %2219 = vst [vmem:[#allocation3 + $0x494] sm:$0xf] %v2124_v31  ;;  %v1776_v47 = vor.u32 %v1775_v23, %v1771_v14  ;;  %v1762_v28 = vsel %vm14101_vm5, %v1757_v24, %v1761_v54  ;;  %v1772_v40 = vsel %vm14101_vm5, %v1767_v17, %v1771_v14  ;;  %v2717_v37 = vshll.u32 %v11861_v18, 16  ;;  %5425 = vmatprep.mubr.bf16.mxu0 %v13460_v33  ;;  %v5044_v23 = vpop.f32.mrf.mxu0 }
 0x1ad   : > { %v2127_v49 = vsel %vm14091_vm4, %v2125_v26, %v2126_v51  ;;  %v11712_v55 = vld [vmem:[%s14063_s13 + $0xc0] sm:$0xf]  ;;  %v11713_v25 = vld [vmem:[%s14063_s13 + $0xc4] sm:$0x1]  ;;  %1909 = vst [vmem:[#allocation3 + $0x490] sm:$0xf] %v1762_v28  ;;  %5426 = vmatmul.mubr.bf16.gmra.mxu0 %v13458_v43  ;;  %v5237_v33 = vpop.f32.mrf.mxu1 }
 0x1ae   : > { %1910 = vst [vmem:[#allocation3 + $0x4b4] sm:$0xf] %v1772_v40  ;;  %2220 = vst [vmem:[#allocation3 + $0x4b8] sm:$0xf] %v2127_v49  ;;  %v2716_v46 = vrot.slane %v2714_v15, 4  ;;  %v2723_v48 = vshll.u32 %v11862_v4, 16  ;;  %v5046_v49 = vpop.f32.mrf.mxu0 }
 0x1af   : > { %v2727_v6 = vshrl.u32 %v11862_v4, 16  ;;  %v2733_v54 = vshll.u32 %v15177_v13, 16  ;;  %v2719_v14 = vrot.slane %v2717_v37, 5  ;;  %v2737_v11 = vshrl.u32 %v15177_v13, 16  ;;  %v11762_v18 = vld [vmem:[%s14063_s13 + $0xc0] sm:$0xf] }
 0x1b0   : > { %v1777_v16 = vrot.slane %v1776_v47, 4  ;;  %v1779_v22 = vshll.u32 %v11712_v55, 16  ;;  %v2725_v21 = vrot.slane %v2723_v48, 5  ;;  %v1783_v31 = vshrl.u32 %v11712_v55, 16  ;;  %v11763_v26 = vld [vmem:[%s14063_s13 + $0xc4] sm:$0x1]  ;;  %v5239_v55 = vpop.f32.mrf.mxu1 }
 0x1b1   : > { %v2729_v24 = vrot.slane %v2727_v6, 4  ;;  %v15190_v17 = vrot.slane %v2733_v54, 5  ;;  %v2720_v4 = vor.u32 %v2719_v14, %v2716_v46  ;;  %v1789_v28 = vshll.u32 %v11713_v25, 16  ;;  %v11815_v40 = vld [vmem:[%s14063_s13 + $0xd0] sm:$0xf]  ;;  %v5049_v14 = vpop.f32.mrf.mxu0 }
 0x1b2   : > { %v1781_v15 = vrot.slane %v1779_v22, 5  ;;  %v2128_v43 = vrot.slane %v2126_v51, 4  ;;  %v13462_v37 = vld [vmem:[#allocation3 + $0x450] ss:$36 sps:$4 sm:$0xff]   ;;  %v1785_v62 = vrot.slane %v1783_v31, 4  ;;  %v15194_v48 = vadd.f32 %v5234_v50, %v5041_v36 }
 0x1b3   : > { %v13464_v13 = vld [vmem:[#allocation3 + $0x454] ss:$36 sps:$4 sm:$0xff]   ;;  %v2730_v47 = vor.u32 %v2729_v24, %v2725_v21  ;;  %2305 = vst [vmem:[#allocation3 + $0x4e0] sm:$0xf] %v11815_v40  ;;  %v15196_v6 = vadd.f32 %v5237_v33, %v5044_v23  ;;  %v2721_v54 = vrot.slane %v2720_v4, 4  ;;  %v1791_v46 = vrot.slane %v1789_v28, 5  ;;  %v5242_v40 = vpop.f32.mrf.mxu1  ;;  %v5051_v28 = vpop.f32.mrf.mxu0 }
 0x1b4   : > { %17469 = vst [vmem:[#allocation13_spill] sm:$0xff] %v15194_v48  ;;  %v1782_v25 = vsel %vm14101_vm5, %v1777_v16, %v1781_v15  ;;  %v2129_v51 = vrot.slane %v11762_v18, 5  ;;  %v11816_v20 = vld [vmem:[%s14063_s13 + $0xd4] sm:$0xf]  ;;  %5618 = vmatprep.mubr.bf16.mxu1 %v13464_v13  ;;  %v1786_v24 = vor.u32 %v1785_v62, %v1781_v15  ;;  %v2132_v31 = vrot.slane %v11763_v26, 5 }
 0x1b5   : > { %17470 = vst [vmem:[#allocation14_spill] sm:$0xff] %v15196_v6  ;;  %v2731_v22 = vrot.slane %v2730_v47, 4  ;;  %1911 = vst [vmem:[#allocation3 + $0x4d8] sm:$0xf] %v1782_v25  ;;  %v11864_v36 = vld [vmem:[%s14063_s13 + $0xd4] sm:$0xf]  ;;  %5619 = vmatmul.mubr.bf16.gmra.mxu1 %v13462_v37  ;;  %v2726_v33 = vsel %vm14101_vm5, %v2721_v54, %v2725_v21  ;;  %v5244_v47 = vpop.f32.mrf.mxu1  ;;  %v15213_v62 = vadd.f32 %v5242_v40, %v5049_v14  ;;  %v5052_v55 = vpop.f32.mrf.mxu0 }
 0x1b6   : > { %2306 = vst [vmem:[#allocation3 + $0x504] sm:$0xf] %v11816_v20  ;;  %v11865_v50 = vld [vmem:[%s14063_s13 + $0xd8] sm:$0x1]  ;;  %v2130_v16 = vsel %vm14091_vm4, %v2128_v43, %v2129_v51  ;;  %v2131_v18 = vrot.slane %v2129_v51, 4  ;;  %v2739_v4 = vrot.slane %v2737_v11, 4 }
 0x1b7   : > { %v13465_v23 = vld [vmem:[#allocation3 + $0x490] ss:$36 sps:$4 sm:$0xff]   ;;  %v2736_v26 = vsel %vm14101_vm5, %v2731_v22, %v15190_v17  ;;  %2873 = vst [vmem:[#allocation3 + $0x49c] sm:$0xf] %v2726_v33  ;;  %v1787_v15 = vrot.slane %v1786_v24, 4  ;;  %v2743_v37 = vshll.u32 %v11864_v36, 16  ;;  %v5245_v24 = vpop.f32.mrf.mxu1  ;;  %v5054_v40 = vpop.f32.mrf.mxu0 }
 0x1b8   : > { %v13467_v49 = vld [vmem:[#allocation3 + $0x494] ss:$36 sps:$4 sm:$0xff]   ;;  %2221 = vst [vmem:[#allocation3 + $0x4dc] sm:$0xf] %v2130_v16  ;;  %v2747_v13 = vshrl.u32 %v11864_v36, 16  ;;  %v2133_v21 = vsel %vm14091_vm4, %v2131_v18, %v2132_v31  ;;  %v2740_v11 = vor.u32 %v2739_v4, %v15190_v17  ;;  %v2753_v43 = vshll.u32 %v11865_v50, 16 }
 0x1b9   : > { %2874 = vst [vmem:[#allocation3 + $0x4c0] sm:$0xf] %v2736_v26  ;;  %17471 = vst [vmem:[#allocation15_spill] sm:$0xff] %v15213_v62  ;;  %5433 = vmatprep.mubr.bf16.mxu0 %v13467_v49  ;;  %v1792_v54 = vsel %vm14101_vm5, %v1787_v15, %v1791_v46  ;;  %v2745_v25 = vrot.slane %v2743_v37, 5  ;;  %v11714_v20 = vld [vmem:[%s14063_s13 + $0xc8] sm:$0xf]  ;;  %v5247_v28 = vpop.f32.mrf.mxu1 }
 0x1ba   : > { %2222 = vst [vmem:[#allocation3 + $0x500] sm:$0xf] %v2133_v21  ;;  %v2749_v51 = vrot.slane %v2747_v13, 4  ;;  %v11715_v22 = vld [vmem:[%s14063_s13 + $0xcc] sm:$0xf]  ;;  %5434 = vmatmul.mubr.bf16.gmra.mxu0 %v13465_v23  ;;  %v2741_v31 = vrot.slane %v2740_v11, 4  ;;  %v5057_v13 = vpop.f32.mrf.mxu0 }
 0x1bb   : > { %1912 = vst [vmem:[#allocation3 + $0x4fc] sm:$0xf] %v1792_v54  ;;  %v2755_v17 = vrot.slane %v2753_v43, 5  ;;  %v11716_v36 = vld [vmem:[%s14063_s13 + $0xd0] sm:$0xf]  ;;  %v1794_v14 = vshrl.u32 %v11714_v20, 16 }
 0x1bc   : > { %v1797_v50 = vshll.u32 %v11714_v20, 16  ;;  %v2750_v33 = vor.u32 %v2749_v51, %v2745_v25  ;;  %v1803_v16 = vshll.u32 %v11715_v22, 16  ;;  %v1807_v46 = vshrl.u32 %v11715_v22, 16  ;;  %v11764_v4 = vld [vmem:[%s14063_s13 + $0xc8] sm:$0xe]  ;;  %v5250_v51 = vpop.f32.mrf.mxu1 }
 0x1bd   : > { %v1813_v18 = vshll.u32 %v11716_v36, 16  ;;  %v2746_v49 = vsel %vm14101_vm5, %v2741_v31, %v2745_v25  ;;  %v1796_v26 = vrot.slane %v1794_v14, 4  ;;  %v1817_v15 = vshrl.u32 %v11716_v36, 16  ;;  %v11765_v37 = vld [vmem:[%s14063_s13 + $0xcc] sm:$0xf]  ;;  %v5059_v31 = vpop.f32.mrf.mxu0 }
 0x1be   : > { %v1799_v23 = vrot.slane %v1797_v50, 5  ;;  %v2751_v47 = vrot.slane %v2750_v33, 4  ;;  %2875 = vst [vmem:[#allocation3 + $0x4e4] sm:$0xf] %v2746_v49  ;;  %v1805_v21 = vrot.slane %v1803_v16, 5  ;;  %v1809_v11 = vrot.slane %v1807_v46, 4 }
 0x1bf   : > { %v1815_v43 = vrot.slane %v1813_v18, 5  ;;  %v15225_v54 = vld [vmem:[%s14063_s13 + $0xd0] sm:$0xf]  ;;  %v11778_v22 = vrot.slane %v11764_v4, 9  ;;  %v2136_v40 = vrot.slane %v11765_v37, 5  ;;  %v1819_v16 = vrot.slane %v1817_v15, 4  ;;  %v5252_v18 = vpop.f32.mrf.mxu1  ;;  %v5060_v31 = vpop.f32.mrf.mxu0 }
 0x1c0   : > { %v1800_v20 = vor.u32 %v1799_v23, %v1796_v26  ;;  %v17454_v25 = vrot.slane %v15225_v54, 5  ;;  %v13468_v14 = vld [vmem:[#allocation3 + $0x498] ss:$36 sps:$4 sm:$0xff]   ;;  %v2756_v50 = vsel %vm14101_vm5, %v2751_v47, %v2755_v17  ;;  %v1810_v33 = vor.u32 %v1809_v11, %v1805_v21  ;;  %v11817_v26 = vld [vmem:[%s14063_s13 + $0xdc] sm:$0xf] }
 0x1c1   : > { %v13470_v36 = vld [vmem:[#allocation3 + $0x49c] ss:$36 sps:$4 sm:$0xff]   ;;  %v15230_v46 = vadd.f32 %v5245_v24, %v5052_v55  ;;  %2876 = vst [vmem:[#allocation3 + $0x508] sm:$0xf] %v2756_v50  ;;  %v2137_v4 = vsel %vm14091_vm4, %v11778_v22, %v2136_v40  ;;  %v2138_v49 = vrot.slane %v2136_v40, 4  ;;  %v15236_v37 = vadd.f32 %v5250_v51, %v5057_v13  ;;  %v5253_v47 = vpop.f32.mrf.mxu1 }
 0x1c2   : > { %v1801_v28 = vrot.slane %v1800_v20, 4  ;;  %v11818_v23 = vld [vmem:[%s14063_s13 + $0xe0] sm:$0xf]  ;;  %5626 = vmatprep.mubr.bf16.mxu1 %v13470_v36  ;;  %v13473_v15 = vld [vmem:[#allocation3 + $0x4dc] ss:$36 sps:$4 sm:$0xff]   ;;  %v1811_v55 = vrot.slane %v1810_v33, 4  ;;  %v1820_v24 = vor.u32 %v1819_v16, %v1815_v43  ;;  %v15249_v40 = vadd.f32 %v5253_v47, %v5060_v31  ;;  %v5062_v36 = vpop.f32.mrf.mxu0 }
 0x1c3   : > { %17472 = vst [vmem:[#allocation16_spill] sm:$0xff] %v15230_v46  ;;  %17473 = vst [vmem:[#allocation17_spill] sm:$0xff] %v15236_v37  ;;  %v13471_v17 = vld [vmem:[#allocation3 + $0x4d8] ss:$36 sps:$4 sm:$0xff]   ;;  %5627 = vmatmul.mubr.bf16.gmra.mxu1 %v13468_v14  ;;  %v2140_v13 = vsel %vm14091_vm4, %v2138_v49, %v17454_v25  ;;  %v11866_v51 = vld [vmem:[%s14063_s13 + $0xdc] sm:$0xf]  ;;  %5441 = vmatprep.mubr.bf16.mxu0 %v13473_v15  ;;  %v5255_v18 = vpop.f32.mrf.mxu1 }
 0x1c4   : > { %2223 = vst [vmem:[#allocation3 + $0x524] sm:$0xf] %v2137_v4  ;;  %2307 = vst [vmem:[#allocation3 + $0x528] sm:$0xf] %v11817_v26  ;;  %v1806_v11 = vsel %vm14101_vm5, %v1801_v28, %v1805_v21  ;;  %v11867_v20 = vld [vmem:[%s14063_s13 + $0xe0] sm:$0xf]  ;;  %v1816_v14 = vsel %vm14101_vm5, %v1811_v55, %v1815_v43  ;;  %5442 = vmatmul.mubr.bf16.gmra.mxu0 %v13471_v17 }
 0x1c5   : > { %2308 = vst [vmem:[#allocation3 + $0x54c] sm:$0xf] %v11818_v23  ;;  %v15247_v22 = vld [vmem:[%s14063_s13 + $0xe4] sm:$0xf]  ;;  %17474 = vst [vmem:[#allocation18_spill] sm:$0xff] %v15249_v40  ;;  %v2758_v21 = vshrl.u32 %v11866_v51, 16  ;;  %v5065_v23 = vpop.f32.mrf.mxu0 }
 0x1c6   : > { %1913 = vst [vmem:[#allocation3 + $0x520] sm:$0xf] %v1806_v11  ;;  %2224 = vst [vmem:[#allocation3 + $0x548] sm:$0xf] %v2140_v13  ;;  %v2761_v50 = vshll.u32 %v11866_v51, 16  ;;  %v2767_v33 = vshll.u32 %v11867_v20, 16  ;;  %v5258_v11 = vpop.f32.mrf.mxu1 }
 0x1c7   : > { %v11717_v16 = vld [vmem:[%s14063_s13 + $0xd4] sm:$0xf]  ;;  %1914 = vst [vmem:[#allocation3 + $0x544] sm:$0xf] %v1816_v14  ;;  %v2771_v28 = vshrl.u32 %v11867_v20, 16  ;;  %v2777_v4 = vshll.u32 %v15247_v22, 16  ;;  %v5067_v20 = vpop.f32.mrf.mxu0  ;;  %v15261_v37 = vadd.f32 %v5258_v11, %v5065_v23 }
 0x1c8   : > { %v2781_v49 = vshrl.u32 %v15247_v22, 16  ;;  %v11718_v26 = vld [vmem:[%s14063_s13 + $0xd8] sm:$0x1]  ;;  %v2760_v31 = vrot.slane %v2758_v21, 4  ;;  %v2763_v43 = vrot.slane %v2761_v50, 5  ;;  %v2769_v15 = vrot.slane %v2767_v33, 5  ;;  %v5260_v21 = vpop.f32.mrf.mxu1 }
 0x1c9   : > { %v1821_v55 = vrot.slane %v1820_v24, 4  ;;  %v11767_v47 = vld [vmem:[%s14063_s13 + $0xd4] sm:$0xf]  ;;  %v2773_v13 = vrot.slane %v2771_v28, 4  ;;  %v15258_v51 = vrot.slane %v2777_v4, 5  ;;  %v1823_v17 = vshll.u32 %v11717_v16, 16 }
 0x1ca   : > { %v1827_v36 = vshrl.u32 %v11717_v16, 16  ;;  %v11768_v14 = vld [vmem:[%s14063_s13 + $0xd8] sm:$0x1]  ;;  %v13474_v18 = vld [vmem:[#allocation3 + $0x4e0] ss:$36 sps:$4 sm:$0xff]   ;;  %v2764_v22 = vor.u32 %v2763_v43, %v2760_v31  ;;  %v1833_v40 = vshll.u32 %v11718_v26, 16  ;;  %v5068_v16 = vpop.f32.mrf.mxu0  ;;  %v5261_v26 = vpop.f32.mrf.mxu1 }
 0x1cb   : > { %v13476_v25 = vld [vmem:[#allocation3 + $0x4e4] ss:$36 sps:$4 sm:$0xff]   ;;  %v2774_v50 = vor.u32 %v2773_v13, %v2769_v15  ;;  %v1825_v24 = vrot.slane %v1823_v17, 5  ;;  %v17475_v28 = vrot.slane %v15225_v54, 5  ;;  %v11819_v4 = vld [vmem:[%s14063_s13 + $0xe4] sm:$0xf]  ;;  %v15271_v17 = vadd.f32 %v5261_v26, %v5068_v16 }
 0x1cc   : > { %v1829_v33 = vrot.slane %v1827_v36, 4  ;;  %5634 = vmatprep.mubr.bf16.mxu1 %v13476_v25  ;;  %v2765_v20 = vrot.slane %v2764_v22, 4  ;;  %v1835_v62 = vrot.slane %v1833_v40, 5  ;;  %v2142_v6 = vrot.slane %v11767_v47, 5  ;;  %v11820_v31 = vld [vmem:[%s14063_s13 + $0xe8] sm:$0xf]  ;;  %v5070_v25 = vpop.f32.mrf.mxu0 }
 0x1cd   : > { %v2141_v46 = vrot.slane %v17475_v28, 4  ;;  %v2145_v48 = vrot.slane %v11768_v14, 5  ;;  %2309 = vst [vmem:[#allocation3 + $0x570] sm:$0xf] %v11819_v4  ;;  %5635 = vmatmul.mubr.bf16.gmra.mxu1 %v13474_v18  ;;  %v2775_v23 = vrot.slane %v2774_v50, 4  ;;  %v1826_v43 = vsel %vm14101_vm5, %v1821_v55, %v1825_v24  ;;  %17476 = vst [vmem:[#allocation19_spill] sm:$0xff] %v15271_v17  ;;  %v5263_v55 = vpop.f32.mrf.mxu1 }
 0x1ce   : > { %v1830_v11 = vor.u32 %v1829_v33, %v1825_v24  ;;  %2310 = vst [vmem:[#allocation3 + $0x594] sm:$0xf] %v11820_v31  ;;  %v11869_v54 = vld [vmem:[%s14063_s13 + $0xe8] sm:$0xf]  ;;  %v11870_v13 = vld [vmem:[%s14063_s13 + $0xec] sm:$0x1]  ;;  %v2770_v47 = vsel %vm14101_vm5, %v2765_v20, %v2769_v15  ;;  %v5073_v15 = vpop.f32.mrf.mxu0 }
 0x1cf   : > { %v13478_v36 = vld [vmem:[#allocation3 + $0x520] ss:$36 sps:$4 sm:$0xff]   ;;  %1915 = vst [vmem:[#allocation3 + $0x568] sm:$0xf] %v1826_v43  ;;  %v2143_v14 = vsel %vm14091_vm4, %v2141_v46, %v2142_v6  ;;  %v2144_v18 = vrot.slane %v2142_v6, 4  ;;  %v2780_v22 = vsel %vm14101_vm5, %v2775_v23, %v15258_v51  ;;  %v2783_v50 = vrot.slane %v2781_v49, 4  ;;  %v5266_v20 = vpop.f32.mrf.mxu1 }
 0x1d0   : > { %v13480_v40 = vld [vmem:[#allocation3 + $0x524] ss:$36 sps:$4 sm:$0xff]   ;;  %2877 = vst [vmem:[#allocation3 + $0x52c] sm:$0xf] %v2770_v47  ;;  %v1831_v21 = vrot.slane %v1830_v11, 4  ;;  %v2787_v24 = vshll.u32 %v11869_v54, 16  ;;  %v5075_v25 = vpop.f32.mrf.mxu0 }
 0x1d1   : > { %2225 = vst [vmem:[#allocation3 + $0x56c] sm:$0xf] %v2143_v14  ;;  %v11871_v33 = vld [vmem:[%s14063_s13 + $0x28] sm:$0xe]  ;;  %5449 = vmatprep.mubr.bf16.mxu0 %v13480_v40  ;;  %2878 = vst [vmem:[#allocation3 + $0x550] sm:$0xf] %v2780_v22  ;;  %v2146_v6 = vsel %vm14091_vm4, %v2144_v18, %v2145_v48  ;;  %v2784_v31 = vor.u32 %v2783_v50, %v15258_v51  ;;  %v5268_v47 = vpop.f32.mrf.mxu1 }
 0x1d2   : > { %v2791_v46 = vshrl.u32 %v11869_v54, 16  ;;  %v2797_v28 = vshll.u32 %v11870_v13, 16  ;;  %v11872_v4 = vld [vmem:[%s14063_s13 + $0x2c] sm:$0xf]  ;;  %v11873_v16 = vld [vmem:[%s14063_s13 + $0x30] sm:$0xf]  ;;  %5450 = vmatmul.mubr.bf16.gmra.mxu0 %v13478_v36  ;;  %v1836_v49 = vsel %vm14101_vm5, %v1831_v21, %v1835_v62  ;;  %v5076_v22 = vpop.f32.mrf.mxu0 }
 0x1d3   : > { %2226 = vst [vmem:[#allocation3 + $0x590] sm:$0xf] %v2146_v6  ;;  %v2789_v26 = vrot.slane %v2787_v24, 5  ;;  %v11874_v23 = vld [vmem:[%s14063_s13 + $0x34] sm:$0xf]  ;;  %v11921_v43 = vrot.slane %v11871_v33, 9 }
 0x1d4   : > { %v11875_v11 = vld [vmem:[%s14063_s13 + $0x38] sm:$0x1]  ;;  %1916 = vst [vmem:[#allocation3 + $0x58c] sm:$0xf] %v1836_v49  ;;  %v2793_v48 = vrot.slane %v2791_v46, 4  ;;  %v2799_v54 = vrot.slane %v2797_v28, 5  ;;  %v5269_v28 = vpop.f32.mrf.mxu1 }
 0x1d5   : > { %v2983_v13 = vrot.slane %v11872_v4, 5  ;;  %v2986_v40 = vrot.slane %v11873_v16, 5  ;;  %v11876_v36 = vld [vmem:[%s14063_s13 + $0x3c] sm:$0xe]  ;;  %v2785_v14 = vrot.slane %v2784_v31, 4  ;;  %v2989_v62 = vrot.slane %v11874_v23, 5 }
 0x1d6   : > { %v2992_v18 = vrot.slane %v11875_v11, 5  ;;  %v11877_v51 = vld [vmem:[%s14063_s13 + $0x40] sm:$0xf]  ;;  %v11922_v55 = vrot.slane %v11876_v36, 9  ;;  %v2794_v21 = vor.u32 %v2793_v48, %v2789_v26  ;;  %v11878_v6 = vld [vmem:[%s14063_s13 + $0x44] sm:$0xf]  ;;  %v5078_v11 = vpop.f32.mrf.mxu0  ;;  %v5271_v47 = vpop.f32.mrf.mxu1 }
 0x1d7   : > { %v2984_v50 = vsel %vm14091_vm4, %v11921_v43, %v2983_v13  ;;  %v2985_v24 = vrot.slane %v2983_v13, 4  ;;  %v2988_v33 = vrot.slane %v2986_v40, 4  ;;  %v11879_v46 = vld [vmem:[%s14063_s13 + $0x48] sm:$0xf]  ;;  %v2790_v4 = vsel %vm14101_vm5, %v2785_v14, %v2789_v26  ;;  %v11880_v23 = vld [vmem:[%s14063_s13 + $0x4c] sm:$0x1] }
 0x1d8   : > { %v2991_v16 = vrot.slane %v2989_v62, 4  ;;  %3151 = vst [vmem:[#allocation3 + $0x20] sm:$0xf] %v2984_v50  ;;  %v2996_v49 = vrot.slane %v11877_v51, 5  ;;  %v2999_v31 = vrot.slane %v11878_v6, 5  ;;  %v2795_v25 = vrot.slane %v2794_v21, 4 }
 0x1d9   : > { %2879 = vst [vmem:[#allocation3 + $0x574] sm:$0xf] %v2790_v4  ;;  %v2987_v43 = vsel %vm14091_vm4, %v2985_v24, %v2986_v40  ;;  %v2990_v48 = vsel %vm14091_vm4, %v2988_v33, %v2989_v62  ;;  %v3002_v13 = vrot.slane %v11879_v46, 5  ;;  %v11881_v36 = vld [vmem:[%s14063_s13 + $0x50] sm:$0xe]  ;;  %v15308_v50 = vadd.f32 %v5266_v20, %v5073_v15  ;;  %v5307_v40 = vpop.f32.mrf.mxu0 }
 0x1da   : > { %v13481_v17 = vld [vmem:[#allocation3 + $0x528] ss:$36 sps:$4 sm:$0xff]   ;;  %3152 = vst [vmem:[#allocation3 + $0x44] sm:$0xf] %v2987_v43  ;;  %3153 = vst [vmem:[#allocation3 + $0x68] sm:$0xf] %v2990_v48  ;;  %v2993_v14 = vsel %vm14091_vm4, %v2991_v16, %v2992_v18  ;;  %v2997_v51 = vsel %vm14091_vm4, %v11922_v55, %v2996_v49  ;;  %v2800_v62 = vsel %vm14101_vm5, %v2795_v25, %v2799_v54 }
 0x1db   : > { %v13483_v26 = vld [vmem:[#allocation3 + $0x52c] ss:$36 sps:$4 sm:$0xff]   ;;  %v2998_v21 = vrot.slane %v2996_v49, 4  ;;  %3154 = vst [vmem:[#allocation3 + $0x8c] sm:$0xf] %v2993_v14  ;;  %v3001_v24 = vrot.slane %v2999_v31, 4  ;;  %v15315_v55 = vadd.f32 %v5269_v28, %v5076_v22  ;;  %v5308_v54 = vadd.f32 %v5307_v40, %v14788_v10  ;;  %v5309_v16 = vpop.f32.mrf.mxu0 }
 0x1dc   : > { %3155 = vst [vmem:[#allocation3 + $0xb0] sm:$0xf] %v2997_v51  ;;  %v3004_v33 = vrot.slane %v3002_v13, 4  ;;  %v3005_v6 = vrot.slane %v11880_v23, 5  ;;  %v11882_v46 = vld [vmem:[%s14063_s13 + $0x54] sm:$0xf]  ;;  %5642 = vmatprep.mubr.bf16.mxu1 %v13483_v26 }
 0x1dd   : > { %v13484_v18 = vld [vmem:[#allocation3 + $0x568] ss:$36 sps:$4 sm:$0xff]   ;;  %2880 = vst [vmem:[#allocation3 + $0x598] sm:$0xf] %v2800_v62  ;;  %v3000_v15 = vsel %vm14091_vm4, %v2998_v21, %v2999_v31  ;;  %v11923_v20 = vrot.slane %v11881_v36, 9  ;;  %5643 = vmatmul.mubr.bf16.gmra.mxu1 %v13481_v17  ;;  %v3003_v49 = vsel %vm14091_vm4, %v3001_v24, %v3002_v13  ;;  %v3009_v25 = vrot.slane %v11882_v46, 5  ;;  %v5310_v17 = vpop.f32.mrf.mxu0 }
 0x1de   : > { %v13486_v4 = vld [vmem:[#allocation3 + $0x56c] ss:$36 sps:$4 sm:$0xff]   ;;  %3156 = vst [vmem:[#allocation3 + $0xd4] sm:$0xf] %v3000_v15  ;;  %v3006_v23 = vsel %vm14091_vm4, %v3004_v33, %v3005_v6  ;;  %v11884_v31 = vld [vmem:[%s14063_s13 + $0x5c] sm:$0xf]  ;;  %v5311_v26 = vadd.f32 %v5310_v17, %v14803_v32  ;;  %v5500_v6 = vpop.f32.mrf.mxu1 }
 0x1df   : > { %v11883_v11 = vld [vmem:[%s14063_s13 + $0x58] sm:$0xf]  ;;  %5457 = vmatprep.mubr.bf16.mxu0 %v13486_v4  ;;  %3157 = vst [vmem:[#allocation3 + $0xf8] sm:$0xf] %v3003_v49  ;;  %3158 = vst [vmem:[#allocation3 + $0x11c] sm:$0xf] %v3006_v23  ;;  %v3010_v48 = vsel %vm14091_vm4, %v11923_v20, %v3009_v25  ;;  %v5312_v62 = vpop.f32.mrf.mxu0  ;;  %v15337_v32 = vadd.f32 %v5500_v6, %v5308_v54 }
 0x1e0   : > { %v3012_v22 = vrot.slane %v11883_v11, 5  ;;  %v11885_v28 = vld [vmem:[%s14063_s13 + $0x60] sm:$0x1]  ;;  %v3015_v10 = vrot.slane %v11884_v31, 5  ;;  %v11886_v43 = vld [vmem:[%s14063_s13 + $0x64] sm:$0xe]  ;;  %5458 = vmatmul.mubr.bf16.gmra.mxu0 %v13484_v18  ;;  %v5502_v49 = vpop.f32.mrf.mxu1 }
 0x1e1   : > { %v3011_v13 = vrot.slane %v3009_v25, 4  ;;  %v3018_v36 = vrot.slane %v11885_v28, 5  ;;  %v11887_v47 = vld [vmem:[%s14063_s13 + $0x68] sm:$0xf]  ;;  %3159 = vst [vmem:[#allocation3 + $0x140] sm:$0xf] %v3010_v48  ;;  %v5315_v23 = vpop.f32.mrf.mxu0 }
 0x1e2   : > { %v3014_v14 = vrot.slane %v3012_v22, 4  ;;  %v3017_v51 = vrot.slane %v3015_v10, 4  ;;  %v11888_v21 = vld [vmem:[%s14063_s13 + $0x6c] sm:$0xf]  ;;  %v11924_v40 = vrot.slane %v11886_v43, 9  ;;  %v3022_v16 = vrot.slane %v11887_v47, 5 }
 0x1e3   : > { %v13490_v24 = vld [vmem:[#allocation3 + $0x20] ss:$36 sps:$4 sm:$0xff]   ;;  %v3013_v33 = vsel %vm14091_vm4, %v3011_v13, %v3012_v22  ;;  %v13491_v46 = vld [vmem:[#allocation3 + $0x68] ss:$36 sps:$4 sm:$0xff]   ;;  %v13487_v15 = vld [vmem:[#allocation3 + $0x570] ss:$36 sps:$4 sm:$0xff]   ;;  %v5316_v31 = vadd.f32 %v5315_v23, %v14817_v59  ;;  %v5503_v22 = vpop.f32.mrf.mxu1  ;;  %v5317_v28 = vpop.f32.mrf.mxu0 }
 0x1e4   : > { %3160 = vst [vmem:[#allocation3 + $0x164] sm:$0xf] %v3013_v33  ;;  %v3016_v18 = vsel %vm14091_vm4, %v3014_v14, %v3015_v10  ;;  %v3019_v4 = vsel %vm14091_vm4, %v3017_v51, %v3018_v36  ;;  %v13489_v20 = vld [vmem:[#allocation3 + $0x574] ss:$36 sps:$4 sm:$0xff]   ;;  %13032 = vmatprep.mubr.bf16.mxu0 %v13490_v24  ;;  %v3025_v25 = vrot.slane %v11888_v21, 5  ;;  %v3023_v54 = vsel %vm14091_vm4, %v11924_v40, %v3022_v16 }
 0x1e5   : > { %3161 = vst [vmem:[#allocation3 + $0x188] sm:$0xf] %v3016_v18  ;;  %3162 = vst [vmem:[#allocation3 + $0x1ac] sm:$0xf] %v3019_v4  ;;  %v13492_v11 = vld [vmem:[#allocation3 + $0xb0] ss:$36 sps:$4 sm:$0xff]   ;;  %5650 = vmatprep.mubr.bf16.mxu1 %v13489_v20  ;;  %v15344_v13 = vadd.f32 %v5503_v22, %v5311_v26  ;;  %v5505_v14 = vpop.f32.mrf.mxu1  ;;  %v5318_v51 = vpop.f32.mrf.mxu0 }
 0x1e6   : > { %5651 = vmatmul.mubr.bf16.gmra.mxu1 %v13487_v15  ;;  %v3024_v10 = vrot.slane %v3022_v16, 4  ;;  %v3027_v43 = vrot.slane %v3025_v25, 4  ;;  %3163 = vst [vmem:[#allocation3 + $0x1d0] sm:$0xf] %v3023_v54  ;;  %v11889_v17 = vld [vmem:[%s14063_s13 + $0x70] sm:$0xf]  ;;  %v5319_v33 = vadd.f32 %v5318_v51, %v14830_v19 }
 0x1e7   : > { %v11890_v48 = vld [vmem:[%s14063_s13 + $0x74] sm:$0x1]  ;;  %v3028_v36 = vrot.slane %v11889_v17, 5  ;;  %v11891_v59 = vld [vmem:[%s14063_s13 + $0x78] sm:$0xe]  ;;  %v5320_v4 = vpop.f32.mrf.mxu0  ;;  %v5508_v20 = vpop.f32.mrf.mxu1 }
 0x1e8   : > { %13033 = vmatmul.mubr.bf16.vlgmr.msra.gmra.mxu0 %v13491_v46  ;;  %v3031_v47 = vrot.slane %v11890_v48, 5  ;;  %v3026_v21 = vsel %vm14091_vm4, %v3024_v10, %v3025_v25  ;;  %v11892_v40 = vld [vmem:[%s14063_s13 + $0x7c] sm:$0xf]  ;;  %v11893_v62 = vld [vmem:[%s14063_s13 + $0x80] sm:$0xf]  ;;  %v11925_v24 = vrot.slane %v11891_v59, 9 }
 0x1e9   : > { %13036 = vmatprep.mubr.bf16.mxu0 %v13492_v11  ;;  %v13493_v6 = vld [vmem:[#allocation3 + $0xf8] ss:$36 sps:$4 sm:$0xff]   ;;  %3164 = vst [vmem:[#allocation3 + $0x1f4] sm:$0xf] %v3026_v21  ;;  %v3029_v26 = vsel %vm14091_vm4, %v3027_v43, %v3028_v36  ;;  %v3030_v46 = vrot.slane %v3028_v36, 4  ;;  %v3035_v18 = vrot.slane %v11892_v40, 5  ;;  %v15362_v43 = vadd.f32 %v5508_v20, %v5316_v31  ;;  %v5510_v17 = vpop.f32.mrf.mxu1  ;;  %v5323_v48 = vpop.f32.mrf.mxu0 }
 0x1ea   : > { %3165 = vst [vmem:[#allocation3 + $0x218] sm:$0xf] %v3029_v26  ;;  %v3038_v23 = vrot.slane %v11893_v62, 5  ;;  %v11894_v11 = vld [vmem:[%s14063_s13 + $0x84] sm:$0xf]  ;;  %v5324_v51 = vadd.f32 %v5323_v48, %v14850_v56 }
 0x1eb   : > { %v13494_v15 = vld [vmem:[#allocation3 + $0x140] ss:$36 sps:$4 sm:$0xff]   ;;  %v3032_v16 = vsel %vm14091_vm4, %v3030_v46, %v3031_v47  ;;  %v3036_v49 = vsel %vm14091_vm4, %v11925_v24, %v3035_v18  ;;  %v3037_v19 = vrot.slane %v3035_v18, 4  ;;  %v3041_v54 = vrot.slane %v11894_v11, 5  ;;  %v11897_v10 = vld [vmem:[%s14063_s13 + $0x90] sm:$0xf]  ;;  %v5511_v26 = vpop.f32.mrf.mxu1  ;;  %v5325_v31 = vpop.f32.mrf.mxu0 }
 0x1ec   : > { %v11895_v25 = vld [vmem:[%s14063_s13 + $0x88] sm:$0x1]  ;;  %3166 = vst [vmem:[#allocation3 + $0x23c] sm:$0xf] %v3032_v16  ;;  %3167 = vst [vmem:[#allocation3 + $0x260] sm:$0xf] %v3036_v49  ;;  %v15372_v20 = vadd.f32 %v5511_v26, %v5319_v33 }
 0x1ed   : > { %v3044_v22 = vrot.slane %v11895_v25, 5  ;;  %v11896_v28 = vld [vmem:[%s14063_s13 + $0x8c] sm:$0xe]  ;;  %v3039_v36 = vsel %vm14091_vm4, %v3037_v19, %v3038_v23  ;;  %v3040_v47 = vrot.slane %v3038_v23, 4  ;;  %v11898_v59 = vld [vmem:[%s14063_s13 + $0x94] sm:$0xf]  ;;  %v5513_v23 = vpop.f32.mrf.mxu1  ;;  %v5326_v11 = vpop.f32.mrf.mxu0 }
 0x1ee   : > { %v11926_v14 = vrot.slane %v11896_v28, 9  ;;  %3168 = vst [vmem:[#allocation3 + $0x284] sm:$0xf] %v3039_v36  ;;  %v3043_v21 = vrot.slane %v3041_v54, 4  ;;  %v3048_v40 = vrot.slane %v11897_v10, 5  ;;  %v3051_v62 = vrot.slane %v11898_v59, 5 }
 0x1ef   : > { %v11899_v24 = vld [vmem:[%s14063_s13 + $0x98] sm:$0xf]  ;;  %v3042_v46 = vsel %vm14091_vm4, %v3040_v47, %v3041_v54  ;;  %v11900_v18 = vld [vmem:[%s14063_s13 + $0x9c] sm:$0x1]  ;;  %v11901_v16 = vld [vmem:[%s14063_s13 + $0xa0] sm:$0xe]  ;;  %v5328_v59 = vpop.f32.mrf.mxu0 }
 0x1f0   : > { %13037 = vmatmul.mubr.bf16.gmra.mxu0 %v13493_v6  ;;  %v3054_v4 = vrot.slane %v11899_v24, 5  ;;  %v3045_v56 = vsel %vm14091_vm4, %v3043_v21, %v3044_v22  ;;  %3169 = vst [vmem:[#allocation3 + $0x2a8] sm:$0xf] %v3042_v46  ;;  %v3049_v49 = vsel %vm14091_vm4, %v11926_v14, %v3048_v40  ;;  %v3050_v19 = vrot.slane %v3048_v40, 4  ;;  %v13495_v25 = vld [vmem:[#allocation3 + $0x188] ss:$36 sps:$4 sm:$0xff]   ;;  %v5516_v46 = vpop.f32.mrf.mxu1 }
 0x1f1   : > { %13040 = vmatprep.mubr.bf16.mxu0 %v13494_v15  ;;  %v3053_v6 = vrot.slane %v3051_v62, 4  ;;  %3170 = vst [vmem:[#allocation3 + $0x2cc] sm:$0xf] %v3045_v56  ;;  %3171 = vst [vmem:[#allocation3 + $0x2f0] sm:$0xf] %v3049_v49  ;;  %v3057_v54 = vrot.slane %v11900_v18, 5  ;;  %v5327_v15 = vadd.f32 %v5326_v11, %v14862_v9  ;;  %v15394_v56 = vadd.f32 %v5516_v46, %v5324_v51 }
 0x1f2   : > { %v3056_v33 = vrot.slane %v3054_v4, 4  ;;  %v11902_v28 = vld [vmem:[%s14063_s13 + $0xa4] sm:$0xf]  ;;  %v3052_v22 = vsel %vm14091_vm4, %v3050_v19, %v3051_v62  ;;  %v11903_v17 = vld [vmem:[%s14063_s13 + $0xa8] sm:$0xf]  ;;  %v11927_v48 = vrot.slane %v11901_v16, 9 }
 0x1f3   : > { %v3055_v10 = vsel %vm14091_vm4, %v3053_v6, %v3054_v4  ;;  %v3061_v36 = vrot.slane %v11902_v28, 5  ;;  %v11904_v47 = vld [vmem:[%s14063_s13 + $0xac] sm:$0xf]  ;;  %v13496_v14 = vld [vmem:[#allocation3 + $0x1d0] ss:$36 sps:$4 sm:$0xff]   ;;  %v3064_v62 = vrot.slane %v11903_v17, 5  ;;  %v5518_v6 = vpop.f32.mrf.mxu1 }
 0x1f4   : > { %3172 = vst [vmem:[#allocation3 + $0x314] sm:$0xf] %v3052_v22  ;;  %v3058_v21 = vsel %vm14091_vm4, %v3056_v33, %v3057_v54  ;;  %3173 = vst [vmem:[#allocation3 + $0x338] sm:$0xf] %v3055_v10  ;;  %v11905_v24 = vld [vmem:[%s14063_s13 + $0xb0] sm:$0x1]  ;;  %v5331_v54 = vpop.f32.mrf.mxu0 }
 0x1f5   : > { %3174 = vst [vmem:[#allocation3 + $0x35c] sm:$0xf] %v3058_v21  ;;  %v3062_v9 = vsel %vm14091_vm4, %v11927_v48, %v3061_v36  ;;  %v3063_v40 = vrot.slane %v3061_v36, 4  ;;  %v3067_v26 = vrot.slane %v11904_v47, 5  ;;  %v3070_v31 = vrot.slane %v11905_v24, 5 }
 0x1f6   : > { %3175 = vst [vmem:[#allocation3 + $0x380] sm:$0xf] %v3062_v9  ;;  %v3066_v4 = vrot.slane %v3064_v62, 4  ;;  %v11906_v49 = vld [vmem:[%s14063_s13 + $0xb4] sm:$0xe]  ;;  %v5332_v51 = vadd.f32 %v5331_v54, %v14877_v39  ;;  %v5333_v59 = vpop.f32.mrf.mxu0 }
 0x1f7   : > { %v3065_v18 = vsel %vm14091_vm4, %v3063_v40, %v3064_v62  ;;  %v3069_v16 = vrot.slane %v3067_v26, 4  ;;  %v11907_v19 = vld [vmem:[%s14063_s13 + $0xb8] sm:$0xf]  ;;  %v11908_v23 = vld [vmem:[%s14063_s13 + $0xbc] sm:$0xf]  ;;  %v11928_v11 = vrot.slane %v11906_v49, 9 }
 0x1f8   : > { %13041 = vmatmul.mubr.bf16.gmra.mxu0 %v13495_v25  ;;  %3176 = vst [vmem:[#allocation3 + $0x3a4] sm:$0xf] %v3065_v18  ;;  %v3074_v33 = vrot.slane %v11907_v19, 5  ;;  %v3068_v28 = vsel %vm14091_vm4, %v3066_v4, %v3067_v26  ;;  %v5519_v25 = vpop.f32.mrf.mxu1  ;;  %v3077_v48 = vrot.slane %v11908_v23, 5  ;;  %v11909_v36 = vld [vmem:[%s14063_s13 + $0xc0] sm:$0xf]  ;;  %v5334_v26 = vpop.f32.mrf.mxu0 }
 0x1f9   : > { %13044 = vmatprep.mubr.bf16.mxu0 %v13496_v14  ;;  %v3071_v22 = vsel %vm14091_vm4, %v3069_v16, %v3070_v31  ;;  %3177 = vst [vmem:[#allocation3 + $0x3c8] sm:$0xf] %v3068_v28  ;;  %v11910_v47 = vld [vmem:[%s14063_s13 + $0xc4] sm:$0x1]  ;;  %v15408_v21 = vadd.f32 %v5519_v25, %v5327_v15  ;;  %v13498_v9 = vld [vmem:[#allocation3 + $0x260] ss:$36 sps:$4 sm:$0xff]   ;;  %v5335_v46 = vadd.f32 %v5334_v26, %v14891_v2 }
 0x1fa   : > { %3178 = vst [vmem:[#allocation3 + $0x3ec] sm:$0xf] %v3071_v22  ;;  %v3075_v10 = vsel %vm14091_vm4, %v11928_v11, %v3074_v33  ;;  %v3076_v17 = vrot.slane %v3074_v33, 4  ;;  %v13497_v14 = vld [vmem:[#allocation3 + $0x218] ss:$36 sps:$4 sm:$0xff]   ;;  %v3079_v40 = vrot.slane %v3077_v48, 4  ;;  %v5521_v62 = vpop.f32.mrf.mxu1  ;;  %v5336_v16 = vpop.f32.mrf.mxu0 }
 0x1fb   : > { %3179 = vst [vmem:[#allocation3 + $0x410] sm:$0xf] %v3075_v10  ;;  %v3080_v24 = vrot.slane %v11909_v36, 5  ;;  %v3083_v31 = vrot.slane %v11910_v47, 5  ;;  %v11911_v18 = vld [vmem:[%s14063_s13 + $0xc8] sm:$0xe] }
 0x1fc   : > { %v3078_v39 = vsel %vm14091_vm4, %v3076_v17, %v3077_v48  ;;  %v11912_v49 = vld [vmem:[%s14063_s13 + $0xcc] sm:$0xf]  ;;  %v11913_v19 = vld [vmem:[%s14063_s13 + $0xd0] sm:$0xf]  ;;  %v11929_v6 = vrot.slane %v11911_v18, 9  ;;  %v5524_v23 = vpop.f32.mrf.mxu1  ;;  %v5339_v59 = vpop.f32.mrf.mxu0 }
 0x1fd   : > { %3180 = vst [vmem:[#allocation3 + $0x434] sm:$0xf] %v3078_v39  ;;  %v3081_v15 = vsel %vm14091_vm4, %v3079_v40, %v3080_v24  ;;  %v3082_v4 = vrot.slane %v3080_v24, 4  ;;  %v3087_v11 = vrot.slane %v11912_v49, 5  ;;  %v3090_v33 = vrot.slane %v11913_v19, 5 }
 0x1fe   : > { %3181 = vst [vmem:[#allocation3 + $0x458] sm:$0xf] %v3081_v15  ;;  %v15420_v2 = vadd.f32 %v5524_v23, %v5332_v51  ;;  %v11914_v28 = vld [vmem:[%s14063_s13 + $0xd4] sm:$0xf]  ;;  %v11915_v22 = vld [vmem:[%s14063_s13 + $0xd8] sm:$0x1]  ;;  %v5526_v10 = vpop.f32.mrf.mxu1  ;;  %v5340_v40 = vadd.f32 %v5339_v59, %v14904_v30  ;;  %v5341_v16 = vpop.f32.mrf.mxu0 }
 0x1ff   : > { %v3084_v54 = vsel %vm14091_vm4, %v3082_v4, %v3083_v31  ;;  %v11916_v25 = vld [vmem:[%s14063_s13 + $0xdc] sm:$0xe]  ;;  %v3088_v17 = vsel %vm14091_vm4, %v11929_v6, %v3087_v11  ;;  %v13499_v48 = vld [vmem:[#allocation3 + $0x2a8] ss:$36 sps:$4 sm:$0xff]   ;;  %v3089_v36 = vrot.slane %v3087_v11, 4  ;;  %v3092_v47 = vrot.slane %v3090_v33, 4 }
 0x200   : > { %13045 = vmatmul.mubr.bf16.gmra.mxu0 %v13497_v14  ;;  %3182 = vst [vmem:[#allocation3 + $0x47c] sm:$0xf] %v3084_v54  ;;  %3183 = vst [vmem:[#allocation3 + $0x4a0] sm:$0xf] %v3088_v17  ;;  %v3093_v14 = vrot.slane %v11914_v28, 5  ;;  %v3096_v39 = vrot.slane %v11915_v22, 5  ;;  %v5527_v51 = vpop.f32.mrf.mxu1 }
 0x201   : > { %13048 = vmatprep.mubr.bf16.mxu0 %v13498_v9  ;;  %v11917_v62 = vld [vmem:[%s14063_s13 + $0xe0] sm:$0xf]  ;;  %v11918_v24 = vld [vmem:[%s14063_s13 + $0xe4] sm:$0xf]  ;;  %v11930_v9 = vrot.slane %v11916_v25, 9  ;;  %v15430_v31 = vadd.f32 %v5527_v51, %v5335_v46  ;;  %v3091_v18 = vsel %vm14091_vm4, %v3089_v36, %v3090_v33  ;;  %v5342_v46 = vpop.f32.mrf.mxu0 }
 0x202   : > { %v13500_v26 = vld [vmem:[#allocation3 + $0x2f0] ss:$36 sps:$4 sm:$0xff]   ;;  %v3094_v15 = vsel %vm14091_vm4, %v3092_v47, %v3093_v14  ;;  %v3095_v4 = vrot.slane %v3093_v14, 4  ;;  %3184 = vst [vmem:[#allocation3 + $0x4c4] sm:$0xf] %v3091_v18  ;;  %v5529_v49 = vpop.f32.mrf.mxu1  ;;  %v3100_v19 = vrot.slane %v11917_v62, 5  ;;  %v5343_v33 = vadd.f32 %v5342_v46, %v14928_v8 }
 0x203   : > { %3185 = vst [vmem:[#allocation3 + $0x4e8] sm:$0xf] %v3094_v15  ;;  %v3103_v30 = vrot.slane %v11918_v24, 5  ;;  %v11919_v6 = vld [vmem:[%s14063_s13 + $0xe8] sm:$0xf]  ;;  %v5344_v17 = vpop.f32.mrf.mxu0 }
 0x204   : > { %v11920_v23 = vld [vmem:[%s14063_s13 + $0xec] sm:$0x1]  ;;  %v3097_v11 = vsel %vm14091_vm4, %v3095_v4, %v3096_v39  ;;  %v3106_v54 = vrot.slane %v11919_v6, 5  ;;  %v3101_v22 = vsel %vm14091_vm4, %v11930_v9, %v3100_v19  ;;  %v3102_v25 = vrot.slane %v3100_v19, 4  ;;  %v5532_v14 = vpop.f32.mrf.mxu1  ;;  %v13503_v19 = vld [vmem:[#allocation3 + $0x3c8] ss:$36 sps:$4 sm:$0xff]  }
 0x205   : > { %v3109_v28 = vrot.slane %v11920_v23, 5  ;;  %3186 = vst [vmem:[#allocation3 + $0x50c] sm:$0xf] %v3097_v11  ;;  %v3105_v10 = vrot.slane %v3103_v30, 4  ;;  %3187 = vst [vmem:[#allocation3 + $0x530] sm:$0xf] %v3101_v22  ;;  %v15449_v39 = vadd.f32 %v5532_v14, %v5340_v40  ;;  %v5347_v9 = vpop.f32.mrf.mxu0 }
 0x206   : > { %v3108_v36 = vrot.slane %v3106_v54, 4  ;;  %v3104_v47 = vsel %vm14091_vm4, %v3102_v25, %v3103_v30  ;;  %v5534_v51 = vpop.f32.mrf.mxu1  ;;  %v13502_v62 = vld [vmem:[#allocation3 + $0x380] ss:$36 sps:$4 sm:$0xff]   ;;  %v5348_v18 = vadd.f32 %v5347_v9, %v14938_v35  ;;  %v13504_v30 = vld [vmem:[#allocation3 + $0x410] ss:$36 sps:$4 sm:$0xff]  }
 0x207   : > { %v3107_v59 = vsel %vm14091_vm4, %v3105_v10, %v3106_v54  ;;  %3188 = vst [vmem:[#allocation3 + $0x554] sm:$0xf] %v3104_v47  ;;  %v5349_v4 = vpop.f32.mrf.mxu0  ;;  %v13505_v25 = vld [vmem:[#allocation3 + $0x458] ss:$36 sps:$4 sm:$0xff]  }
 0x208   : > { %13049 = vmatmul.mubr.bf16.gmra.mxu0 %v13499_v48  ;;  %v3110_v8 = vsel %vm14091_vm4, %v3108_v36, %v3109_v28  ;;  %3189 = vst [vmem:[#allocation3 + $0x578] sm:$0xf] %v3107_v59  ;;  %v13501_v48 = vld [vmem:[#allocation3 + $0x338] ss:$36 sps:$4 sm:$0xff]   ;;  %v5535_v24 = vpop.f32.mrf.mxu1 }
 0x209   : > { %13052 = vmatprep.mubr.bf16.mxu0 %v13500_v26  ;;  %3190 = vst [vmem:[#allocation3 + $0x59c] sm:$0xf] %v3110_v8  ;;  %v15451_v26 = vadd.f32 %v5535_v24, %v5343_v33  ;;  %v5350_v16 = vpop.f32.mrf.mxu0 }
 0x20a   : > { %v5537_v15 = vpop.f32.mrf.mxu1  ;;  %v5351_v49 = vadd.f32 %v5350_v16, %v14952_v63  ;;  %v13506_v63 = vld [vmem:[#allocation3 + $0x4a0] ss:$36 sps:$4 sm:$0xff]  }
 0x20b   : > { %v5352_v40 = vpop.f32.mrf.mxu0 }
 0x20c   : > { %v5540_v6 = vpop.f32.mrf.mxu1 }
 0x20d   : > { %v15455_v23 = vadd.f32 %v5540_v6, %v5348_v18  ;;  %v5355_v46 = vpop.f32.mrf.mxu0 }
 0x20e   : > { %v5542_v11 = vpop.f32.mrf.mxu1  ;;  %v5356_v35 = vadd.f32 %v5355_v46, %v14976_v57 }
 0x20f   : > { %v5357_v33 = vpop.f32.mrf.mxu0 }
 0x210   : > { %13053 = vmatmul.mubr.bf16.gmra.mxu0 %v13501_v48  ;;  %v5543_v54 = vpop.f32.mrf.mxu1  ;;  %v13507_v48 = vld [vmem:[#allocation3 + $0x4e8] ss:$36 sps:$4 sm:$0xff]  }
 0x211   : > { %13056 = vmatprep.mubr.bf16.mxu0 %v13502_v62  ;;  %v15458_v28 = vadd.f32 %v5543_v54, %v5351_v49  ;;  %v5358_v10 = vpop.f32.mrf.mxu0  ;;  %v13508_v62 = vld [vmem:[#allocation3 + $0x530] ss:$36 sps:$4 sm:$0xff]  }
 0x212   : > { %v5545_v22 = vpop.f32.mrf.mxu1  ;;  %v5359_v17 = vadd.f32 %v5358_v10, %v14978_v58 }
 0x213   : > { %v5360_v36 = vpop.f32.mrf.mxu0 }
 0x214   : > { %v5548_v47 = vpop.f32.mrf.mxu1 }
 0x215   : > { %v15461_v59 = vadd.f32 %v5548_v47, %v5356_v35  ;;  %v5363_v8 = vpop.f32.mrf.mxu0 }
 0x216   : > { %v5550_v14 = vpop.f32.mrf.mxu1  ;;  %v5364_v57 = vadd.f32 %v5363_v8, %v14995_v45 }
 0x217   : > { %v5365_v9 = vpop.f32.mrf.mxu0 }
 0x218   : > { %13057 = vmatmul.mubr.bf16.gmra.mxu0 %v13503_v19  ;;  %v5551_v51 = vpop.f32.mrf.mxu1  ;;  %v13509_v19 = vld [vmem:[#allocation3 + $0x578] ss:$36 sps:$4 sm:$0xff]  }
 0x219   : > { %13060 = vmatprep.mubr.bf16.mxu0 %v13504_v30  ;;  %v15464_v24 = vadd.f32 %v5551_v51, %v5359_v17  ;;  %v5366_v15 = vpop.f32.mrf.mxu0 }
 0x21a   : > { %v5553_v18 = vpop.f32.mrf.mxu1  ;;  %v5367_v58 = vadd.f32 %v5366_v15, %v15010_v7 }
 0x21b   : > { %v5368_v4 = vpop.f32.mrf.mxu0 }
 0x21c   : > { %v5556_v16 = vpop.f32.mrf.mxu1 }
 0x21d   : > { %v15467_v49 = vadd.f32 %v5556_v16, %v5364_v57  ;;  %v5371_v30 = vpop.f32.mrf.mxu0 }
 0x21e   : > { %v5558_v40 = vpop.f32.mrf.mxu1  ;;  %v5372_v45 = vadd.f32 %v5371_v30, %v15016_v1 }
 0x21f   : > { %v5373_v46 = vpop.f32.mrf.mxu0 }
 0x220   : > { %13061 = vmatmul.mubr.bf16.gmra.mxu0 %v13505_v25  ;;  %v5559_v6 = vpop.f32.mrf.mxu1 }
 0x221   : > { %13064 = vmatprep.mubr.bf16.mxu0 %v13506_v63  ;;  %v15470_v11 = vadd.f32 %v5559_v6, %v5367_v58  ;;  %v5374_v35 = vpop.f32.mrf.mxu0 }
 0x222   : > { %v5561_v54 = vpop.f32.mrf.mxu1  ;;  %v5375_v33 = vadd.f32 %v5374_v35, %v15045_v38 }
 0x223   : > { %v5376_v7 = vpop.f32.mrf.mxu0 }
 0x224   : > { %v5564_v22 = vpop.f32.mrf.mxu1 }
 0x225   : > { %v15473_v25 = vadd.f32 %v5564_v22, %v5372_v45  ;;  %v5379_v63 = vpop.f32.mrf.mxu0 }
 0x226   : > { %v5566_v10 = vpop.f32.mrf.mxu1  ;;  %v5380_v17 = vadd.f32 %v5379_v63, %v15051_v53 }
 0x227   : > { %v5381_v47 = vpop.f32.mrf.mxu0 }
 0x228   : > { %13065 = vmatmul.mubr.bf16.gmra.mxu0 %v13507_v48  ;;  %v5567_v36 = vpop.f32.mrf.mxu1 }
 0x229   : > { %13068 = vmatprep.mubr.bf16.mxu0 %v13508_v62  ;;  %v15476_v14 = vadd.f32 %v5567_v36, %v5375_v33  ;;  %v5382_v8 = vpop.f32.mrf.mxu0 }
 0x22a   : > { %v5569_v1 = vpop.f32.mrf.mxu1  ;;  %v5383_v48 = vadd.f32 %v5382_v8, %v15055_v61 }
 0x22b   : > { %v5384_v51 = vpop.f32.mrf.mxu0 }
 0x22d   : > { %v5572_v57 = vpop.f32.mrf.mxu1 }
 0x22e   : > { %v15479_v62 = vadd.f32 %v5572_v57, %v5380_v17 }
 0x22f   : > { %v5574_v38 = vpop.f32.mrf.mxu1  ;;  %v5387_v9 = vpop.f32.mrf.mxu0 }
 0x230   : > { %13069 = vmatmul.mubr.bf16.gmra.mxu0 %v13509_v19  ;;  %v5388_v15 = vadd.f32 %v5387_v9, %v15064_v27 }
 0x231   : > { %v5575_v18 = vpop.f32.mrf.mxu1  ;;  %v5389_v53 = vpop.f32.mrf.mxu0 }
 0x232   : > { %v15482_v58 = vadd.f32 %v5575_v18, %v5383_v48 }
 0x233   : > { %v5577_v4 = vpop.f32.mrf.mxu1  ;;  %v5390_v16 = vpop.f32.mrf.mxu0 }
 0x234   : > { %v5391_v19 = vadd.f32 %v5390_v16, %v15069_v5 }
 0x235   : > { %v5392_v40 = vpop.f32.mrf.mxu0 }
 0x23b   : > { %v5580_v30 = vpop.f32.mrf.mxu1 }
 0x23c   : > { %v15485_v6 = vadd.f32 %v5580_v30, %v5388_v15 }
 0x23d   : > { %v5582_v61 = vpop.f32.mrf.mxu1 }
 0x23f   : > { %v5395_v45 = vpop.f32.mrf.mxu0  ;;  %v5583_v46 = vpop.f32.mrf.mxu1 }
 0x240   : > { %v5396_v54 = vadd.f32 %v5395_v45, %v15090_v52  ;;  %v15488_v35 = vadd.f32 %v5583_v46, %v5391_v19 }
 0x241   : > { %v5397_v33 = vpop.f32.mrf.mxu0  ;;  %v5585_v27 = vpop.f32.mrf.mxu1 }
 0x243   : > { %v5398_v7 = vpop.f32.mrf.mxu0 }
 0x244   : > { %v5588_v22 = vpop.f32.mrf.mxu1  ;;  %v5399_v10 = vadd.f32 %v5398_v7, %v15100_v34 }
 0x245   : > { %v15491_v63 = vadd.f32 %v5588_v22, %v5396_v54  ;;  %v5400_v5 = vpop.f32.mrf.mxu0 }
 0x246   : > { %v5590_v17 = vpop.f32.mrf.mxu1 }
 0x247   : > { %v5403_v47 = vpop.f32.mrf.mxu0 }
 0x248   : > { %v5591_v36 = vpop.f32.mrf.mxu1  ;;  %v5404_v8 = vadd.f32 %v5403_v47, %v15108_v29 }
 0x249   : > { %v15493_v1 = vadd.f32 %v5591_v36, %v5399_v10  ;;  %v5405_v52 = vpop.f32.mrf.mxu0 }
 0x24a   : > { %v5593_v48 = vpop.f32.mrf.mxu1 }
 0x24b   : > { %v5406_v51 = vpop.f32.mrf.mxu0 }
 0x24c   : > { %v5407_v57 = vadd.f32 %v5406_v51, %v15129_v12  ;;  %v17477_v51 = vld [vmem:[#allocation13_spill] sm:$0xff] }
 0x24d   : > { %v5408_v38 = vpop.f32.mrf.mxu0 }
 0x252   : > { %v5596_v9 = vpop.f32.mrf.mxu1 }
 0x253   : > { %v15497_v18 = vadd.f32 %v5596_v9, %v5404_v8 }
 0x254   : > { %v5598_v34 = vpop.f32.mrf.mxu1 }
 0x255   : > { %v5411_v15 = vpop.f32.mrf.mxu0 }
 0x256   : > { %v5599_v53 = vpop.f32.mrf.mxu1  ;;  %v5412_v4 = vadd.f32 %v5411_v15, %v15131_v3 }
 0x257   : > { %v15500_v16 = vadd.f32 %v5599_v53, %v5407_v57  ;;  %v5413_v19 = vpop.f32.mrf.mxu0 }
 0x258   : > { %v5601_v40 = vpop.f32.mrf.mxu1 }
 0x259   : > { %v5414_v30 = vpop.f32.mrf.mxu0 }
 0x25a   : > { %v5415_v29 = vadd.f32 %v5414_v30, %v15148_v42 }
 0x25b   : > { %v5416_v61 = vpop.f32.mrf.mxu0 }
 0x25c   : > { %v17479_v61 = vld [vmem:[#allocation15_spill] sm:$0xff] }
 0x25d   : > { %v5604_v45 = vpop.f32.mrf.mxu1 }
 0x25e   : > { %v15503_v46 = vadd.f32 %v5604_v45, %v5412_v4 }
 0x25f   : > { %v5606_v12 = vpop.f32.mrf.mxu1 }
 0x261   : > { %v5607_v54 = vpop.f32.mrf.mxu1 }
 0x262   : > { %v5419_v33 = vpop.f32.mrf.mxu0  ;;  %v15505_v27 = vadd.f32 %v5607_v54, %v5415_v29 }
 0x263   : > { %v5420_v7 = vadd.f32 %v5419_v33, %v15164_v0  ;;  %v5609_v22 = vpop.f32.mrf.mxu1  ;;  %v17478_v0 = vld [vmem:[#allocation14_spill] sm:$0xff] }
 0x264   : > { %v5421_v3 = vpop.f32.mrf.mxu0 }
 0x266   : > { %v5422_v10 = vpop.f32.mrf.mxu0 }
 0x267   : > { %v5423_v5 = vadd.f32 %v5422_v10, %v15172_v60 }
 0x268   : > { %v5424_v17 = vpop.f32.mrf.mxu0 }
 0x26a   : > { %v5612_v36 = vpop.f32.mrf.mxu1 }
 0x26b   : > { %v15509_v47 = vadd.f32 %v5612_v36, %v5420_v7  ;;  %v17480_v7 = vld [vmem:[#allocation16_spill] sm:$0xff] }
 0x26c   : > { %v5614_v42 = vpop.f32.mrf.mxu1 }
 0x26d   : > { %v5427_v48 = vpop.f32.mrf.mxu0  ;;  %v17481_v42 = vld [vmem:[#allocation17_spill] sm:$0xff] }
 0x26e   : > { %v5615_v8 = vpop.f32.mrf.mxu1  ;;  %v5428_v57 = vadd.f32 %v5427_v48, %v17477_v51 }
 0x26f   : > { %v15511_v52 = vadd.f32 %v5615_v8, %v5423_v5  ;;  %v5429_v9 = vpop.f32.mrf.mxu0 }
 0x270   : > { %v5617_v38 = vpop.f32.mrf.mxu1 }
 0x271   : > { %v5430_v34 = vpop.f32.mrf.mxu0 }
 0x272   : > { %v5431_v15 = vadd.f32 %v5430_v34, %v17478_v0  ;;  %v17482_v34 = vld [vmem:[#allocation18_spill] sm:$0xff] }
 0x273   : > { %v5432_v4 = vpop.f32.mrf.mxu0 }
 0x275   : > { %v5620_v53 = vpop.f32.mrf.mxu1 }
 0x276   : > { %v15515_v19 = vadd.f32 %v5620_v53, %v5428_v57 }
 0x277   : > { %v5622_v60 = vpop.f32.mrf.mxu1 }
 0x279   : > { %v5623_v40 = vpop.f32.mrf.mxu1 }
 0x27a   : > { %v5435_v30 = vpop.f32.mrf.mxu0  ;;  %v15517_v29 = vadd.f32 %v5623_v40, %v5431_v15 }
 0x27b   : > { %v5436_v45 = vadd.f32 %v5435_v30, %v17479_v61  ;;  %v5625_v12 = vpop.f32.mrf.mxu1 }
 0x27c   : > { %v5437_v54 = vpop.f32.mrf.mxu0 }
 0x27e   : > { %v5438_v33 = vpop.f32.mrf.mxu0 }
 0x27f   : > { %v5439_v22 = vadd.f32 %v5438_v33, %v17480_v7  ;;  %v17483_v7 = vld [vmem:[#allocation19_spill] sm:$0xff] }
 0x280   : > { %v5440_v3 = vpop.f32.mrf.mxu0 }
 0x283   : > { %v5628_v10 = vpop.f32.mrf.mxu1 }
 0x284   : > { %v15521_v5 = vadd.f32 %v5628_v10, %v5436_v45  ;;  %v5443_v36 = vpop.f32.mrf.mxu0 }
 0x285   : > { %v5630_v17 = vpop.f32.mrf.mxu1  ;;  %v5444_v8 = vadd.f32 %v5443_v36, %v17481_v42 }
 0x286   : > { %v5445_v51 = vpop.f32.mrf.mxu0 }
 0x287   : > { %v5631_v48 = vpop.f32.mrf.mxu1 }
 0x288   : > { %v15524_v57 = vadd.f32 %v5631_v48, %v5439_v22  ;;  %v5446_v9 = vpop.f32.mrf.mxu0 }
 0x289   : > { %v5633_v38 = vpop.f32.mrf.mxu1  ;;  %v5447_v0 = vadd.f32 %v5446_v9, %v17482_v34 }
 0x28a   : > { %v5448_v53 = vpop.f32.mrf.mxu0 }
 0x28d   : > { %v5636_v15 = vpop.f32.mrf.mxu1 }
 0x28e   : > { %v15527_v4 = vadd.f32 %v5636_v15, %v5444_v8 }
 0x28f   : > { %v5638_v60 = vpop.f32.mrf.mxu1 }
 0x291   : > { %v5639_v40 = vpop.f32.mrf.mxu1 }
 0x292   : > { %v5451_v30 = vpop.f32.mrf.mxu0  ;;  %v15529_v61 = vadd.f32 %v5639_v40, %v5447_v0  ;;  %v15544_v40 = vld [vmem:[%s17445_s2] ss:$0 sm:$0xff] }
 0x293   : > { %v5452_v45 = vadd.f32 %v5451_v30, %v15261_v37  ;;  %v5641_v12 = vpop.f32.mrf.mxu1 }
 0x294   : > { %v5453_v54 = vpop.f32.mrf.mxu0 }
 0x296   : > { %v5454_v33 = vpop.f32.mrf.mxu0 }
 0x297   : > { %v5455_v22 = vadd.f32 %v5454_v33, %v17483_v7 }
 0x298   : > { %v5456_v3 = vpop.f32.mrf.mxu0 }
 0x29d   : > { %v5644_v10 = vpop.f32.mrf.mxu1 }
 0x29e   : > { %v15533_v17 = vadd.f32 %v5644_v10, %v5452_v45  ;;  %v15550_v45 = vld [vmem:[%s17446_s3] ss:$0 sm:$0xff] }
 0x29f   : > { %v5646_v36 = vpop.f32.mrf.mxu1 }
 0x2a0   : > { %v5459_v42 = vpop.f32.mrf.mxu0 }
 0x2a1   : > { %v5460_v8 = vadd.f32 %v5459_v42, %v15308_v50  ;;  %v5647_v48 = vpop.f32.mrf.mxu1 }
 0x2a2   : > { %v5461_v51 = vpop.f32.mrf.mxu0  ;;  %v15536_v38 = vadd.f32 %v5647_v48, %v5455_v22 }
 0x2a3   : > { %v5649_v9 = vpop.f32.mrf.mxu1 }
 0x2a4   : > { %17484 = vst [vmem:[#allocation13_spill] sm:$0xff] %v15536_v38  ;;  %v5462_v34 = vpop.f32.mrf.mxu0 }
 0x2a5   : > { %v5463_v37 = vadd.f32 %v5462_v34, %v15315_v55 }
 0x2a6   : > { %v5464_v0 = vpop.f32.mrf.mxu0  ;;  %v5652_v15 = vpop.f32.mrf.mxu1 }
 0x2a7   : > { %v15539_v53 = vadd.f32 %v5652_v15, %v5460_v8 }
 0x2a8   : > { %v13034_v60 = vpop.f32.mrf.mxu0  ;;  %v5654_v30 = vpop.f32.mrf.mxu1 }
 0x2a9   : > { %v5702_v50 = vadd.f32 %v13034_v60, %v15362_v43 }
 0x2aa   : > { %v5693_v12 = vpop.f32.mrf.mxu0  ;;  %v5655_v55 = vpop.f32.mrf.mxu1 }
 0x2ab   : > { %v5861_v54 = vmul.f32 %v15544_v40, %v5702_v50  ;;  %v5694_v33 = vadd.f32 %v5693_v12, %v15337_v32  ;;  %v15554_v7 = vadd.f32 %v5655_v55, %v5463_v37 }
 0x2ac   : > { %v13035_v22 = vpop.f32.mrf.mxu0  ;;  %v5657_v36 = vpop.f32.mrf.mxu1 }
 0x2ad   : > { %17485 = vst [vmem:[#allocation14_spill] sm:$0xff] %v15554_v7  ;;  %v5908_v3 = vadd.f32 %v15550_v45, %v5861_v54  ;;  %v5859_v10 = vmul.f32 %v15544_v40, %v5694_v33  ;;  %v5705_v43 = vadd.f32 %v13035_v22, %v15372_v20 }
 0x2ae   : > { %v5696_v42 = vpop.f32.mrf.mxu0 }
 0x2af   : > { %v5948_v8 = vmax.f32 %v5908_v3, 0.0  ;;  %v5906_v48 = vadd.f32 %v15550_v45, %v5859_v10  ;;  %v5862_v51 = vmul.f32 %v15544_v40, %v5705_v43  ;;  %v5697_v9 = vadd.f32 %v5696_v42, %v15344_v13 }
 0x2b0   : > { %v13038_v32 = vpop.f32.mrf.mxu0 }
 0x2b1   : > { %v12478_v34 = vpack.c.bf16 %v5948_v8, %v5948_v8  ;;  %v5946_v37 = vmax.f32 %v5906_v48, 0.0  ;;  %v5909_v0 = vadd.f32 %v15550_v45, %v5862_v51  ;;  %v5860_v15 = vmul.f32 %v15544_v40, %v5697_v9 }
 0x2b2   : > { %v5718_v20 = vadd.f32 %v13038_v32, %v15420_v2  ;;  %v5709_v60 = vpop.f32.mrf.mxu0 }
 0x2b3   : > { %v6159_v30 = vshrl.u32 %v12478_v34, 16  ;;  %v12476_v50 = vpack.c.bf16 %v5946_v37, %v5946_v37  ;;  %v5949_v12 = vmax.f32 %v5909_v0, 0.0  ;;  %v6162_v55 = vshll.u32 %v12478_v34, 16  ;;  %v6544_v0 = vld [vmem:[#allocation2] sm:$0xf] }
 0x2b4   : > { %v5907_v13 = vadd.f32 %v15550_v45, %v5860_v15  ;;  %v5865_v54 = vmul.f32 %v15544_v40, %v5718_v20  ;;  %v5710_v33 = vadd.f32 %v5709_v60, %v15394_v56  ;;  %v13039_v22 = vpop.f32.mrf.mxu0 }
 0x2b5   : > { %v6161_v3 = vrot.slane %v6159_v30, 7  ;;  %v6142_v10 = vshrl.u32 %v12476_v50, 16  ;;  %v6145_v43 = vshll.u32 %v12476_v50, 16  ;;  %v12479_v36 = vpack.c.bf16 %v5949_v12, %v5949_v12 }
 0x2b6   : > { %v5947_v42 = vmax.f32 %v5907_v13, 0.0  ;;  %v5912_v2 = vadd.f32 %v15550_v45, %v5865_v54  ;;  %v5863_v8 = vmul.f32 %v15544_v40, %v5710_v33  ;;  %v5721_v48 = vadd.f32 %v13039_v22, %v15430_v31  ;;  %v5712_v51 = vpop.f32.mrf.mxu0  ;;  %v6552_v22 = vld [vmem:[#allocation2 + $0x10] sm:$0x1] }
 0x2b7   : > { %v6164_v9 = vor.u32 %v6162_v55, %v6161_v3  ;;  %v6166_v32 = vrot.slane %v6161_v3, 4  ;;  %v6144_v34 = vrot.slane %v6142_v10, 7  ;;  %v6168_v37 = vshrl.u32 %v12479_v36, 16 }
 0x2b8   : > { %v6171_v15 = vshll.u32 %v12479_v36, 16  ;;  %v12477_v20 = vpack.c.bf16 %v5947_v42, %v5947_v42  ;;  %v5952_v60 = vmax.f32 %v5912_v2, 0.0  ;;  %v5910_v30 = vadd.f32 %v15550_v45, %v5863_v8  ;;  %v13042_v50 = vpop.f32.mrf.mxu0 }
 0x2b9   : > { %v6147_v12 = vor.u32 %v6145_v43, %v6144_v34  ;;  %v6148_v55 = vrot.slane %v6144_v34, 4  ;;  %v6170_v13 = vrot.slane %v6168_v37, 7  ;;  %v5866_v54 = vmul.f32 %v15544_v40, %v5721_v48 }
 0x2ba   : > { %v6150_v3 = vshrl.u32 %v12477_v20, 16  ;;  %v6153_v10 = vshll.u32 %v12477_v20, 16  ;;  %5988 = vst [vmem:[#allocation5 + $0xd8] sm:$0xff] %v5952_v60  ;;  %v12482_v36 = vpack.c.bf16 %v5952_v60, %v5952_v60  ;;  %v5950_v42 = vmax.f32 %v5910_v30, 0.0  ;;  %v5725_v2 = vpop.f32.mrf.mxu0 }
 0x2bb   : > { %v6545_v43 = vsel %vm15573_vm11, %v6147_v12, %v6544_v0  ;;  %v6173_v8 = vor.u32 %v6171_v15, %v6170_v13  ;;  %v6175_v34 = vrot.slane %v6170_v13, 4  ;;  %v5913_v48 = vadd.f32 %v15550_v45, %v5866_v54 }
 0x2bc   : > { %6546 = vst [vmem:[#allocation2] sm:$0xf] %v6545_v43  ;;  %v6152_v37 = vrot.slane %v6150_v3, 7  ;;  %v6194_v44 = vshrl.u32 %v12482_v36, 16  ;;  %v6197_v41 = vshll.u32 %v12482_v36, 16  ;;  %5986 = vst [vmem:[#allocation5 + $0xb0] sm:$0xff] %v5950_v42  ;;  %v12480_v38 = vpack.c.bf16 %v5950_v42, %v5950_v42  ;;  %v13043_v7 = vpop.f32.mrf.mxu0 }
 0x2bd   : > { %v6174_v20 = vsel %vm15580_vm12, %v6166_v32, %v6173_v8  ;;  %v6553_v60 = vsel %vm15587_vm13, %v6175_v34, %v6552_v22  ;;  %v5953_v30 = vmax.f32 %v5913_v48, 0.0  ;;  %v5713_v0 = vadd.f32 %v5712_v51, %v15408_v21 }
 0x2be   : > { %6549 = vst [vmem:[#allocation2 + $0xc] sm:$0xf] %v6174_v20  ;;  %6554 = vst [vmem:[#allocation2 + $0x10] sm:$0x1] %v6553_v60  ;;  %v6155_v15 = vor.u32 %v6153_v10, %v6152_v37  ;;  %v6157_v12 = vrot.slane %v6152_v37, 4  ;;  %v6196_v13 = vrot.slane %v6194_v44, 7  ;;  %v5728_v3 = vpop.f32.mrf.mxu0  ;;  %v5734_v32 = vadd.f32 %v13042_v50, %v15455_v23 }
 0x2bf   : > { %v6177_v54 = vshrl.u32 %v12480_v38, 16  ;;  %v6180_v36 = vshll.u32 %v12480_v38, 16  ;;  %5989 = vst [vmem:[#allocation5 + $0x18] sm:$0xff] %v5953_v30  ;;  %v12483_v42 = vpack.c.bf16 %v5953_v30, %v5953_v30  ;;  %v5864_v43 = vmul.f32 %v15544_v40, %v5713_v0  ;;  %v6555_v37 = vld [vmem:[#allocation2 + $0x14] sm:$0xf] }
 0x2c0   : > { %v6156_v22 = vsel %vm15580_vm12, %v6148_v55, %v6155_v15  ;;  %v6165_v21 = vsel %vm15580_vm12, %v6157_v12, %v6164_v9  ;;  %v15605_v51 = vor.u32 %v6197_v41, %v6196_v13  ;;  %v6201_v10 = vrot.slane %v6196_v13, 4  ;;  %v13046_v8 = vpop.f32.mrf.mxu0 }
 0x2c1   : > { %6547 = vst [vmem:[#allocation2 + $0x4] sm:$0xf] %v6156_v22  ;;  %6548 = vst [vmem:[#allocation2 + $0x8] sm:$0xf] %v6165_v21  ;;  %v15607_v44 = vrot.slane %v6177_v54, 7  ;;  %v6203_v38 = vshrl.u32 %v12483_v42, 16  ;;  %v5911_v48 = vadd.f32 %v15550_v45, %v5864_v43  ;;  %v5869_v23 = vmul.f32 %v15544_v40, %v5734_v32 }
 0x2c2   : > { %v6206_v34 = vshll.u32 %v12483_v42, 16  ;;  %v5726_v50 = vadd.f32 %v5725_v2, %v15449_v39  ;;  %v5737_v55 = vadd.f32 %v13043_v7, %v15458_v28  ;;  %v5729_v41 = vadd.f32 %v5728_v3, %v15451_v26  ;;  %v5741_v9 = vpop.f32.mrf.mxu0  ;;  %v6561_v28 = vld [vmem:[#allocation2 + $0x24] sm:$0x1] }
 0x2c3   : > { %v6636_v20 = vld [vmem:[#allocation2] sm:$0x1]  ;;  %v6182_v30 = vor.u32 %v6180_v36, %v15607_v44  ;;  %v6183_v0 = vrot.slane %v15607_v44, 4  ;;  %v6205_v15 = vrot.slane %v6203_v38, 7  ;;  %v5951_v12 = vmax.f32 %v5911_v48, 0.0 }
 0x2c4   : > { %v6637_v39 = vsel %vm15587_vm13, 0, %v6636_v20  ;;  %v5916_v26 = vadd.f32 %v15550_v45, %v5869_v23  ;;  %v5867_v7 = vmul.f32 %v15544_v40, %v5726_v50  ;;  %v5870_v2 = vmul.f32 %v15544_v40, %v5737_v55  ;;  %v13047_v13 = vpop.f32.mrf.mxu0 }
 0x2c5   : > { %6638 = vst [vmem:[#allocation2] sm:$0x1] %v6637_v39  ;;  %v6667_v54 = vld [vmem:[#allocation2 + $0x10] sm:$0x1]  ;;  %v6556_v3 = vsel %vm15573_vm11, %v6182_v30, %v6555_v37  ;;  %v6208_v36 = vor.u32 %v6206_v34, %v6205_v15  ;;  %v6210_v42 = vrot.slane %v6205_v15, 4  ;;  %5987 = vst [vmem:[#allocation5] sm:$0xff] %v5951_v12  ;;  %v12481_v43 = vpack.c.bf16 %v5951_v12, %v5951_v12 }
 0x2c6   : > { %v6668_v32 = vsel %vm15616_vm14, 0, %v6667_v54  ;;  %6557 = vst [vmem:[#allocation2 + $0x14] sm:$0xf] %v6556_v3  ;;  %v5956_v22 = vmax.f32 %v5916_v26, 0.0  ;;  %v5914_v21 = vadd.f32 %v15550_v45, %v5867_v7  ;;  %v5917_v44 = vadd.f32 %v15550_v45, %v5870_v2  ;;  %v15633_v38 = vpop.f32.mrf.mxu0 }
 0x2c7   : > { %6669 = vst [vmem:[#allocation2 + $0x10] sm:$0x1] %v6668_v32  ;;  %v6209_v48 = vsel %vm15580_vm12, %v6201_v10, %v6208_v36  ;;  %v6562_v34 = vsel %vm15587_vm13, %v6210_v42, %v6561_v28  ;;  %v6185_v37 = vshrl.u32 %v12481_v43, 16  ;;  %v6188_v23 = vshll.u32 %v12481_v43, 16 }
 0x2c8   : > { %6560 = vst [vmem:[#allocation2 + $0x20] sm:$0xf] %v6209_v48  ;;  %6563 = vst [vmem:[#allocation2 + $0x24] sm:$0x1] %v6562_v34  ;;  %v12486_v50 = vpack.c.bf16 %v5956_v22, %v5956_v22  ;;  %v5954_v55 = vmax.f32 %v5914_v21, 0.0  ;;  %v5957_v20 = vmax.f32 %v5917_v44, 0.0  ;;  %v5868_v30 = vmul.f32 %v15544_v40, %v5729_v41  ;;  %v15640_v15 = vpop.f32.mrf.mxu0 }
 0x2c9   : > { %5992 = vst [vmem:[#allocation5 + $0x30] sm:$0xff] %v5956_v22  ;;  %v6187_v12 = vrot.slane %v6185_v37, 7  ;;  %v5750_v39 = vadd.f32 %v13046_v8, %v15467_v49  ;;  %v5742_v10 = vadd.f32 %v5741_v9, %v15461_v59  ;;  %v5753_v26 = vadd.f32 %v13047_v13, %v15470_v11 }
 0x2ca   : > { %v6229_v28 = vshrl.u32 %v12486_v50, 16  ;;  %v6232_v7 = vshll.u32 %v12486_v50, 16  ;;  %5990 = vst [vmem:[#allocation5 + $0x50] sm:$0xff] %v5954_v55  ;;  %v12484_v2 = vpack.c.bf16 %v5954_v55, %v5954_v55  ;;  %5993 = vst [vmem:[#allocation5 + $0x48] sm:$0xff] %v5957_v20  ;;  %v12487_v54 = vpack.c.bf16 %v5957_v20, %v5957_v20  ;;  %v5757_v3 = vpop.f32.mrf.mxu0  ;;  %v6564_v20 = vld [vmem:[#allocation2 + $0x28] sm:$0xf] }
 0x2cb   : > { %v6190_v36 = vor.u32 %v6188_v23, %v6187_v12  ;;  %v6192_v42 = vrot.slane %v6187_v12, 4  ;;  %v5915_v41 = vadd.f32 %v15550_v45, %v5868_v30  ;;  %v5873_v43 = vmul.f32 %v15544_v40, %v5750_v39 }
 0x2cc   : > { %v6231_v32 = vrot.slane %v6229_v28, 7  ;;  %v6212_v22 = vshrl.u32 %v12484_v2, 16  ;;  %v6215_v49 = vshll.u32 %v12484_v2, 16  ;;  %v6238_v8 = vshrl.u32 %v12487_v54, 16  ;;  %v15647_v59 = vpop.f32.mrf.mxu0 }
 0x2cd   : > { %v6639_v11 = vld [vmem:[#allocation2 + $0x14] sm:$0x1]  ;;  %v6191_v9 = vsel %vm15580_vm12, %v6183_v0, %v6190_v36  ;;  %v6200_v13 = vsel %vm15580_vm12, %v6192_v42, %v15605_v51  ;;  %v6241_v21 = vshll.u32 %v12487_v54, 16  ;;  %v5955_v44 = vmax.f32 %v5915_v41, 0.0 }
 0x2ce   : > { %v6640_v48 = vsel %vm15587_vm13, 0, %v6639_v11  ;;  %6558 = vst [vmem:[#allocation2 + $0x18] sm:$0xf] %v6191_v9  ;;  %6559 = vst [vmem:[#allocation2 + $0x1c] sm:$0xf] %v6200_v13  ;;  %v6234_v34 = vor.u32 %v6232_v7, %v6231_v32  ;;  %v6236_v37 = vrot.slane %v6231_v32, 4  ;;  %v15656_v50 = vpop.f32.mrf.mxu0  ;;  %v5920_v51 = vadd.f32 %v15550_v45, %v5873_v43 }
 0x2cf   : > { %v6214_v23 = vrot.slane %v6212_v22, 7  ;;  %6641 = vst [vmem:[#allocation2 + $0x14] sm:$0x1] %v6640_v48  ;;  %v6670_v55 = vld [vmem:[#allocation2 + $0x24] sm:$0x1]  ;;  %v6240_v0 = vrot.slane %v6238_v8, 7  ;;  %v12485_v30 = vpack.c.bf16 %v5955_v44, %v5955_v44  ;;  %v5871_v12 = vmul.f32 %v15544_v40, %v5742_v10 }
 0x2d0   : > { %5991 = vst [vmem:[#allocation5 + $0x68] sm:$0xff] %v5955_v44  ;;  %v6671_v39 = vsel %vm15616_vm14, 0, %v6670_v55  ;;  %v6570_v7 = vld [vmem:[#allocation2 + $0x38] sm:$0x1]  ;;  %v5874_v54 = vmul.f32 %v15544_v40, %v5753_v26  ;;  %v15663_v36 = vpop.f32.mrf.mxu0  ;;  %v5960_v8 = vmax.f32 %v5920_v51, 0.0  ;;  %v5766_v55 = vadd.f32 %v15640_v15, %v15479_v62 }
 0x2d1   : > { %v6217_v28 = vor.u32 %v6215_v49, %v6214_v23  ;;  %v6218_v2 = vrot.slane %v6214_v23, 4  ;;  %6672 = vst [vmem:[#allocation2 + $0x24] sm:$0x1] %v6671_v39  ;;  %v6243_v42 = vor.u32 %v6241_v21, %v6240_v0  ;;  %v6245_v41 = vrot.slane %v6240_v0, 4 }
 0x2d2   : > { %v6220_v32 = vshrl.u32 %v12485_v30, 16  ;;  %v6223_v22 = vshll.u32 %v12485_v30, 16  ;;  %v5918_v10 = vadd.f32 %v15550_v45, %v5871_v12  ;;  %v5921_v11 = vadd.f32 %v15550_v45, %v5874_v54  ;;  %v15669_v49 = vpop.f32.mrf.mxu0  ;;  %5996 = vst [vmem:[#allocation5 + $0xe8] sm:$0xff] %v5960_v8 }
 0x2d3   : > { %v6565_v43 = vsel %vm15573_vm11, %v6217_v28, %v6564_v20  ;;  %v6244_v26 = vsel %vm15580_vm12, %v6236_v37, %v6243_v42  ;;  %v6571_v9 = vsel %vm15587_vm13, %v6245_v41, %v6570_v7  ;;  %v5745_v21 = vadd.f32 %v15633_v38, %v15464_v24 }
 0x2d4   : > { %6566 = vst [vmem:[#allocation2 + $0x28] sm:$0xf] %v6565_v43  ;;  %v6222_v13 = vrot.slane %v6220_v32, 7  ;;  %6569 = vst [vmem:[#allocation2 + $0x34] sm:$0xf] %v6244_v26  ;;  %v12490_v44 = vpack.c.bf16 %v5960_v8, %v5960_v8  ;;  %v5958_v48 = vmax.f32 %v5918_v10, 0.0  ;;  %v15679_v20 = vpop.f32.mrf.mxu0  ;;  %v5758_v51 = vadd.f32 %v5757_v3, %v15473_v25 }
 0x2d5   : > { %6572 = vst [vmem:[#allocation2 + $0x38] sm:$0x1] %v6571_v9  ;;  %v5961_v23 = vmax.f32 %v5921_v11, 0.0  ;;  %v5872_v30 = vmul.f32 %v15544_v40, %v5745_v21  ;;  %v5877_v54 = vmul.f32 %v15544_v40, %v5766_v55 }
 0x2d6   : > { %v6225_v0 = vor.u32 %v6223_v22, %v6222_v13  ;;  %v6227_v37 = vrot.slane %v6222_v13, 4  ;;  %v6264_v12 = vshrl.u32 %v12490_v44, 16  ;;  %v6267_v39 = vshll.u32 %v12490_v44, 16  ;;  %5994 = vst [vmem:[#allocation5 + $0x80] sm:$0xff] %v5958_v48  ;;  %v15683_v28 = vpop.f32.mrf.mxu0  ;;  %v6573_v44 = vld [vmem:[#allocation2 + $0x3c] sm:$0xf] }
 0x2d7   : > { %v12488_v24 = vpack.c.bf16 %v5958_v48, %v5958_v48  ;;  %5997 = vst [vmem:[#allocation5 + $0xb8] sm:$0xff] %v5961_v23  ;;  %v12491_v38 = vpack.c.bf16 %v5961_v23, %v5961_v23  ;;  %v5919_v15 = vadd.f32 %v15550_v45, %v5872_v30  ;;  %v5924_v8 = vadd.f32 %v15550_v45, %v5877_v54 }
 0x2d8   : > { %v6226_v7 = vsel %vm15580_vm12, %v6218_v2, %v6225_v0  ;;  %v6235_v62 = vsel %vm15580_vm12, %v6227_v37, %v6234_v34  ;;  %v6266_v25 = vrot.slane %v6264_v12, 7  ;;  %v15691_v32 = vpop.f32.mrf.mxu0  ;;  %v5875_v2 = vmul.f32 %v15544_v40, %v5758_v51  ;;  %v6579_v12 = vld [vmem:[#allocation2 + $0x4c] sm:$0x1] }
 0x2d9   : > { %6567 = vst [vmem:[#allocation2 + $0x2c] sm:$0xf] %v6226_v7  ;;  %6568 = vst [vmem:[#allocation2 + $0x30] sm:$0xf] %v6235_v62  ;;  %v6247_v3 = vshrl.u32 %v12488_v24, 16  ;;  %v6250_v42 = vshll.u32 %v12488_v24, 16 }
 0x2da   : > { %v6273_v41 = vshrl.u32 %v12491_v38, 16  ;;  %v6276_v22 = vshll.u32 %v12491_v38, 16  ;;  %v5959_v43 = vmax.f32 %v5919_v15, 0.0  ;;  %v6269_v34 = vor.u32 %v6267_v39, %v6266_v25  ;;  %v15700_v39 = vpop.f32.mrf.mxu0 }
 0x2db   : > { %v6642_v10 = vld [vmem:[#allocation2 + $0x28] sm:$0x1]  ;;  %v6271_v11 = vrot.slane %v6266_v25, 4  ;;  %v6249_v26 = vrot.slane %v6247_v3, 7  ;;  %v5964_v23 = vmax.f32 %v5924_v8, 0.0  ;;  %v5922_v55 = vadd.f32 %v15550_v45, %v5875_v2 }
 0x2dc   : > { %v6275_v9 = vrot.slane %v6273_v41, 7  ;;  %v6643_v13 = vsel %vm15587_vm13, 0, %v6642_v10  ;;  %v6673_v21 = vld [vmem:[#allocation2 + $0x38] sm:$0x1]  ;;  %5995 = vst [vmem:[#allocation5 + $0x88] sm:$0xff] %v5959_v43  ;;  %v12489_v48 = vpack.c.bf16 %v5959_v43, %v5959_v43  ;;  %v5769_v3 = vadd.f32 %v15647_v59, %v15482_v58  ;;  %v15715_v58 = vpop.f32.mrf.mxu0 }
 0x2dd   : > { %6644 = vst [vmem:[#allocation2 + $0x28] sm:$0x1] %v6643_v13  ;;  %v6674_v0 = vsel %vm15616_vm14, 0, %v6673_v21  ;;  %v6252_v37 = vor.u32 %v6250_v42, %v6249_v26  ;;  %v6253_v30 = vrot.slane %v6249_v26, 4  ;;  %6000 = vst [vmem:[#allocation5 + $0x8] sm:$0xff] %v5964_v23  ;;  %v12494_v62 = vpack.c.bf16 %v5964_v23, %v5964_v23 }
 0x2de   : > { %v6278_v51 = vor.u32 %v6276_v22, %v6275_v9  ;;  %6675 = vst [vmem:[#allocation2 + $0x38] sm:$0x1] %v6674_v0  ;;  %v6280_v24 = vrot.slane %v6275_v9, 4  ;;  %v6255_v38 = vshrl.u32 %v12489_v48, 16  ;;  %v6258_v7 = vshll.u32 %v12489_v48, 16  ;;  %v15734_v0 = vpop.f32.mrf.mxu0 }
 0x2df   : > { %v6574_v15 = vsel %vm15573_vm11, %v6252_v37, %v6573_v44  ;;  %v5962_v25 = vmax.f32 %v5922_v55, 0.0  ;;  %v6299_v22 = vshrl.u32 %v12494_v62, 16  ;;  %v6302_v43 = vshll.u32 %v12494_v62, 16 }
 0x2e0   : > { %v6279_v54 = vsel %vm15580_vm12, %v6271_v11, %v6278_v51  ;;  %6575 = vst [vmem:[#allocation2 + $0x3c] sm:$0xf] %v6574_v15  ;;  %v6580_v42 = vsel %vm15587_vm13, %v6280_v24, %v6579_v12  ;;  %v6257_v41 = vrot.slane %v6255_v38, 7  ;;  %v5878_v2 = vmul.f32 %v15544_v40, %v5769_v3 }
 0x2e1   : > { %6578 = vst [vmem:[#allocation2 + $0x48] sm:$0xf] %v6279_v54  ;;  %6581 = vst [vmem:[#allocation2 + $0x4c] sm:$0x1] %v6580_v42  ;;  %v12492_v8 = vpack.c.bf16 %v5962_v25, %v5962_v25  ;;  %v5761_v10 = vadd.f32 %v15656_v50, %v15476_v14  ;;  %v5782_v11 = vadd.f32 %v15663_v36, %v15491_v63  ;;  %v15717_v9 = vrot.slane %v6299_v22, 7 }
 0x2e2   : > { %5998 = vst [vmem:[#allocation5 + $0x60] sm:$0xff] %v5962_v25  ;;  %v6260_v59 = vor.u32 %v6258_v7, %v6257_v41  ;;  %v6262_v26 = vrot.slane %v6257_v41, 4  ;;  %v5774_v13 = vadd.f32 %v15669_v49, %v15485_v6  ;;  %v5925_v44 = vadd.f32 %v15550_v45, %v5878_v2 }
 0x2e3   : > { %v6282_v21 = vshrl.u32 %v12492_v8, 16  ;;  %v5876_v48 = vmul.f32 %v15544_v40, %v5761_v10  ;;  %v15728_v50 = vor.u32 %v6302_v43, %v15717_v9  ;;  %v6285_v36 = vshll.u32 %v12492_v8, 16 }
 0x2e4   : > { %v6261_v14 = vsel %vm15580_vm12, %v6253_v30, %v6260_v59  ;;  %v6270_v63 = vsel %vm15580_vm12, %v6262_v26, %v6269_v34  ;;  %v5965_v6 = vmax.f32 %v5925_v44, 0.0  ;;  %v5881_v55 = vmul.f32 %v15544_v40, %v5782_v11  ;;  %v6582_v30 = vld [vmem:[#allocation2 + $0x50] sm:$0xf]  ;;  %v6588_v26 = vld [vmem:[#allocation2 + $0x60] sm:$0x1] }
 0x2e5   : > { %6576 = vst [vmem:[#allocation2 + $0x40] sm:$0xf] %v6261_v14  ;;  %6577 = vst [vmem:[#allocation2 + $0x44] sm:$0xf] %v6270_v63  ;;  %v15730_v23 = vrot.slane %v6282_v21, 7  ;;  %v5923_v49 = vadd.f32 %v15550_v45, %v5876_v48  ;;  %v6306_v37 = vrot.slane %v15717_v9, 4  ;;  %v5879_v34 = vmul.f32 %v15544_v40, %v5774_v13 }
 0x2e6   : > { %v5785_v51 = vadd.f32 %v15679_v20, %v15493_v1  ;;  %v5777_v12 = vadd.f32 %v15683_v28, %v15488_v35  ;;  %6001 = vst [vmem:[#allocation5 + $0x78] sm:$0xff] %v5965_v6  ;;  %v12495_v7 = vpack.c.bf16 %v5965_v6, %v5965_v6  ;;  %v5798_v15 = vadd.f32 %v15691_v32, %v15503_v46  ;;  %v15755_v32 = vpop.f32.mrf.mxu0 }
 0x2e7   : > { %v6645_v24 = vld [vmem:[#allocation2 + $0x3c] sm:$0x1]  ;;  %v6287_v38 = vor.u32 %v6285_v36, %v15730_v23  ;;  %v5963_v62 = vmax.f32 %v5923_v49, 0.0  ;;  %v5928_v3 = vadd.f32 %v15550_v45, %v5881_v55  ;;  %v5926_v1 = vadd.f32 %v15550_v45, %v5879_v34 }
 0x2e8   : > { %v6646_v54 = vsel %vm15587_vm13, 0, %v6645_v24  ;;  %v6676_v25 = vld [vmem:[#allocation2 + $0x4c] sm:$0x1]  ;;  %v5882_v20 = vmul.f32 %v15544_v40, %v5785_v51  ;;  %v6288_v28 = vrot.slane %v15730_v23, 4  ;;  %v6308_v46 = vshrl.u32 %v12495_v7, 16  ;;  %v15763_v23 = vpop.f32.mrf.mxu0 }
 0x2e9   : > { %6647 = vst [vmem:[#allocation2 + $0x3c] sm:$0x1] %v6646_v54  ;;  %v6677_v35 = vsel %vm15616_vm14, 0, %v6676_v25  ;;  %v6583_v42 = vsel %vm15573_vm11, %v6287_v38, %v6582_v30  ;;  %5999 = vst [vmem:[#allocation5 + $0xf0] sm:$0xff] %v5963_v62  ;;  %v12493_v41 = vpack.c.bf16 %v5963_v62, %v5963_v62  ;;  %v5968_v22 = vmax.f32 %v5928_v3, 0.0 }
 0x2ea   : > { %6678 = vst [vmem:[#allocation2 + $0x4c] sm:$0x1] %v6677_v35  ;;  %6584 = vst [vmem:[#allocation2 + $0x50] sm:$0xf] %v6583_v42  ;;  %v5966_v43 = vmax.f32 %v5926_v1, 0.0  ;;  %v5929_v8 = vadd.f32 %v15550_v45, %v5882_v20  ;;  %v6310_v2 = vrot.slane %v6308_v46, 7  ;;  %v5880_v11 = vmul.f32 %v15544_v40, %v5777_v12 }
 0x2eb   : > { %v6311_v10 = vshll.u32 %v12495_v7, 16  ;;  %v5885_v59 = vmul.f32 %v15544_v40, %v5798_v15  ;;  %v6290_v9 = vshrl.u32 %v12493_v41, 16  ;;  %6004 = vst [vmem:[#allocation5 + $0x40] sm:$0xff] %v5968_v22  ;;  %v12498_v13 = vpack.c.bf16 %v5968_v22, %v5968_v22  ;;  %v6591_v42 = vld [vmem:[#allocation2 + $0x64] sm:$0xf] }
 0x2ec   : > { %6002 = vst [vmem:[#allocation5 + $0x38] sm:$0xff] %v5966_v43  ;;  %v12496_v21 = vpack.c.bf16 %v5966_v43, %v5966_v43  ;;  %v5790_v44 = vadd.f32 %v15700_v39, %v15497_v18  ;;  %v6315_v14 = vrot.slane %v6310_v2, 4  ;;  %v5969_v63 = vmax.f32 %v5929_v8, 0.0 }
 0x2ed   : > { %v6313_v48 = vor.u32 %v6311_v10, %v6310_v2  ;;  %v5927_v36 = vadd.f32 %v15550_v45, %v5880_v11  ;;  %v6292_v6 = vrot.slane %v6290_v9, 7  ;;  %v6293_v49 = vshll.u32 %v12493_v41, 16  ;;  %v6597_v2 = vld [vmem:[#allocation2 + $0x74] sm:$0x1] }
 0x2ee   : > { %v6334_v55 = vshrl.u32 %v12498_v13, 16  ;;  %v6317_v30 = vshrl.u32 %v12496_v21, 16  ;;  %v6589_v51 = vsel %vm15587_vm13, %v6315_v14, %v6588_v26  ;;  %v6337_v12 = vshll.u32 %v12498_v13, 16  ;;  %6005 = vst [vmem:[#allocation5 + $0xc8] sm:$0xff] %v5969_v63 }
 0x2ef   : > { %v6314_v34 = vsel %vm15580_vm12, %v6306_v37, %v6313_v48  ;;  %v12499_v18 = vpack.c.bf16 %v5969_v63, %v5969_v63  ;;  %6590 = vst [vmem:[#allocation2 + $0x60] sm:$0x1] %v6589_v51  ;;  %v6295_v39 = vor.u32 %v6293_v49, %v6292_v6  ;;  %v6297_v24 = vrot.slane %v6292_v6, 4  ;;  %v15772_v37 = vpop.f32.mrf.mxu0 }
 0x2f0   : > { %6587 = vst [vmem:[#allocation2 + $0x5c] sm:$0xf] %v6314_v34  ;;  %v6336_v38 = vrot.slane %v6334_v55, 7  ;;  %v15769_v7 = vrot.slane %v6317_v30, 7  ;;  %v6320_v15 = vshll.u32 %v12496_v21, 16  ;;  %v5967_v25 = vmax.f32 %v5927_v36, 0.0 }
 0x2f1   : > { %v6648_v62 = vld [vmem:[#allocation2 + $0x50] sm:$0x1]  ;;  %v6343_v54 = vshrl.u32 %v12499_v18, 16  ;;  %v5932_v3 = vadd.f32 %v15550_v45, %v5885_v59  ;;  %v6296_v20 = vsel %vm15580_vm12, %v6288_v28, %v6295_v39  ;;  %v6305_v35 = vsel %vm15580_vm12, %v6297_v24, %v15728_v50  ;;  %v15789_v21 = vpop.f32.mrf.mxu0 }
 0x2f2   : > { %v6649_v1 = vsel %vm15587_vm13, 0, %v6648_v62  ;;  %v6346_v46 = vshll.u32 %v12499_v18, 16  ;;  %6585 = vst [vmem:[#allocation2 + $0x54] sm:$0xf] %v6296_v20  ;;  %6586 = vst [vmem:[#allocation2 + $0x58] sm:$0xf] %v6305_v35  ;;  %v6339_v41 = vor.u32 %v6337_v12, %v6336_v38  ;;  %v6322_v43 = vor.u32 %v6320_v15, %v15769_v7 }
 0x2f3   : > { %6650 = vst [vmem:[#allocation2 + $0x50] sm:$0x1] %v6649_v1  ;;  %v6341_v22 = vrot.slane %v6336_v38, 4  ;;  %v6345_v8 = vrot.slane %v6343_v54, 7  ;;  %6003 = vst [vmem:[#allocation5 + $0x58] sm:$0xff] %v5967_v25  ;;  %v12497_v10 = vpack.c.bf16 %v5967_v25, %v5967_v25  ;;  %v5972_v11 = vmax.f32 %v5932_v3, 0.0  ;;  %v15808_v39 = vpop.f32.mrf.mxu0 }
 0x2f4   : > { %v5883_v28 = vmul.f32 %v15544_v40, %v5790_v44  ;;  %v5801_v59 = vadd.f32 %v15715_v58, %v15505_v27  ;;  %v6592_v50 = vsel %vm15573_vm11, %v6322_v43, %v6591_v42  ;;  %v5793_v13 = vadd.f32 %v15734_v0, %v15500_v16 }
 0x2f5   : > { %v6348_v26 = vor.u32 %v6346_v46, %v6345_v8  ;;  %v6350_v9 = vrot.slane %v6345_v8, 4  ;;  %v6323_v48 = vrot.slane %v15769_v7, 4  ;;  %6593 = vst [vmem:[#allocation2 + $0x64] sm:$0xf] %v6592_v50  ;;  %v6325_v14 = vshrl.u32 %v12497_v10, 16  ;;  %6008 = vst [vmem:[#allocation5 + $0x70] sm:$0xff] %v5972_v11 }
 0x2f6   : > { %v15792_v63 = vpack.c.bf16 %v5972_v11, %v5972_v11  ;;  %v5930_v44 = vadd.f32 %v15550_v45, %v5883_v28  ;;  %v6679_v27 = vld [vmem:[#allocation2 + $0x60] sm:$0x1]  ;;  %v5886_v16 = vmul.f32 %v15544_v40, %v5801_v59  ;;  %v5884_v0 = vmul.f32 %v15544_v40, %v5793_v13 }
 0x2f7   : > { %v6349_v58 = vsel %vm15580_vm12, %v6341_v22, %v6348_v26  ;;  %v6598_v36 = vsel %vm15587_vm13, %v6350_v9, %v6597_v2  ;;  %v6680_v6 = vsel %vm15616_vm14, 0, %v6679_v27  ;;  %v6327_v49 = vrot.slane %v6325_v14, 7  ;;  %v5821_v22 = vpop.f32.mrf.mxu0  ;;  %v6600_v9 = vld [vmem:[#allocation2 + $0x78] sm:$0xf] }
 0x2f8   : > { %6596 = vst [vmem:[#allocation2 + $0x70] sm:$0xf] %v6349_v58  ;;  %6599 = vst [vmem:[#allocation2 + $0x74] sm:$0x1] %v6598_v36  ;;  %v6328_v55 = vshll.u32 %v12497_v10, 16  ;;  %v6369_v30 = vshrl.u32 %v15792_v63, 16  ;;  %v5933_v51 = vadd.f32 %v15550_v45, %v5886_v16  ;;  %v5931_v12 = vadd.f32 %v15550_v45, %v5884_v0 }
 0x2f9   : > { %6681 = vst [vmem:[#allocation2 + $0x60] sm:$0x1] %v6680_v6  ;;  %v5970_v34 = vmax.f32 %v5930_v44, 0.0  ;;  %v5814_v18 = vadd.f32 %v15755_v32, %v15515_v19  ;;  %v6332_v38 = vrot.slane %v6327_v49, 4  ;;  %v5806_v62 = vadd.f32 %v15763_v23, %v15509_v47 }
 0x2fa   : > { %v6330_v24 = vor.u32 %v6328_v55, %v6327_v49  ;;  %v6371_v7 = vrot.slane %v6369_v30, 7  ;;  %v5973_v54 = vmax.f32 %v5933_v51, 0.0  ;;  %v5971_v25 = vmax.f32 %v5931_v12, 0.0 }
 0x2fb   : > { %6006 = vst [vmem:[#allocation5 + $0xe0] sm:$0xff] %v5970_v34  ;;  %v12500_v15 = vpack.c.bf16 %v5970_v34, %v5970_v34  ;;  %v5889_v3 = vmul.f32 %v15544_v40, %v5814_v18  ;;  %v6340_v19 = vsel %vm15580_vm12, %v6332_v38, %v6339_v41  ;;  %v6372_v32 = vshll.u32 %v15792_v63, 16 }
 0x2fc   : > { %v6331_v1 = vsel %vm15580_vm12, %v6323_v48, %v6330_v24  ;;  %v6376_v20 = vrot.slane %v6371_v7, 4  ;;  %v6651_v35 = vld [vmem:[#allocation2 + $0x64] sm:$0x1]  ;;  %6595 = vst [vmem:[#allocation2 + $0x6c] sm:$0xf] %v6340_v19  ;;  %6009 = vst [vmem:[#allocation5 + $0xc0] sm:$0xff] %v5973_v54  ;;  %v12503_v23 = vpack.c.bf16 %v5973_v54, %v5973_v54  ;;  %v12501_v46 = vpack.c.bf16 %v5971_v25, %v5971_v25 }
 0x2fd   : > { %6594 = vst [vmem:[#allocation2 + $0x68] sm:$0xf] %v6331_v1  ;;  %v6352_v42 = vshrl.u32 %v12500_v15, 16  ;;  %v6355_v47 = vshll.u32 %v12500_v15, 16  ;;  %6007 = vst [vmem:[#allocation5 + $0x90] sm:$0xff] %v5971_v25  ;;  %v6652_v43 = vsel %vm15587_vm13, 0, %v6651_v35  ;;  %v5936_v8 = vadd.f32 %v15550_v45, %v5889_v3 }
 0x2fe   : > { %v5887_v41 = vmul.f32 %v15544_v40, %v5806_v62  ;;  %v5817_v2 = vadd.f32 %v15772_v37, %v15517_v29  ;;  %6653 = vst [vmem:[#allocation2 + $0x64] sm:$0x1] %v6652_v43  ;;  %v6378_v28 = vshrl.u32 %v12503_v23, 16  ;;  %v6381_v59 = vshll.u32 %v12503_v23, 16  ;;  %v13067_v29 = vpop.f32.mrf.mxu0  ;;  %v6606_v37 = vld [vmem:[#allocation2 + $0x88] sm:$0x1] }
 0x2ff   : > { %v6682_v10 = vld [vmem:[#allocation2 + $0x74] sm:$0x1]  ;;  %v6354_v11 = vrot.slane %v6352_v42, 7  ;;  %v6360_v50 = vshrl.u32 %v12501_v46, 16  ;;  %v6363_v13 = vshll.u32 %v12501_v46, 16  ;;  %v5976_v48 = vmax.f32 %v5936_v8, 0.0 }
 0x300   : > { %v6683_v26 = vsel %vm15616_vm14, 0, %v6682_v10  ;;  %v5934_v14 = vadd.f32 %v15550_v45, %v5887_v41  ;;  %v6380_v27 = vrot.slane %v6378_v28, 7  ;;  %v5890_v0 = vmul.f32 %v15544_v40, %v5817_v2  ;;  %v5824_v15 = vpop.f32.mrf.mxu0  ;;  %v6609_v46 = vld [vmem:[#allocation2 + $0x8c] sm:$0xf] }
 0x301   : > { %6684 = vst [vmem:[#allocation2 + $0x74] sm:$0x1] %v6683_v26  ;;  %v6357_v63 = vor.u32 %v6355_v47, %v6354_v11  ;;  %v6358_v44 = vrot.slane %v6354_v11, 4  ;;  %v6362_v58 = vrot.slane %v6360_v50, 7  ;;  %6012 = vst [vmem:[#allocation5 + $0x10] sm:$0xff] %v5976_v48  ;;  %v12506_v36 = vpack.c.bf16 %v5976_v48, %v5976_v48 }
 0x302   : > { %v5974_v16 = vmax.f32 %v5934_v14, 0.0  ;;  %v5809_v6 = vadd.f32 %v15789_v21, %v15511_v52  ;;  %v6383_v55 = vor.u32 %v6381_v59, %v6380_v27  ;;  %v6385_v30 = vrot.slane %v6380_v27, 4  ;;  %v13070_v10 = vpop.f32.mrf.mxu0 }
 0x303   : > { %v6601_v49 = vsel %vm15573_vm11, %v6357_v63, %v6600_v9  ;;  %v6365_v34 = vor.u32 %v6363_v13, %v6362_v58  ;;  %v6374_v51 = vor.u32 %v6372_v32, %v6371_v7  ;;  %v6367_v12 = vrot.slane %v6362_v58, 4 }
 0x304   : > { %6602 = vst [vmem:[#allocation2 + $0x78] sm:$0xf] %v6601_v49  ;;  %v6404_v18 = vshrl.u32 %v12506_v36, 16  ;;  %6010 = vst [vmem:[#allocation5 + $0xa8] sm:$0xff] %v5974_v16  ;;  %v12504_v24 = vpack.c.bf16 %v5974_v16, %v5974_v16  ;;  %v6384_v38 = vsel %vm15580_vm12, %v6376_v20, %v6383_v55  ;;  %v6607_v62 = vsel %vm15587_vm13, %v6385_v30, %v6606_v37  ;;  %v5837_v58 = vpop.f32.mrf.mxu0  ;;  %v6615_v37 = vld [vmem:[#allocation2 + $0x9c] sm:$0x1] }
 0x305   : > { %v6366_v52 = vsel %vm15580_vm12, %v6358_v44, %v6365_v34  ;;  %v5937_v21 = vadd.f32 %v15550_v45, %v5890_v0  ;;  %6605 = vst [vmem:[#allocation2 + $0x84] sm:$0xf] %v6384_v38  ;;  %6608 = vst [vmem:[#allocation2 + $0x88] sm:$0x1] %v6607_v62  ;;  %v6375_v7 = vsel %vm15580_vm12, %v6367_v12, %v6374_v51  ;;  %v6407_v25 = vshll.u32 %v12506_v36, 16 }
 0x306   : > { %6603 = vst [vmem:[#allocation2 + $0x7c] sm:$0xf] %v6366_v52  ;;  %v6406_v54 = vrot.slane %v6404_v18, 7  ;;  %v6387_v3 = vshrl.u32 %v12504_v24, 16  ;;  %6604 = vst [vmem:[#allocation2 + $0x80] sm:$0xf] %v6375_v7  ;;  %v5888_v19 = vmul.f32 %v15544_v40, %v5809_v6  ;;  %v5830_v32 = vadd.f32 %v15808_v39, %v15527_v4  ;;  %v13071_v52 = vpop.f32.mrf.mxu0 }
 0x307   : > { %v5977_v1 = vmax.f32 %v5937_v21, 0.0  ;;  %v5822_v20 = vadd.f32 %v5821_v22, %v15521_v5  ;;  %v6390_v47 = vshll.u32 %v12504_v24, 16  ;;  %v5833_v23 = vadd.f32 %v13067_v29, %v15529_v61  ;;  %v15871_v44 = vld [vmem:[%s17445_s2] ss:$0 sm:$0xff] }
 0x308   : > { %v15845_v35 = vor.u32 %v6407_v25, %v6406_v54  ;;  %v15847_v42 = vrot.slane %v6387_v3, 7  ;;  %v5935_v8 = vadd.f32 %v15550_v45, %v5888_v19  ;;  %v5893_v41 = vmul.f32 %v15544_v40, %v5830_v32  ;;  %v15859_v45 = vld [vmem:[%s17446_s3] ss:$0 sm:$0xff] }
 0x309   : > { %6013 = vst [vmem:[#allocation5 + $0x28] sm:$0xff] %v5977_v1  ;;  %v12507_v43 = vpack.c.bf16 %v5977_v1, %v5977_v1  ;;  %v5891_v2 = vmul.f32 %v15544_v40, %v5822_v20  ;;  %v6411_v4 = vrot.slane %v6406_v54, 4  ;;  %v5894_v39 = vmul.f32 %v15544_v40, %v5833_v23 }
 0x30a   : > { %v6392_v5 = vor.u32 %v6390_v47, %v15847_v42  ;;  %v5825_v22 = vadd.f32 %v5824_v15, %v15524_v57  ;;  %v5975_v59 = vmax.f32 %v5935_v8, 0.0  ;;  %v5940_v50 = vadd.f32 %v15859_v45, %v5893_v41  ;;  %v6618_v41 = vld [vmem:[#allocation2 + $0xa0] sm:$0xf] }
 0x30b   : > { %v6654_v11 = vld [vmem:[#allocation2 + $0x78] sm:$0x1]  ;;  %v6413_v28 = vshrl.u32 %v12507_v43, 16  ;;  %v6416_v61 = vshll.u32 %v12507_v43, 16  ;;  %v5938_v40 = vadd.f32 %v15859_v45, %v5891_v2  ;;  %v5941_v57 = vadd.f32 %v15859_v45, %v5894_v39  ;;  %v6624_v39 = vld [vmem:[#allocation2 + $0xb0] sm:$0x1] }
 0x30c   : > { %v6655_v26 = vsel %vm15587_vm13, 0, %v6654_v11  ;;  %v6610_v9 = vsel %vm15573_vm11, %v6392_v5, %v6609_v46  ;;  %v6685_v13 = vld [vmem:[#allocation2 + $0x88] sm:$0x1]  ;;  %6011 = vst [vmem:[#allocation5 + $0xd0] sm:$0xff] %v5975_v59  ;;  %v12505_v14 = vpack.c.bf16 %v5975_v59, %v5975_v59  ;;  %v5980_v63 = vmax.f32 %v5940_v50, 0.0 }
 0x30d   : > { %6656 = vst [vmem:[#allocation2 + $0x78] sm:$0x1] %v6655_v26  ;;  %6611 = vst [vmem:[#allocation2 + $0x8c] sm:$0xf] %v6610_v9  ;;  %v6415_v48 = vrot.slane %v6413_v28, 7  ;;  %v5892_v27 = vmul.f32 %v15871_v44, %v5825_v22  ;;  %v6686_v29 = vsel %vm15616_vm14, 0, %v6685_v13  ;;  %v5846_v0 = vadd.f32 %v13070_v10, %v15539_v53  ;;  %v5840_v10 = vpop.f32.mrf.mxu0 }
 0x30e   : > { %v5978_v36 = vmax.f32 %v5938_v40, 0.0  ;;  %v5981_v16 = vmax.f32 %v5941_v57, 0.0  ;;  %6687 = vst [vmem:[#allocation2 + $0x88] sm:$0x1] %v6686_v29  ;;  %v6395_v55 = vshrl.u32 %v12505_v14, 16  ;;  %v6398_v30 = vshll.u32 %v12505_v14, 16 }
 0x30f   : > { %v6418_v6 = vor.u32 %v6416_v61, %v6415_v48  ;;  %v6420_v49 = vrot.slane %v6415_v48, 4  ;;  %6016 = vst [vmem:[#allocation5 + $0x20] sm:$0xff] %v5980_v63  ;;  %v15877_v34 = vpack.c.bf16 %v5980_v63, %v5980_v63  ;;  %v5939_v18 = vadd.f32 %v15859_v45, %v5892_v27  ;;  %v17495_v9 = vld [vmem:[#allocation13_spill] sm:$0xff] }
 0x310   : > { %6014 = vst [vmem:[#allocation5 + $0xa0] sm:$0xff] %v5978_v36  ;;  %v12508_v51 = vpack.c.bf16 %v5978_v36, %v5978_v36  ;;  %6017 = vst [vmem:[#allocation5 + $0x98] sm:$0xff] %v5981_v16  ;;  %v12511_v12 = vpack.c.bf16 %v5981_v16, %v5981_v16  ;;  %v6397_v38 = vrot.slane %v6395_v55, 7  ;;  %v5897_v62 = vmul.f32 %v15871_v44, %v5846_v0 }
 0x311   : > { %v6419_v24 = vsel %vm15580_vm12, %v6411_v4, %v6418_v6  ;;  %v6616_v53 = vsel %vm15587_vm13, %v6420_v49, %v6615_v37  ;;  %v6393_v21 = vrot.slane %v15847_v42, 4  ;;  %v6439_v15 = vshrl.u32 %v15877_v34, 16 }
 0x312   : > { %6614 = vst [vmem:[#allocation2 + $0x98] sm:$0xf] %v6419_v24  ;;  %6617 = vst [vmem:[#allocation2 + $0x9c] sm:$0x1] %v6616_v53  ;;  %v6422_v7 = vshrl.u32 %v12508_v51, 16  ;;  %v6425_v54 = vshll.u32 %v12508_v51, 16  ;;  %v6400_v25 = vor.u32 %v6398_v30, %v6397_v38  ;;  %v5944_v46 = vadd.f32 %v15859_v45, %v5897_v62 }
 0x313   : > { %v6402_v3 = vrot.slane %v6397_v38, 4  ;;  %v6448_v1 = vshrl.u32 %v12511_v12, 16  ;;  %v6451_v19 = vshll.u32 %v12511_v12, 16  ;;  %v6441_v20 = vrot.slane %v6439_v15, 7 }
 0x314   : > { %v6657_v32 = vld [vmem:[#allocation2 + $0x8c] sm:$0x1]  ;;  %v6424_v47 = vrot.slane %v6422_v7, 7  ;;  %v5979_v23 = vmax.f32 %v5939_v18, 0.0  ;;  %v6401_v42 = vsel %vm15580_vm12, %v6393_v21, %v6400_v25  ;;  %v5984_v61 = vmax.f32 %v5944_v46, 0.0 }
 0x315   : > { %v6658_v43 = vsel %vm15587_vm13, 0, %v6657_v32  ;;  %v6410_v8 = vsel %vm15580_vm12, %v6402_v3, %v15845_v35  ;;  %v6450_v2 = vrot.slane %v6448_v1, 7  ;;  %6612 = vst [vmem:[#allocation2 + $0x90] sm:$0xf] %v6401_v42  ;;  %v6446_v4 = vrot.slane %v6441_v20, 4  ;;  %v17494_v35 = vld [vmem:[#allocation14_spill] sm:$0xff] }
 0x316   : > { %6659 = vst [vmem:[#allocation2 + $0x8c] sm:$0x1] %v6658_v43  ;;  %6613 = vst [vmem:[#allocation2 + $0x94] sm:$0xf] %v6410_v8  ;;  %v6427_v5 = vor.u32 %v6425_v54, %v6424_v47  ;;  %v12509_v28 = vpack.c.bf16 %v5979_v23, %v5979_v23  ;;  %v5838_v50 = vadd.f32 %v5837_v58, %v15533_v17  ;;  %v6442_v13 = vshll.u32 %v15877_v34, 16 }
 0x317   : > { %6015 = vst [vmem:[#allocation5 + $0xf8] sm:$0xff] %v5979_v23  ;;  %v6453_v22 = vor.u32 %v6451_v19, %v6450_v2  ;;  %v6455_v11 = vrot.slane %v6450_v2, 4  ;;  %v5849_v26 = vadd.f32 %v13071_v52, %v17494_v35  ;;  %v5841_v40 = vadd.f32 %v5840_v10, %v17495_v9  ;;  %v6633_v42 = vld [vmem:[#allocation2 + $0xc4] sm:$0x1] }
 0x318   : > { %v6619_v59 = vsel %vm15573_vm11, %v6427_v5, %v6618_v41  ;;  %v6430_v63 = vshrl.u32 %v12509_v28, 16  ;;  %v12514_v17 = vpack.c.bf16 %v5984_v61, %v5984_v61  ;;  %v5895_v58 = vmul.f32 %v15871_v44, %v5838_v50 }
 0x319   : > { %v6688_v57 = vld [vmem:[#allocation2 + $0x9c] sm:$0x1]  ;;  %6620 = vst [vmem:[#allocation2 + $0xa0] sm:$0xf] %v6619_v59  ;;  %v6454_v48 = vsel %vm15580_vm12, %v6446_v4, %v6453_v22  ;;  %v6625_v14 = vsel %vm15587_vm13, %v6455_v11, %v6624_v39  ;;  %v5898_v29 = vmul.f32 %v15871_v44, %v5849_v26  ;;  %v6433_v36 = vshll.u32 %v12509_v28, 16 }
 0x31a   : > { %v6689_v27 = vsel %vm15616_vm14, 0, %v6688_v57  ;;  %6623 = vst [vmem:[#allocation2 + $0xac] sm:$0xf] %v6454_v48  ;;  %6626 = vst [vmem:[#allocation2 + $0xb0] sm:$0x1] %v6625_v14  ;;  %v6432_v37 = vrot.slane %v6430_v63, 7  ;;  %v5896_v16 = vmul.f32 %v15871_v44, %v5841_v40  ;;  %v6444_v0 = vor.u32 %v6442_v13, %v6441_v20 }
 0x31b   : > { %6690 = vst [vmem:[#allocation2 + $0x9c] sm:$0x1] %v6689_v27  ;;  %v5942_v6 = vadd.f32 %v15859_v45, %v5895_v58  ;;  %v5945_v49 = vadd.f32 %v15859_v45, %v5898_v29  ;;  %v6428_v55 = vrot.slane %v6424_v47, 4  ;;  %v6474_v12 = vshrl.u32 %v12514_v17, 16  ;;  %v6627_v47 = vld [vmem:[#allocation2 + $0xb4] sm:$0xf] }
 0x31c   : > { %v6435_v30 = vor.u32 %v6433_v36, %v6432_v37  ;;  %v6437_v34 = vrot.slane %v6432_v37, 4  ;;  %v5943_v51 = vadd.f32 %v15859_v45, %v5896_v16  ;;  %v6477_v43 = vshll.u32 %v12514_v17, 16 }
 0x31d   : > { %v5982_v18 = vmax.f32 %v5942_v6, 0.0  ;;  %v5985_v24 = vmax.f32 %v5945_v49, 0.0  ;;  %v6476_v25 = vrot.slane %v6474_v12, 7 }
 0x31e   : > { %v6436_v53 = vsel %vm15580_vm12, %v6428_v55, %v6435_v30  ;;  %v6445_v38 = vsel %vm15580_vm12, %v6437_v34, %v6444_v0  ;;  %v5983_v44 = vmax.f32 %v5943_v51, 0.0 }
 0x31f   : > { %6621 = vst [vmem:[#allocation2 + $0xa4] sm:$0xf] %v6436_v53  ;;  %6622 = vst [vmem:[#allocation2 + $0xa8] sm:$0xf] %v6445_v38  ;;  %v12512_v52 = vpack.c.bf16 %v5982_v18, %v5982_v18  ;;  %v12515_v21 = vpack.c.bf16 %v5985_v24, %v5985_v24  ;;  %v6481_v2 = vrot.slane %v6476_v25, 4  ;;  %v6479_v39 = vor.u32 %v6477_v43, %v6476_v25 }
 0x320   : > { %v6660_v62 = vld [vmem:[#allocation2 + $0xa0] sm:$0x1]  ;;  %v12513_v45 = vpack.c.bf16 %v5983_v44, %v5983_v44 }
 0x321   : > { %v6661_v15 = vsel %vm15587_vm13, 0, %v6660_v62  ;;  %v6691_v7 = vld [vmem:[#allocation2 + $0xb0] sm:$0x1]  ;;  %v6457_v3 = vshrl.u32 %v12512_v52, 16  ;;  %v6483_v1 = vshrl.u32 %v12515_v21, 16  ;;  %v6460_v20 = vshll.u32 %v12512_v52, 16 }
 0x322   : > { %6662 = vst [vmem:[#allocation2 + $0xa0] sm:$0x1] %v6661_v15  ;;  %v6692_v54 = vsel %vm15616_vm14, 0, %v6691_v7  ;;  %v6465_v19 = vshrl.u32 %v12513_v45, 16  ;;  %v6486_v46 = vshll.u32 %v12515_v21, 16  ;;  %v6468_v41 = vshll.u32 %v12513_v45, 16 }
 0x323   : > { %6693 = vst [vmem:[#allocation2 + $0xb0] sm:$0x1] %v6692_v54  ;;  %v6459_v32 = vrot.slane %v6457_v3, 7  ;;  %v6485_v23 = vrot.slane %v6483_v1, 7 }
 0x324   : > { %v6467_v8 = vrot.slane %v6465_v19, 7 }
 0x325   : > { %v6462_v10 = vor.u32 %v6460_v20, %v6459_v32  ;;  %v6488_v4 = vor.u32 %v6486_v46, %v6485_v23  ;;  %v6490_v5 = vrot.slane %v6485_v23, 4  ;;  %v6463_v22 = vrot.slane %v6459_v32, 4 }
 0x326   : > { %v6470_v11 = vor.u32 %v6468_v41, %v6467_v8  ;;  %v6472_v28 = vrot.slane %v6467_v8, 4 }
 0x327   : > { %v6628_v61 = vsel %vm15573_vm11, %v6462_v10, %v6627_v47  ;;  %v6489_v59 = vsel %vm15580_vm12, %v6481_v2, %v6488_v4  ;;  %v6634_v50 = vsel %vm15587_vm13, %v6490_v5, %v6633_v42 }
 0x328   : > { %6629 = vst [vmem:[#allocation2 + $0xb4] sm:$0xf] %v6628_v61  ;;  %6632 = vst [vmem:[#allocation2 + $0xc0] sm:$0xf] %v6489_v59  ;;  %v6471_v35 = vsel %vm15580_vm12, %v6463_v22, %v6470_v11  ;;  %v6480_v26 = vsel %vm15580_vm12, %v6472_v28, %v6479_v39 }
 0x329   : > { %6635 = vst [vmem:[#allocation2 + $0xc4] sm:$0x1] %v6634_v50  ;;  %6630 = vst [vmem:[#allocation2 + $0xb8] sm:$0xf] %v6471_v35 }
 0x32a   : > { %6631 = vst [vmem:[#allocation2 + $0xbc] sm:$0xf] %v6480_v26 }
 0x32e   : > { %6700 = sbr.rel (%p12225_p13) target bundleno = 823 (0x337), region = 52 }
 0x32f   : > { %v6663_v56 = vld [vmem:[#allocation2 + $0xb4] sm:$0x1] }
 0x330   : > { %v6694_v9 = vld [vmem:[#allocation2 + $0xc4] sm:$0x1]  ;;  %v6664_v40 = vsel %vm15587_vm13, 0, %v6663_v56 }
 0x331   : > { %v6695_v57 = vsel %vm15616_vm14, 0, %v6694_v9  ;;  %6665 = vst [vmem:[#allocation2 + $0xb4] sm:$0x1] %v6664_v40 }
 0x332   : > { %6696 = vst [vmem:[#allocation2 + $0xc4] sm:$0x1] %v6695_v57 }
 0x333   : > { %v13872_v13 = vmov 0  }
 0x334   : > { %6701 = vst [vmem:[#allocation2] sm:$0xf] %v13872_v13  ;;  %6702 = vst [vmem:[#allocation2 + $0x4] sm:$0xf] %v13872_v13 }
 0x335   : > { %6703 = vst [vmem:[#allocation2 + $0x8] sm:$0xf] %v13872_v13  ;;  %6704 = vst [vmem:[#allocation2 + $0xc] sm:$0xf] %v13872_v13 }
 0x336   : > { %6705 = vst [vmem:[#allocation2 + $0x10] sm:$0x1] %v13872_v13 }
 0x337 PF: > { %p12226_p0 = scmp.ne.s32.totalorder %s13853_s27, 3 }
 0x339   : > { %6709 = sbr.rel (%p12226_p0) target bundleno = 834 (0x342), region = 56 }
 0x33e   : > { %v13873_v31 = vmov 0  }
 0x33f   : > { %6711 = vst [vmem:[#allocation2 + $0xb4] sm:$0xf] %v13873_v31  ;;  %6712 = vst [vmem:[#allocation2 + $0xb8] sm:$0xf] %v13873_v31 }
 0x340   : > { %6713 = vst [vmem:[#allocation2 + $0xbc] sm:$0xf] %v13873_v31  ;;  %6714 = vst [vmem:[#allocation2 + $0xc0] sm:$0xf] %v13873_v31 }
 0x341   : > { %6715 = vst [vmem:[#allocation2 + $0xc4] sm:$0x1] %v13873_v31 }
 0x342 PF: > { %v13512_v33 = vld [vmem:[%s17447_s4 + $0x78] sm:$0xff]   ;;  %v13516_v63 = vld [vmem:[%s17447_s4 + $0x70] sm:$0xff]   ;;  %v13520_v29 = vld [vmem:[%s17447_s4 + $0x68] sm:$0xff]   ;;  %s12470_s10 = sshll.u32 %s13853_s27, 5  ;;  %s12471_s20 = sshll.u32 %s13857_s28, 7 }
 0x343   : > { %v13513_v60 = vld [vmem:[%s17447_s4 + $0xf8] sm:$0xff]   ;;  %12544 = vmatprep.subr.bf16.mxu1 %v13512_v33  ;;  %v13517_v27 = vld [vmem:[%s17447_s4 + $0xf0] sm:$0xff]   ;;  %v13521_v37 = vld [vmem:[%s17447_s4 + $0xe8] sm:$0xff]   ;;  %s11518_s27 = sadd.s32 %s12471_s20, %s12470_s10  ;;  %s11521_s28 = sshll.u32 %s15936_s9, 4  ;;  %s17381_s28 = int_to_ptr.vmem [resolvable:$true] %s11521_s28 }
 0x344   : > { %v13514_v48 = vld [vmem:[%s17447_s4 + $0x38] sm:$0xff]   ;;  %12656 = vmatprep.subr.bf16.mxu0 %v13513_v60  ;;  %v13518_v17 = vld [vmem:[%s17447_s4 + $0x30] sm:$0xff]   ;;  %v13522_v36 = vld [vmem:[%s17447_s4 + $0x28] sm:$0xff]   ;;  %s12472_s18 = sshll.u32 %s11518_s27, 7  ;;  %s17572_s21 = sand.u32 1, %s13845_s25  }
 0x345   : > { %v13515_v14 = vld [vmem:[%s17447_s4 + $0xb8] sm:$0xff]   ;;  %12545 = vmatpush3.bf16.msra.mxu1 %v13514_v48  ;;  %v13519_v58 = vld [vmem:[%s17447_s4 + $0xb0] sm:$0xff]   ;;  %v13523_v16 = vld [vmem:[%s17447_s4 + $0xa8] sm:$0xff]   ;;  %s17387_s17 = scalar_lea.hbm %s17450_s7, %s12472_s18  ;;  %s17392_s16 = scalar_lea.sflag [#allocation7], %s17572_s21 }
 0x346   : > { %12657 = vmatpush3.bf16.msra.mxu0 %v13515_v14  ;;  %12546 = vmatprep.subr.bf16.mxu1 %v13516_v63  ;;  %v13524_v0 = vld [vmem:[%s17447_s4 + $0x60] sm:$0xff]   ;;  %v13528_v30 = vld [vmem:[%s17447_s4 + $0x58] sm:$0xff]   ;;  %v13532_v18 = vld [vmem:[%s17447_s4 + $0x50] sm:$0xff]   ;;  %s13777_s11 = scalar_lea.vmem %s17381_s28, 4096  ;;  %s13874_s13 = smov [#allocation6]  }
 0x347   : > { %12658 = vmatprep.subr.bf16.mxu0 %v13517_v27  ;;  %v13525_v6 = vld [vmem:[%s17447_s4 + $0xe0] sm:$0xff]   ;;  %v13529_v34 = vld [vmem:[%s17447_s4 + $0xd8] sm:$0xff]   ;;  %v13533_v24 = vld [vmem:[%s17447_s4 + $0xd0] sm:$0xff]   ;;  %p13778_p1 = scmp.ne.s32.totalorder %s17381_s28, %s13777_s11  ;;  %s13781_s12 = sshll.u32 %s13874_s13, 4  ;;  %s13782_s12 = int_to_ptr.vmem [resolvable:$false] %s13781_s12 }
 0x348   : > { %v13526_v49 = vld [vmem:[%s17447_s4 + $0x20] sm:$0xff]   ;;  %v13530_v51 = vld [vmem:[%s17447_s4 + $0x18] sm:$0xff]   ;;  %v13534_v53 = vld [vmem:[%s17447_s4 + $0x10] sm:$0xff]   ;;  %s13783_s10 = scalar_lea.vmem %s13782_s12, 8192  ;;  %p13784_p5 = scmp.lt.s32.totalorder %s17381_s28, %s13782_s12 }
 0x349   : > { %12547 = vmatpush3.bf16.msra.mxu1 %v13518_v17  ;;  %v13527_v55 = vld [vmem:[%s17447_s4 + $0xa0] sm:$0xff]   ;;  %v13531_v12 = vld [vmem:[%s17447_s4 + $0x98] sm:$0xff]   ;;  %v13535_v38 = vld [vmem:[%s17447_s4 + $0x90] sm:$0xff]   ;;  %p13779_p2 = pnand %p13778_p1, %p13968_p3  ;;  %p13785_p6 = scmp.lt.s32.totalorder %s13783_s10, %s13777_s11 }
 0x34a   : > { %12659 = vmatpush3.bf16.msra.mxu0 %v13519_v58  ;;  %12548 = vmatprep.subr.bf16.mxu1 %v13520_v29  ;;  %v13536_v44 = vld [vmem:[%s17447_s4 + $0x48] sm:$0xff]   ;;  %v13540_v15 = vld [vmem:[%s17447_s4 + $0x40] sm:$0xff]   ;;  %v7485_v28 = vld [vmem:[#allocation2 + $0x14] sm:$0xf] }
 0x34b   : > { %12660 = vmatprep.subr.bf16.mxu0 %v13521_v37  ;;  %v13537_v62 = vld [vmem:[%s17447_s4 + $0xc8] sm:$0xff]   ;;  %v13541_v7 = vld [vmem:[%s17447_s4 + $0xc0] sm:$0xff]   ;;  %v7486_v26 = vld [vmem:[#allocation2 + $0x18] sm:$0xf]  ;;  %7517 = vst [vmem:[#allocation4 + $0xc] sm:$0xf] %v7485_v28  ;;  %p13780_p4 = pneg %p13779_p2  ;;  %p13786_p7 = por %p13785_p6, %p13784_p5 }
 0x34c   : > { %v13538_v52 = vld [vmem:[%s17447_s4 + $0x8] sm:$0xff]   ;;  %v13542_v45 = vld [vmem:[%s17447_s4] sm:$0xff]   ;;  %v13550_v56 = vld [vmem:[%s17447_s4 + $0x178] sm:$0xff]   ;;  %7518 = vst [vmem:[#allocation4 + $0x30] sm:$0xf] %v7486_v26 }
 0x34d   : > { %12549 = vmatpush3.bf16.msra.mxu1 %v13522_v36  ;;  %v13539_v21 = vld [vmem:[%s17447_s4 + $0x88] sm:$0xff]   ;;  %v13543_v54 = vld [vmem:[%s17447_s4 + $0x80] sm:$0xff]   ;;  %v6784_v36 = vld [vmem:[#allocation2 + $0x10] sm:$0x1]  ;;  %p13787_p9 = pnand %p13786_p7, %p13780_p4 }
 0x34e   : > { %12661 = vmatpush3.bf16.msra.mxu0 %v13523_v16  ;;  %12550 = vmatprep.subr.bf16.mxu1 %v13524_v0  ;;  %v6716_v25 = vld [vmem:[#allocation2] sm:$0xf]  ;;  %v6717_v3 = vld [vmem:[#allocation2 + $0x4] sm:$0xf]  ;;  %v6782_v32 = vld [vmem:[#allocation2 + $0x8] sm:$0xf] }
 0x34f   : > { %12662 = vmatprep.subr.bf16.mxu0 %v13525_v6  ;;  %v6780_v1 = vld [vmem:[#allocation2] sm:$0xf]  ;;  %6748 = vst [vmem:[#allocation4] sm:$0xf] %v6716_v25  ;;  %6749 = vst [vmem:[#allocation4 + $0x24] sm:$0xf] %v6717_v3 }
 0x350   : > { %v6781_v19 = vld [vmem:[#allocation2 + $0x4] sm:$0xf]  ;;  %v6821_v20 = vshrl.u32 %v6780_v1, 16  ;;  %v6824_v47 = vshll.u32 %v6780_v1, 16  ;;  %v6840_v43 = vshll.u32 %v6782_v32, 16  ;;  %v6844_v42 = vshrl.u32 %v6782_v32, 16 }
 0x351   : > { %12551 = vmatpush3.bf16.msra.mxu1 %v13526_v49  ;;  %v6830_v23 = vshll.u32 %v6781_v19, 16  ;;  %v6834_v46 = vshrl.u32 %v6781_v19, 16  ;;  %v7236_v8 = vld [vmem:[#allocation2] sm:$0xe]  ;;  %v7237_v10 = vld [vmem:[#allocation2 + $0x4] sm:$0xf] }
 0x352   : > { %12663 = vmatpush3.bf16.msra.mxu0 %v13527_v55  ;;  %12552 = vmatprep.subr.bf16.mxu1 %v13528_v30  ;;  %v6823_v41 = vrot.slane %v6821_v20, 4  ;;  %v6826_v2 = vrot.slane %v6824_v47, 5  ;;  %v7238_v4 = vld [vmem:[#allocation2 + $0x8] sm:$0xf]  ;;  %v6842_v22 = vrot.slane %v6840_v43, 5  ;;  %v6846_v11 = vrot.slane %v6844_v42, 4 }
 0x353   : > { %12664 = vmatprep.subr.bf16.mxu0 %v13529_v34  ;;  %v6832_v5 = vrot.slane %v6830_v23, 5  ;;  %v6836_v39 = vrot.slane %v6834_v46, 4  ;;  %v12227_v59 = vrot.slane %v7236_v8, 9  ;;  %v7318_v50 = vrot.slane %v7237_v10, 5  ;;  %v6718_v63 = vld [vmem:[#allocation2 + $0x8] sm:$0xf] }
 0x354   : > { %v6827_v61 = vor.u32 %v6826_v2, %v6823_v41  ;;  %v7321_v35 = vrot.slane %v7238_v4, 5  ;;  %v6847_v40 = vor.u32 %v6846_v11, %v6842_v22  ;;  %v6719_v27 = vld [vmem:[#allocation2 + $0xc] sm:$0xf]  ;;  %6750 = vst [vmem:[#allocation4 + $0x48] sm:$0xf] %v6718_v63  ;;  %v6860_v55 = vshll.u32 %v6784_v36, 16 }
 0x355   : > { %12553 = vmatpush3.bf16.msra.mxu1 %v13530_v51  ;;  %v6837_v9 = vor.u32 %v6836_v39, %v6832_v5  ;;  %v7319_v31 = vsel %vm14091_vm4, %v12227_v59, %v7318_v50  ;;  %v7320_v33 = vrot.slane %v7318_v50, 4  ;;  %6751 = vst [vmem:[#allocation4 + $0x6c] sm:$0xf] %v6719_v27  ;;  %v6783_v37 = vld [vmem:[#allocation2 + $0xc] sm:$0xf]  ;;  %v13551_v46 = vld [vmem:[%s17447_s4 + $0x138] sm:$0xff]  }
 0x356   : > { %12665 = vmatpush3.bf16.msra.mxu0 %v13531_v12  ;;  %12554 = vmatprep.subr.bf16.mxu1 %v13532_v18  ;;  %v6828_v57 = vrot.slane %v6827_v61, 4  ;;  %v7323_v60 = vrot.slane %v7321_v35, 4  ;;  %v6848_v14 = vrot.slane %v6847_v40, 4  ;;  %7452 = vst [vmem:[#allocation4 + $0x8] sm:$0xf] %v7319_v31  ;;  %v6850_v6 = vshll.u32 %v6783_v37, 16 }
 0x357   : > { %12666 = vmatprep.subr.bf16.mxu0 %v13533_v24  ;;  %v6838_v48 = vrot.slane %v6837_v9, 4  ;;  %v7322_v29 = vsel %vm14091_vm4, %v7320_v33, %v7321_v35  ;;  %v7239_v16 = vld [vmem:[#allocation2 + $0xc] sm:$0xf]  ;;  %v6854_v49 = vshrl.u32 %v6783_v37, 16  ;;  %v7240_v30 = vld [vmem:[#allocation2 + $0x10] sm:$0x1] }
 0x358   : > { %v6833_v58 = vsel %vm14101_vm5, %v6828_v57, %v6832_v5  ;;  %7453 = vst [vmem:[#allocation4 + $0x2c] sm:$0xf] %v7322_v29  ;;  %v7324_v34 = vrot.slane %v7239_v16, 5  ;;  %v7327_v51 = vrot.slane %v7240_v30, 5  ;;  %v7487_v12 = vld [vmem:[#allocation2 + $0x1c] sm:$0xf] }
 0x359   : > { %12555 = vmatpush3.bf16.msra.mxu1 %v13534_v53  ;;  %v6843_v0 = vsel %vm14101_vm5, %v6838_v48, %v6842_v22  ;;  %7204 = vst [vmem:[#allocation4 + $0x4] sm:$0xf] %v6833_v58  ;;  %v7488_v18 = vld [vmem:[#allocation2 + $0x20] sm:$0xf]  ;;  %v6852_v24 = vrot.slane %v6850_v6, 5  ;;  %v6856_v53 = vrot.slane %v6854_v49, 4 }
 0x35a   : > { %12667 = vmatpush3.bf16.msra.mxu0 %v13535_v38  ;;  %12556 = vmatprep.subr.bf16.mxu1 %v13536_v44  ;;  %7205 = vst [vmem:[#allocation4 + $0x28] sm:$0xf] %v6843_v0  ;;  %7519 = vst [vmem:[#allocation4 + $0x54] sm:$0xf] %v7487_v12  ;;  %v6720_v38 = vld [vmem:[#allocation2 + $0x14] sm:$0xf] }
 0x35b   : > { %12668 = vmatprep.subr.bf16.mxu0 %v13537_v62  ;;  %7520 = vst [vmem:[#allocation4 + $0x78] sm:$0xf] %v7488_v18  ;;  %v6862_v44 = vrot.slane %v6860_v55, 5  ;;  %v7325_v62 = vsel %vm14091_vm4, %v7323_v60, %v7324_v34  ;;  %6752 = vst [vmem:[#allocation4 + $0x90] sm:$0xf] %v6720_v38  ;;  %v13562_v39 = vld [vmem:[%s17447_s4 + $0x170] sm:$0xff]  }
 0x35c   : > { %7454 = vst [vmem:[#allocation4 + $0x50] sm:$0xf] %v7325_v62  ;;  %v6787_v25 = vld [vmem:[#allocation2 + $0x1c] sm:$0xf]  ;;  %v7241_v23 = vld [vmem:[#allocation2 + $0x14] sm:$0xe] }
 0x35d   : > { %12557 = vmatpush3.bf16.msra.mxu1 %v13538_v52  ;;  %v7326_v52 = vrot.slane %v7324_v34, 4  ;;  %v6884_v47 = vshll.u32 %v6787_v25, 16  ;;  %v6888_v41 = vshrl.u32 %v6787_v25, 16  ;;  %v7242_v2 = vld [vmem:[#allocation2 + $0x18] sm:$0xf]  ;;  %v13563_v60 = vld [vmem:[%s17447_s4 + $0x130] sm:$0xff]  }
 0x35e   : > { %12669 = vmatpush3.bf16.msra.mxu0 %v13539_v21  ;;  %12558 = vmatprep.subr.bf16.mxu1 %v13540_v15  ;;  %v6721_v21 = vld [vmem:[#allocation2 + $0x18] sm:$0xf]  ;;  %v6785_v15 = vld [vmem:[#allocation2 + $0x14] sm:$0xf]  ;;  %v13544_v22 = vld [vmem:[#allocation4] ss:$36 sps:$4 sm:$0xff]  }
 0x35f   : > { %12670 = vmatprep.subr.bf16.mxu0 %v13541_v7  ;;  %v6853_v7 = vsel %vm14101_vm5, %v6848_v14, %v6852_v24  ;;  %6753 = vst [vmem:[#allocation4 + $0xb4] sm:$0xf] %v6721_v21  ;;  %v6865_v3 = vshrl.u32 %v6785_v15, 16  ;;  %v6868_v1 = vshll.u32 %v6785_v15, 16  ;;  %v7328_v19 = vsel %vm14091_vm4, %v7326_v52, %v7327_v51  ;;  %v13547_v10 = vld [vmem:[#allocation4 + $0x8] ss:$36 sps:$4 sm:$0xff]  }
 0x360   : > { %7206 = vst [vmem:[#allocation4 + $0x4c] sm:$0xf] %v6853_v7  ;;  %7455 = vst [vmem:[#allocation4 + $0x74] sm:$0xf] %v7328_v19  ;;  %v6886_v59 = vrot.slane %v6884_v47, 5  ;;  %v7331_v9 = vrot.slane %v7242_v2, 5 }
 0x361   : > { %12559 = vmatpush3.bf16.msra.mxu1 %v13542_v45  ;;  %v6857_v45 = vor.u32 %v6856_v53, %v6852_v24  ;;  %v6867_v42 = vrot.slane %v6865_v3, 4  ;;  %v6870_v8 = vrot.slane %v6868_v1, 5  ;;  %v13546_v11 = vld [vmem:[#allocation4 + $0x4] ss:$36 sps:$4 sm:$0xff]   ;;  %v13549_v50 = vld [vmem:[#allocation4 + $0xc] ss:$36 sps:$4 sm:$0xff]  }
 0x362   : > { %12671 = vmatpush3.bf16.msra.mxu0 %v13543_v54  ;;  %12768 = vmatprep.subr.bf16.mxu1 %v13550_v56  ;;  %v6786_v54 = vld [vmem:[#allocation2 + $0x18] sm:$0xf]  ;;  %v7243_v26 = vld [vmem:[#allocation2 + $0x1c] sm:$0xf]  ;;  %v12228_v56 = vrot.slane %v7241_v23, 9  ;;  %v7333_v63 = vrot.slane %v7331_v9, 4 }
 0x363   : > { %v6874_v32 = vshll.u32 %v6786_v54, 16  ;;  %v6878_v20 = vshrl.u32 %v6786_v54, 16  ;;  %v6858_v43 = vrot.slane %v6857_v45, 4  ;;  %v6871_v61 = vor.u32 %v6870_v8, %v6867_v42  ;;  %10526 = vmatprep.mubr.bf16.mxu1 %v13546_v11  ;;  %v7489_v31 = vld [vmem:[#allocation2 + $0x28] sm:$0xf]  ;;  %10687 = vmatprep.mubr.bf16.mxu0 %v13549_v50 }
 0x364   : > { %v7334_v57 = vrot.slane %v7243_v26, 5  ;;  %v7490_v33 = vld [vmem:[#allocation2 + $0x2c] sm:$0xf]  ;;  %10527 = vmatmul.mubr.bf16.vlgmr.msra.gmra.mxu1 %v13544_v22  ;;  %v7332_v14 = vsel %vm14091_vm4, %v12228_v56, %v7331_v9  ;;  %7521 = vst [vmem:[#allocation4 + $0x9c] sm:$0xf] %v7489_v31  ;;  %v6890_v27 = vrot.slane %v6888_v41, 4 }
 0x365   : > { %v6876_v4 = vrot.slane %v6874_v32, 5  ;;  %v6880_v5 = vrot.slane %v6878_v20, 4  ;;  %v6863_v28 = vsel %vm14101_vm5, %v6858_v43, %v6862_v44  ;;  %v6872_v40 = vrot.slane %v6871_v61, 4  ;;  %7522 = vst [vmem:[#allocation4 + $0xc0] sm:$0xf] %v7490_v33  ;;  %10688 = vmatmul.mubr.bf16.vlgmr.msra.gmra.mxu0 %v13547_v10  ;;  %12769 = vmatpush3.bf16.msra.mxu1 %v13551_v46  ;;  %v13574_v29 = vld [vmem:[%s17447_s4 + $0x168] sm:$0xff]  }
 0x366   : > { %7207 = vst [vmem:[#allocation4 + $0x70] sm:$0xf] %v6863_v28  ;;  %7456 = vst [vmem:[#allocation4 + $0x98] sm:$0xf] %v7332_v14  ;;  %v13554_v36 = vld [vmem:[#allocation4 + $0x54] ss:$36 sps:$4 sm:$0xff]   ;;  %v7335_v0 = vsel %vm14091_vm4, %v7333_v63, %v7334_v57  ;;  %12770 = vmatprep.subr.bf16.mxu1 %v13562_v39  ;;  %v6891_v6 = vor.u32 %v6890_v27, %v6886_v59 }
 0x367   : > { %v6881_v35 = vor.u32 %v6880_v5, %v6876_v4  ;;  %v6877_v58 = vsel %vm14101_vm5, %v6872_v40, %v6876_v4  ;;  %v9032_v37 = vld [vmem:[#allocation4 + $0x48] sm:$0xff]  ;;  %v7336_v49 = vrot.slane %v7334_v57, 4  ;;  %v13556_v55 = vld [vmem:[#allocation4 + $0x50] ss:$36 sps:$4 sm:$0xff]   ;;  %7457 = vst [vmem:[#allocation4 + $0xbc] sm:$0xf] %v7335_v0  ;;  %10695 = vmatprep.mubr.bf16.mxu0 %v13554_v36 }
 0x368   : > { %7208 = vst [vmem:[#allocation4 + $0x94] sm:$0xf] %v6877_v58  ;;  %v6722_v30 = vld [vmem:[#allocation2 + $0x1c] sm:$0xf]  ;;  %v6723_v34 = vld [vmem:[#allocation2 + $0x20] sm:$0xf] }
 0x369   : > { %v6882_v48 = vrot.slane %v6881_v35, 4  ;;  %6754 = vst [vmem:[#allocation4 + $0xd8] sm:$0xf] %v6722_v30  ;;  %6755 = vst [vmem:[#allocation4 + $0xfc] sm:$0xf] %v6723_v34  ;;  %v6892_v18 = vrot.slane %v6891_v6, 4  ;;  %12771 = vmatpush3.bf16.msra.mxu1 %v13563_v60 }
 0x36a   : > { %v6788_v51 = vld [vmem:[#allocation2 + $0x20] sm:$0xf]  ;;  %v6789_v12 = vld [vmem:[#allocation2 + $0x24] sm:$0x1]  ;;  %v13575_v24 = vld [vmem:[%s17447_s4 + $0x128] sm:$0xff]   ;;  %12772 = vmatprep.subr.bf16.mxu1 %v13574_v29 }
 0x36b   : > { %v6887_v16 = vsel %vm14101_vm5, %v6882_v48, %v6886_v59  ;;  %v6894_v44 = vshll.u32 %v6788_v51, 16  ;;  %v6898_v62 = vshrl.u32 %v6788_v51, 16  ;;  %v6904_v52 = vshll.u32 %v6789_v12, 16  ;;  %v7244_v15 = vld [vmem:[#allocation2 + $0x20] sm:$0xf]  ;;  %v13593_v51 = vld [vmem:[%s17447_s4 + $0x1f8] sm:$0xff]  }
 0x36c   : > { %7209 = vst [vmem:[#allocation4 + $0xb8] sm:$0xf] %v6887_v16  ;;  %v7245_v7 = vld [vmem:[#allocation2 + $0x24] sm:$0x1]  ;;  %v7491_v45 = vld [vmem:[#allocation2 + $0x30] sm:$0xf]  ;;  %12880 = vmatprep.subr.bf16.mxu0 %v13593_v51 }
 0x36d   : > { %v9037_v53 = vld [vmem:[#allocation4 + $0x6c] sm:$0xff]  ;;  %v6896_v54 = vrot.slane %v6894_v44, 5  ;;  %v6900_v25 = vrot.slane %v6898_v62, 4  ;;  %v6906_v3 = vrot.slane %v6904_v52, 5  ;;  %v7337_v1 = vrot.slane %v7244_v15, 5  ;;  %10696 = vmatmul.mubr.bf16.gmra.mxu0 %v13556_v55  ;;  %12773 = vmatpush3.bf16.msra.mxu1 %v13575_v24  ;;  %v13586_v40 = vld [vmem:[%s17447_s4 + $0x160] sm:$0xff]  }
 0x36e   : > { %v13552_v38 = vld [vmem:[#allocation4 + $0x4c] ss:$36 sps:$4 sm:$0xff]   ;;  %v12260_v21 = vcombine.low %v9032_v37, %v9037_v53  ;;  %7523 = vst [vmem:[#allocation4 + $0xe4] sm:$0xf] %v7491_v45  ;;  %v7340_v32 = vrot.slane %v7245_v7, 5  ;;  %v13587_v14 = vld [vmem:[%s17447_s4 + $0x120] sm:$0xff]   ;;  %12774 = vmatprep.subr.bf16.mxu1 %v13586_v40 }
 0x36f   : > { %10534 = vmatprep.mubr.bf16.mxu1 %v13552_v38  ;;  %v7492_v19 = vld [vmem:[#allocation2 + $0x34] sm:$0xf]  ;;  %v6724_v20 = vld [vmem:[#allocation2 + $0x28] sm:$0xf]  ;;  %v6725_v47 = vld [vmem:[#allocation2 + $0x2c] sm:$0xf]  ;;  %v6897_v46 = vsel %vm14101_vm5, %v6892_v18, %v6896_v54  ;;  %v6901_v43 = vor.u32 %v6900_v25, %v6896_v54  ;;  %v7338_v42 = vsel %vm14091_vm4, %v7336_v49, %v7337_v1 }
 0x370   : > { %10535 = vmatmul.mubr.bf16.gmra.mxu1 %v12260_v21  ;;  %7524 = vst [vmem:[#allocation4 + $0x108] sm:$0xf] %v7492_v19  ;;  %v9042_v23 = vld [vmem:[#allocation4 + $0x90] sm:$0xff]  ;;  %v7339_v8 = vrot.slane %v7337_v1, 4  ;;  %6756 = vst [vmem:[#allocation4 + $0x120] sm:$0xf] %v6724_v20 }
 0x371   : > { %6757 = vst [vmem:[#allocation4 + $0x144] sm:$0xf] %v6725_v47  ;;  %v6790_v41 = vld [vmem:[#allocation2 + $0x28] sm:$0xf]  ;;  %v6791_v2 = vld [vmem:[#allocation2 + $0x2c] sm:$0xf]  ;;  %12775 = vmatpush3.bf16.msra.mxu1 %v13587_v14 }
 0x372   : > { %7210 = vst [vmem:[#allocation4 + $0xdc] sm:$0xf] %v6897_v46  ;;  %7458 = vst [vmem:[#allocation4 + $0xe0] sm:$0xf] %v7338_v42  ;;  %v6909_v5 = vshrl.u32 %v6790_v41, 16  ;;  %v6912_v39 = vshll.u32 %v6790_v41, 16  ;;  %v7341_v61 = vsel %vm14091_vm4, %v7339_v8, %v7340_v32 }
 0x373   : > { %v9047_v10 = vld [vmem:[#allocation4 + $0xb4] sm:$0xff]  ;;  %v13559_v22 = vld [vmem:[#allocation4 + $0x9c] ss:$36 sps:$4 sm:$0xff]   ;;  %v6902_v28 = vrot.slane %v6901_v43, 4  ;;  %v6918_v59 = vshll.u32 %v6791_v2, 16  ;;  %v6922_v9 = vshrl.u32 %v6791_v2, 16 }
 0x374   : > { %v13557_v4 = vld [vmem:[#allocation4 + $0x94] ss:$36 sps:$4 sm:$0xff]   ;;  %v12269_v50 = vcombine.low %v9042_v23, %v9047_v10  ;;  %7459 = vst [vmem:[#allocation4 + $0x104] sm:$0xf] %v7341_v61  ;;  %v6792_v35 = vld [vmem:[#allocation2 + $0x30] sm:$0xf]  ;;  %10703 = vmatprep.mubr.bf16.mxu0 %v13559_v22 }
 0x375   : > { %v13561_v11 = vld [vmem:[#allocation4 + $0x98] ss:$36 sps:$4 sm:$0xff]   ;;  %10542 = vmatprep.mubr.bf16.mxu1 %v13557_v4  ;;  %v6911_v26 = vrot.slane %v6909_v5, 4  ;;  %v6914_v56 = vrot.slane %v6912_v39, 5  ;;  %v6907_v57 = vsel %vm14101_vm5, %v6902_v28, %v6906_v3  ;;  %v6920_v31 = vrot.slane %v6918_v59, 5  ;;  %v13594_v52 = vld [vmem:[%s17447_s4 + $0x1b8] sm:$0xff]  }
 0x376   : > { %v6928_v33 = vshll.u32 %v6792_v35, 16  ;;  %v6932_v60 = vshrl.u32 %v6792_v35, 16  ;;  %v7246_v48 = vld [vmem:[#allocation2 + $0x28] sm:$0xe]  ;;  %7211 = vst [vmem:[#allocation4 + $0x100] sm:$0xf] %v6907_v57  ;;  %10704 = vmatmul.mubr.bf16.gmra.mxu0 %v13561_v11 }
 0x377   : > { %v6915_v63 = vor.u32 %v6914_v56, %v6911_v26  ;;  %v6924_v27 = vrot.slane %v6922_v9, 4  ;;  %v7247_v58 = vld [vmem:[#allocation2 + $0x2c] sm:$0xf]  ;;  %v7248_v29 = vld [vmem:[#allocation2 + $0x30] sm:$0xf]  ;;  %v12229_v37 = vrot.slane %v7246_v48, 9  ;;  %12881 = vmatpush3.bf16.msra.mxu0 %v13594_v52 }
 0x378   : > { %v6930_v36 = vrot.slane %v6928_v33, 5  ;;  %v7344_v16 = vrot.slane %v7247_v58, 5  ;;  %v7347_v0 = vrot.slane %v7248_v29, 5  ;;  %v7493_v6 = vld [vmem:[#allocation2 + $0x3c] sm:$0xf]  ;;  %v6934_v49 = vrot.slane %v6932_v60, 4  ;;  %10543 = vmatmul.mubr.bf16.gmra.mxu1 %v12269_v50 }
 0x379   : > { %v6916_v55 = vrot.slane %v6915_v63, 4  ;;  %v6925_v30 = vor.u32 %v6924_v27, %v6920_v31  ;;  %v7494_v34 = vld [vmem:[#allocation2 + $0x40] sm:$0xf]  ;;  %7525 = vst [vmem:[#allocation4 + $0x12c] sm:$0xf] %v7493_v6  ;;  %v13600_v5 = vld [vmem:[%s17447_s4 + $0x158] sm:$0xff]  }
 0x37a   : > { %v9052_v12 = vld [vmem:[#allocation4 + $0xd8] sm:$0xff]  ;;  %v7345_v18 = vsel %vm14091_vm4, %v12229_v37, %v7344_v16  ;;  %v7346_v24 = vrot.slane %v7344_v16, 4  ;;  %7526 = vst [vmem:[#allocation4 + $0x150] sm:$0xf] %v7494_v34  ;;  %v6935_v53 = vor.u32 %v6934_v49, %v6930_v36  ;;  %v7349_v38 = vrot.slane %v7347_v0, 4  ;;  %12776 = vmatprep.subr.bf16.mxu1 %v13600_v5 }
 0x37b   : > { %v6921_v44 = vsel %vm14101_vm5, %v6916_v55, %v6920_v31  ;;  %v6926_v62 = vrot.slane %v6925_v30, 4  ;;  %7460 = vst [vmem:[#allocation4 + $0x128] sm:$0xf] %v7345_v18  ;;  %v13566_v21 = vld [vmem:[#allocation4 + $0xe4] ss:$36 sps:$4 sm:$0xff]   ;;  %v13601_v55 = vld [vmem:[%s17447_s4 + $0x118] sm:$0xff]  }
 0x37c   : > { %v13568_v15 = vld [vmem:[#allocation4 + $0xe0] ss:$36 sps:$4 sm:$0xff]   ;;  %7212 = vst [vmem:[#allocation4 + $0x124] sm:$0xf] %v6921_v44  ;;  %v7348_v7 = vsel %vm14091_vm4, %v7346_v24, %v7347_v0  ;;  %v6936_v45 = vrot.slane %v6935_v53, 4  ;;  %10711 = vmatprep.mubr.bf16.mxu0 %v13566_v21  ;;  %12777 = vmatpush3.bf16.msra.mxu1 %v13601_v55 }
 0x37d   : > { %v6931_v54 = vsel %vm14101_vm5, %v6926_v62, %v6930_v36  ;;  %7461 = vst [vmem:[#allocation4 + $0x14c] sm:$0xf] %v7348_v7  ;;  %v6726_v25 = vld [vmem:[#allocation2 + $0x30] sm:$0xf]  ;;  %v6727_v3 = vld [vmem:[#allocation2 + $0x34] sm:$0xf] }
 0x37e   : > { %v6793_v1 = vld [vmem:[#allocation2 + $0x34] sm:$0xf]  ;;  %v9057_v19 = vld [vmem:[#allocation4 + $0xfc] sm:$0xff]  ;;  %7213 = vst [vmem:[#allocation4 + $0x148] sm:$0xf] %v6931_v54  ;;  %10712 = vmatmul.mubr.bf16.gmra.mxu0 %v13568_v15 }
 0x37f   : > { %v13564_v32 = vld [vmem:[#allocation4 + $0xdc] ss:$36 sps:$4 sm:$0xff]   ;;  %6758 = vst [vmem:[#allocation4 + $0x168] sm:$0xf] %v6726_v25  ;;  %6759 = vst [vmem:[#allocation4 + $0x18c] sm:$0xf] %v6727_v3  ;;  %v12278_v23 = vcombine.low %v9052_v12, %v9057_v19 }
 0x380   : > { %v6794_v20 = vld [vmem:[#allocation2 + $0x38] sm:$0x1]  ;;  %v6938_v47 = vshll.u32 %v6793_v1, 16  ;;  %v6942_v46 = vshrl.u32 %v6793_v1, 16  ;;  %v7249_v42 = vld [vmem:[#allocation2 + $0x34] sm:$0xf]  ;;  %10550 = vmatprep.mubr.bf16.mxu1 %v13564_v32 }
 0x381   : > { %v6948_v43 = vshll.u32 %v6794_v20, 16  ;;  %v7250_v8 = vld [vmem:[#allocation2 + $0x38] sm:$0x1]  ;;  %v7350_v2 = vrot.slane %v7249_v42, 5  ;;  %v7495_v4 = vld [vmem:[#allocation2 + $0x44] sm:$0xf]  ;;  %10551 = vmatmul.mubr.bf16.gmra.mxu1 %v12278_v23 }
 0x382   : > { %v6940_v41 = vrot.slane %v6938_v47, 5  ;;  %v7353_v10 = vrot.slane %v7250_v8, 5  ;;  %v6944_v39 = vrot.slane %v6942_v46, 4  ;;  %v7496_v11 = vld [vmem:[#allocation2 + $0x48] sm:$0xf]  ;;  %v13607_v62 = vld [vmem:[%s17447_s4 + $0x1f0] sm:$0xff]  }
 0x383   : > { %v6950_v22 = vrot.slane %v6948_v43, 5  ;;  %7527 = vst [vmem:[#allocation4 + $0x174] sm:$0xf] %v7495_v4  ;;  %v6728_v28 = vld [vmem:[#allocation2 + $0x3c] sm:$0xf]  ;;  %v7351_v59 = vsel %vm14091_vm4, %v7349_v38, %v7350_v2  ;;  %v7352_v50 = vrot.slane %v7350_v2, 4  ;;  %12882 = vmatprep.subr.bf16.mxu0 %v13607_v62 }
 0x384   : > { %v6941_v61 = vsel %vm14101_vm5, %v6936_v45, %v6940_v41  ;;  %7528 = vst [vmem:[#allocation4 + $0x198] sm:$0xf] %v7496_v11  ;;  %v6729_v35 = vld [vmem:[#allocation2 + $0x40] sm:$0xf]  ;;  %6760 = vst [vmem:[#allocation4 + $0x1b0] sm:$0xf] %v6728_v28  ;;  %v6945_v9 = vor.u32 %v6944_v39, %v6940_v41 }
 0x385   : > { %v6795_v26 = vld [vmem:[#allocation2 + $0x3c] sm:$0xf]  ;;  %v9062_v56 = vld [vmem:[#allocation4 + $0x120] sm:$0xff]  ;;  %7214 = vst [vmem:[#allocation4 + $0x16c] sm:$0xf] %v6941_v61  ;;  %v7354_v48 = vsel %vm14091_vm4, %v7352_v50, %v7353_v10  ;;  %v13608_v11 = vld [vmem:[%s17447_s4 + $0x1b0] sm:$0xff]  }
 0x386   : > { %7462 = vst [vmem:[#allocation4 + $0x170] sm:$0xf] %v7351_v59  ;;  %6761 = vst [vmem:[#allocation4 + $0x1d4] sm:$0xf] %v6729_v35  ;;  %v6796_v40 = vld [vmem:[#allocation2 + $0x40] sm:$0xf]  ;;  %12883 = vmatpush3.bf16.msra.mxu0 %v13608_v11 }
 0x387   : > { %v6797_v57 = vld [vmem:[#allocation2 + $0x44] sm:$0xf]  ;;  %v6953_v31 = vshrl.u32 %v6795_v26, 16  ;;  %v13571_v33 = vld [vmem:[#allocation4 + $0x12c] ss:$36 sps:$4 sm:$0xff]   ;;  %v6956_v14 = vshll.u32 %v6795_v26, 16 }
 0x388   : > { %v13573_v60 = vld [vmem:[#allocation4 + $0x128] ss:$36 sps:$4 sm:$0xff]   ;;  %v6946_v58 = vrot.slane %v6945_v9, 4  ;;  %7463 = vst [vmem:[#allocation4 + $0x194] sm:$0xf] %v7354_v48  ;;  %v6962_v37 = vshll.u32 %v6796_v40, 16  ;;  %10719 = vmatprep.mubr.bf16.mxu0 %v13571_v33 }
 0x389   : > { %v9067_v63 = vld [vmem:[#allocation4 + $0x144] sm:$0xff]  ;;  %v6955_v29 = vrot.slane %v6953_v31, 4  ;;  %v6958_v16 = vrot.slane %v6956_v14, 5  ;;  %v6966_v0 = vshrl.u32 %v6796_v40, 16  ;;  %v6972_v6 = vshll.u32 %v6797_v57, 16  ;;  %10720 = vmatmul.mubr.bf16.gmra.mxu0 %v13573_v60 }
 0x38a   : > { %v13569_v27 = vld [vmem:[#allocation4 + $0x124] ss:$36 sps:$4 sm:$0xff]   ;;  %v12287_v36 = vcombine.low %v9062_v56, %v9067_v63  ;;  %v7251_v49 = vld [vmem:[#allocation2 + $0x3c] sm:$0xe]  ;;  %v6951_v30 = vsel %vm14101_vm5, %v6946_v58, %v6950_v22  ;;  %v6964_v34 = vrot.slane %v6962_v37, 5  ;;  %v6976_v51 = vshrl.u32 %v6797_v57, 16 }
 0x38b   : > { %10558 = vmatprep.mubr.bf16.mxu1 %v13569_v27  ;;  %v7252_v12 = vld [vmem:[#allocation2 + $0x40] sm:$0xf]  ;;  %v7253_v18 = vld [vmem:[#allocation2 + $0x44] sm:$0xf]  ;;  %7215 = vst [vmem:[#allocation4 + $0x190] sm:$0xf] %v6951_v30  ;;  %v6959_v24 = vor.u32 %v6958_v16, %v6955_v29 }
 0x38c   : > { %v6968_v53 = vrot.slane %v6966_v0, 4  ;;  %v12230_v38 = vrot.slane %v7251_v49, 9  ;;  %v7497_v44 = vld [vmem:[#allocation2 + $0x50] sm:$0xf]  ;;  %10559 = vmatmul.mubr.bf16.gmra.mxu1 %v12287_v36  ;;  %v7357_v52 = vrot.slane %v7252_v12, 5  ;;  %v7360_v21 = vrot.slane %v7253_v18, 5 }
 0x38d   : > { %v7498_v15 = vld [vmem:[#allocation2 + $0x54] sm:$0xf]  ;;  %7529 = vst [vmem:[#allocation4 + $0x1bc] sm:$0xf] %v7497_v44  ;;  %v6960_v7 = vrot.slane %v6959_v24, 4  ;;  %v6974_v54 = vrot.slane %v6972_v6, 5 }
 0x38e   : > { %v6969_v45 = vor.u32 %v6968_v53, %v6964_v34  ;;  %7530 = vst [vmem:[#allocation4 + $0x1e0] sm:$0xf] %v7498_v15  ;;  %v6978_v25 = vrot.slane %v6976_v51, 4  ;;  %v9072_v3 = vld [vmem:[#allocation4 + $0x168] sm:$0xff]  ;;  %v7358_v1 = vsel %vm14091_vm4, %v12230_v38, %v7357_v52  ;;  %v7359_v19 = vrot.slane %v7357_v52, 4 }
 0x38f   : > { %v7362_v32 = vrot.slane %v7360_v21, 4  ;;  %v13578_v20 = vld [vmem:[#allocation4 + $0x174] ss:$36 sps:$4 sm:$0xff]   ;;  %v6965_v23 = vsel %vm14101_vm5, %v6960_v7, %v6964_v34  ;;  %7464 = vst [vmem:[#allocation4 + $0x1b8] sm:$0xf] %v7358_v1  ;;  %v13614_v57 = vld [vmem:[%s17447_s4 + $0x150] sm:$0xff]  }
 0x390   : > { %v13580_v47 = vld [vmem:[#allocation4 + $0x170] ss:$36 sps:$4 sm:$0xff]   ;;  %v6970_v46 = vrot.slane %v6969_v45, 4  ;;  %v6979_v43 = vor.u32 %v6978_v25, %v6974_v54  ;;  %7216 = vst [vmem:[#allocation4 + $0x1b4] sm:$0xf] %v6965_v23  ;;  %v7361_v42 = vsel %vm14091_vm4, %v7359_v19, %v7360_v21  ;;  %10727 = vmatprep.mubr.bf16.mxu0 %v13578_v20  ;;  %v13615_v29 = vld [vmem:[%s17447_s4 + $0x110] sm:$0xff]   ;;  %12778 = vmatprep.subr.bf16.mxu1 %v13614_v57 }
 0x391   : > { %v6730_v8 = vld [vmem:[#allocation2 + $0x44] sm:$0xf]  ;;  %v6731_v41 = vld [vmem:[#allocation2 + $0x48] sm:$0xf]  ;;  %7465 = vst [vmem:[#allocation4 + $0x1dc] sm:$0xf] %v7361_v42  ;;  %10728 = vmatmul.mubr.bf16.gmra.mxu0 %v13580_v47  ;;  %12779 = vmatpush3.bf16.msra.mxu1 %v13615_v29 }
 0x392   : > { %v6798_v2 = vld [vmem:[#allocation2 + $0x48] sm:$0xf]  ;;  %v6975_v10 = vsel %vm14101_vm5, %v6970_v46, %v6974_v54  ;;  %6762 = vst [vmem:[#allocation4 + $0x1f8] sm:$0xf] %v6730_v8  ;;  %6763 = vst [vmem:[#allocation4 + $0x21c] sm:$0xf] %v6731_v41 }
 0x393   : > { %v6799_v4 = vld [vmem:[#allocation2 + $0x4c] sm:$0x1]  ;;  %v6980_v5 = vrot.slane %v6979_v43, 4  ;;  %v6982_v39 = vshll.u32 %v6798_v2, 16  ;;  %v6986_v22 = vshrl.u32 %v6798_v2, 16  ;;  %v9077_v28 = vld [vmem:[#allocation4 + $0x18c] sm:$0xff] }
 0x394   : > { %v13576_v61 = vld [vmem:[#allocation4 + $0x16c] ss:$36 sps:$4 sm:$0xff]   ;;  %7217 = vst [vmem:[#allocation4 + $0x1d8] sm:$0xf] %v6975_v10  ;;  %v6992_v59 = vshll.u32 %v6799_v4, 16  ;;  %v12296_v35 = vcombine.low %v9072_v3, %v9077_v28 }
 0x395   : > { %v7254_v50 = vld [vmem:[#allocation2 + $0x48] sm:$0xf]  ;;  %v6984_v26 = vrot.slane %v6982_v39, 5  ;;  %v6988_v56 = vrot.slane %v6986_v22, 4  ;;  %v7255_v9 = vld [vmem:[#allocation2 + $0x4c] sm:$0x1]  ;;  %10566 = vmatprep.mubr.bf16.mxu1 %v13576_v61 }
 0x396   : > { %v7363_v40 = vrot.slane %v7254_v50, 5  ;;  %v6994_v31 = vrot.slane %v6992_v59, 5  ;;  %v7366_v33 = vrot.slane %v7255_v9, 5  ;;  %v7499_v60 = vld [vmem:[#allocation2 + $0x58] sm:$0xf]  ;;  %10567 = vmatmul.mubr.bf16.gmra.mxu1 %v12296_v35 }
 0x397   : > { %v7500_v48 = vld [vmem:[#allocation2 + $0x5c] sm:$0xf]  ;;  %v6985_v14 = vsel %vm14101_vm5, %v6980_v5, %v6984_v26  ;;  %v6989_v63 = vor.u32 %v6988_v56, %v6984_v26  ;;  %7531 = vst [vmem:[#allocation4 + $0x204] sm:$0xf] %v7499_v60  ;;  %v6732_v0 = vld [vmem:[#allocation2 + $0x50] sm:$0xf] }
 0x398   : > { %v7364_v27 = vsel %vm14091_vm4, %v7362_v32, %v7363_v40  ;;  %v7365_v58 = vrot.slane %v7363_v40, 4  ;;  %7532 = vst [vmem:[#allocation4 + $0x228] sm:$0xf] %v7500_v48  ;;  %7218 = vst [vmem:[#allocation4 + $0x1fc] sm:$0xf] %v6985_v14  ;;  %v9082_v37 = vld [vmem:[#allocation4 + $0x1b0] sm:$0xff] }
 0x399   : > { %7466 = vst [vmem:[#allocation4 + $0x200] sm:$0xf] %v7364_v27  ;;  %v6990_v36 = vrot.slane %v6989_v63, 4  ;;  %v6733_v6 = vld [vmem:[#allocation2 + $0x54] sm:$0xf] }
 0x39a   : > { %v7367_v16 = vsel %vm14091_vm4, %v7365_v58, %v7366_v33  ;;  %v13583_v49 = vld [vmem:[#allocation4 + $0x1bc] ss:$36 sps:$4 sm:$0xff]   ;;  %6764 = vst [vmem:[#allocation4 + $0x240] sm:$0xf] %v6732_v0  ;;  %6765 = vst [vmem:[#allocation4 + $0x264] sm:$0xf] %v6733_v6 }
 0x39b   : > { %v13585_v55 = vld [vmem:[#allocation4 + $0x1b8] ss:$36 sps:$4 sm:$0xff]   ;;  %7467 = vst [vmem:[#allocation4 + $0x224] sm:$0xf] %v7367_v16  ;;  %v6995_v51 = vsel %vm14101_vm5, %v6990_v36, %v6994_v31  ;;  %v6800_v12 = vld [vmem:[#allocation2 + $0x50] sm:$0xf]  ;;  %10735 = vmatprep.mubr.bf16.mxu0 %v13583_v49 }
 0x39c   : > { %v9087_v30 = vld [vmem:[#allocation4 + $0x1d4] sm:$0xff]  ;;  %7219 = vst [vmem:[#allocation4 + $0x220] sm:$0xf] %v6995_v51  ;;  %v6801_v24 = vld [vmem:[#allocation2 + $0x54] sm:$0xf]  ;;  %v6997_v38 = vshrl.u32 %v6800_v12, 16  ;;  %10736 = vmatmul.mubr.bf16.gmra.mxu0 %v13585_v55 }
 0x39d   : > { %v13581_v34 = vld [vmem:[#allocation4 + $0x1b4] ss:$36 sps:$4 sm:$0xff]   ;;  %v12305_v18 = vcombine.low %v9082_v37, %v9087_v30  ;;  %v6802_v53 = vld [vmem:[#allocation2 + $0x58] sm:$0xf]  ;;  %v7000_v44 = vshll.u32 %v6800_v12, 16  ;;  %v7006_v62 = vshll.u32 %v6801_v24, 16 }
 0x39e   : > { %10574 = vmatprep.mubr.bf16.mxu1 %v13581_v34  ;;  %v7010_v52 = vshrl.u32 %v6801_v24, 16  ;;  %v7016_v21 = vshll.u32 %v6802_v53, 16  ;;  %v7020_v15 = vshrl.u32 %v6802_v53, 16  ;;  %v7256_v7 = vld [vmem:[#allocation2 + $0x50] sm:$0xe]  ;;  %v6999_v45 = vrot.slane %v6997_v38, 4 }
 0x39f   : > { %v7002_v54 = vrot.slane %v7000_v44, 5  ;;  %v7257_v25 = vld [vmem:[#allocation2 + $0x54] sm:$0xf]  ;;  %v7258_v3 = vld [vmem:[#allocation2 + $0x58] sm:$0xf]  ;;  %10575 = vmatmul.mubr.bf16.gmra.mxu1 %v12305_v18  ;;  %v9092_v1 = vld [vmem:[#allocation4 + $0x1f8] sm:$0xff] }
 0x3a0   : > { %v7008_v19 = vrot.slane %v7006_v62, 5  ;;  %v7012_v32 = vrot.slane %v7010_v52, 4  ;;  %v7018_v20 = vrot.slane %v7016_v21, 5  ;;  %v12231_v47 = vrot.slane %v7256_v7, 9  ;;  %v7501_v42 = vld [vmem:[#allocation2 + $0x64] sm:$0xf] }
 0x3a1   : > { %v7003_v23 = vor.u32 %v7002_v54, %v6999_v45  ;;  %v7370_v46 = vrot.slane %v7257_v25, 5  ;;  %v7373_v43 = vrot.slane %v7258_v3, 5  ;;  %v7502_v8 = vld [vmem:[#allocation2 + $0x68] sm:$0xf]  ;;  %v13590_v41 = vld [vmem:[#allocation4 + $0x204] ss:$36 sps:$4 sm:$0xff]  }
 0x3a2   : > { %v13592_v2 = vld [vmem:[#allocation4 + $0x200] ss:$36 sps:$4 sm:$0xff]   ;;  %v7013_v10 = vor.u32 %v7012_v32, %v7008_v19  ;;  %7533 = vst [vmem:[#allocation4 + $0x24c] sm:$0xf] %v7501_v42  ;;  %7534 = vst [vmem:[#allocation4 + $0x270] sm:$0xf] %v7502_v8  ;;  %10743 = vmatprep.mubr.bf16.mxu0 %v13590_v41 }
 0x3a3   : > { %v7022_v4 = vrot.slane %v7020_v15, 4  ;;  %v7004_v5 = vrot.slane %v7003_v23, 4  ;;  %v7371_v39 = vsel %vm14091_vm4, %v12231_v47, %v7370_v46  ;;  %v7372_v22 = vrot.slane %v7370_v46, 4  ;;  %v9097_v11 = vld [vmem:[#allocation4 + $0x21c] sm:$0xff]  ;;  %v6734_v56 = vld [vmem:[#allocation2 + $0x58] sm:$0xf] }
 0x3a4   : > { %v13588_v28 = vld [vmem:[#allocation4 + $0x1fc] ss:$36 sps:$4 sm:$0xff]   ;;  %v7014_v61 = vrot.slane %v7013_v10, 4  ;;  %7468 = vst [vmem:[#allocation4 + $0x248] sm:$0xf] %v7371_v39  ;;  %v12314_v50 = vcombine.low %v9092_v1, %v9097_v11  ;;  %v7375_v60 = vrot.slane %v7373_v43, 4  ;;  %10744 = vmatmul.mubr.bf16.gmra.mxu0 %v13592_v2 }
 0x3a5   : > { %v7023_v59 = vor.u32 %v7022_v4, %v7018_v20  ;;  %v7009_v35 = vsel %vm14101_vm5, %v7004_v5, %v7008_v19  ;;  %v7374_v26 = vsel %vm14091_vm4, %v7372_v22, %v7373_v43  ;;  %v6735_v9 = vld [vmem:[#allocation2 + $0x5c] sm:$0xf]  ;;  %10582 = vmatprep.mubr.bf16.mxu1 %v13588_v28  ;;  %6766 = vst [vmem:[#allocation4 + $0x288] sm:$0xf] %v6734_v56  ;;  %v6804_v31 = vld [vmem:[#allocation2 + $0x60] sm:$0x1] }
 0x3a6   : > { %v7019_v40 = vsel %vm14101_vm5, %v7014_v61, %v7018_v20  ;;  %7220 = vst [vmem:[#allocation4 + $0x244] sm:$0xf] %v7009_v35  ;;  %7469 = vst [vmem:[#allocation4 + $0x26c] sm:$0xf] %v7374_v26  ;;  %v6803_v57 = vld [vmem:[#allocation2 + $0x5c] sm:$0xf] }
 0x3a7   : > { %6767 = vst [vmem:[#allocation4 + $0x2ac] sm:$0xf] %v6735_v9  ;;  %v7024_v33 = vrot.slane %v7023_v59, 4  ;;  %7221 = vst [vmem:[#allocation4 + $0x268] sm:$0xf] %v7019_v40  ;;  %v7026_v48 = vshll.u32 %v6803_v57, 16  ;;  %10583 = vmatmul.mubr.bf16.gmra.mxu1 %v12314_v50 }
 0x3a8   : > { %v7030_v14 = vshrl.u32 %v6803_v57, 16  ;;  %v7036_v63 = vshll.u32 %v6804_v31, 16  ;;  %v7259_v27 = vld [vmem:[#allocation2 + $0x5c] sm:$0xf]  ;;  %v13621_v58 = vld [vmem:[%s17447_s4 + $0x1e8] sm:$0xff]  }
 0x3a9   : > { %v7260_v29 = vld [vmem:[#allocation2 + $0x60] sm:$0x1]  ;;  %v7376_v37 = vrot.slane %v7259_v27, 5  ;;  %v7503_v36 = vld [vmem:[#allocation2 + $0x6c] sm:$0xf]  ;;  %v7028_v0 = vrot.slane %v7026_v48, 5  ;;  %12884 = vmatprep.subr.bf16.mxu0 %v13621_v58 }
 0x3aa   : > { %v13622_v16 = vld [vmem:[%s17447_s4 + $0x1a8] sm:$0xff]   ;;  %v7032_v6 = vrot.slane %v7030_v14, 4  ;;  %v7379_v49 = vrot.slane %v7260_v29, 5  ;;  %v7504_v55 = vld [vmem:[#allocation2 + $0x70] sm:$0xf]  ;;  %v7038_v24 = vrot.slane %v7036_v63, 5 }
 0x3ab   : > { %7535 = vst [vmem:[#allocation4 + $0x294] sm:$0xf] %v7503_v36  ;;  %v7377_v30 = vsel %vm14091_vm4, %v7375_v60, %v7376_v37  ;;  %v7378_v34 = vrot.slane %v7376_v37, 4  ;;  %7536 = vst [vmem:[#allocation4 + $0x2b8] sm:$0xf] %v7504_v55  ;;  %12885 = vmatpush3.bf16.msra.mxu0 %v13622_v16  ;;  %v13628_v51 = vld [vmem:[%s17447_s4 + $0x148] sm:$0xff]   ;;  %v7029_v12 = vsel %vm14101_vm5, %v7024_v33, %v7028_v0 }
 0x3ac   : > { %v7033_v18 = vor.u32 %v7032_v6, %v7028_v0  ;;  %7470 = vst [vmem:[#allocation4 + $0x290] sm:$0xf] %v7377_v30  ;;  %7222 = vst [vmem:[#allocation4 + $0x28c] sm:$0xf] %v7029_v12  ;;  %v6736_v38 = vld [vmem:[#allocation2 + $0x64] sm:$0xf]  ;;  %12780 = vmatprep.subr.bf16.mxu1 %v13628_v51 }
 0x3ad   : > { %v7380_v53 = vsel %vm14091_vm4, %v7378_v34, %v7379_v49  ;;  %v6737_v44 = vld [vmem:[#allocation2 + $0x68] sm:$0xf]  ;;  %v6805_v62 = vld [vmem:[#allocation2 + $0x64] sm:$0xf]  ;;  %v13597_v21 = vld [vmem:[#allocation4 + $0x24c] ss:$36 sps:$4 sm:$0xff]  }
 0x3ae   : > { %v9102_v52 = vld [vmem:[#allocation4 + $0x240] sm:$0xff]  ;;  %v7034_v15 = vrot.slane %v7033_v18, 4  ;;  %7471 = vst [vmem:[#allocation4 + $0x2b4] sm:$0xf] %v7380_v53  ;;  %6768 = vst [vmem:[#allocation4 + $0x2d0] sm:$0xf] %v6736_v38  ;;  %10751 = vmatprep.mubr.bf16.mxu0 %v13597_v21 }
 0x3af   : > { %6769 = vst [vmem:[#allocation4 + $0x2f4] sm:$0xf] %v6737_v44  ;;  %v7041_v7 = vshrl.u32 %v6805_v62, 16  ;;  %v9107_v45 = vld [vmem:[#allocation4 + $0x264] sm:$0xff]  ;;  %v7044_v3 = vshll.u32 %v6805_v62, 16  ;;  %v13635_v58 = vld [vmem:[%s17447_s4 + $0x1e0] sm:$0xff]  }
 0x3b0   : > { %v13595_v54 = vld [vmem:[#allocation4 + $0x244] ss:$36 sps:$4 sm:$0xff]   ;;  %v12323_v1 = vcombine.low %v9102_v52, %v9107_v45  ;;  %v7039_v19 = vsel %vm14101_vm5, %v7034_v15, %v7038_v24  ;;  %v6806_v32 = vld [vmem:[#allocation2 + $0x68] sm:$0xf]  ;;  %v7261_v41 = vld [vmem:[#allocation2 + $0x64] sm:$0xe]  ;;  %12886 = vmatprep.subr.bf16.mxu0 %v13635_v58 }
 0x3b1   : > { %v13599_v25 = vld [vmem:[#allocation4 + $0x248] ss:$36 sps:$4 sm:$0xff]   ;;  %v6807_v20 = vld [vmem:[#allocation2 + $0x6c] sm:$0xf]  ;;  %v7043_v47 = vrot.slane %v7041_v7, 4  ;;  %10590 = vmatprep.mubr.bf16.mxu1 %v13595_v54  ;;  %v7046_v46 = vrot.slane %v7044_v3, 5 }
 0x3b2   : > { %v13629_v23 = vld [vmem:[%s17447_s4 + $0x108] sm:$0xff]   ;;  %10752 = vmatmul.mubr.bf16.gmra.mxu0 %v13599_v25  ;;  %7223 = vst [vmem:[#allocation4 + $0x2b0] sm:$0xf] %v7039_v19  ;;  %v7050_v43 = vshll.u32 %v6806_v32, 16  ;;  %v7054_v42 = vshrl.u32 %v6806_v32, 16  ;;  %v7060_v8 = vshll.u32 %v6807_v20, 16  ;;  %10591 = vmatmul.mubr.bf16.gmra.mxu1 %v12323_v1 }
 0x3b3   : > { %v7064_v2 = vshrl.u32 %v6807_v20, 16  ;;  %v7262_v10 = vld [vmem:[#allocation2 + $0x68] sm:$0xf]  ;;  %v7263_v4 = vld [vmem:[#allocation2 + $0x6c] sm:$0xf]  ;;  %v12232_v5 = vrot.slane %v7261_v41, 9  ;;  %v7047_v39 = vor.u32 %v7046_v46, %v7043_v47  ;;  %12781 = vmatpush3.bf16.msra.mxu1 %v13629_v23 }
 0x3b4   : > { %v7052_v22 = vrot.slane %v7050_v43, 5  ;;  %v7056_v11 = vrot.slane %v7054_v42, 4  ;;  %v7062_v28 = vrot.slane %v7060_v8, 5  ;;  %v7505_v61 = vld [vmem:[#allocation2 + $0x78] sm:$0xf]  ;;  %v9112_v59 = vld [vmem:[#allocation4 + $0x288] sm:$0xff] }
 0x3b5   : > { %v7383_v50 = vrot.slane %v7262_v10, 5  ;;  %v7386_v35 = vrot.slane %v7263_v4, 5  ;;  %v7506_v26 = vld [vmem:[#allocation2 + $0x7c] sm:$0xf]  ;;  %7537 = vst [vmem:[#allocation4 + $0x2dc] sm:$0xf] %v7505_v61 }
 0x3b6   : > { %v7066_v56 = vrot.slane %v7064_v2, 4  ;;  %v13604_v9 = vld [vmem:[#allocation4 + $0x294] ss:$36 sps:$4 sm:$0xff]   ;;  %v7048_v57 = vrot.slane %v7047_v39, 4  ;;  %v7057_v31 = vor.u32 %v7056_v11, %v7052_v22  ;;  %7538 = vst [vmem:[#allocation4 + $0x300] sm:$0xf] %v7506_v26 }
 0x3b7   : > { %v13606_v40 = vld [vmem:[#allocation4 + $0x290] ss:$36 sps:$4 sm:$0xff]   ;;  %v7384_v33 = vsel %vm14091_vm4, %v12232_v5, %v7383_v50  ;;  %v7385_v60 = vrot.slane %v7383_v50, 4  ;;  %v7388_v14 = vrot.slane %v7386_v35, 4  ;;  %10759 = vmatprep.mubr.bf16.mxu0 %v13604_v9  ;;  %v6738_v16 = vld [vmem:[#allocation2 + $0x6c] sm:$0xf] }
 0x3b8   : > { %v7067_v48 = vor.u32 %v7066_v56, %v7062_v28  ;;  %v7053_v63 = vsel %vm14101_vm5, %v7048_v57, %v7052_v22  ;;  %v7058_v27 = vrot.slane %v7057_v31, 4  ;;  %7472 = vst [vmem:[#allocation4 + $0x2d8] sm:$0xf] %v7384_v33  ;;  %v6739_v55 = vld [vmem:[#allocation2 + $0x70] sm:$0xf]  ;;  %v13636_v53 = vld [vmem:[%s17447_s4 + $0x1a0] sm:$0xff]  }
 0x3b9   : > { %v9117_v29 = vld [vmem:[#allocation4 + $0x2ac] sm:$0xff]  ;;  %7224 = vst [vmem:[#allocation4 + $0x2d4] sm:$0xf] %v7053_v63  ;;  %v7387_v36 = vsel %vm14091_vm4, %v7385_v60, %v7386_v35  ;;  %6770 = vst [vmem:[#allocation4 + $0x318] sm:$0xf] %v6738_v16  ;;  %v13642_v52 = vld [vmem:[%s17447_s4 + $0x140] sm:$0xff]   ;;  %12887 = vmatpush3.bf16.msra.mxu0 %v13636_v53 }
 0x3ba   : > { %v13602_v37 = vld [vmem:[#allocation4 + $0x28c] ss:$36 sps:$4 sm:$0xff]   ;;  %v7068_v0 = vrot.slane %v7067_v48, 4  ;;  %v12332_v6 = vcombine.low %v9112_v59, %v9117_v29  ;;  %10760 = vmatmul.mubr.bf16.gmra.mxu0 %v13606_v40  ;;  %v7063_v49 = vsel %vm14101_vm5, %v7058_v27, %v7062_v28  ;;  %7473 = vst [vmem:[#allocation4 + $0x2fc] sm:$0xf] %v7387_v36  ;;  %12782 = vmatprep.subr.bf16.mxu1 %v13642_v52  ;;  %v13643_v3 = vld [vmem:[%s17447_s4 + $0x100] sm:$0xff]  }
 0x3bb   : > { %v6808_v30 = vld [vmem:[#allocation2 + $0x70] sm:$0xf]  ;;  %v6809_v34 = vld [vmem:[#allocation2 + $0x74] sm:$0x1]  ;;  %10598 = vmatprep.mubr.bf16.mxu1 %v13602_v37  ;;  %7225 = vst [vmem:[#allocation4 + $0x2f8] sm:$0xf] %v7063_v49  ;;  %12783 = vmatpush3.bf16.msra.mxu1 %v13643_v3 }
 0x3bc   : > { %6771 = vst [vmem:[#allocation4 + $0x33c] sm:$0xf] %v6739_v55  ;;  %v7070_v51 = vshll.u32 %v6808_v30, 16  ;;  %v7074_v12 = vshrl.u32 %v6808_v30, 16  ;;  %v7080_v18 = vshll.u32 %v6809_v34, 16  ;;  %10599 = vmatmul.mubr.bf16.gmra.mxu1 %v12332_v6 }
 0x3bd   : > { %v7264_v24 = vld [vmem:[#allocation2 + $0x70] sm:$0xf]  ;;  %v7265_v38 = vld [vmem:[#allocation2 + $0x74] sm:$0x1]  ;;  %v7507_v62 = vld [vmem:[#allocation2 + $0x80] sm:$0xf] }
 0x3be   : > { %v7389_v44 = vrot.slane %v7264_v24, 5  ;;  %v7072_v21 = vrot.slane %v7070_v51, 5  ;;  %v7076_v15 = vrot.slane %v7074_v12, 4  ;;  %v7392_v7 = vrot.slane %v7265_v38, 5  ;;  %v7508_v45 = vld [vmem:[#allocation2 + $0x84] sm:$0xf] }
 0x3bf   : > { %7539 = vst [vmem:[#allocation4 + $0x324] sm:$0xf] %v7507_v62  ;;  %7540 = vst [vmem:[#allocation4 + $0x348] sm:$0xf] %v7508_v45  ;;  %v7082_v32 = vrot.slane %v7080_v18, 5 }
 0x3c0   : > { %v7390_v54 = vsel %vm14091_vm4, %v7388_v14, %v7389_v44  ;;  %v7391_v25 = vrot.slane %v7389_v44, 4  ;;  %v7073_v1 = vsel %vm14101_vm5, %v7068_v0, %v7072_v21  ;;  %v7077_v19 = vor.u32 %v7076_v15, %v7072_v21  ;;  %v9122_v20 = vld [vmem:[#allocation4 + $0x2d0] sm:$0xff]  ;;  %v13611_v43 = vld [vmem:[#allocation4 + $0x2dc] ss:$36 sps:$4 sm:$0xff]   ;;  %v6812_v22 = vld [vmem:[#allocation2 + $0x80] sm:$0xf] }
 0x3c1   : > { %7474 = vst [vmem:[#allocation4 + $0x320] sm:$0xf] %v7390_v54  ;;  %7226 = vst [vmem:[#allocation4 + $0x31c] sm:$0xf] %v7073_v1  ;;  %v6740_v23 = vld [vmem:[#allocation2 + $0x78] sm:$0xf]  ;;  %10767 = vmatprep.mubr.bf16.mxu0 %v13611_v43 }
 0x3c2   : > { %v7393_v47 = vsel %vm14091_vm4, %v7391_v25, %v7392_v7  ;;  %v6741_v46 = vld [vmem:[#allocation2 + $0x7c] sm:$0xf]  ;;  %v13613_v42 = vld [vmem:[#allocation4 + $0x2d8] ss:$36 sps:$4 sm:$0xff]   ;;  %v7078_v8 = vrot.slane %v7077_v19, 4  ;;  %v7104_v50 = vshll.u32 %v6812_v22, 16 }
 0x3c3   : > { %7475 = vst [vmem:[#allocation4 + $0x344] sm:$0xf] %v7393_v47  ;;  %6772 = vst [vmem:[#allocation4 + $0x360] sm:$0xf] %v6740_v23  ;;  %v9127_v41 = vld [vmem:[#allocation4 + $0x2f4] sm:$0xff]  ;;  %10768 = vmatmul.mubr.bf16.gmra.mxu0 %v13613_v42  ;;  %v7108_v35 = vshrl.u32 %v6812_v22, 16 }
 0x3c4   : > { %6773 = vst [vmem:[#allocation4 + $0x384] sm:$0xf] %v6741_v46  ;;  %v13609_v2 = vld [vmem:[#allocation4 + $0x2d4] ss:$36 sps:$4 sm:$0xff]   ;;  %v6810_v10 = vld [vmem:[#allocation2 + $0x78] sm:$0xf]  ;;  %v12341_v4 = vcombine.low %v9122_v20, %v9127_v41  ;;  %v7083_v5 = vsel %vm14101_vm5, %v7078_v8, %v7082_v32 }
 0x3c5   : > { %v6811_v39 = vld [vmem:[#allocation2 + $0x7c] sm:$0xf]  ;;  %v7085_v11 = vshrl.u32 %v6810_v10, 16  ;;  %v7088_v28 = vshll.u32 %v6810_v10, 16  ;;  %10606 = vmatprep.mubr.bf16.mxu1 %v13609_v2  ;;  %7227 = vst [vmem:[#allocation4 + $0x340] sm:$0xf] %v7083_v5 }
 0x3c6   : > { %v7094_v61 = vshll.u32 %v6811_v39, 16  ;;  %v7098_v59 = vshrl.u32 %v6811_v39, 16  ;;  %v7266_v26 = vld [vmem:[#allocation2 + $0x78] sm:$0xe]  ;;  %10607 = vmatmul.mubr.bf16.gmra.mxu1 %v12341_v4  ;;  %v7267_v40 = vld [vmem:[#allocation2 + $0x7c] sm:$0xf] }
 0x3c7   : > { %v7087_v56 = vrot.slane %v7085_v11, 4  ;;  %v7090_v9 = vrot.slane %v7088_v28, 5  ;;  %v7268_v57 = vld [vmem:[#allocation2 + $0x80] sm:$0xf]  ;;  %v7106_v60 = vrot.slane %v7104_v50, 5  ;;  %v12233_v48 = vrot.slane %v7266_v26, 9 }
 0x3c8   : > { %v7096_v31 = vrot.slane %v7094_v61, 5  ;;  %v7100_v33 = vrot.slane %v7098_v59, 4  ;;  %v13644_v14 = vld [vmem:[%s17447_s4 + $0x1d8] sm:$0xff]   ;;  %v9132_v63 = vld [vmem:[#allocation4 + $0x318] sm:$0xff]  ;;  %v7396_v58 = vrot.slane %v7267_v40, 5  ;;  %v7399_v29 = vrot.slane %v7268_v57, 5 }
 0x3c9   : > { %v7091_v27 = vor.u32 %v7090_v9, %v7087_v56  ;;  %v7509_v37 = vld [vmem:[#allocation2 + $0x8c] sm:$0xf]  ;;  %v7110_v36 = vrot.slane %v7108_v35, 4  ;;  %12888 = vmatprep.subr.bf16.mxu0 %v13644_v14  ;;  %v7510_v34 = vld [vmem:[#allocation2 + $0x90] sm:$0xf]  ;;  %v13645_v8 = vld [vmem:[%s17447_s4 + $0x198] sm:$0xff]  }
 0x3ca   : > { %v13618_v16 = vld [vmem:[#allocation4 + $0x324] ss:$36 sps:$4 sm:$0xff]   ;;  %v7101_v6 = vor.u32 %v7100_v33, %v7096_v31  ;;  %7541 = vst [vmem:[#allocation4 + $0x36c] sm:$0xf] %v7509_v37  ;;  %v7397_v55 = vsel %vm14091_vm4, %v12233_v48, %v7396_v58  ;;  %v7398_v30 = vrot.slane %v7396_v58, 4  ;;  %v7401_v18 = vrot.slane %v7399_v29, 4  ;;  %12889 = vmatpush3.bf16.msra.mxu0 %v13645_v8 }
 0x3cb   : > { %v13620_v0 = vld [vmem:[#allocation4 + $0x320] ss:$36 sps:$4 sm:$0xff]   ;;  %v7092_v49 = vrot.slane %v7091_v27, 4  ;;  %v7111_v51 = vor.u32 %v7110_v36, %v7106_v60  ;;  %10775 = vmatprep.mubr.bf16.mxu0 %v13618_v16  ;;  %7476 = vst [vmem:[#allocation4 + $0x368] sm:$0xf] %v7397_v55  ;;  %v13646_v14 = vld [vmem:[%s17447_s4 + $0x1d0] sm:$0xff]  }
 0x3cc   : > { %v7102_v12 = vrot.slane %v7101_v6, 4  ;;  %7542 = vst [vmem:[#allocation4 + $0x390] sm:$0xf] %v7510_v34  ;;  %v9137_v24 = vld [vmem:[#allocation4 + $0x33c] sm:$0xff]  ;;  %v7400_v44 = vsel %vm14091_vm4, %v7398_v30, %v7399_v29  ;;  %10776 = vmatmul.mubr.bf16.gmra.mxu0 %v13620_v0  ;;  %v6742_v15 = vld [vmem:[#allocation2 + $0x80] sm:$0xf]  ;;  %12890 = vmatprep.subr.bf16.mxu0 %v13646_v14 }
 0x3cd   : > { %v13616_v53 = vld [vmem:[#allocation4 + $0x31c] ss:$36 sps:$4 sm:$0xff]   ;;  %v7097_v38 = vsel %vm14101_vm5, %v7092_v49, %v7096_v31  ;;  %v7112_v62 = vrot.slane %v7111_v51, 4  ;;  %v12350_v52 = vcombine.low %v9132_v63, %v9137_v24  ;;  %7477 = vst [vmem:[#allocation4 + $0x38c] sm:$0xf] %v7400_v44 }
 0x3ce   : > { %v7107_v21 = vsel %vm14101_vm5, %v7102_v12, %v7106_v60  ;;  %7228 = vst [vmem:[#allocation4 + $0x364] sm:$0xf] %v7097_v38  ;;  %v6743_v7 = vld [vmem:[#allocation2 + $0x84] sm:$0xf]  ;;  %10614 = vmatprep.mubr.bf16.mxu1 %v13616_v53  ;;  %6774 = vst [vmem:[#allocation4 + $0x3a8] sm:$0xf] %v6742_v15 }
 0x3cf   : > { %v6813_v45 = vld [vmem:[#allocation2 + $0x84] sm:$0xf]  ;;  %7229 = vst [vmem:[#allocation4 + $0x388] sm:$0xf] %v7107_v21  ;;  %6775 = vst [vmem:[#allocation4 + $0x3cc] sm:$0xf] %v6743_v7  ;;  %10615 = vmatmul.mubr.bf16.gmra.mxu1 %v12350_v52 }
 0x3d0   : > { %v6814_v54 = vld [vmem:[#allocation2 + $0x88] sm:$0x1]  ;;  %v7114_v25 = vshll.u32 %v6813_v45, 16  ;;  %v7118_v3 = vshrl.u32 %v6813_v45, 16  ;;  %v7269_v1 = vld [vmem:[#allocation2 + $0x84] sm:$0xf] }
 0x3d1   : > { %v7124_v19 = vshll.u32 %v6814_v54, 16  ;;  %v7270_v32 = vld [vmem:[#allocation2 + $0x88] sm:$0x1]  ;;  %v7402_v20 = vrot.slane %v7269_v1, 5  ;;  %v7511_v47 = vld [vmem:[#allocation2 + $0x94] sm:$0xf] }
 0x3d2   : > { %v7116_v23 = vrot.slane %v7114_v25, 5  ;;  %v7120_v46 = vrot.slane %v7118_v3, 4  ;;  %v7405_v43 = vrot.slane %v7270_v32, 5  ;;  %v7512_v42 = vld [vmem:[#allocation2 + $0x98] sm:$0xf]  ;;  %v13651_v1 = vld [vmem:[%s17447_s4 + $0x190] sm:$0xff]  }
 0x3d3   : > { %7543 = vst [vmem:[#allocation4 + $0x3b4] sm:$0xf] %v7511_v47  ;;  %v7403_v41 = vsel %vm14091_vm4, %v7401_v18, %v7402_v20  ;;  %v7404_v2 = vrot.slane %v7402_v20, 4  ;;  %7544 = vst [vmem:[#allocation4 + $0x3d8] sm:$0xf] %v7512_v42  ;;  %v7126_v5 = vrot.slane %v7124_v19, 5  ;;  %12891 = vmatpush3.bf16.msra.mxu0 %v13651_v1 }
 0x3d4   : > { %v7117_v10 = vsel %vm14101_vm5, %v7112_v62, %v7116_v23  ;;  %v7121_v4 = vor.u32 %v7120_v46, %v7116_v23  ;;  %7478 = vst [vmem:[#allocation4 + $0x3b0] sm:$0xf] %v7403_v41  ;;  %v6744_v22 = vld [vmem:[#allocation2 + $0x8c] sm:$0xf]  ;;  %v6745_v11 = vld [vmem:[#allocation2 + $0x90] sm:$0xf] }
 0x3d5   : > { %7230 = vst [vmem:[#allocation4 + $0x3ac] sm:$0xf] %v7117_v10  ;;  %v7406_v39 = vsel %vm14091_vm4, %v7404_v2, %v7405_v43  ;;  %v6815_v28 = vld [vmem:[#allocation2 + $0x8c] sm:$0xf]  ;;  %v13625_v59 = vld [vmem:[#allocation4 + $0x36c] ss:$36 sps:$4 sm:$0xff]  }
 0x3d6   : > { %v9142_v61 = vld [vmem:[#allocation4 + $0x360] sm:$0xff]  ;;  %v7122_v50 = vrot.slane %v7121_v4, 4  ;;  %7479 = vst [vmem:[#allocation4 + $0x3d4] sm:$0xf] %v7406_v39  ;;  %6776 = vst [vmem:[#allocation4 + $0x3f0] sm:$0xf] %v6744_v22  ;;  %10783 = vmatprep.mubr.bf16.mxu0 %v13625_v59 }
 0x3d7   : > { %6777 = vst [vmem:[#allocation4 + $0x414] sm:$0xf] %v6745_v11  ;;  %v7129_v35 = vshrl.u32 %v6815_v28, 16  ;;  %v9147_v26 = vld [vmem:[#allocation4 + $0x384] sm:$0xff]  ;;  %v7132_v40 = vshll.u32 %v6815_v28, 16 }
 0x3d8   : > { %v13623_v56 = vld [vmem:[#allocation4 + $0x364] ss:$36 sps:$4 sm:$0xff]   ;;  %v12359_v57 = vcombine.low %v9142_v61, %v9147_v26  ;;  %v7127_v31 = vsel %vm14101_vm5, %v7122_v50, %v7126_v5  ;;  %v6817_v60 = vld [vmem:[#allocation2 + $0x94] sm:$0xf]  ;;  %v7513_v51 = vld [vmem:[#allocation2 + $0xa0] sm:$0xf] }
 0x3d9   : > { %v13627_v9 = vld [vmem:[#allocation4 + $0x368] ss:$36 sps:$4 sm:$0xff]   ;;  %v7131_v48 = vrot.slane %v7129_v35, 4  ;;  %10622 = vmatprep.mubr.bf16.mxu1 %v13623_v56  ;;  %7231 = vst [vmem:[#allocation4 + $0x3d0] sm:$0xf] %v7127_v31  ;;  %v7134_v63 = vrot.slane %v7132_v40, 5 }
 0x3da   : > { %v6816_v33 = vld [vmem:[#allocation2 + $0x90] sm:$0xf]  ;;  %10784 = vmatmul.mubr.bf16.gmra.mxu0 %v13627_v9  ;;  %v7148_v29 = vshll.u32 %v6817_v60, 16  ;;  %v7271_v37 = vld [vmem:[#allocation2 + $0x8c] sm:$0xe]  ;;  %10623 = vmatmul.mubr.bf16.gmra.mxu1 %v12359_v57  ;;  %v7152_v36 = vshrl.u32 %v6817_v60, 16 }
 0x3db   : > { %v7138_v27 = vshll.u32 %v6816_v33, 16  ;;  %v7142_v58 = vshrl.u32 %v6816_v33, 16  ;;  %v7272_v16 = vld [vmem:[#allocation2 + $0x90] sm:$0xf]  ;;  %v7273_v0 = vld [vmem:[#allocation2 + $0x94] sm:$0xf]  ;;  %v7135_v49 = vor.u32 %v7134_v63, %v7131_v48 }
 0x3dc   : > { %v12234_v6 = vrot.slane %v7271_v37, 9  ;;  %v7150_v34 = vrot.slane %v7148_v29, 5  ;;  %v9152_v12 = vld [vmem:[#allocation4 + $0x3a8] sm:$0xff]  ;;  %v7409_v18 = vrot.slane %v7272_v16, 5  ;;  %v7412_v24 = vrot.slane %v7273_v0, 5  ;;  %v13653_v39 = vld [vmem:[%s17447_s4 + $0x1c8] sm:$0xff]  }
 0x3dd   : > { %v7140_v55 = vrot.slane %v7138_v27, 5  ;;  %v7144_v30 = vrot.slane %v7142_v58, 4  ;;  %v7514_v53 = vld [vmem:[#allocation2 + $0xa4] sm:$0xf]  ;;  %7545 = vst [vmem:[#allocation4 + $0x3fc] sm:$0xf] %v7513_v51  ;;  %12892 = vmatprep.subr.bf16.mxu0 %v13653_v39 }
 0x3de   : > { %v7154_v38 = vrot.slane %v7152_v36, 4  ;;  %v13632_v44 = vld [vmem:[#allocation4 + $0x3b4] ss:$36 sps:$4 sm:$0xff]   ;;  %v7136_v52 = vrot.slane %v7135_v49, 4  ;;  %7546 = vst [vmem:[#allocation4 + $0x420] sm:$0xf] %v7514_v53  ;;  %v7410_v15 = vsel %vm14091_vm4, %v12234_v6, %v7409_v18 }
 0x3df   : > { %v13634_v62 = vld [vmem:[#allocation4 + $0x3b0] ss:$36 sps:$4 sm:$0xff]   ;;  %v7145_v21 = vor.u32 %v7144_v30, %v7140_v55  ;;  %v7411_v7 = vrot.slane %v7409_v18, 4  ;;  %v7414_v54 = vrot.slane %v7412_v24, 4  ;;  %10791 = vmatprep.mubr.bf16.mxu0 %v13632_v44  ;;  %7480 = vst [vmem:[#allocation4 + $0x3f8] sm:$0xf] %v7410_v15 }
 0x3e0   : > { %v7155_v45 = vor.u32 %v7154_v38, %v7150_v34  ;;  %v7141_v25 = vsel %vm14101_vm5, %v7136_v52, %v7140_v55  ;;  %v9157_v19 = vld [vmem:[#allocation4 + $0x3cc] sm:$0xff]  ;;  %v6819_v41 = vld [vmem:[#allocation2 + $0x9c] sm:$0x1]  ;;  %v7515_v28 = vld [vmem:[#allocation2 + $0xa8] sm:$0xf] }
 0x3e1   : > { %v7146_v3 = vrot.slane %v7145_v21, 4  ;;  %v13630_v32 = vld [vmem:[#allocation4 + $0x3ac] ss:$36 sps:$4 sm:$0xff]   ;;  %7232 = vst [vmem:[#allocation4 + $0x3f4] sm:$0xf] %v7141_v25  ;;  %v7413_v20 = vsel %vm14091_vm4, %v7411_v7, %v7412_v24  ;;  %v12368_v23 = vcombine.low %v9152_v12, %v9157_v19  ;;  %v7168_v4 = vshll.u32 %v6819_v41, 16 }
 0x3e2   : > { %v7156_v47 = vrot.slane %v7155_v45, 4  ;;  %10792 = vmatmul.mubr.bf16.gmra.mxu0 %v13634_v62  ;;  %7481 = vst [vmem:[#allocation4 + $0x41c] sm:$0xf] %v7413_v20  ;;  %10630 = vmatprep.mubr.bf16.mxu1 %v13630_v32  ;;  %v6746_v43 = vld [vmem:[#allocation2 + $0x94] sm:$0xf]  ;;  %v13654_v61 = vld [vmem:[%s17447_s4 + $0x188] sm:$0xff]  }
 0x3e3   : > { %v7151_v46 = vsel %vm14101_vm5, %v7146_v3, %v7150_v34  ;;  %10631 = vmatmul.mubr.bf16.gmra.mxu1 %v12368_v23  ;;  %v6747_v42 = vld [vmem:[#allocation2 + $0x98] sm:$0xf]  ;;  %6778 = vst [vmem:[#allocation4 + $0x438] sm:$0xf] %v6746_v43  ;;  %v7275_v22 = vld [vmem:[#allocation2 + $0x9c] sm:$0x1]  ;;  %12893 = vmatpush3.bf16.msra.mxu0 %v13654_v61 }
 0x3e4   : > { %7233 = vst [vmem:[#allocation4 + $0x418] sm:$0xf] %v7151_v46  ;;  %v6818_v8 = vld [vmem:[#allocation2 + $0x98] sm:$0xf]  ;;  %6779 = vst [vmem:[#allocation4 + $0x45c] sm:$0xf] %v6747_v42 }
 0x3e5   : > { %v7158_v2 = vshll.u32 %v6818_v8, 16  ;;  %v7162_v10 = vshrl.u32 %v6818_v8, 16  ;;  %v7274_v5 = vld [vmem:[#allocation2 + $0x98] sm:$0xf]  ;;  %v7418_v35 = vrot.slane %v7275_v22, 5  ;;  %v13655_v26 = vld [vmem:[%s17447_s4 + $0x1c0] sm:$0xff]  }
 0x3e6   : > { %v7415_v11 = vrot.slane %v7274_v5, 5  ;;  %7547 = vst [vmem:[#allocation4 + $0x444] sm:$0xf] %v7515_v28  ;;  %v7516_v57 = vld [vmem:[#allocation2 + $0xac] sm:$0xf]  ;;  %v7170_v14 = vrot.slane %v7168_v4, 5  ;;  %12894 = vmatprep.subr.bf16.mxu0 %v13655_v26 }
 0x3e7   : > { %v7160_v59 = vrot.slane %v7158_v2, 5  ;;  %v7164_v50 = vrot.slane %v7162_v10, 4  ;;  %v13639_v31 = vld [vmem:[#allocation4 + $0x3fc] ss:$36 sps:$4 sm:$0xff]   ;;  %7548 = vst [vmem:[#allocation4 + $0x468] sm:$0xf] %v7516_v57 }
 0x3e8   : > { %v9162_v56 = vld [vmem:[#allocation4 + $0x3f0] sm:$0xff]  ;;  %v7416_v9 = vsel %vm14091_vm4, %v7414_v54, %v7415_v11  ;;  %v7417_v40 = vrot.slane %v7415_v11, 4  ;;  %10799 = vmatprep.mubr.bf16.mxu0 %v13639_v31  ;;  %v13659_v36 = vld [vmem:[%s17447_s4 + $0x180] sm:$0xff]   ;;  %v7549_v0 = vld [vmem:[#allocation2 + $0x14] sm:$0xf] }
 0x3e9   : > { %v13641_v33 = vld [vmem:[#allocation4 + $0x3f8] ss:$36 sps:$4 sm:$0xff]   ;;  %v7161_v60 = vsel %vm14101_vm5, %v7156_v47, %v7160_v59  ;;  %v7165_v48 = vor.u32 %v7164_v50, %v7160_v59  ;;  %7482 = vst [vmem:[#allocation4 + $0x440] sm:$0xf] %v7416_v9  ;;  %v7550_v6 = vld [vmem:[#allocation2 + $0x18] sm:$0xf]  ;;  %12895 = vmatpush3.bf16.msra.mxu0 %v13659_v36 }
 0x3ea   : > { %7234 = vst [vmem:[#allocation4 + $0x43c] sm:$0xf] %v7161_v60  ;;  %v7419_v58 = vsel %vm14091_vm4, %v7417_v40, %v7418_v35  ;;  %10800 = vmatmul.mubr.bf16.gmra.mxu0 %v13641_v33  ;;  %v7551_v49 = vld [vmem:[#allocation2 + $0x1c] sm:$0xf]  ;;  %v7590_v55 = vshrl.u32 %v7549_v0, 16  ;;  %v7593_v30 = vshll.u32 %v7549_v0, 16 }
 0x3eb   : > { %v9167_v63 = vld [vmem:[#allocation4 + $0x414] sm:$0xff]  ;;  %v7166_v37 = vrot.slane %v7165_v48, 4  ;;  %7483 = vst [vmem:[#allocation4 + $0x464] sm:$0xf] %v7419_v58  ;;  %v7599_v34 = vshll.u32 %v7550_v6, 16  ;;  %v7603_v51 = vshrl.u32 %v7550_v6, 16 }
 0x3ec   : > { %v13637_v27 = vld [vmem:[#allocation4 + $0x3f4] ss:$36 sps:$4 sm:$0xff]   ;;  %v12377_v29 = vcombine.low %v9162_v56, %v9167_v63  ;;  %v7609_v12 = vshll.u32 %v7551_v49, 16  ;;  %v7613_v18 = vshrl.u32 %v7551_v49, 16  ;;  %v8005_v24 = vld [vmem:[#allocation2 + $0x14] sm:$0xe] }
 0x3ed   : > { %10638 = vmatprep.mubr.bf16.mxu1 %v13637_v27  ;;  %v7171_v16 = vsel %vm14101_vm5, %v7166_v37, %v7170_v14  ;;  %v8006_v53 = vld [vmem:[#allocation2 + $0x18] sm:$0xf]  ;;  %v7592_v38 = vrot.slane %v7590_v55, 4  ;;  %v7595_v44 = vrot.slane %v7593_v30, 5  ;;  %v7601_v62 = vrot.slane %v7599_v34, 5 }
 0x3ee   : > { %10639 = vmatmul.mubr.bf16.gmra.mxu1 %v12377_v29  ;;  %7235 = vst [vmem:[#allocation4 + $0x460] sm:$0xf] %v7171_v16  ;;  %v7605_v52 = vrot.slane %v7603_v51, 4  ;;  %v16263_v21 = vld [vmem:[%s17447_s4 + $0x238] sm:$0xff]   ;;  %v7611_v7 = vrot.slane %v7609_v12, 5  ;;  %v12235_v54 = vrot.slane %v8005_v24, 9 }
 0x3ef   : > { %v8007_v45 = vld [vmem:[#allocation2 + $0x1c] sm:$0xf]  ;;  %v8087_v25 = vrot.slane %v8006_v53, 5  ;;  %v13649_v3 = vld [vmem:[#allocation4 + $0x444] ss:$36 sps:$4 sm:$0xff]   ;;  %v7596_v19 = vor.u32 %v7595_v44, %v7592_v38  ;;  %13072 = vmatprep.subr.bf16.mxu1 %v16263_v21  ;;  %v7615_v46 = vrot.slane %v7613_v18, 4 }
 0x3f0   : > { %v7606_v32 = vor.u32 %v7605_v52, %v7601_v62  ;;  %v8090_v20 = vrot.slane %v8007_v45, 5  ;;  %10807 = vmatprep.mubr.bf16.mxu0 %v13649_v3  ;;  %v8254_v10 = vld [vmem:[#allocation2 + $0x28] sm:$0xf]  ;;  %v8255_v11 = vld [vmem:[#allocation2 + $0x2c] sm:$0xf] }
 0x3f1   : > { %v9172_v15 = vld [vmem:[#allocation4 + $0x438] sm:$0xff]  ;;  %v8088_v47 = vsel %vm14091_vm4, %v12235_v54, %v8087_v25  ;;  %v8089_v23 = vrot.slane %v8087_v25, 4  ;;  %v7597_v43 = vrot.slane %v7596_v19, 4  ;;  %8286 = vst [vmem:[#allocation4 + $0x18] sm:$0xf] %v8254_v10  ;;  %v7616_v59 = vor.u32 %v7615_v46, %v7611_v7 }
 0x3f2   : > { %v13652_v1 = vld [vmem:[#allocation4 + $0x440] ss:$36 sps:$4 sm:$0xff]   ;;  %v7607_v42 = vrot.slane %v7606_v32, 4  ;;  %8221 = vst [vmem:[#allocation4 + $0x14] sm:$0xf] %v8088_v47  ;;  %v8092_v4 = vrot.slane %v8090_v20, 4 }
 0x3f3   : > { %10808 = vmatmul.mubr.bf16.gmra.mxu0 %v13652_v1  ;;  %v8091_v2 = vsel %vm14091_vm4, %v8089_v23, %v8090_v20  ;;  %v7602_v39 = vsel %vm14101_vm5, %v7597_v43, %v7601_v62  ;;  %v8318_v28 = vld [vmem:[#allocation2 + $0x28] sm:$0xf]  ;;  %v8319_v61 = vld [vmem:[#allocation2 + $0x2c] sm:$0xf]  ;;  %8287 = vst [vmem:[#allocation4 + $0x3c] sm:$0xf] %v8255_v11 }
 0x3f4   : > { %v7612_v22 = vsel %vm14101_vm5, %v7607_v42, %v7611_v7  ;;  %8222 = vst [vmem:[#allocation4 + $0x38] sm:$0xf] %v8091_v2  ;;  %7973 = vst [vmem:[#allocation4 + $0x10] sm:$0xf] %v7602_v39  ;;  %v8320_v50 = vld [vmem:[#allocation2 + $0x30] sm:$0xf] }
 0x3f5   : > { %v9177_v8 = vld [vmem:[#allocation4 + $0x45c] sm:$0xff]  ;;  %7974 = vst [vmem:[#allocation4 + $0x34] sm:$0xf] %v7612_v22  ;;  %v8359_v35 = vshrl.u32 %v8318_v28, 16  ;;  %v8362_v26 = vshll.u32 %v8318_v28, 16  ;;  %v8368_v56 = vshll.u32 %v8319_v61, 16 }
 0x3f6   : > { %v13647_v41 = vld [vmem:[#allocation4 + $0x43c] ss:$36 sps:$4 sm:$0xff]   ;;  %v12386_v5 = vcombine.low %v9172_v15, %v9177_v8  ;;  %v8372_v9 = vshrl.u32 %v8319_v61, 16  ;;  %v8378_v40 = vshll.u32 %v8320_v50, 16  ;;  %v8382_v57 = vshrl.u32 %v8320_v50, 16  ;;  %v13673_v2 = vld [vmem:[%s17447_s4 + $0x230] sm:$0xff]  }
 0x3f7   : > { %10646 = vmatprep.mubr.bf16.mxu1 %v13647_v41  ;;  %v7552_v31 = vld [vmem:[#allocation2 + $0x20] sm:$0xf]  ;;  %v7553_v33 = vld [vmem:[#allocation2 + $0x24] sm:$0x1]  ;;  %v8361_v60 = vrot.slane %v8359_v35, 4  ;;  %v8364_v48 = vrot.slane %v8362_v26, 5 }
 0x3f8   : > { %10647 = vmatmul.mubr.bf16.gmra.mxu1 %v12386_v5  ;;  %v8370_v14 = vrot.slane %v8368_v56, 5  ;;  %v8374_v63 = vrot.slane %v8372_v9, 4  ;;  %v8008_v27 = vld [vmem:[#allocation2 + $0x20] sm:$0xf]  ;;  %v8380_v58 = vrot.slane %v8378_v40, 5  ;;  %v7617_v29 = vrot.slane %v7616_v59, 4 }
 0x3f9   : > { %v7619_v37 = vshll.u32 %v7552_v31, 16  ;;  %v7623_v36 = vshrl.u32 %v7552_v31, 16  ;;  %v8009_v16 = vld [vmem:[#allocation2 + $0x24] sm:$0x1]  ;;  %v8365_v0 = vor.u32 %v8364_v48, %v8361_v60  ;;  %v7629_v49 = vshll.u32 %v7553_v33, 16  ;;  %v13686_v35 = vld [vmem:[%s17447_s4 + $0x228] sm:$0xff]  }
 0x3fa   : > { %v8375_v6 = vor.u32 %v8374_v63, %v8370_v14  ;;  %v8093_v55 = vrot.slane %v8008_v27, 5  ;;  %v8256_v30 = vld [vmem:[#allocation2 + $0x30] sm:$0xf]  ;;  %v8257_v34 = vld [vmem:[#allocation2 + $0x34] sm:$0xf]  ;;  %v8096_v18 = vrot.slane %v8009_v16, 5 }
 0x3fb   : > { %v7621_v51 = vrot.slane %v7619_v37, 5  ;;  %v7625_v12 = vrot.slane %v7623_v36, 4  ;;  %8288 = vst [vmem:[#allocation4 + $0x60] sm:$0xf] %v8256_v30  ;;  %8289 = vst [vmem:[#allocation4 + $0x84] sm:$0xf] %v8257_v34 }
 0x3fc   : > { %v8321_v24 = vld [vmem:[#allocation2 + $0x34] sm:$0xf]  ;;  %v8384_v53 = vrot.slane %v8382_v57, 4  ;;  %v8366_v38 = vrot.slane %v8365_v0, 4  ;;  %v8376_v44 = vrot.slane %v8375_v6, 4  ;;  %v7631_v62 = vrot.slane %v7629_v49, 5 }
 0x3fd   : > { %v8094_v52 = vsel %vm14091_vm4, %v8092_v4, %v8093_v55  ;;  %v8322_v15 = vld [vmem:[#allocation2 + $0x38] sm:$0x1]  ;;  %v7622_v45 = vsel %vm14101_vm5, %v7617_v29, %v7621_v51  ;;  %v7626_v54 = vor.u32 %v7625_v12, %v7621_v51  ;;  %v8095_v25 = vrot.slane %v8093_v55, 4  ;;  %v13658_v1 = vld [vmem:[#allocation4 + $0x14] ss:$36 sps:$4 sm:$0xff]  }
 0x3fe   : > { %v13656_v7 = vld [vmem:[#allocation4 + $0x10] ss:$36 sps:$4 sm:$0xff]   ;;  %8223 = vst [vmem:[#allocation4 + $0x5c] sm:$0xf] %v8094_v52  ;;  %v8385_v3 = vor.u32 %v8384_v53, %v8380_v58  ;;  %v8371_v19 = vsel %vm14101_vm5, %v8366_v38, %v8370_v14  ;;  %v8381_v32 = vsel %vm14101_vm5, %v8376_v44, %v8380_v58  ;;  %7975 = vst [vmem:[#allocation4 + $0x58] sm:$0xf] %v7622_v45  ;;  %10848 = vmatprep.mubr.bf16.mxu1 %v13658_v1 }
 0x3ff   : > { %v8388_v20 = vshll.u32 %v8321_v24, 16  ;;  %v8392_v47 = vshrl.u32 %v8321_v24, 16  ;;  %v7554_v23 = vld [vmem:[#allocation2 + $0x28] sm:$0xf]  ;;  %8742 = vst [vmem:[#allocation4 + $0x1c] sm:$0xf] %v8371_v19  ;;  %v8097_v43 = vsel %vm14091_vm4, %v8095_v25, %v8096_v18 }
 0x400   : > { %8743 = vst [vmem:[#allocation4 + $0x40] sm:$0xf] %v8381_v32  ;;  %v7627_v46 = vrot.slane %v7626_v54, 4  ;;  %v8386_v42 = vrot.slane %v8385_v3, 4  ;;  %v8398_v8 = vshll.u32 %v8322_v15, 16  ;;  %v7634_v39 = vshrl.u32 %v7554_v23, 16  ;;  %10849 = vmatmul.mubr.bf16.vlgmr.msra.gmra.mxu1 %v13656_v7 }
 0x401   : > { %v7555_v41 = vld [vmem:[#allocation2 + $0x2c] sm:$0xf]  ;;  %8224 = vst [vmem:[#allocation4 + $0x80] sm:$0xf] %v8097_v43  ;;  %v8390_v10 = vrot.slane %v8388_v20, 5  ;;  %v8394_v4 = vrot.slane %v8392_v47, 4  ;;  %13073 = vmatpush3.bf16.msra.mxu1 %v16263_v21 }
 0x402   : > { %v7556_v5 = vld [vmem:[#allocation2 + $0x30] sm:$0xf]  ;;  %v7637_v22 = vshll.u32 %v7554_v23, 16  ;;  %v7632_v11 = vsel %vm14101_vm5, %v7627_v46, %v7631_v62  ;;  %v8400_v28 = vrot.slane %v8398_v8, 5  ;;  %v7643_v61 = vshll.u32 %v7555_v41, 16  ;;  %13074 = vmatprep.subr.bf16.mxu1 %v13673_v2  ;;  %v13699_v6 = vld [vmem:[%s17447_s4 + $0x220] sm:$0xff]  }
 0x403   : > { %v7647_v59 = vshrl.u32 %v7555_v41, 16  ;;  %v8010_v50 = vld [vmem:[#allocation2 + $0x28] sm:$0xe]  ;;  %7976 = vst [vmem:[#allocation4 + $0x7c] sm:$0xf] %v7632_v11  ;;  %v8391_v26 = vsel %vm14101_vm5, %v8386_v42, %v8390_v10  ;;  %v8395_v56 = vor.u32 %v8394_v4, %v8390_v10  ;;  %v7636_v9 = vrot.slane %v7634_v39, 4 }
 0x404   : > { %v7639_v40 = vrot.slane %v7637_v22, 5  ;;  %v8011_v57 = vld [vmem:[#allocation2 + $0x2c] sm:$0xf]  ;;  %v8012_v31 = vld [vmem:[#allocation2 + $0x30] sm:$0xf]  ;;  %v7645_v33 = vrot.slane %v7643_v61, 5 }
 0x405   : > { %8744 = vst [vmem:[#allocation4 + $0x64] sm:$0xf] %v8391_v26  ;;  %v7649_v60 = vrot.slane %v7647_v59, 4  ;;  %v7653_v48 = vshll.u32 %v7556_v5, 16  ;;  %v7657_v14 = vshrl.u32 %v7556_v5, 16  ;;  %v8396_v63 = vrot.slane %v8395_v56, 4  ;;  %13075 = vmatpush3.bf16.msra.mxu1 %v13673_v2 }
 0x406   : > { %v7640_v27 = vor.u32 %v7639_v40, %v7636_v9  ;;  %v12236_v58 = vrot.slane %v8010_v50, 9  ;;  %v8100_v29 = vrot.slane %v8011_v57, 5  ;;  %v8103_v36 = vrot.slane %v8012_v31, 5  ;;  %v8258_v16 = vld [vmem:[#allocation2 + $0x3c] sm:$0xf]  ;;  %13076 = vmatprep.subr.bf16.mxu1 %v13686_v35  ;;  %v16314_v61 = vld [vmem:[%s17447_s4 + $0x210] sm:$0xff]  }
 0x407   : > { %v7650_v21 = vor.u32 %v7649_v60, %v7645_v33  ;;  %v7655_v37 = vrot.slane %v7653_v48, 5  ;;  %v7659_v0 = vrot.slane %v7657_v14, 4  ;;  %v13661_v49 = vld [vmem:[#allocation4 + $0x18] ss:$36 sps:$4 sm:$0xff]   ;;  %v8401_v55 = vsel %vm14101_vm5, %v8396_v63, %v8400_v28  ;;  %8290 = vst [vmem:[#allocation4 + $0xa8] sm:$0xf] %v8258_v16 }
 0x408   : > { %v7641_v30 = vrot.slane %v7640_v27, 4  ;;  %v8101_v34 = vsel %vm14091_vm4, %v12236_v58, %v8100_v29  ;;  %v8102_v51 = vrot.slane %v8100_v29, 4  ;;  %v13663_v12 = vld [vmem:[#allocation4 + $0x1c] ss:$36 sps:$4 sm:$0xff]   ;;  %8745 = vst [vmem:[#allocation4 + $0x88] sm:$0xf] %v8401_v55 }
 0x409   : > { %v7651_v18 = vrot.slane %v7650_v21, 4  ;;  %8225 = vst [vmem:[#allocation4 + $0xa4] sm:$0xf] %v8101_v34  ;;  %v8259_v24 = vld [vmem:[#allocation2 + $0x40] sm:$0xf]  ;;  %v8105_v53 = vrot.slane %v8103_v36, 4  ;;  %11009 = vmatprep.mubr.bf16.mxu0 %v13663_v12  ;;  %v7660_v3 = vor.u32 %v7659_v0, %v7655_v37  ;;  %13077 = vmatpush3.bf16.msra.mxu1 %v13686_v35 }
 0x40a   : > { %v7646_v38 = vsel %vm14101_vm5, %v7641_v30, %v7645_v33  ;;  %v8104_v44 = vsel %vm14091_vm4, %v8102_v51, %v8103_v36  ;;  %8291 = vst [vmem:[#allocation4 + $0xcc] sm:$0xf] %v8259_v24  ;;  %v8323_v62 = vld [vmem:[#allocation2 + $0x3c] sm:$0xf]  ;;  %v8324_v52 = vld [vmem:[#allocation2 + $0x40] sm:$0xf]  ;;  %11010 = vmatmul.mubr.bf16.vlgmr.msra.gmra.mxu0 %v13661_v49  ;;  %13078 = vmatprep.subr.bf16.mxu1 %v13699_v6 }
 0x40b   : > { %v8325_v15 = vld [vmem:[#allocation2 + $0x44] sm:$0xf]  ;;  %v7656_v54 = vsel %vm14101_vm5, %v7651_v18, %v7655_v37  ;;  %7977 = vst [vmem:[#allocation4 + $0xa0] sm:$0xf] %v7646_v38  ;;  %8226 = vst [vmem:[#allocation4 + $0xc8] sm:$0xf] %v8104_v44 }
 0x40c   : > { %v13664_v7 = vld [vmem:[#allocation4 + $0x5c] ss:$36 sps:$4 sm:$0xff]   ;;  %v8403_v25 = vshrl.u32 %v8323_v62, 16  ;;  %7978 = vst [vmem:[#allocation4 + $0xc4] sm:$0xf] %v7656_v54  ;;  %v8406_v1 = vshll.u32 %v8323_v62, 16 }
 0x40d   : > { %v13666_v45 = vld [vmem:[#allocation4 + $0x58] ss:$36 sps:$4 sm:$0xff]   ;;  %v8412_v19 = vshll.u32 %v8324_v52, 16  ;;  %v8416_v32 = vshrl.u32 %v8324_v52, 16  ;;  %v8422_v20 = vshll.u32 %v8325_v15, 16  ;;  %v13712_v47 = vld [vmem:[%s17447_s4 + $0x218] sm:$0xff]   ;;  %10856 = vmatprep.mubr.bf16.mxu1 %v13664_v7  ;;  %13079 = vmatpush3.bf16.msra.mxu1 %v13699_v6 }
 0x40e   : > { %v8405_v23 = vrot.slane %v8403_v25, 4  ;;  %v8426_v46 = vshrl.u32 %v8325_v15, 16  ;;  %v7557_v43 = vld [vmem:[#allocation2 + $0x34] sm:$0xf]  ;;  %v7558_v42 = vld [vmem:[#allocation2 + $0x38] sm:$0x1]  ;;  %10857 = vmatmul.mubr.bf16.gmra.mxu1 %v13666_v45  ;;  %13080 = vmatprep.subr.bf16.mxu1 %v13712_v47 }
 0x40f   : > { %v8408_v8 = vrot.slane %v8406_v1, 5  ;;  %v8414_v41 = vrot.slane %v8412_v19, 5  ;;  %v8418_v2 = vrot.slane %v8416_v32, 4  ;;  %v8424_v10 = vrot.slane %v8422_v20, 5  ;;  %v8013_v4 = vld [vmem:[#allocation2 + $0x34] sm:$0xf] }
 0x410   : > { %v7661_v5 = vrot.slane %v7660_v3, 4  ;;  %v7663_v39 = vshll.u32 %v7557_v43, 16  ;;  %v7667_v22 = vshrl.u32 %v7557_v43, 16  ;;  %v7673_v11 = vshll.u32 %v7558_v42, 16  ;;  %v8014_v28 = vld [vmem:[#allocation2 + $0x38] sm:$0x1] }
 0x411   : > { %v13667_v59 = vld [vmem:[#allocation4 + $0x64] ss:$36 sps:$4 sm:$0xff]   ;;  %v8409_v35 = vor.u32 %v8408_v8, %v8405_v23  ;;  %v8419_v26 = vor.u32 %v8418_v2, %v8414_v41  ;;  %v8106_v56 = vrot.slane %v8013_v4, 5  ;;  %v8109_v31 = vrot.slane %v8014_v28, 5  ;;  %v8260_v33 = vld [vmem:[#allocation2 + $0x44] sm:$0xf]  ;;  %13081 = vmatpush3.bf16.msra.mxu1 %v13712_v47 }
 0x412   : > { %v13669_v50 = vld [vmem:[#allocation4 + $0x60] ss:$36 sps:$4 sm:$0xff]   ;;  %v7665_v9 = vrot.slane %v7663_v39, 5  ;;  %v7669_v40 = vrot.slane %v7667_v22, 4  ;;  %v7675_v57 = vrot.slane %v7673_v11, 5  ;;  %11017 = vmatprep.mubr.bf16.mxu0 %v13667_v59  ;;  %v8428_v36 = vrot.slane %v8426_v46, 4  ;;  %13082 = vmatprep.subr.bf16.mxu1 %v16314_v61 }
 0x413   : > { %v8410_v60 = vrot.slane %v8409_v35, 4  ;;  %v8420_v48 = vrot.slane %v8419_v26, 4  ;;  %v8107_v14 = vsel %vm14091_vm4, %v8105_v53, %v8106_v56  ;;  %v8108_v63 = vrot.slane %v8106_v56, 4  ;;  %v8261_v27 = vld [vmem:[#allocation2 + $0x48] sm:$0xf]  ;;  %11018 = vmatmul.mubr.bf16.gmra.mxu0 %v13669_v50  ;;  %v13751_v1 = vld [vmem:[%s17447_s4 + $0x200] sm:$0xff]  }
 0x414   : > { %8292 = vst [vmem:[#allocation4 + $0xf0] sm:$0xf] %v8260_v33  ;;  %v13670_v58 = vld [vmem:[#allocation4 + $0xa4] ss:$36 sps:$4 sm:$0xff]   ;;  %v7666_v21 = vsel %vm14101_vm5, %v7661_v5, %v7665_v9  ;;  %v7670_v37 = vor.u32 %v7669_v40, %v7665_v9  ;;  %8227 = vst [vmem:[#allocation4 + $0xec] sm:$0xf] %v8107_v14  ;;  %v8429_v51 = vor.u32 %v8428_v36, %v8424_v10 }
 0x415   : > { %v13672_v29 = vld [vmem:[#allocation4 + $0xa0] ss:$36 sps:$4 sm:$0xff]   ;;  %8293 = vst [vmem:[#allocation4 + $0x114] sm:$0xf] %v8261_v27  ;;  %v8415_v16 = vsel %vm14101_vm5, %v8410_v60, %v8414_v41  ;;  %v8425_v0 = vsel %vm14101_vm5, %v8420_v48, %v8424_v10  ;;  %7979 = vst [vmem:[#allocation4 + $0xe8] sm:$0xf] %v7666_v21  ;;  %v8110_v6 = vsel %vm14091_vm4, %v8108_v63, %v8109_v31  ;;  %10864 = vmatprep.mubr.bf16.mxu1 %v13670_v58 }
 0x416   : > { %v8326_v49 = vld [vmem:[#allocation2 + $0x48] sm:$0xf]  ;;  %v8327_v55 = vld [vmem:[#allocation2 + $0x4c] sm:$0x1]  ;;  %v7559_v30 = vld [vmem:[#allocation2 + $0x3c] sm:$0xf]  ;;  %10865 = vmatmul.mubr.bf16.gmra.mxu1 %v13672_v29 }
 0x417   : > { %8746 = vst [vmem:[#allocation4 + $0xac] sm:$0xf] %v8415_v16  ;;  %8747 = vst [vmem:[#allocation4 + $0xd0] sm:$0xf] %v8425_v0  ;;  %v7671_v34 = vrot.slane %v7670_v37, 4  ;;  %v8432_v12 = vshll.u32 %v8326_v49, 16  ;;  %13083 = vmatpush3.bf16.msra.mxu1 %v16314_v61 }
 0x418   : > { %8228 = vst [vmem:[#allocation4 + $0x110] sm:$0xf] %v8110_v6  ;;  %v8436_v18 = vshrl.u32 %v8326_v49, 16  ;;  %v7560_v24 = vld [vmem:[#allocation2 + $0x40] sm:$0xf]  ;;  %v13738_v53 = vld [vmem:[%s17447_s4 + $0x208] sm:$0xff]  }
 0x419   : > { %v8442_v38 = vshll.u32 %v8327_v55, 16  ;;  %v16330_v44 = vld [vmem:[#allocation2 + $0x44] sm:$0xf]  ;;  %v7678_v62 = vshrl.u32 %v7559_v30, 16  ;;  %v7681_v52 = vshll.u32 %v7559_v30, 16  ;;  %v7687_v15 = vshll.u32 %v7560_v24, 16  ;;  %13084 = vmatprep.subr.bf16.mxu1 %v13738_v53 }
 0x41a   : > { %v7676_v7 = vsel %vm14101_vm5, %v7671_v34, %v7675_v57  ;;  %v8430_v45 = vrot.slane %v8429_v51, 4  ;;  %v8434_v54 = vrot.slane %v8432_v12, 5  ;;  %v8438_v25 = vrot.slane %v8436_v18, 4  ;;  %v8015_v3 = vld [vmem:[#allocation2 + $0x3c] sm:$0xe] }
 0x41b   : > { %7980 = vst [vmem:[#allocation4 + $0x10c] sm:$0xf] %v7676_v7  ;;  %v8444_v19 = vrot.slane %v8442_v38, 5  ;;  %v7680_v32 = vrot.slane %v7678_v62, 4  ;;  %v7683_v20 = vrot.slane %v7681_v52, 5  ;;  %v7689_v47 = vrot.slane %v7687_v15, 5  ;;  %13085 = vmatpush3.bf16.msra.mxu1 %v13738_v53 }
 0x41c   : > { %v8016_v23 = vld [vmem:[#allocation2 + $0x40] sm:$0xf]  ;;  %v8435_v46 = vsel %vm14101_vm5, %v8430_v45, %v8434_v54  ;;  %v8439_v43 = vor.u32 %v8438_v25, %v8434_v54  ;;  %v7691_v42 = vshrl.u32 %v7560_v24, 16  ;;  %v7697_v8 = vshll.u32 %v16330_v44, 16  ;;  %v16341_v41 = vld [vmem:[#allocation2 + $0x44] sm:$0xf]  ;;  %13086 = vmatprep.subr.bf16.mxu1 %v13751_v1 }
 0x41d   : > { %8748 = vst [vmem:[#allocation4 + $0xf4] sm:$0xf] %v8435_v46  ;;  %v7684_v2 = vor.u32 %v7683_v20, %v7680_v32  ;;  %v7701_v10 = vshrl.u32 %v16330_v44, 16  ;;  %v12237_v4 = vrot.slane %v8015_v3, 9  ;;  %v8113_v5 = vrot.slane %v8016_v23, 5 }
 0x41e   : > { %v8440_v39 = vrot.slane %v8439_v43, 4  ;;  %v7693_v22 = vrot.slane %v7691_v42, 4  ;;  %v7699_v11 = vrot.slane %v7697_v8, 5  ;;  %v8116_v28 = vrot.slane %v16341_v41, 5  ;;  %v13674_v61 = vld [vmem:[#allocation4 + $0xac] ss:$36 sps:$4 sm:$0xff]  }
 0x41f   : > { %v7685_v59 = vrot.slane %v7684_v2, 4  ;;  %v8114_v50 = vsel %vm14091_vm4, %v12237_v4, %v8113_v5  ;;  %v8115_v35 = vrot.slane %v8113_v5, 4  ;;  %v13676_v26 = vld [vmem:[#allocation4 + $0xa8] ss:$36 sps:$4 sm:$0xff]   ;;  %11025 = vmatprep.mubr.bf16.mxu0 %v13674_v61  ;;  %v8330_v14 = vld [vmem:[#allocation2 + $0x58] sm:$0xf]  ;;  %13087 = vmatpush3.bf16.msra.mxu1 %v13751_v1 }
 0x420   : > { %v8445_v56 = vsel %vm14101_vm5, %v8440_v39, %v8444_v19  ;;  %v7694_v9 = vor.u32 %v7693_v22, %v7689_v47  ;;  %8229 = vst [vmem:[#allocation4 + $0x134] sm:$0xf] %v8114_v50  ;;  %v8262_v40 = vld [vmem:[#allocation2 + $0x50] sm:$0xf]  ;;  %v8263_v57 = vld [vmem:[#allocation2 + $0x54] sm:$0xf]  ;;  %11026 = vmatmul.mubr.bf16.gmra.mxu0 %v13676_v26 }
 0x421   : > { %8749 = vst [vmem:[#allocation4 + $0x118] sm:$0xf] %v8445_v56  ;;  %v7690_v31 = vsel %vm14101_vm5, %v7685_v59, %v7689_v47  ;;  %v8117_v33 = vsel %vm14091_vm4, %v8115_v35, %v8116_v28  ;;  %8294 = vst [vmem:[#allocation4 + $0x138] sm:$0xf] %v8262_v40  ;;  %v8328_v60 = vld [vmem:[#allocation2 + $0x50] sm:$0xf] }
 0x422   : > { %8295 = vst [vmem:[#allocation4 + $0x15c] sm:$0xf] %v8263_v57  ;;  %v8329_v48 = vld [vmem:[#allocation2 + $0x54] sm:$0xf]  ;;  %v7695_v58 = vrot.slane %v7694_v9, 4  ;;  %v8447_v29 = vshrl.u32 %v8328_v60, 16 }
 0x423   : > { %v13677_v63 = vld [vmem:[#allocation4 + $0xec] ss:$36 sps:$4 sm:$0xff]   ;;  %7981 = vst [vmem:[#allocation4 + $0x130] sm:$0xf] %v7690_v31  ;;  %8230 = vst [vmem:[#allocation4 + $0x158] sm:$0xf] %v8117_v33 }
 0x424   : > { %v13679_v27 = vld [vmem:[#allocation4 + $0xe8] ss:$36 sps:$4 sm:$0xff]   ;;  %v8450_v21 = vshll.u32 %v8328_v60, 16  ;;  %v8456_v37 = vshll.u32 %v8329_v48, 16  ;;  %v8460_v36 = vshrl.u32 %v8329_v48, 16  ;;  %10872 = vmatprep.mubr.bf16.mxu1 %v13677_v63  ;;  %v7700_v0 = vsel %vm14101_vm5, %v7695_v58, %v7699_v11 }
 0x425   : > { %v7562_v16 = vld [vmem:[#allocation2 + $0x48] sm:$0xf]  ;;  %v8466_v6 = vshll.u32 %v8330_v14, 16  ;;  %v8470_v49 = vshrl.u32 %v8330_v14, 16  ;;  %v7563_v55 = vld [vmem:[#allocation2 + $0x4c] sm:$0x1]  ;;  %10873 = vmatmul.mubr.bf16.gmra.mxu1 %v13679_v27 }
 0x426   : > { %v7703_v30 = vrot.slane %v7701_v10, 4  ;;  %7982 = vst [vmem:[#allocation4 + $0x154] sm:$0xf] %v7700_v0  ;;  %v8449_v34 = vrot.slane %v8447_v29, 4  ;;  %v8452_v51 = vrot.slane %v8450_v21, 5  ;;  %v8458_v12 = vrot.slane %v8456_v37, 5 }
 0x427   : > { %v8462_v18 = vrot.slane %v8460_v36, 4  ;;  %v8018_v24 = vld [vmem:[#allocation2 + $0x48] sm:$0xf]  ;;  %v8468_v53 = vrot.slane %v8466_v6, 5  ;;  %v7707_v44 = vshll.u32 %v7562_v16, 16  ;;  %v7711_v62 = vshrl.u32 %v7562_v16, 16 }
 0x428   : > { %v7704_v38 = vor.u32 %v7703_v30, %v7699_v11  ;;  %v8019_v52 = vld [vmem:[#allocation2 + $0x4c] sm:$0x1]  ;;  %v8453_v15 = vor.u32 %v8452_v51, %v8449_v34  ;;  %v7717_v45 = vshll.u32 %v7563_v55, 16  ;;  %v8118_v54 = vrot.slane %v8116_v28, 4  ;;  %v8264_v25 = vld [vmem:[#allocation2 + $0x58] sm:$0xf] }
 0x429   : > { %v8463_v7 = vor.u32 %v8462_v18, %v8458_v12  ;;  %v8265_v3 = vld [vmem:[#allocation2 + $0x5c] sm:$0xf]  ;;  %8296 = vst [vmem:[#allocation4 + $0x180] sm:$0xf] %v8264_v25  ;;  %v7709_v23 = vrot.slane %v7707_v44, 5  ;;  %v7713_v46 = vrot.slane %v7711_v62, 4 }
 0x42a   : > { %v13680_v1 = vld [vmem:[#allocation4 + $0xf4] ss:$36 sps:$4 sm:$0xff]   ;;  %v7705_v32 = vrot.slane %v7704_v38, 4  ;;  %8297 = vst [vmem:[#allocation4 + $0x1a4] sm:$0xf] %v8265_v3  ;;  %v8454_v20 = vrot.slane %v8453_v15, 4 }
 0x42b   : > { %v13682_v19 = vld [vmem:[#allocation4 + $0xf0] ss:$36 sps:$4 sm:$0xff]   ;;  %v8464_v47 = vrot.slane %v8463_v7, 4  ;;  %11033 = vmatprep.mubr.bf16.mxu0 %v13680_v1  ;;  %v7719_v43 = vrot.slane %v7717_v45, 5  ;;  %v8119_v42 = vrot.slane %v8018_v24, 5  ;;  %v8122_v8 = vrot.slane %v8019_v52, 5 }
 0x42c   : > { %v8331_v41 = vld [vmem:[#allocation2 + $0x5c] sm:$0xf]  ;;  %v8472_v2 = vrot.slane %v8470_v49, 4  ;;  %11034 = vmatmul.mubr.bf16.gmra.mxu0 %v13682_v19  ;;  %v8459_v10 = vsel %vm14101_vm5, %v8454_v20, %v8458_v12  ;;  %v7710_v5 = vsel %vm14101_vm5, %v7705_v32, %v7709_v23  ;;  %v7714_v39 = vor.u32 %v7713_v46, %v7709_v23  ;;  %v8332_v22 = vld [vmem:[#allocation2 + $0x60] sm:$0x1] }
 0x42d   : > { %v8469_v4 = vsel %vm14101_vm5, %v8464_v47, %v8468_v53  ;;  %v7564_v11 = vld [vmem:[#allocation2 + $0x50] sm:$0xf]  ;;  %v7565_v28 = vld [vmem:[#allocation2 + $0x54] sm:$0xf]  ;;  %v13683_v61 = vld [vmem:[#allocation4 + $0x134] ss:$36 sps:$4 sm:$0xff]   ;;  %v8120_v50 = vsel %vm14091_vm4, %v8118_v54, %v8119_v42 }
 0x42e   : > { %v13685_v59 = vld [vmem:[#allocation4 + $0x130] ss:$36 sps:$4 sm:$0xff]   ;;  %8750 = vst [vmem:[#allocation4 + $0x13c] sm:$0xf] %v8459_v10  ;;  %8751 = vst [vmem:[#allocation4 + $0x160] sm:$0xf] %v8469_v4  ;;  %v8473_v26 = vor.u32 %v8472_v2, %v8468_v53  ;;  %10880 = vmatprep.mubr.bf16.mxu1 %v13683_v61 }
 0x42f   : > { %7983 = vst [vmem:[#allocation4 + $0x178] sm:$0xf] %v7710_v5  ;;  %v8121_v35 = vrot.slane %v8119_v42, 4  ;;  %v7715_v56 = vrot.slane %v7714_v39, 4  ;;  %8231 = vst [vmem:[#allocation4 + $0x17c] sm:$0xf] %v8120_v50  ;;  %10881 = vmatmul.mubr.bf16.gmra.mxu1 %v13685_v59 }
 0x430   : > { %v8476_v9 = vshll.u32 %v8331_v41, 16  ;;  %v8480_v40 = vshrl.u32 %v8331_v41, 16  ;;  %v8486_v57 = vshll.u32 %v8332_v22, 16  ;;  %v16363_v31 = vld [vmem:[#allocation2 + $0x58] sm:$0xf]  ;;  %v8474_v60 = vrot.slane %v8473_v26, 4 }
 0x431   : > { %v8123_v33 = vsel %vm14091_vm4, %v8121_v35, %v8122_v8  ;;  %v7722_v48 = vshrl.u32 %v7564_v11, 16  ;;  %v7725_v14 = vshll.u32 %v7564_v11, 16  ;;  %v8020_v63 = vld [vmem:[#allocation2 + $0x50] sm:$0xe]  ;;  %v7720_v27 = vsel %vm14101_vm5, %v7715_v56, %v7719_v43  ;;  %v8021_v37 = vld [vmem:[#allocation2 + $0x54] sm:$0xf]  ;;  %v12560_v35 = vpop.f32.mrf.mxu1 }
 0x432   : > { %8232 = vst [vmem:[#allocation4 + $0x1a0] sm:$0xf] %v8123_v33  ;;  %v8478_v58 = vrot.slane %v8476_v9, 5  ;;  %v8482_v29 = vrot.slane %v8480_v40, 4  ;;  %v8488_v21 = vrot.slane %v8486_v57, 5  ;;  %v7731_v0 = vshll.u32 %v7565_v28, 16 }
 0x433   : > { %7984 = vst [vmem:[#allocation4 + $0x19c] sm:$0xf] %v7720_v27  ;;  %v7724_v36 = vrot.slane %v7722_v48, 4  ;;  %v7727_v16 = vrot.slane %v7725_v14, 5  ;;  %v7735_v6 = vshrl.u32 %v7565_v28, 16  ;;  %v7741_v34 = vshll.u32 %v16363_v31, 16  ;;  %v12561_v27 = vpop.f32.mrf.mxu1 }
 0x434   : > { %v16369_v49 = vld [vmem:[#allocation2 + $0x58] sm:$0xf]  ;;  %v8479_v55 = vsel %vm14101_vm5, %v8474_v60, %v8478_v58  ;;  %v8483_v30 = vor.u32 %v8482_v29, %v8478_v58  ;;  %v7745_v51 = vshrl.u32 %v16363_v31, 16  ;;  %v7733_v18 = vrot.slane %v7731_v0, 5  ;;  %v8266_v38 = vld [vmem:[#allocation2 + $0x64] sm:$0xf]  ;;  %v12672_v31 = vpop.f32.mrf.mxu0 }
 0x435   : > { %8752 = vst [vmem:[#allocation4 + $0x184] sm:$0xf] %v8479_v55  ;;  %v7728_v12 = vor.u32 %v7727_v16, %v7724_v36  ;;  %v7737_v24 = vrot.slane %v7735_v6, 4  ;;  %v12238_v53 = vrot.slane %v8020_v63, 9  ;;  %v13687_v44 = vld [vmem:[#allocation4 + $0x13c] ss:$36 sps:$4 sm:$0xff]  }
 0x436   : > { %v8484_v62 = vrot.slane %v8483_v30, 4  ;;  %v16375_v52 = vrot.slane %v7741_v34, 5  ;;  %8298 = vst [vmem:[#allocation4 + $0x1c8] sm:$0xf] %v8266_v38  ;;  %v13689_v15 = vld [vmem:[#allocation4 + $0x138] ss:$36 sps:$4 sm:$0xff]   ;;  %11041 = vmatprep.mubr.bf16.mxu0 %v13687_v44  ;;  %v12673_v0 = vpop.f32.mrf.mxu0  ;;  %v16390_v34 = vadd.f32 %v12561_v27, %v12560_v35 }
 0x437   : > { %v7729_v7 = vrot.slane %v7728_v12, 4  ;;  %v7738_v45 = vor.u32 %v7737_v24, %v7733_v18  ;;  %v8126_v54 = vrot.slane %v8021_v37, 5  ;;  %v8129_v25 = vrot.slane %v16369_v49, 5  ;;  %v8267_v1 = vld [vmem:[#allocation2 + $0x68] sm:$0xf]  ;;  %11042 = vmatmul.mubr.bf16.gmra.mxu0 %v13689_v15  ;;  %v16394_v12 = vpop.f32.mrf.mxu1 }
 0x438   : > { %v8489_v3 = vsel %vm14101_vm5, %v8484_v62, %v8488_v21  ;;  %v8333_v19 = vld [vmem:[#allocation2 + $0x64] sm:$0xf]  ;;  %v8334_v32 = vld [vmem:[#allocation2 + $0x68] sm:$0xf]  ;;  %8299 = vst [vmem:[#allocation4 + $0x1ec] sm:$0xf] %v8267_v1  ;;  %v16396_v44 = vpop.f32.mrf.mxu0 }
 0x439   : > { %8753 = vst [vmem:[#allocation4 + $0x1a8] sm:$0xf] %v8489_v3  ;;  %v7734_v20 = vsel %vm14101_vm5, %v7729_v7, %v7733_v18  ;;  %v7739_v47 = vrot.slane %v7738_v45, 4  ;;  %v8127_v23 = vsel %vm14091_vm4, %v12238_v53, %v8126_v54  ;;  %v8128_v46 = vrot.slane %v8126_v54, 4  ;;  %v8335_v43 = vld [vmem:[#allocation2 + $0x6c] sm:$0xf]  ;;  %v16398_v54 = vpop.f32.mrf.mxu1 }
 0x43a   : > { %v7567_v42 = vld [vmem:[#allocation2 + $0x5c] sm:$0xf]  ;;  %v13690_v8 = vld [vmem:[#allocation4 + $0x17c] ss:$36 sps:$4 sm:$0xff]   ;;  %7985 = vst [vmem:[#allocation4 + $0x1c0] sm:$0xf] %v7734_v20 }
 0x43b   : > { %v13692_v41 = vld [vmem:[#allocation4 + $0x178] ss:$36 sps:$4 sm:$0xff]   ;;  %8233 = vst [vmem:[#allocation4 + $0x1c4] sm:$0xf] %v8127_v23  ;;  %v8491_v2 = vshrl.u32 %v8333_v19, 16  ;;  %v7744_v10 = vsel %vm14101_vm5, %v7739_v47, %v16375_v52  ;;  %v8130_v4 = vsel %vm14091_vm4, %v8128_v46, %v8129_v25  ;;  %v8494_v5 = vshll.u32 %v8333_v19, 16  ;;  %10888 = vmatprep.mubr.bf16.mxu1 %v13690_v8  ;;  %v16406_v47 = vpop.f32.mrf.mxu0 }
 0x43c   : > { %v8500_v39 = vshll.u32 %v8334_v32, 16  ;;  %v7568_v22 = vld [vmem:[#allocation2 + $0x60] sm:$0x1]  ;;  %7986 = vst [vmem:[#allocation4 + $0x1e4] sm:$0xf] %v7744_v10  ;;  %v8504_v28 = vshrl.u32 %v8334_v32, 16  ;;  %10889 = vmatmul.mubr.bf16.gmra.mxu1 %v13692_v41 }
 0x43d   : > { %8234 = vst [vmem:[#allocation4 + $0x1e8] sm:$0xf] %v8130_v4  ;;  %v8493_v11 = vrot.slane %v8491_v2, 4  ;;  %v8510_v61 = vshll.u32 %v8335_v43, 16  ;;  %v8514_v59 = vshrl.u32 %v8335_v43, 16  ;;  %v8496_v26 = vrot.slane %v8494_v5, 5  ;;  %v12566_v2 = vpop.f32.mrf.mxu1 }
 0x43e   : > { %v8023_v50 = vld [vmem:[#allocation2 + $0x5c] sm:$0xf]  ;;  %v8502_v56 = vrot.slane %v8500_v39, 5  ;;  %v7747_v9 = vrot.slane %v7745_v51, 4  ;;  %v7751_v40 = vshll.u32 %v7567_v42, 16  ;;  %v8506_v33 = vrot.slane %v8504_v28, 4 }
 0x43f   : > { %v8024_v57 = vld [vmem:[#allocation2 + $0x60] sm:$0x1]  ;;  %v8512_v60 = vrot.slane %v8510_v61, 5  ;;  %v7755_v48 = vshrl.u32 %v7567_v42, 16  ;;  %v7761_v14 = vshll.u32 %v7568_v22, 16  ;;  %v8497_v58 = vor.u32 %v8496_v26, %v8493_v11  ;;  %v16412_v11 = vpop.f32.mrf.mxu0  ;;  %v12567_v26 = vpop.f32.mrf.mxu1 }
 0x440   : > { %v8268_v63 = vld [vmem:[#allocation2 + $0x6c] sm:$0xf]  ;;  %v7748_v29 = vor.u32 %v7747_v9, %v16375_v52  ;;  %v7753_v21 = vrot.slane %v7751_v40, 5  ;;  %v8131_v37 = vrot.slane %v8129_v25, 4  ;;  %v8269_v36 = vld [vmem:[#allocation2 + $0x70] sm:$0xf]  ;;  %v8507_v55 = vor.u32 %v8506_v33, %v8502_v56 }
 0x441   : > { %8300 = vst [vmem:[#allocation4 + $0x210] sm:$0xf] %v8268_v63  ;;  %v8336_v16 = vld [vmem:[#allocation2 + $0x70] sm:$0xf]  ;;  %v13695_v49 = vld [vmem:[#allocation4 + $0x180] ss:$36 sps:$4 sm:$0xff]   ;;  %v16392_v51 = vadd.f32 %v12673_v0, %v12672_v31  ;;  %v12679_v33 = vpop.f32.mrf.mxu0 }
 0x442   : > { %v13693_v6 = vld [vmem:[#allocation4 + $0x184] ss:$36 sps:$4 sm:$0xff]   ;;  %v7757_v30 = vrot.slane %v7755_v48, 4  ;;  %8301 = vst [vmem:[#allocation4 + $0x234] sm:$0xf] %v8269_v36  ;;  %v8498_v18 = vrot.slane %v8497_v58, 4  ;;  %v16420_v58 = vpop.f32.mrf.mxu1 }
 0x443   : > { %v7749_v24 = vrot.slane %v7748_v29, 4  ;;  %v7763_v53 = vrot.slane %v7761_v14, 5  ;;  %v8132_v38 = vrot.slane %v8023_v50, 5  ;;  %11049 = vmatprep.mubr.bf16.mxu0 %v13693_v6  ;;  %v8508_v62 = vrot.slane %v8507_v55, 4  ;;  %v8337_v7 = vld [vmem:[#allocation2 + $0x74] sm:$0x1] }
 0x444   : > { %v7758_v52 = vor.u32 %v7757_v30, %v7753_v21  ;;  %v8135_v15 = vrot.slane %v8024_v57, 5  ;;  %v8516_v45 = vrot.slane %v8514_v59, 4  ;;  %11050 = vmatmul.mubr.bf16.gmra.mxu0 %v13695_v49  ;;  %v13696_v25 = vld [vmem:[#allocation4 + $0x1c4] ss:$36 sps:$4 sm:$0xff]   ;;  %v8503_v1 = vsel %vm14101_vm5, %v8498_v18, %v8502_v56  ;;  %v7569_v8 = vld [vmem:[#allocation2 + $0x64] sm:$0xf]  ;;  %v16424_v30 = vpop.f32.mrf.mxu1 }
 0x445   : > { %v13698_v3 = vld [vmem:[#allocation4 + $0x1c0] ss:$36 sps:$4 sm:$0xff]   ;;  %v7754_v19 = vsel %vm14101_vm5, %v7749_v24, %v7753_v21  ;;  %v8133_v32 = vsel %vm14091_vm4, %v8131_v37, %v8132_v38  ;;  %v8134_v20 = vrot.slane %v8132_v38, 4  ;;  %v8513_v23 = vsel %vm14101_vm5, %v8508_v62, %v8512_v60  ;;  %8754 = vst [vmem:[#allocation4 + $0x1cc] sm:$0xf] %v8503_v1  ;;  %10896 = vmatprep.mubr.bf16.mxu1 %v13696_v25 }
 0x446   : > { %v7759_v46 = vrot.slane %v7758_v52, 4  ;;  %7987 = vst [vmem:[#allocation4 + $0x208] sm:$0xf] %v7754_v19  ;;  %8235 = vst [vmem:[#allocation4 + $0x20c] sm:$0xf] %v8133_v32  ;;  %v8517_v43 = vor.u32 %v8516_v45, %v8512_v60  ;;  %v8520_v42 = vshll.u32 %v8336_v16, 16  ;;  %10897 = vmatmul.mubr.bf16.gmra.mxu1 %v13698_v3  ;;  %v16429_v38 = vadd.f32 %v16392_v51, %v16390_v34  ;;  %v16439_v19 = vpop.f32.mrf.mxu1 }
 0x447   : > { %v7570_v41 = vld [vmem:[#allocation2 + $0x68] sm:$0xf]  ;;  %8755 = vst [vmem:[#allocation4 + $0x1f0] sm:$0xf] %v8513_v23  ;;  %v8136_v10 = vsel %vm14091_vm4, %v8134_v20, %v8135_v15  ;;  %v8524_v4 = vshrl.u32 %v8336_v16, 16  ;;  %v8530_v5 = vshll.u32 %v8337_v7, 16  ;;  %v16422_v16 = vpop.f32.mrf.mxu0  ;;  %v12565_v62 = vadd.f32 %v16398_v54, %v16394_v12 }
 0x448   : > { %v7571_v39 = vld [vmem:[#allocation2 + $0x6c] sm:$0xf]  ;;  %v7766_v22 = vshrl.u32 %v7569_v8, 16  ;;  %v7764_v28 = vsel %vm14101_vm5, %v7759_v46, %v7763_v53  ;;  %8236 = vst [vmem:[#allocation4 + $0x230] sm:$0xf] %v8136_v10  ;;  %v8518_v61 = vrot.slane %v8517_v43, 4  ;;  %v12677_v1 = vadd.f32 %v16406_v47, %v16396_v44 }
 0x449   : > { %v8522_v59 = vrot.slane %v8520_v42, 5  ;;  %v7769_v50 = vshll.u32 %v7569_v8, 16  ;;  %v8025_v35 = vld [vmem:[#allocation2 + $0x64] sm:$0xe]  ;;  %7988 = vst [vmem:[#allocation4 + $0x22c] sm:$0xf] %v7764_v28  ;;  %v16433_v52 = vpop.f32.mrf.mxu0  ;;  %v12568_v20 = vadd.f32 %v12567_v26, %v12566_v2  ;;  %v12680_v8 = vadd.f32 %v12679_v33, %v16412_v11 }
 0x44a   : > { %v8526_v56 = vrot.slane %v8524_v4, 4  ;;  %v8532_v9 = vrot.slane %v8530_v5, 5  ;;  %v7768_v40 = vrot.slane %v7766_v22, 4  ;;  %v7775_v57 = vshll.u32 %v7570_v41, 16  ;;  %v8026_v31 = vld [vmem:[#allocation2 + $0x68] sm:$0xf] }
 0x44b   : > { %v8523_v60 = vsel %vm14101_vm5, %v8518_v61, %v8522_v59  ;;  %v7771_v48 = vrot.slane %v7769_v50, 5  ;;  %v7779_v14 = vshrl.u32 %v7570_v41, 16  ;;  %v7785_v63 = vshll.u32 %v7571_v39, 16  ;;  %v16418_v27 = vld [vmem:[#allocation2 + $0x6c] sm:$0xf]  ;;  %v16443_v23 = vpop.f32.mrf.mxu0  ;;  %v16450_v41 = vpop.f32.mrf.mxu1 }
 0x44c   : > { %v8527_v29 = vor.u32 %v8526_v56, %v8522_v59  ;;  %8756 = vst [vmem:[#allocation4 + $0x214] sm:$0xf] %v8523_v60  ;;  %v7777_v21 = vrot.slane %v7775_v57, 5  ;;  %v7789_v37 = vshrl.u32 %v7571_v39, 16  ;;  %v12239_v36 = vrot.slane %v8025_v35, 9 }
 0x44d   : > { %v7772_v0 = vor.u32 %v7771_v48, %v7768_v40  ;;  %v7781_v6 = vrot.slane %v7779_v14, 4  ;;  %v7787_v49 = vrot.slane %v7785_v63, 5  ;;  %v8139_v55 = vrot.slane %v8026_v31, 5  ;;  %v8270_v53 = vld [vmem:[#allocation2 + $0x78] sm:$0xf]  ;;  %v16456_v28 = vpop.f32.mrf.mxu0  ;;  %v16460_v26 = vpop.f32.mrf.mxu1 }
 0x44e   : > { %v8528_v18 = vrot.slane %v8527_v29, 4  ;;  %v8142_v24 = vrot.slane %v16418_v27, 5  ;;  %v13700_v15 = vld [vmem:[#allocation4 + $0x1cc] ss:$36 sps:$4 sm:$0xff]   ;;  %8302 = vst [vmem:[#allocation4 + $0x258] sm:$0xf] %v8270_v53  ;;  %v16447_v42 = vadd.f32 %v12677_v1, %v12565_v62  ;;  %v12683_v27 = vadd.f32 %v16433_v52, %v16422_v16 }
 0x44f   : > { %v13702_v7 = vld [vmem:[#allocation4 + $0x1c8] ss:$36 sps:$4 sm:$0xff]   ;;  %v7773_v45 = vrot.slane %v7772_v0, 4  ;;  %v7782_v25 = vor.u32 %v7781_v6, %v7777_v21  ;;  %v8140_v3 = vsel %vm14091_vm4, %v12239_v36, %v8139_v55  ;;  %v8141_v51 = vrot.slane %v8139_v55, 4  ;;  %v8271_v12 = vld [vmem:[#allocation2 + $0x7c] sm:$0xf]  ;;  %11057 = vmatprep.mubr.bf16.mxu0 %v13700_v15  ;;  %v16462_v33 = vpop.f32.mrf.mxu0 }
 0x450   : > { %v8533_v34 = vsel %vm14101_vm5, %v8528_v18, %v8532_v9  ;;  %8237 = vst [vmem:[#allocation4 + $0x254] sm:$0xf] %v8140_v3  ;;  %v8338_v54 = vld [vmem:[#allocation2 + $0x78] sm:$0xf]  ;;  %v7791_v32 = vrot.slane %v7789_v37, 4  ;;  %11058 = vmatmul.mubr.bf16.gmra.mxu0 %v13702_v7 }
 0x451   : > { %v13703_v46 = vld [vmem:[#allocation4 + $0x20c] ss:$36 sps:$4 sm:$0xff]   ;;  %8757 = vst [vmem:[#allocation4 + $0x238] sm:$0xf] %v8533_v34  ;;  %v7778_v44 = vsel %vm14101_vm5, %v7773_v45, %v7777_v21  ;;  %v7783_v47 = vrot.slane %v7782_v25, 4  ;;  %v8143_v2 = vsel %vm14091_vm4, %v8141_v51, %v8142_v24  ;;  %v8535_v5 = vshrl.u32 %v8338_v54, 16  ;;  %v16466_v21 = vpop.f32.mrf.mxu1  ;;  %v16470_v55 = vpop.f32.mrf.mxu0 }
 0x452   : > { %v13705_v43 = vld [vmem:[#allocation4 + $0x208] ss:$36 sps:$4 sm:$0xff]   ;;  %8303 = vst [vmem:[#allocation4 + $0x27c] sm:$0xf] %v8271_v12  ;;  %7989 = vst [vmem:[#allocation4 + $0x250] sm:$0xf] %v7778_v44  ;;  %v7792_v22 = vor.u32 %v7791_v32, %v7787_v49  ;;  %10904 = vmatprep.mubr.bf16.mxu1 %v13703_v46  ;;  %v16474_v34 = vadd.f32 %v12680_v8, %v12568_v20  ;;  %v12571_v51 = vadd.f32 %v16424_v30, %v16420_v58 }
 0x453   : > { %v8339_v10 = vld [vmem:[#allocation2 + $0x7c] sm:$0xf]  ;;  %v8340_v4 = vld [vmem:[#allocation2 + $0x80] sm:$0xf]  ;;  %v8538_v39 = vshll.u32 %v8338_v54, 16  ;;  %v7788_v11 = vsel %vm14101_vm5, %v7783_v47, %v7787_v49  ;;  %10905 = vmatmul.mubr.bf16.gmra.mxu1 %v13705_v43  ;;  %v8537_v56 = vrot.slane %v8535_v5, 4  ;;  %v16472_v45 = vpop.f32.mrf.mxu1 }
 0x454   : > { %8238 = vst [vmem:[#allocation4 + $0x278] sm:$0xf] %v8143_v2  ;;  %v8544_v61 = vshll.u32 %v8339_v10, 16  ;;  %v8548_v59 = vshrl.u32 %v8339_v10, 16  ;;  %v8554_v50 = vshll.u32 %v8340_v4, 16  ;;  %v8558_v40 = vshrl.u32 %v8340_v4, 16 }
 0x455   : > { %v7572_v35 = vld [vmem:[#allocation2 + $0x70] sm:$0xf]  ;;  %7990 = vst [vmem:[#allocation4 + $0x274] sm:$0xf] %v7788_v11  ;;  %v8540_v9 = vrot.slane %v8538_v39, 5  ;;  %v7793_v31 = vrot.slane %v7792_v22, 4  ;;  %v16484_v44 = vpop.f32.mrf.mxu1  ;;  %v16495_v22 = vadd.f32 %v12683_v27, %v12571_v51 }
 0x456   : > { %v7573_v57 = vld [vmem:[#allocation2 + $0x74] sm:$0x1]  ;;  %v8546_v60 = vrot.slane %v8544_v61, 5  ;;  %v8550_v48 = vrot.slane %v8548_v59, 4  ;;  %v16464_v14 = vrot.slane %v8554_v50, 5  ;;  %v7795_v63 = vshll.u32 %v7572_v35, 16 }
 0x457   : > { %v8028_v29 = vld [vmem:[#allocation2 + $0x70] sm:$0xf]  ;;  %v8541_v37 = vor.u32 %v8540_v9, %v8537_v56  ;;  %v7799_v36 = vshrl.u32 %v7572_v35, 16  ;;  %v7805_v0 = vshll.u32 %v7573_v57, 16  ;;  %v8029_v6 = vld [vmem:[#allocation2 + $0x74] sm:$0x1]  ;;  %v16497_v11 = vpop.f32.mrf.mxu1 }
 0x458   : > { %v8144_v49 = vrot.slane %v8142_v24, 4  ;;  %v8551_v18 = vor.u32 %v8550_v48, %v8546_v60  ;;  %v7797_v53 = vrot.slane %v7795_v63, 5  ;;  %v8145_v62 = vrot.slane %v8028_v29, 5  ;;  %v8272_v7 = vld [vmem:[#allocation2 + $0x80] sm:$0xf]  ;;  %v16480_v24 = vpop.f32.mrf.mxu0 }
 0x459   : > { %v8148_v15 = vrot.slane %v8029_v6, 5  ;;  %v13706_v25 = vld [vmem:[#allocation4 + $0x214] ss:$36 sps:$4 sm:$0xff]   ;;  %v8542_v1 = vrot.slane %v8541_v37, 4  ;;  %8304 = vst [vmem:[#allocation4 + $0x2a0] sm:$0xf] %v8272_v7  ;;  %v16506_v29 = vpop.f32.mrf.mxu1 }
 0x45a   : > { %v13708_v3 = vld [vmem:[#allocation4 + $0x210] ss:$36 sps:$4 sm:$0xff]   ;;  %v8552_v12 = vrot.slane %v8551_v18, 4  ;;  %v7798_v54 = vsel %vm14101_vm5, %v7793_v31, %v7797_v53  ;;  %v7801_v32 = vrot.slane %v7799_v36, 4  ;;  %v7807_v46 = vrot.slane %v7805_v0, 5  ;;  %11065 = vmatprep.mubr.bf16.mxu0 %v13706_v25  ;;  %v16490_v8 = vpop.f32.mrf.mxu0 }
 0x45b   : > { %v8273_v43 = vld [vmem:[#allocation2 + $0x84] sm:$0xf]  ;;  %v8547_v20 = vsel %vm14101_vm5, %v8542_v1, %v8546_v60  ;;  %7991 = vst [vmem:[#allocation4 + $0x298] sm:$0xf] %v7798_v54  ;;  %v8146_v58 = vsel %vm14091_vm4, %v8144_v49, %v8145_v62  ;;  %v8147_v16 = vrot.slane %v8145_v62, 4  ;;  %v8560_v47 = vrot.slane %v8558_v40, 4  ;;  %11066 = vmatmul.mubr.bf16.gmra.mxu0 %v13708_v3  ;;  %v16512_v25 = vpop.f32.mrf.mxu1 }
 0x45c   : > { %8305 = vst [vmem:[#allocation4 + $0x2c4] sm:$0xf] %v8273_v43  ;;  %v8341_v30 = vld [vmem:[#allocation2 + $0x84] sm:$0xf]  ;;  %v8342_v52 = vld [vmem:[#allocation2 + $0x88] sm:$0x1]  ;;  %v8557_v4 = vsel %vm14101_vm5, %v8552_v12, %v16464_v14  ;;  %v7802_v5 = vor.u32 %v7801_v32, %v7797_v53  ;;  %v16502_v40 = vpop.f32.mrf.mxu0 }
 0x45d   : > { %v13709_v2 = vld [vmem:[#allocation4 + $0x254] ss:$36 sps:$4 sm:$0xff]   ;;  %8758 = vst [vmem:[#allocation4 + $0x25c] sm:$0xf] %v8547_v20  ;;  %8239 = vst [vmem:[#allocation4 + $0x29c] sm:$0xf] %v8146_v58  ;;  %v8149_v61 = vsel %vm14091_vm4, %v8147_v16, %v8148_v15  ;;  %v8561_v59 = vor.u32 %v8560_v47, %v16464_v14  ;;  %v16522_v58 = vpop.f32.mrf.mxu1 }
 0x45e   : > { %v13711_v10 = vld [vmem:[#allocation4 + $0x250] ss:$36 sps:$4 sm:$0xff]   ;;  %v8564_v39 = vshll.u32 %v8341_v30, 16  ;;  %8759 = vst [vmem:[#allocation4 + $0x280] sm:$0xf] %v8557_v4  ;;  %v8568_v50 = vshrl.u32 %v8341_v30, 16  ;;  %10912 = vmatprep.mubr.bf16.mxu1 %v13709_v2  ;;  %v16508_v49 = vpop.f32.mrf.mxu0 }
 0x45f   : > { %v8574_v35 = vshll.u32 %v8342_v52, 16  ;;  %v7574_v56 = vld [vmem:[#allocation2 + $0x78] sm:$0xf]  ;;  %v7575_v9 = vld [vmem:[#allocation2 + $0x7c] sm:$0xf]  ;;  %v7803_v57 = vrot.slane %v7802_v5, 4  ;;  %10913 = vmatmul.mubr.bf16.gmra.mxu1 %v13711_v10 }
 0x460   : > { %8240 = vst [vmem:[#allocation4 + $0x2c0] sm:$0xf] %v8149_v61  ;;  %v8566_v31 = vrot.slane %v8564_v39, 5  ;;  %v16504_v60 = vld [vmem:[#allocation2 + $0x80] sm:$0xf]  ;;  %v7810_v48 = vshrl.u32 %v7574_v56, 16  ;;  %v16519_v54 = vpop.f32.mrf.mxu0  ;;  %v12574_v61 = vadd.f32 %v16450_v41, %v16439_v19 }
 0x461   : > { %v7813_v63 = vshll.u32 %v7574_v56, 16  ;;  %v8562_v37 = vrot.slane %v8561_v59, 4  ;;  %v8570_v36 = vrot.slane %v8568_v50, 4  ;;  %v8576_v14 = vrot.slane %v8574_v35, 5  ;;  %v8030_v6 = vld [vmem:[#allocation2 + $0x78] sm:$0xe]  ;;  %v16533_v50 = vpop.f32.mrf.mxu1 }
 0x462   : > { %v7819_v0 = vshll.u32 %v7575_v9, 16  ;;  %v7808_v18 = vsel %vm14101_vm5, %v7803_v57, %v7807_v46  ;;  %v7812_v53 = vrot.slane %v7810_v48, 4  ;;  %v7823_v15 = vshrl.u32 %v7575_v9, 16  ;;  %v8031_v7 = vld [vmem:[#allocation2 + $0x7c] sm:$0xf]  ;;  %v16527_v2 = vpop.f32.mrf.mxu0 }
 0x463   : > { %v7815_v62 = vrot.slane %v7813_v63, 5  ;;  %7992 = vst [vmem:[#allocation4 + $0x2bc] sm:$0xf] %v7808_v18  ;;  %v8567_v3 = vsel %vm14101_vm5, %v8562_v37, %v8566_v31  ;;  %v8571_v1 = vor.u32 %v8570_v36, %v8566_v31  ;;  %v7829_v27 = vshll.u32 %v16504_v60, 16  ;;  %v16517_v12 = vld [vmem:[#allocation2 + $0x80] sm:$0xf] }
 0x464   : > { %v7821_v51 = vrot.slane %v7819_v0, 5  ;;  %8760 = vst [vmem:[#allocation4 + $0x2a4] sm:$0xf] %v8567_v3  ;;  %v7825_v46 = vrot.slane %v7823_v15, 4  ;;  %v7833_v43 = vshrl.u32 %v16504_v60, 16  ;;  %v12240_v20 = vrot.slane %v8030_v6, 9  ;;  %v16541_v63 = vpop.f32.mrf.mxu0 }
 0x465   : > { %v7816_v32 = vor.u32 %v7815_v62, %v7812_v53  ;;  %v8572_v16 = vrot.slane %v8571_v1, 4  ;;  %v16524_v30 = vrot.slane %v7829_v27, 5  ;;  %v8152_v52 = vrot.slane %v8031_v7, 5  ;;  %v13713_v10 = vld [vmem:[#allocation4 + $0x25c] ss:$36 sps:$4 sm:$0xff]  }
 0x466   : > { %v8155_v47 = vrot.slane %v16517_v12, 5  ;;  %v13715_v4 = vld [vmem:[#allocation4 + $0x258] ss:$36 sps:$4 sm:$0xff]   ;;  %v7826_v39 = vor.u32 %v7825_v46, %v7821_v51  ;;  %v12686_v59 = vadd.f32 %v16456_v28, %v16443_v23  ;;  %v8274_v57 = vld [vmem:[#allocation2 + $0x8c] sm:$0xf]  ;;  %v12577_v48 = vadd.f32 %v16466_v21, %v16460_v26  ;;  %11073 = vmatprep.mubr.bf16.mxu0 %v13713_v10  ;;  %v16557_v53 = vpop.f32.mrf.mxu0 }
 0x467   : > { %v7817_v5 = vrot.slane %v7816_v32, 4  ;;  %v8577_v35 = vsel %vm14101_vm5, %v8572_v16, %v8576_v14  ;;  %v8153_v56 = vsel %vm14091_vm4, %v12240_v20, %v8152_v52  ;;  %v8154_v9 = vrot.slane %v8152_v52, 4  ;;  %v8275_v31 = vld [vmem:[#allocation2 + $0x90] sm:$0xf]  ;;  %8306 = vst [vmem:[#allocation4 + $0x2e8] sm:$0xf] %v8274_v57  ;;  %v16549_v14 = vpop.f32.mrf.mxu1  ;;  %11074 = vmatmul.mubr.bf16.gmra.mxu0 %v13715_v4 }
 0x468   : > { %8761 = vst [vmem:[#allocation4 + $0x2c8] sm:$0xf] %v8577_v35  ;;  %v7827_v23 = vrot.slane %v7826_v39, 4  ;;  %8241 = vst [vmem:[#allocation4 + $0x2e4] sm:$0xf] %v8153_v56  ;;  %v16545_v37 = vadd.f32 %v12686_v59, %v12574_v61  ;;  %v12689_v36 = vadd.f32 %v16470_v55, %v16462_v33  ;;  %v12580_v3 = vadd.f32 %v16484_v44, %v16472_v45  ;;  %v16569_v20 = vpop.f32.mrf.mxu0 }
 0x469   : > { %v7822_v19 = vsel %vm14101_vm5, %v7817_v5, %v7821_v51  ;;  %8307 = vst [vmem:[#allocation4 + $0x30c] sm:$0xf] %v8275_v31  ;;  %v8343_v41 = vld [vmem:[#allocation2 + $0x8c] sm:$0xf]  ;;  %v8344_v28 = vld [vmem:[#allocation2 + $0x90] sm:$0xf]  ;;  %v8156_v26 = vsel %vm14091_vm4, %v8154_v9, %v8155_v47  ;;  %v16567_v46 = vpop.f32.mrf.mxu1  ;;  %v12692_v5 = vadd.f32 %v16490_v8, %v16480_v24  ;;  %v12583_v45 = vadd.f32 %v16506_v29, %v16497_v11 }
 0x46a   : > { %7993 = vst [vmem:[#allocation4 + $0x2e0] sm:$0xf] %v7822_v19  ;;  %v16555_v21 = vld [vmem:[#allocation2 + $0x94] sm:$0xf]  ;;  %v8579_v0 = vshrl.u32 %v8343_v41, 16  ;;  %v8582_v6 = vshll.u32 %v8343_v41, 16  ;;  %v7832_v33 = vsel %vm14101_vm5, %v7827_v23, %v16524_v30  ;;  %v16562_v7 = vadd.f32 %v12689_v36, %v12577_v48  ;;  %v16582_v9 = vpop.f32.mrf.mxu0 }
 0x46b   : > { %v8588_v18 = vshll.u32 %v8344_v28, 16  ;;  %v13716_v62 = vld [vmem:[#allocation4 + $0x29c] ss:$36 sps:$4 sm:$0xff]   ;;  %8242 = vst [vmem:[#allocation4 + $0x308] sm:$0xf] %v8156_v26  ;;  %v8592_v55 = vshrl.u32 %v8344_v28, 16  ;;  %v16580_v56 = vpop.f32.mrf.mxu1  ;;  %v16587_v60 = vadd.f32 %v12692_v5, %v12580_v3 }
 0x46c   : > { %v13718_v15 = vld [vmem:[#allocation4 + $0x298] ss:$36 sps:$4 sm:$0xff]   ;;  %7994 = vst [vmem:[#allocation4 + $0x304] sm:$0xf] %v7832_v33  ;;  %v8581_v1 = vrot.slane %v8579_v0, 4  ;;  %v8584_v51 = vrot.slane %v8582_v6, 5  ;;  %10920 = vmatprep.mubr.bf16.mxu1 %v13716_v62  ;;  %v16593_v28 = vpop.f32.mrf.mxu0 }
 0x46d   : > { %v8590_v27 = vrot.slane %v8588_v18, 5  ;;  %v8598_v32 = vshll.u32 %v16555_v21, 16  ;;  %v8594_v16 = vrot.slane %v8592_v55, 4  ;;  %v8602_v52 = vshrl.u32 %v16555_v21, 16  ;;  %v7577_v10 = vld [vmem:[#allocation2 + $0x84] sm:$0xf]  ;;  %10921 = vmatmul.mubr.bf16.gmra.mxu1 %v13718_v15  ;;  %v16591_v41 = vpop.f32.mrf.mxu1 }
 0x46e   : > { %v7578_v4 = vld [vmem:[#allocation2 + $0x88] sm:$0x1]  ;;  %v8585_v44 = vor.u32 %v8584_v51, %v8581_v1  ;;  %v7835_v61 = vrot.slane %v7833_v43, 4  ;;  %v7839_v59 = vshll.u32 %v7577_v10, 16  ;;  %v8033_v35 = vld [vmem:[#allocation2 + $0x84] sm:$0xf]  ;;  %v12695_v43 = vadd.f32 %v16508_v49, %v16502_v40  ;;  %v16599_v15 = vpop.f32.mrf.mxu0 }
 0x46f   : > { %v16576_v39 = vrot.slane %v8598_v32, 5  ;;  %v8595_v57 = vor.u32 %v8594_v16, %v8590_v27  ;;  %v7843_v31 = vshrl.u32 %v7577_v10, 16  ;;  %v7849_v48 = vshll.u32 %v7578_v4, 16  ;;  %v8034_v24 = vld [vmem:[#allocation2 + $0x88] sm:$0x1]  ;;  %v16597_v62 = vpop.f32.mrf.mxu1 }
 0x470   : > { %v8157_v8 = vrot.slane %v8155_v47, 4  ;;  %v13719_v11 = vld [vmem:[#allocation4 + $0x2a4] ss:$36 sps:$4 sm:$0xff]   ;;  %v8586_v19 = vrot.slane %v8585_v44, 4  ;;  %v7836_v23 = vor.u32 %v7835_v61, %v16524_v30  ;;  %v7841_v26 = vrot.slane %v7839_v59, 5  ;;  %v16614_v44 = vpop.f32.mrf.mxu0 }
 0x471   : > { %v13721_v29 = vld [vmem:[#allocation4 + $0x2a0] ss:$36 sps:$4 sm:$0xff]   ;;  %v8596_v36 = vrot.slane %v8595_v57, 4  ;;  %v7845_v21 = vrot.slane %v7843_v31, 4  ;;  %v7851_v0 = vrot.slane %v7849_v48, 5  ;;  %11081 = vmatprep.mubr.bf16.mxu0 %v13719_v11  ;;  %v8158_v6 = vrot.slane %v8033_v35, 5  ;;  %v16612_v5 = vpop.f32.mrf.mxu1 }
 0x472   : > { %v8591_v12 = vsel %vm14101_vm5, %v8586_v19, %v8590_v27  ;;  %v7837_v47 = vrot.slane %v7836_v23, 4  ;;  %v8161_v30 = vrot.slane %v8034_v24, 5  ;;  %v8276_v18 = vld [vmem:[#allocation2 + $0x94] sm:$0xf]  ;;  %11082 = vmatmul.mubr.bf16.gmra.mxu0 %v13721_v29  ;;  %v13722_v40 = vld [vmem:[#allocation4 + $0x2e4] ss:$36 sps:$4 sm:$0xff]   ;;  %v16604_v1 = vadd.f32 %v12695_v43, %v12583_v45  ;;  %v16625_v11 = vpop.f32.mrf.mxu0 }
 0x473   : > { %v13724_v49 = vld [vmem:[#allocation4 + $0x2e0] ss:$36 sps:$4 sm:$0xff]   ;;  %v8601_v33 = vsel %vm14101_vm5, %v8596_v36, %v16576_v39  ;;  %8762 = vst [vmem:[#allocation4 + $0x2ec] sm:$0xf] %v8591_v12  ;;  %v7846_v55 = vor.u32 %v7845_v21, %v7841_v26  ;;  %8308 = vst [vmem:[#allocation4 + $0x330] sm:$0xf] %v8276_v18  ;;  %v8159_v27 = vsel %vm14091_vm4, %v8157_v8, %v8158_v6  ;;  %10928 = vmatprep.mubr.bf16.mxu1 %v13722_v40  ;;  %v16623_v8 = vpop.f32.mrf.mxu1 }
 0x474   : > { %v8604_v3 = vrot.slane %v8602_v52, 4  ;;  %8763 = vst [vmem:[#allocation4 + $0x310] sm:$0xf] %v8601_v33  ;;  %v7842_v51 = vsel %vm14101_vm5, %v7837_v47, %v7841_v26  ;;  %v8160_v32 = vrot.slane %v8158_v6, 4  ;;  %v8277_v16 = vld [vmem:[#allocation2 + $0x98] sm:$0xf]  ;;  %v12586_v4 = vadd.f32 %v16522_v58, %v16512_v25 }
 0x475   : > { %v8346_v10 = vld [vmem:[#allocation2 + $0x98] sm:$0xf]  ;;  %v7847_v52 = vrot.slane %v7846_v55, 4  ;;  %7995 = vst [vmem:[#allocation4 + $0x328] sm:$0xf] %v7842_v51  ;;  %10929 = vmatmul.mubr.bf16.gmra.mxu1 %v13724_v49  ;;  %v12698_v48 = vadd.f32 %v16527_v2, %v16519_v54  ;;  %v12589_v24 = vadd.f32 %v16549_v14, %v16533_v50  ;;  %v16629_v12 = vpop.f32.mrf.mxu1  ;;  %v16631_v50 = vpop.f32.mrf.mxu0 }
 0x476   : > { %8243 = vst [vmem:[#allocation4 + $0x32c] sm:$0xf] %v8159_v27  ;;  %8309 = vst [vmem:[#allocation4 + $0x354] sm:$0xf] %v8277_v16  ;;  %v8347_v45 = vld [vmem:[#allocation2 + $0x9c] sm:$0x1]  ;;  %v8605_v61 = vor.u32 %v8604_v3, %v16576_v39  ;;  %v8162_v57 = vsel %vm14091_vm4, %v8160_v32, %v8161_v30 }
 0x477   : > { %v8608_v59 = vshll.u32 %v8346_v10, 16  ;;  %v8612_v35 = vshrl.u32 %v8346_v10, 16  ;;  %v8618_v31 = vshll.u32 %v8347_v45, 16  ;;  %v7579_v25 = vld [vmem:[#allocation2 + $0x8c] sm:$0xf]  ;;  %v7852_v39 = vsel %vm14101_vm5, %v7847_v52, %v7851_v0  ;;  %v16637_v3 = vpop.f32.mrf.mxu1  ;;  %v16639_v51 = vpop.f32.mrf.mxu0 }
 0x478   : > { %v7580_v58 = vld [vmem:[#allocation2 + $0x90] sm:$0xf]  ;;  %8244 = vst [vmem:[#allocation4 + $0x350] sm:$0xf] %v8162_v57  ;;  %v8606_v29 = vrot.slane %v8605_v61, 4  ;;  %v7854_v26 = vshrl.u32 %v7579_v25, 16  ;;  %v16641_v10 = vadd.f32 %v12698_v48, %v12586_v4  ;;  %v12701_v52 = vadd.f32 %v16557_v53, %v16541_v63 }
 0x479   : > { %v8610_v19 = vrot.slane %v8608_v59, 5  ;;  %v8614_v23 = vrot.slane %v8612_v35, 4  ;;  %v7581_v43 = vld [vmem:[#allocation2 + $0x94] sm:$0xf]  ;;  %7996 = vst [vmem:[#allocation4 + $0x34c] sm:$0xf] %v7852_v39  ;;  %v16647_v45 = vadd.f32 %v16580_v56, %v16567_v46 }
 0x47a   : > { %v8620_v36 = vrot.slane %v8618_v31, 5  ;;  %v7857_v21 = vshll.u32 %v7579_v25, 16  ;;  %v7863_v54 = vshll.u32 %v7580_v58, 16  ;;  %v8035_v2 = vld [vmem:[#allocation2 + $0x8c] sm:$0xe]  ;;  %v7867_v0 = vshrl.u32 %v7580_v58, 16  ;;  %v16649_v31 = vpop.f32.mrf.mxu1  ;;  %v16651_v25 = vpop.f32.mrf.mxu0 }
 0x47b   : > { %v8611_v14 = vsel %vm14101_vm5, %v8606_v29, %v8610_v19  ;;  %v8615_v47 = vor.u32 %v8614_v23, %v8610_v19  ;;  %v7873_v6 = vshll.u32 %v7581_v43, 16  ;;  %v8036_v30 = vld [vmem:[#allocation2 + $0x90] sm:$0xf]  ;;  %v16635_v18 = vld [vmem:[#allocation2 + $0x94] sm:$0xf]  ;;  %v7856_v40 = vrot.slane %v7854_v26, 4 }
 0x47c   : > { %8764 = vst [vmem:[#allocation4 + $0x334] sm:$0xf] %v8611_v14  ;;  %v7859_v49 = vrot.slane %v7857_v21, 5  ;;  %v7865_v33 = vrot.slane %v7863_v54, 5  ;;  %v7877_v55 = vshrl.u32 %v7581_v43, 16  ;;  %17498 = vst [vmem:[#allocation15_spill] sm:$0xff] %v16641_v10  ;;  %v16656_v53 = vadd.f32 %v12701_v52, %v12589_v24  ;;  %v16660_v43 = vpop.f32.mrf.mxu1 }
 0x47d   : > { %v13726_v27 = vld [vmem:[#allocation4 + $0x2ec] ss:$36 sps:$4 sm:$0xff]   ;;  %v8616_v16 = vrot.slane %v8615_v47, 4  ;;  %v7869_v59 = vrot.slane %v7867_v0, 4  ;;  %v7875_v35 = vrot.slane %v7873_v6, 5  ;;  %v12241_v57 = vrot.slane %v8035_v2, 9 }
 0x47e   : > { %v13728_v32 = vld [vmem:[#allocation4 + $0x2e8] ss:$36 sps:$4 sm:$0xff]   ;;  %v7860_v61 = vor.u32 %v7859_v49, %v7856_v40  ;;  %11089 = vmatprep.mubr.bf16.mxu0 %v13726_v27  ;;  %v8165_v58 = vrot.slane %v8036_v30, 5  ;;  %v8168_v48 = vrot.slane %v16635_v18, 5  ;;  %v8278_v63 = vld [vmem:[#allocation2 + $0xa0] sm:$0xf]  ;;  %v12704_v23 = vadd.f32 %v16582_v9, %v16569_v20  ;;  %v16676_v18 = vpop.f32.mrf.mxu1 }
 0x47f   : > { %v8621_v4 = vsel %vm14101_vm5, %v8616_v16, %v8620_v36  ;;  %17499 = vst [vmem:[#allocation16_spill] sm:$0xff] %v16656_v53  ;;  %11090 = vmatmul.mubr.bf16.gmra.mxu0 %v13728_v32  ;;  %v7870_v56 = vor.u32 %v7869_v59, %v7865_v33  ;;  %v8279_v39 = vld [vmem:[#allocation2 + $0xa4] sm:$0xf]  ;;  %8310 = vst [vmem:[#allocation4 + $0x378] sm:$0xf] %v8278_v63  ;;  %v7879_v19 = vrot.slane %v7877_v55, 4  ;;  %v16662_v36 = vpop.f32.mrf.mxu0 }
 0x480   : > { %8765 = vst [vmem:[#allocation4 + $0x358] sm:$0xf] %v8621_v4  ;;  %v7861_v46 = vrot.slane %v7860_v61, 4  ;;  %v8348_v29 = vld [vmem:[#allocation2 + $0xa0] sm:$0xf]  ;;  %v8166_v24 = vsel %vm14091_vm4, %v12241_v57, %v8165_v58  ;;  %v8167_v54 = vrot.slane %v8165_v58, 4  ;;  %v16668_v2 = vadd.f32 %v16597_v62, %v16591_v41  ;;  %v16684_v52 = vpop.f32.mrf.mxu1 }
 0x481   : > { %v13729_v26 = vld [vmem:[#allocation4 + $0x32c] ss:$36 sps:$4 sm:$0xff]   ;;  %8311 = vst [vmem:[#allocation4 + $0x39c] sm:$0xf] %v8279_v39  ;;  %v16672_v14 = vadd.f32 %v16599_v15, %v16593_v28  ;;  %v7871_v9 = vrot.slane %v7870_v56, 4  ;;  %v8623_v6 = vshrl.u32 %v8348_v29, 16  ;;  %v7880_v30 = vor.u32 %v7879_v19, %v7875_v35  ;;  %v16678_v40 = vpop.f32.mrf.mxu0 }
 0x482   : > { %v13731_v21 = vld [vmem:[#allocation4 + $0x328] ss:$36 sps:$4 sm:$0xff]   ;;  %v7866_v20 = vsel %vm14101_vm5, %v7861_v46, %v7865_v33  ;;  %8245 = vst [vmem:[#allocation4 + $0x374] sm:$0xf] %v8166_v24  ;;  %v8349_v47 = vld [vmem:[#allocation2 + $0xa4] sm:$0xf]  ;;  %10936 = vmatprep.mubr.bf16.mxu1 %v13729_v26  ;;  %v8169_v41 = vsel %vm14091_vm4, %v8167_v54, %v8168_v48 }
 0x483   : > { %v8350_v0 = vld [vmem:[#allocation2 + $0xa8] sm:$0xf]  ;;  %7997 = vst [vmem:[#allocation4 + $0x370] sm:$0xf] %v7866_v20  ;;  %v8626_v28 = vshll.u32 %v8348_v29, 16  ;;  %v8632_v62 = vshll.u32 %v8349_v47, 16  ;;  %10937 = vmatmul.mubr.bf16.gmra.mxu1 %v13731_v21  ;;  %v7876_v33 = vsel %vm14101_vm5, %v7871_v9, %v7875_v35  ;;  %v16686_v61 = vpop.f32.mrf.mxu0  ;;  %v16691_v9 = vadd.f32 %v12704_v23, %v16647_v45 }
 0x484   : > { %v8636_v15 = vshrl.u32 %v8349_v47, 16  ;;  %v7582_v49 = vld [vmem:[#allocation2 + $0x98] sm:$0xf]  ;;  %8246 = vst [vmem:[#allocation4 + $0x398] sm:$0xf] %v8169_v41  ;;  %v8625_v55 = vrot.slane %v8623_v6, 4  ;;  %v16693_v47 = vpop.f32.mrf.mxu1 }
 0x485   : > { %v8642_v27 = vshll.u32 %v8350_v0, 16  ;;  %v8646_v32 = vshrl.u32 %v8350_v0, 16  ;;  %v7583_v16 = vld [vmem:[#allocation2 + $0x9c] sm:$0x1]  ;;  %7998 = vst [vmem:[#allocation4 + $0x394] sm:$0xf] %v7876_v33  ;;  %v16688_v19 = vpop.f32.mrf.mxu0 }
 0x486   : > { %v8628_v59 = vrot.slane %v8626_v28, 5  ;;  %v8634_v57 = vrot.slane %v8632_v62, 5  ;;  %v8638_v4 = vrot.slane %v8636_v15, 4  ;;  %v7881_v58 = vrot.slane %v7880_v30, 4  ;;  %v8038_v63 = vld [vmem:[#allocation2 + $0x98] sm:$0xf] }
 0x487   : > { %v8644_v46 = vrot.slane %v8642_v27, 5  ;;  %v7883_v56 = vshll.u32 %v7582_v49, 16  ;;  %v7887_v39 = vshrl.u32 %v7582_v49, 16  ;;  %v7893_v29 = vshll.u32 %v7583_v16, 16  ;;  %v8039_v35 = vld [vmem:[#allocation2 + $0x9c] sm:$0x1]  ;;  %v16695_v62 = vpop.f32.mrf.mxu0 }
 0x488   : > { %v13732_v26 = vld [vmem:[#allocation4 + $0x334] ss:$36 sps:$4 sm:$0xff]   ;;  %v8629_v24 = vor.u32 %v8628_v59, %v8625_v55  ;;  %v8639_v54 = vor.u32 %v8638_v4, %v8634_v57  ;;  %v8170_v20 = vrot.slane %v8168_v48, 4  ;;  %17500 = vst [vmem:[#allocation17_spill] sm:$0xff] %v16691_v9  ;;  %v8171_v41 = vrot.slane %v8038_v63, 5  ;;  %v16697_v48 = vpop.f32.mrf.mxu1 }
 0x489   : > { %v13734_v21 = vld [vmem:[#allocation4 + $0x330] ss:$36 sps:$4 sm:$0xff]   ;;  %v7885_v0 = vrot.slane %v7883_v56, 5  ;;  %v7889_v6 = vrot.slane %v7887_v39, 4  ;;  %v7895_v30 = vrot.slane %v7893_v29, 5  ;;  %11097 = vmatprep.mubr.bf16.mxu0 %v13732_v26  ;;  %v8174_v33 = vrot.slane %v8039_v35, 5  ;;  %v16703_v56 = vpop.f32.mrf.mxu0 }
 0x48a   : > { %v8280_v28 = vld [vmem:[#allocation2 + $0xa8] sm:$0xf]  ;;  %v8630_v15 = vrot.slane %v8629_v24, 4  ;;  %v8640_v49 = vrot.slane %v8639_v54, 4  ;;  %v8281_v27 = vld [vmem:[#allocation2 + $0xac] sm:$0xf]  ;;  %11098 = vmatmul.mubr.bf16.gmra.mxu0 %v13734_v21  ;;  %v8172_v16 = vsel %vm14091_vm4, %v8170_v20, %v8171_v41  ;;  %v16709_v21 = vpop.f32.mrf.mxu1  ;;  %v12710_v9 = vadd.f32 %v16625_v11, %v16614_v44 }
 0x48b   : > { %8312 = vst [vmem:[#allocation4 + $0x3c0] sm:$0xf] %v8280_v28  ;;  %v8648_v55 = vrot.slane %v8646_v32, 4  ;;  %v7886_v45 = vsel %vm14101_vm5, %v7881_v58, %v7885_v0  ;;  %v7890_v23 = vor.u32 %v7889_v6, %v7885_v0  ;;  %v8173_v59 = vrot.slane %v8171_v41, 4  ;;  %8313 = vst [vmem:[#allocation4 + $0x3e4] sm:$0xf] %v8281_v27  ;;  %v16719_v6 = vpop.f32.mrf.mxu0 }
 0x48c   : > { %v8351_v4 = vld [vmem:[#allocation2 + $0xac] sm:$0xf]  ;;  %v8352_v63 = vld [vmem:[#allocation2 + $0xb0] sm:$0x1]  ;;  %v8635_v39 = vsel %vm14101_vm5, %v8630_v15, %v8634_v57  ;;  %v8645_v32 = vsel %vm14101_vm5, %v8640_v49, %v8644_v46  ;;  %7999 = vst [vmem:[#allocation4 + $0x3b8] sm:$0xf] %v7886_v45  ;;  %v16715_v57 = vadd.f32 %v16672_v14, %v16668_v2 }
 0x48d   : > { %8247 = vst [vmem:[#allocation4 + $0x3bc] sm:$0xf] %v8172_v16  ;;  %v8649_v29 = vor.u32 %v8648_v55, %v8644_v46  ;;  %v8652_v58 = vshll.u32 %v8351_v4, 16  ;;  %v7584_v35 = vld [vmem:[#allocation2 + $0xa0] sm:$0xf]  ;;  %v7891_v20 = vrot.slane %v7890_v23, 4  ;;  %v8175_v0 = vsel %vm14091_vm4, %v8173_v59, %v8174_v33  ;;  %v16721_v55 = vpop.f32.mrf.mxu1  ;;  %v16725_v16 = vpop.f32.mrf.mxu0 }
 0x48e   : > { %v7585_v26 = vld [vmem:[#allocation2 + $0xa4] sm:$0xf]  ;;  %v13735_v24 = vld [vmem:[#allocation4 + $0x370] ss:$36 sps:$4 sm:$0xff]   ;;  %8766 = vst [vmem:[#allocation4 + $0x37c] sm:$0xf] %v8635_v39  ;;  %v12598_v46 = vadd.f32 %v16623_v8, %v16612_v5 }
 0x48f   : > { %v13737_v54 = vld [vmem:[#allocation4 + $0x374] ss:$36 sps:$4 sm:$0xff]   ;;  %8767 = vst [vmem:[#allocation4 + $0x3a0] sm:$0xf] %v8645_v32  ;;  %17501 = vst [vmem:[#allocation18_spill] sm:$0xff] %v16715_v57  ;;  %v8650_v41 = vrot.slane %v8649_v29, 4  ;;  %v7896_v33 = vsel %vm14101_vm5, %v7891_v20, %v7895_v30 }
 0x490   : > { %8248 = vst [vmem:[#allocation4 + $0x3e0] sm:$0xf] %v8175_v0  ;;  %v8654_v28 = vrot.slane %v8652_v58, 5  ;;  %v8656_v15 = vshrl.u32 %v8351_v4, 16  ;;  %v8662_v49 = vshll.u32 %v8352_v63, 16  ;;  %10944 = vmatprep.mubr.bf16.mxu1 %v13737_v54  ;;  %v7898_v45 = vshrl.u32 %v7584_v35, 16  ;;  %v16733_v54 = vpop.f32.mrf.mxu0 }
 0x491   : > { %v7586_v27 = vld [vmem:[#allocation2 + $0xa8] sm:$0xf]  ;;  %v7901_v2 = vshll.u32 %v7584_v35, 16  ;;  %v7907_v14 = vshll.u32 %v7585_v26, 16  ;;  %v8040_v23 = vld [vmem:[#allocation2 + $0xa0] sm:$0xe]  ;;  %10945 = vmatmul.mubr.bf16.gmra.mxu1 %v13735_v24  ;;  %v16731_v35 = vpop.f32.mrf.mxu1 }
 0x492   : > { %8000 = vst [vmem:[#allocation4 + $0x3dc] sm:$0xf] %v7896_v33  ;;  %v8655_v5 = vsel %vm14101_vm5, %v8650_v41, %v8654_v28  ;;  %v8658_v8 = vrot.slane %v8656_v15, 4  ;;  %v8664_v59 = vrot.slane %v8662_v49, 5  ;;  %v7911_v4 = vshrl.u32 %v7585_v26, 16 }
 0x493   : > { %v8041_v63 = vld [vmem:[#allocation2 + $0xa4] sm:$0xf]  ;;  %8768 = vst [vmem:[#allocation4 + $0x3c4] sm:$0xf] %v8655_v5  ;;  %v7900_v39 = vrot.slane %v7898_v45, 4  ;;  %v7903_v32 = vrot.slane %v7901_v2, 5  ;;  %v16736_v5 = vpop.f32.mrf.mxu1  ;;  %v16738_v45 = vpop.f32.mrf.mxu0 }
 0x494   : > { %v7909_v29 = vrot.slane %v7907_v14, 5  ;;  %v7917_v30 = vshll.u32 %v7586_v27, 16  ;;  %v16729_v58 = vld [vmem:[#allocation2 + $0xa8] sm:$0xf]  ;;  %v8659_v24 = vor.u32 %v8658_v8, %v8654_v28  ;;  %v7913_v20 = vrot.slane %v7911_v4, 4 }
 0x495   : > { %v7921_v0 = vshrl.u32 %v7586_v27, 16  ;;  %v12242_v33 = vrot.slane %v8040_v23, 9  ;;  %v7904_v41 = vor.u32 %v7903_v32, %v7900_v39  ;;  %v8178_v49 = vrot.slane %v8041_v63, 5  ;;  %v13739_v2 = vld [vmem:[#allocation4 + $0x378] ss:$36 sps:$4 sm:$0xff]   ;;  %v16748_v32 = vpop.f32.mrf.mxu1 }
 0x496   : > { %v7919_v15 = vrot.slane %v7917_v30, 5  ;;  %v8181_v26 = vrot.slane %v16729_v58, 5  ;;  %v8660_v14 = vrot.slane %v8659_v24, 4  ;;  %v7914_v57 = vor.u32 %v7913_v20, %v7909_v29  ;;  %v13741_v27 = vld [vmem:[#allocation4 + $0x37c] ss:$36 sps:$4 sm:$0xff]   ;;  %v16750_v30 = vpop.f32.mrf.mxu0 }
 0x497   : > { %v12601_v28 = vadd.f32 %v16637_v3, %v16629_v12  ;;  %v7905_v23 = vrot.slane %v7904_v41, 4  ;;  %v8179_v8 = vsel %vm14091_vm4, %v12242_v33, %v8178_v49  ;;  %v8180_v4 = vrot.slane %v8178_v49, 4  ;;  %v8282_v63 = vld [vmem:[#allocation2 + $0xb4] sm:$0xf]  ;;  %v8283_v12 = vld [vmem:[#allocation2 + $0xb8] sm:$0xf]  ;;  %11105 = vmatprep.mubr.bf16.mxu0 %v13741_v27  ;;  %v16764_v49 = vpop.f32.mrf.mxu1 }
 0x498   : > { %v12713_v39 = vadd.f32 %v16639_v51, %v16631_v50  ;;  %v8665_v44 = vsel %vm14101_vm5, %v8660_v14, %v8664_v59  ;;  %v7915_v11 = vrot.slane %v7914_v57, 4  ;;  %8249 = vst [vmem:[#allocation4 + $0x404] sm:$0xf] %v8179_v8  ;;  %8314 = vst [vmem:[#allocation4 + $0x408] sm:$0xf] %v8282_v63  ;;  %v16754_v24 = vadd.f32 %v12710_v9, %v12598_v46  ;;  %v16773_v63 = vpop.f32.mrf.mxu0 }
 0x499   : > { %v8353_v3 = vld [vmem:[#allocation2 + $0xb4] sm:$0xf]  ;;  %v7923_v20 = vrot.slane %v7921_v0, 4  ;;  %v13742_v33 = vld [vmem:[#allocation4 + $0x3b8] ss:$36 sps:$4 sm:$0xff]   ;;  %v7910_v50 = vsel %vm14101_vm5, %v7905_v23, %v7909_v29  ;;  %v8182_v51 = vsel %vm14091_vm4, %v8180_v4, %v8181_v26  ;;  %11106 = vmatmul.mubr.bf16.gmra.mxu0 %v13739_v2  ;;  %v12604_v27 = vadd.f32 %v16660_v43, %v16649_v31 }
 0x49a   : > { %17502 = vst [vmem:[#allocation19_spill] sm:$0xff] %v16754_v24  ;;  %v13744_v41 = vld [vmem:[#allocation4 + $0x3bc] ss:$36 sps:$4 sm:$0xff]   ;;  %8769 = vst [vmem:[#allocation4 + $0x3e8] sm:$0xf] %v8665_v44  ;;  %v8667_v57 = vshrl.u32 %v8353_v3, 16  ;;  %v16762_v59 = vadd.f32 %v12713_v39, %v12601_v28  ;;  %v7920_v9 = vsel %vm14101_vm5, %v7915_v11, %v7919_v15  ;;  %v12716_v58 = vadd.f32 %v16662_v36, %v16651_v25 }
 0x49b   : > { %8315 = vst [vmem:[#allocation4 + $0x42c] sm:$0xf] %v8283_v12  ;;  %8001 = vst [vmem:[#allocation4 + $0x400] sm:$0xf] %v7910_v50  ;;  %v8354_v46 = vld [vmem:[#allocation2 + $0xb8] sm:$0xf]  ;;  %v7924_v14 = vor.u32 %v7923_v20, %v7919_v15  ;;  %10952 = vmatprep.mubr.bf16.mxu1 %v13744_v41 }
 0x49c   : > { %17503 = vst [vmem:[#allocation14_spill] sm:$0xff] %v16762_v59  ;;  %8250 = vst [vmem:[#allocation4 + $0x428] sm:$0xf] %v8182_v51  ;;  %v16768_v0 = vld [vmem:[#allocation2 + $0xbc] sm:$0xf]  ;;  %v8670_v29 = vshll.u32 %v8353_v3, 16  ;;  %10953 = vmatmul.mubr.bf16.gmra.mxu1 %v13742_v33  ;;  %v16776_v3 = vpop.f32.mrf.mxu1  ;;  %v16780_v51 = vpop.f32.mrf.mxu0 }
 0x49d   : > { %8002 = vst [vmem:[#allocation4 + $0x424] sm:$0xf] %v7920_v9  ;;  %v8669_v28 = vrot.slane %v8667_v57, 4  ;;  %v8676_v23 = vshll.u32 %v8354_v46, 16  ;;  %v8680_v8 = vshrl.u32 %v8354_v46, 16  ;;  %v8686_v2 = vshll.u32 %v16768_v0, 16 }
 0x49e   : > { %v7587_v4 = vld [vmem:[#allocation2 + $0xac] sm:$0xf]  ;;  %v8672_v39 = vrot.slane %v8670_v29, 5  ;;  %v8690_v44 = vshrl.u32 %v16768_v0, 16  ;;  %v7588_v11 = vld [vmem:[#allocation2 + $0xb0] sm:$0x1]  ;;  %v16784_v29 = vpop.f32.mrf.mxu1 }
 0x49f   : > { %v7925_v12 = vrot.slane %v7924_v14, 4  ;;  %v7927_v15 = vshll.u32 %v7587_v4, 16  ;;  %v8678_v31 = vrot.slane %v8676_v23, 5  ;;  %v8682_v43 = vrot.slane %v8680_v8, 4  ;;  %v8043_v50 = vld [vmem:[#allocation2 + $0xac] sm:$0xf] }
 0x4a0   : > { %v16778_v20 = vrot.slane %v8686_v2, 5  ;;  %v7931_v41 = vshrl.u32 %v7587_v4, 16  ;;  %v8673_v57 = vor.u32 %v8672_v39, %v8669_v28  ;;  %v7937_v46 = vshll.u32 %v7588_v11, 16  ;;  %v8044_v33 = vld [vmem:[#allocation2 + $0xb0] sm:$0x1]  ;;  %v16786_v2 = vpop.f32.mrf.mxu0  ;;  %v16794_v39 = vpop.f32.mrf.mxu1 }
 0x4a1   : > { %v7929_v9 = vrot.slane %v7927_v15, 5  ;;  %v8183_v0 = vrot.slane %v8181_v26, 4  ;;  %v8683_v14 = vor.u32 %v8682_v43, %v8678_v31  ;;  %v8184_v24 = vrot.slane %v8043_v50, 5  ;;  %v8284_v8 = vld [vmem:[#allocation2 + $0xbc] sm:$0xf] }
 0x4a2   : > { %v7933_v59 = vrot.slane %v7931_v41, 4  ;;  %v8187_v23 = vrot.slane %v8044_v33, 5  ;;  %v13745_v4 = vld [vmem:[#allocation4 + $0x3c0] ss:$36 sps:$4 sm:$0xff]   ;;  %v8674_v10 = vrot.slane %v8673_v57, 4  ;;  %v12607_v26 = vadd.f32 %v16684_v52, %v16676_v18  ;;  %v16798_v57 = vpop.f32.mrf.mxu0 }
 0x4a3   : > { %v13747_v53 = vld [vmem:[#allocation4 + $0x3c4] ss:$36 sps:$4 sm:$0xff]   ;;  %v7930_v28 = vsel %vm14101_vm5, %v7925_v12, %v7929_v9  ;;  %8316 = vst [vmem:[#allocation4 + $0x450] sm:$0xf] %v8284_v8  ;;  %v8684_v11 = vrot.slane %v8683_v14, 4  ;;  %v7939_v43 = vrot.slane %v7937_v46, 5  ;;  %v8185_v41 = vsel %vm14091_vm4, %v8183_v0, %v8184_v24 }
 0x4a4   : > { %v7934_v15 = vor.u32 %v7933_v59, %v7929_v9  ;;  %8003 = vst [vmem:[#allocation4 + $0x448] sm:$0xf] %v7930_v28  ;;  %v8285_v50 = vld [vmem:[#allocation2 + $0xc0] sm:$0xf]  ;;  %11113 = vmatprep.mubr.bf16.mxu0 %v13747_v53  ;;  %v13748_v12 = vld [vmem:[#allocation4 + $0x400] ss:$36 sps:$4 sm:$0xff]   ;;  %v8679_v25 = vsel %vm14101_vm5, %v8674_v10, %v8678_v31  ;;  %v16802_v18 = vadd.f32 %v12716_v58, %v12604_v27  ;;  %v16806_v59 = vpop.f32.mrf.mxu1  ;;  %v16813_v27 = vpop.f32.mrf.mxu0 }
 0x4a5   : > { %v13750_v33 = vld [vmem:[#allocation4 + $0x404] ss:$36 sps:$4 sm:$0xff]   ;;  %v8186_v36 = vrot.slane %v8184_v24, 4  ;;  %8251 = vst [vmem:[#allocation4 + $0x44c] sm:$0xf] %v8185_v41  ;;  %v12719_v52 = vadd.f32 %v16686_v61, %v16678_v40  ;;  %11114 = vmatmul.mubr.bf16.gmra.mxu0 %v13745_v4  ;;  %v8689_v53 = vsel %vm14101_vm5, %v8684_v11, %v16778_v20  ;;  %v8692_v10 = vrot.slane %v8690_v44, 4 }
 0x4a6   : > { %8317 = vst [vmem:[#allocation4 + $0x474] sm:$0xf] %v8285_v50  ;;  %8770 = vst [vmem:[#allocation4 + $0x40c] sm:$0xf] %v8679_v25  ;;  %v7935_v9 = vrot.slane %v7934_v15, 4  ;;  %v12610_v24 = vadd.f32 %v16697_v48, %v16693_v47  ;;  %10960 = vmatprep.mubr.bf16.mxu1 %v13750_v33  ;;  %v12722_v11 = vadd.f32 %v16695_v62, %v16688_v19  ;;  %v16826_v15 = vpop.f32.mrf.mxu0 }
 0x4a7   : > { %v8356_v46 = vld [vmem:[#allocation2 + $0xc0] sm:$0xf]  ;;  %v8357_v0 = vld [vmem:[#allocation2 + $0xc4] sm:$0x1]  ;;  %8771 = vst [vmem:[#allocation4 + $0x430] sm:$0xf] %v8689_v53  ;;  %v8188_v40 = vsel %vm14091_vm4, %v8186_v36, %v8187_v23  ;;  %10961 = vmatmul.mubr.bf16.gmra.mxu1 %v13748_v12  ;;  %v8693_v44 = vor.u32 %v8692_v10, %v16778_v20  ;;  %v16820_v28 = vadd.f32 %v12719_v52, %v12607_v26  ;;  %v16824_v23 = vpop.f32.mrf.mxu1 }
 0x4a8   : > { %v8696_v61 = vshll.u32 %v8356_v46, 16  ;;  %v8700_v31 = vshrl.u32 %v8356_v46, 16  ;;  %v8706_v14 = vshll.u32 %v8357_v0, 16  ;;  %v8774_v8 = vld [vmem:[#allocation2 + $0x28] sm:$0xe]  ;;  %v7940_v4 = vsel %vm14101_vm5, %v7935_v9, %v7939_v43  ;;  %v16830_v9 = vpop.f32.mrf.mxu0 }
 0x4a9   : > { %8252 = vst [vmem:[#allocation4 + $0x470] sm:$0xf] %v8188_v40  ;;  %v8775_v47 = vld [vmem:[#allocation2 + $0x2c] sm:$0xf]  ;;  %v8776_v48 = vld [vmem:[#allocation2 + $0x30] sm:$0xf]  ;;  %v16828_v53 = vpop.f32.mrf.mxu1  ;;  %v16832_v46 = vadd.f32 %v12722_v11, %v12610_v24  ;;  %v12613_v0 = vadd.f32 %v16721_v55, %v16709_v21  ;;  %v12725_v21 = vadd.f32 %v16719_v6, %v16703_v56 }
 0x4aa   : > { %v8777_v58 = vld [vmem:[#allocation2 + $0x34] sm:$0xf]  ;;  %8004 = vst [vmem:[#allocation4 + $0x46c] sm:$0xf] %v7940_v4  ;;  %v8698_v41 = vrot.slane %v8696_v61, 5  ;;  %v8702_v50 = vrot.slane %v8700_v31, 4 }
 0x4ab   : > { %v8708_v12 = vrot.slane %v8706_v14, 5  ;;  %v8778_v43 = vld [vmem:[#allocation2 + $0x38] sm:$0x1]  ;;  %v12243_v33 = vrot.slane %v8774_v8, 9  ;;  %v8694_v25 = vrot.slane %v8693_v44, 4  ;;  %v8856_v20 = vrot.slane %v8775_v47, 5  ;;  %v16840_v44 = vpop.f32.mrf.mxu1  ;;  %v16842_v47 = vpop.f32.mrf.mxu0 }
 0x4ac   : > { %v8859_v26 = vrot.slane %v8776_v48, 5  ;;  %v8862_v36 = vrot.slane %v8777_v58, 5  ;;  %v8779_v52 = vld [vmem:[#allocation2 + $0x3c] sm:$0xe]  ;;  %v8703_v19 = vor.u32 %v8702_v50, %v8698_v41  ;;  %v8865_v62 = vrot.slane %v8778_v43, 5 }
 0x4ad   : > { %v8780_v10 = vld [vmem:[#allocation2 + $0x40] sm:$0xf]  ;;  %v8781_v40 = vld [vmem:[#allocation2 + $0x44] sm:$0xf]  ;;  %v8699_v61 = vsel %vm14101_vm5, %v8694_v25, %v8698_v41  ;;  %v8857_v31 = vsel %vm14091_vm4, %v12243_v33, %v8856_v20  ;;  %v8858_v14 = vrot.slane %v8856_v20, 4  ;;  %v12244_v55 = vrot.slane %v8779_v52, 9  ;;  %v16852_v20 = vpop.f32.mrf.mxu1 }
 0x4ae   : > { %v8861_v8 = vrot.slane %v8859_v26, 4  ;;  %v8782_v4 = vld [vmem:[#allocation2 + $0x48] sm:$0xf]  ;;  %v8704_v24 = vrot.slane %v8703_v19, 4  ;;  %8772 = vst [vmem:[#allocation4 + $0x454] sm:$0xf] %v8699_v61  ;;  %v12616_v25 = vadd.f32 %v16736_v5, %v16731_v35  ;;  %v16858_v6 = vadd.f32 %v12725_v21, %v12613_v0 }
 0x4af   : > { %v8864_v48 = vrot.slane %v8862_v36, 4  ;;  %8990 = vst [vmem:[#allocation4 + $0x20] sm:$0xf] %v8857_v31  ;;  %v8783_v58 = vld [vmem:[#allocation2 + $0x4c] sm:$0x1]  ;;  %v8860_v50 = vsel %vm14091_vm4, %v8858_v14, %v8859_v26  ;;  %v8869_v33 = vrot.slane %v8780_v10, 5  ;;  %v12728_v5 = vadd.f32 %v16733_v54, %v16725_v16 }
 0x4b0   : > { %v13752_v11 = vld [vmem:[#allocation4 + $0x408] ss:$36 sps:$4 sm:$0xff]   ;;  %v8863_v43 = vsel %vm14091_vm4, %v8861_v8, %v8862_v36  ;;  %v8709_v19 = vsel %vm14101_vm5, %v8704_v24, %v8708_v12  ;;  %8991 = vst [vmem:[#allocation4 + $0x44] sm:$0xf] %v8860_v50  ;;  %v8872_v26 = vrot.slane %v8781_v40, 5  ;;  %v12619_v12 = vadd.f32 %v16764_v49, %v16748_v32  ;;  %v12632_v24 = vpop.f32.mrf.mxu1 }
 0x4b1   : > { %v13754_v41 = vld [vmem:[#allocation4 + $0x40c] ss:$36 sps:$4 sm:$0xff]   ;;  %v8866_v56 = vsel %vm14091_vm4, %v8864_v48, %v8865_v62  ;;  %8992 = vst [vmem:[#allocation4 + $0x68] sm:$0xf] %v8863_v43  ;;  %v8784_v52 = vld [vmem:[#allocation2 + $0x50] sm:$0xe]  ;;  %v8870_v35 = vsel %vm14091_vm4, %v12244_v55, %v8869_v33  ;;  %v16866_v62 = vpop.f32.mrf.mxu0  ;;  %v12731_v14 = vadd.f32 %v16750_v30, %v16738_v45  ;;  %v16872_v16 = vadd.f32 %v12728_v5, %v12616_v25 }
 0x4b2   : > { %v8785_v61 = vld [vmem:[#allocation2 + $0x54] sm:$0xf]  ;;  %11121 = vmatprep.mubr.bf16.mxu0 %v13754_v41  ;;  %8773 = vst [vmem:[#allocation4 + $0x478] sm:$0xf] %v8709_v19  ;;  %8993 = vst [vmem:[#allocation4 + $0x8c] sm:$0xf] %v8866_v56 }
 0x4b3   : > { %v13755_v36 = vld [vmem:[#allocation4 + $0x448] ss:$36 sps:$4 sm:$0xff]   ;;  %v8871_v17 = vrot.slane %v8869_v33, 4  ;;  %11122 = vmatmul.mubr.bf16.gmra.mxu0 %v13752_v11  ;;  %v8874_v0 = vrot.slane %v8872_v26, 4  ;;  %8994 = vst [vmem:[#allocation4 + $0xb0] sm:$0xf] %v8870_v35  ;;  %v16874_v55 = vpop.f32.mrf.mxu0  ;;  %v16878_v30 = vadd.f32 %v12731_v14, %v12619_v12  ;;  %v12633_v11 = vpop.f32.mrf.mxu1 }
 0x4b4   : > { %v13757_v10 = vld [vmem:[#allocation4 + $0x44c] ss:$36 sps:$4 sm:$0xff]   ;;  %v8875_v40 = vrot.slane %v8782_v4, 5  ;;  %v8878_v31 = vrot.slane %v8783_v58, 5  ;;  %v12245_v54 = vrot.slane %v8784_v52, 9  ;;  %v8882_v32 = vrot.slane %v8785_v61, 5 }
 0x4b5   : > { %v8786_v8 = vld [vmem:[#allocation2 + $0x58] sm:$0xf]  ;;  %10968 = vmatprep.mubr.bf16.mxu1 %v13757_v10  ;;  %v8873_v48 = vsel %vm14091_vm4, %v8871_v17, %v8872_v26  ;;  %v8787_v49 = vld [vmem:[#allocation2 + $0x5c] sm:$0xf]  ;;  %v8788_v21 = vld [vmem:[#allocation2 + $0x60] sm:$0x1]  ;;  %v12747_v56 = vpop.f32.mrf.mxu0  ;;  %v12622_v61 = vadd.f32 %v16784_v29, %v16776_v3  ;;  %v12635_v17 = vpop.f32.mrf.mxu1  ;;  %v12628_v3 = vadd.f32 %v16828_v53, %v16824_v23  ;;  %v12743_v23 = vadd.f32 %v16842_v47, %v16830_v9 }
 0x4b6   : > { %10969 = vmatmul.mubr.bf16.gmra.mxu1 %v13755_v36  ;;  %8995 = vst [vmem:[#allocation4 + $0xd4] sm:$0xf] %v8873_v48  ;;  %v8876_v4 = vsel %vm14091_vm4, %v8874_v0, %v8875_v40  ;;  %v8877_v45 = vrot.slane %v8875_v40, 4  ;;  %v8885_v58 = vrot.slane %v8786_v8, 5  ;;  %v8883_v41 = vsel %vm14091_vm4, %v12245_v54, %v8882_v32  ;;  %v8789_v25 = vld [vmem:[#allocation2 + $0x64] sm:$0xe] }
 0x4b7   : > { %8996 = vst [vmem:[#allocation4 + $0xf8] sm:$0xf] %v8876_v4  ;;  %v8884_v50 = vrot.slane %v8882_v32, 4  ;;  %v8888_v43 = vrot.slane %v8787_v49, 5  ;;  %v8891_v33 = vrot.slane %v8788_v21, 5  ;;  %v12734_v36 = vadd.f32 %v16780_v51, %v16773_v63  ;;  %v12748_v29 = vpop.f32.mrf.mxu0 }
 0x4b8   : > { %v8790_v19 = vld [vmem:[#allocation2 + $0x68] sm:$0xf]  ;;  %v8879_v26 = vsel %vm14091_vm4, %v8877_v45, %v8878_v31  ;;  %v8887_v52 = vrot.slane %v8885_v58, 4  ;;  %8998 = vst [vmem:[#allocation4 + $0x140] sm:$0xf] %v8883_v41  ;;  %v12625_v0 = vadd.f32 %v16806_v59, %v16794_v39  ;;  %v12737_v40 = vadd.f32 %v16798_v57, %v16786_v2  ;;  %v12636_v39 = vpop.f32.mrf.mxu1 }
 0x4b9   : > { %v8791_v10 = vld [vmem:[#allocation2 + $0x6c] sm:$0xf]  ;;  %v8792_v35 = vld [vmem:[#allocation2 + $0x70] sm:$0xf]  ;;  %8997 = vst [vmem:[#allocation4 + $0x11c] sm:$0xf] %v8879_v26  ;;  %v8886_v12 = vsel %vm14091_vm4, %v8884_v50, %v8885_v58  ;;  %v16898_v8 = vadd.f32 %v12734_v36, %v12622_v61  ;;  %v12740_v48 = vadd.f32 %v16826_v15, %v16813_v27  ;;  %v12631_v57 = vadd.f32 %v16852_v20, %v16840_v44  ;;  %v12750_v54 = vpop.f32.mrf.mxu0 }
 0x4ba   : > { %v13761_v5 = vld [vmem:[#allocation4 + $0x20] ss:$36 sps:$4 sm:$0xff]   ;;  %v13758_v31 = vld [vmem:[#allocation4 + $0x450] ss:$36 sps:$4 sm:$0xff]   ;;  %8999 = vst [vmem:[#allocation4 + $0x164] sm:$0xf] %v8886_v12  ;;  %v8889_v51 = vsel %vm14091_vm4, %v8887_v52, %v8888_v43  ;;  %v16902_v2 = vadd.f32 %v12737_v40, %v12625_v0  ;;  %v12634_v53 = vadd.f32 %v12633_v11, %v12632_v24  ;;  %v12638_v9 = vpop.f32.mrf.mxu1  ;;  %v12637_v26 = vadd.f32 %v12636_v39, %v12635_v17 }
 0x4bb   : > { %v13760_v63 = vld [vmem:[#allocation4 + $0x454] ss:$36 sps:$4 sm:$0xff]   ;;  %v8890_v14 = vrot.slane %v8888_v43, 4  ;;  %13088 = vmatprep.mubr.bf16.mxu1 %v13761_v5  ;;  %v13762_v59 = vld [vmem:[#allocation4 + $0x68] ss:$36 sps:$4 sm:$0xff]   ;;  %v12246_v49 = vrot.slane %v8789_v25, 9  ;;  %v16910_v41 = vadd.f32 %v12740_v48, %v12628_v3  ;;  %v16912_v44 = vadd.f32 %v12743_v23, %v12631_v57  ;;  %v12751_v47 = vpop.f32.mrf.mxu0 }
 0x4bc   : > { %9000 = vst [vmem:[#allocation4 + $0x188] sm:$0xf] %v8889_v51  ;;  %11129 = vmatprep.mubr.bf16.mxu0 %v13760_v63  ;;  %v8895_v27 = vrot.slane %v8790_v19, 5  ;;  %v8898_v15 = vrot.slane %v8791_v10, 5  ;;  %v8793_v21 = vld [vmem:[#allocation2 + $0x74] sm:$0x1]  ;;  %v12746_v43 = vadd.f32 %v16874_v55, %v16866_v62  ;;  %v12749_v52 = vadd.f32 %v12748_v29, %v12747_v56  ;;  %v12639_v61 = vpop.f32.mrf.mxu1 }
 0x4bd   : > { %v8892_v32 = vsel %vm14091_vm4, %v8890_v14, %v8891_v33  ;;  %11130 = vmatmul.mubr.bf16.gmra.mxu0 %v13758_v31  ;;  %v13763_v4 = vld [vmem:[#allocation4 + $0xb0] ss:$36 sps:$4 sm:$0xff]   ;;  %v8901_v45 = vrot.slane %v8792_v35, 5  ;;  %v8904_v58 = vrot.slane %v8793_v21, 5  ;;  %v12753_v36 = vpop.f32.mrf.mxu0  ;;  %v8796_v12 = vld [vmem:[#allocation2 + $0x80] sm:$0xf]  ;;  %v12640_v62 = vadd.f32 %v12639_v61, %v12638_v9 }
 0x4be   : > { %9001 = vst [vmem:[#allocation4 + $0x1ac] sm:$0xf] %v8892_v32  ;;  %13089 = vmatmul.mubr.bf16.vlgmr.msra.gmra.mxu1 %v13762_v59  ;;  %v8896_v20 = vsel %vm14091_vm4, %v12246_v49, %v8895_v27  ;;  %v8897_v24 = vrot.slane %v8895_v27, 4  ;;  %v8900_v11 = vrot.slane %v8898_v15, 4  ;;  %v8794_v50 = vld [vmem:[#allocation2 + $0x78] sm:$0xe]  ;;  %v16922_v0 = vadd.f32 %v12746_v43, %v12634_v53  ;;  %v12641_v29 = vpop.f32.mrf.mxu1 }
 0x4bf   : > { %13092 = vmatprep.mubr.bf16.mxu1 %v13763_v4  ;;  %9002 = vst [vmem:[#allocation4 + $0x1d0] sm:$0xf] %v8896_v20  ;;  %v8903_v33 = vrot.slane %v8901_v45, 4  ;;  %v8795_v25 = vld [vmem:[#allocation2 + $0x7c] sm:$0xf]  ;;  %v12247_v19 = vrot.slane %v8794_v50, 9  ;;  %v16926_v3 = vadd.f32 %v12749_v52, %v12637_v26  ;;  %v12754_v31 = vpop.f32.mrf.mxu0  ;;  %v12752_v14 = vadd.f32 %v12751_v47, %v12750_v54 }
 0x4c0   : > { %v13764_v10 = vld [vmem:[#allocation4 + $0xf8] ss:$36 sps:$4 sm:$0xff]   ;;  %v8899_v35 = vsel %vm14091_vm4, %v8897_v24, %v8898_v15  ;;  %v8902_v5 = vsel %vm14091_vm4, %v8900_v11, %v8901_v45  ;;  %v8908_v56 = vrot.slane %v8795_v25, 5  ;;  %v8911_v17 = vrot.slane %v8796_v12, 5  ;;  %v8798_v51 = vld [vmem:[#allocation2 + $0x88] sm:$0x1]  ;;  %v12642_v32 = vpop.f32.mrf.mxu1 }
 0x4c1   : > { %v13765_v55 = vld [vmem:[#allocation4 + $0x140] ss:$36 sps:$4 sm:$0xff]   ;;  %9003 = vst [vmem:[#allocation4 + $0x1f4] sm:$0xf] %v8899_v35  ;;  %v8905_v40 = vsel %vm14091_vm4, %v8903_v33, %v8904_v58  ;;  %9004 = vst [vmem:[#allocation4 + $0x218] sm:$0xf] %v8902_v5  ;;  %v12755_v48 = vadd.f32 %v12754_v31, %v12753_v36  ;;  %v16930_v15 = vadd.f32 %v12752_v14, %v12640_v62  ;;  %v12756_v47 = vpop.f32.mrf.mxu0 }
 0x4c2   : > { %9005 = vst [vmem:[#allocation4 + $0x23c] sm:$0xf] %v8905_v40  ;;  %v8797_v63 = vld [vmem:[#allocation2 + $0x84] sm:$0xf]  ;;  %v8909_v39 = vsel %vm14091_vm4, %v12247_v19, %v8908_v56  ;;  %v8910_v59 = vrot.slane %v8908_v56, 4  ;;  %v8913_v57 = vrot.slane %v8911_v17, 4  ;;  %v12643_v21 = vadd.f32 %v12642_v32, %v12641_v29  ;;  %v12644_v43 = vpop.f32.mrf.mxu1 }
 0x4c3   : > { %v8914_v23 = vrot.slane %v8797_v63, 5  ;;  %v8799_v53 = vld [vmem:[#allocation2 + $0x8c] sm:$0xe]  ;;  %9006 = vst [vmem:[#allocation4 + $0x260] sm:$0xf] %v8909_v39  ;;  %v8917_v49 = vrot.slane %v8798_v51, 5  ;;  %v12757_v26 = vpop.f32.mrf.mxu0 }
 0x4c4   : > { %v12248_v27 = vrot.slane %v8799_v53, 9  ;;  %v8912_v4 = vsel %vm14091_vm4, %v8910_v59, %v8911_v17  ;;  %v8800_v58 = vld [vmem:[#allocation2 + $0x90] sm:$0xf]  ;;  %v8801_v9 = vld [vmem:[#allocation2 + $0x94] sm:$0xf]  ;;  %v16936_v50 = vadd.f32 %v12755_v48, %v12643_v21  ;;  %v12758_v35 = vadd.f32 %v12757_v26, %v12756_v47 }
 0x4c5   : > { %v8915_v54 = vsel %vm14091_vm4, %v8913_v57, %v8914_v23  ;;  %v8916_v45 = vrot.slane %v8914_v23, 4  ;;  %9007 = vst [vmem:[#allocation4 + $0x284] sm:$0xf] %v8912_v4  ;;  %v8921_v20 = vrot.slane %v8800_v58, 5  ;;  %v8924_v24 = vrot.slane %v8801_v9, 5 }
 0x4c6   : > { %13093 = vmatmul.mubr.bf16.gmra.mxu1 %v13764_v10  ;;  %9008 = vst [vmem:[#allocation4 + $0x2a8] sm:$0xf] %v8915_v54  ;;  %v8802_v11 = vld [vmem:[#allocation2 + $0x98] sm:$0xf]  ;;  %v8803_v25 = vld [vmem:[#allocation2 + $0x9c] sm:$0x1]  ;;  %v12645_v10 = vpop.f32.mrf.mxu1 }
 0x4c7   : > { %13096 = vmatprep.mubr.bf16.mxu1 %v13765_v55  ;;  %v8918_v33 = vsel %vm14091_vm4, %v8916_v45, %v8917_v49  ;;  %v8927_v19 = vrot.slane %v8802_v11, 5  ;;  %v13766_v52 = vld [vmem:[#allocation4 + $0x188] ss:$36 sps:$4 sm:$0xff]   ;;  %v8922_v61 = vsel %vm14091_vm4, %v12248_v27, %v8921_v20  ;;  %v8804_v36 = vld [vmem:[#allocation2 + $0xa0] sm:$0xe]  ;;  %v8923_v12 = vrot.slane %v8921_v20, 4  ;;  %v12759_v55 = vpop.f32.mrf.mxu0 }
 0x4c8   : > { %9009 = vst [vmem:[#allocation4 + $0x2cc] sm:$0xf] %v8918_v33  ;;  %v13767_v5 = vld [vmem:[#allocation4 + $0x1d0] ss:$36 sps:$4 sm:$0xff]   ;;  %v8926_v62 = vrot.slane %v8924_v24, 4  ;;  %v12646_v40 = vadd.f32 %v12645_v10, %v12644_v43  ;;  %v8930_v17 = vrot.slane %v8803_v25, 5  ;;  %v12647_v63 = vpop.f32.mrf.mxu1 }
 0x4c9   : > { %9010 = vst [vmem:[#allocation4 + $0x2f0] sm:$0xf] %v8922_v61  ;;  %v8929_v56 = vrot.slane %v8927_v19, 4  ;;  %v8805_v29 = vld [vmem:[#allocation2 + $0xa4] sm:$0xf]  ;;  %v8925_v51 = vsel %vm14091_vm4, %v8923_v12, %v8924_v24  ;;  %v12249_v48 = vrot.slane %v8804_v36, 9  ;;  %v12760_v57 = vpop.f32.mrf.mxu0 }
 0x4ca   : > { %v8806_v31 = vld [vmem:[#allocation2 + $0xa8] sm:$0xf]  ;;  %v8928_v14 = vsel %vm14091_vm4, %v8926_v62, %v8927_v19  ;;  %v8934_v39 = vrot.slane %v8805_v29, 5  ;;  %v8807_v59 = vld [vmem:[#allocation2 + $0xac] sm:$0xf]  ;;  %v16948_v27 = vadd.f32 %v12758_v35, %v12646_v40  ;;  %v12648_v21 = vpop.f32.mrf.mxu1  ;;  %v12761_v45 = vadd.f32 %v12760_v57, %v12759_v55 }
 0x4cb   : > { %9011 = vst [vmem:[#allocation4 + $0x314] sm:$0xf] %v8925_v51  ;;  %v8931_v23 = vsel %vm14091_vm4, %v8929_v56, %v8930_v17  ;;  %9012 = vst [vmem:[#allocation4 + $0x338] sm:$0xf] %v8928_v14  ;;  %v8937_v53 = vrot.slane %v8806_v31, 5  ;;  %v8940_v49 = vrot.slane %v8807_v59, 5  ;;  %v12649_v54 = vadd.f32 %v12648_v21, %v12647_v63  ;;  %v12762_v43 = vpop.f32.mrf.mxu0 }
 0x4cc   : > { %v8808_v32 = vld [vmem:[#allocation2 + $0xb0] sm:$0x1]  ;;  %9013 = vst [vmem:[#allocation4 + $0x35c] sm:$0xf] %v8931_v23  ;;  %v8935_v4 = vsel %vm14091_vm4, %v12249_v48, %v8934_v39  ;;  %v8809_v58 = vld [vmem:[#allocation2 + $0xb4] sm:$0xe]  ;;  %v12650_v12 = vpop.f32.mrf.mxu1 }
 0x4cd   : > { %v8936_v9 = vrot.slane %v8934_v39, 4  ;;  %v8939_v47 = vrot.slane %v8937_v53, 4  ;;  %9014 = vst [vmem:[#allocation4 + $0x380] sm:$0xf] %v8935_v4  ;;  %v8942_v20 = vrot.slane %v8940_v49, 4  ;;  %v8943_v24 = vrot.slane %v8808_v32, 5  ;;  %v12763_v10 = vpop.f32.mrf.mxu0 }
 0x4ce   : > { %13097 = vmatmul.mubr.bf16.gmra.mxu1 %v13766_v52  ;;  %v8810_v11 = vld [vmem:[#allocation2 + $0xb8] sm:$0xf]  ;;  %v16952_v33 = vadd.f32 %v12761_v45, %v12649_v54  ;;  %v8811_v25 = vld [vmem:[#allocation2 + $0xbc] sm:$0xf]  ;;  %v12250_v61 = vrot.slane %v8809_v58, 9  ;;  %v12764_v55 = vadd.f32 %v12763_v10, %v12762_v43  ;;  %v12651_v51 = vpop.f32.mrf.mxu1 }
 0x4cf   : > { %13100 = vmatprep.mubr.bf16.mxu1 %v13767_v5  ;;  %v8938_v19 = vsel %vm14091_vm4, %v8936_v9, %v8937_v53  ;;  %v8941_v26 = vsel %vm14091_vm4, %v8939_v47, %v8940_v49  ;;  %v8944_v52 = vsel %vm14091_vm4, %v8942_v20, %v8943_v24  ;;  %v8812_v36 = vld [vmem:[#allocation2 + $0xc0] sm:$0xf]  ;;  %v8947_v35 = vrot.slane %v8810_v11, 5  ;;  %v8813_v62 = vld [vmem:[#allocation2 + $0xc4] sm:$0x1]  ;;  %v12765_v29 = vpop.f32.mrf.mxu0 }
 0x4d0   : > { %9015 = vst [vmem:[#allocation4 + $0x3a4] sm:$0xf] %v8938_v19  ;;  %9016 = vst [vmem:[#allocation4 + $0x3c8] sm:$0xf] %v8941_v26  ;;  %v8950_v5 = vrot.slane %v8811_v25, 5  ;;  %v8953_v40 = vrot.slane %v8812_v36, 5  ;;  %v12652_v39 = vadd.f32 %v12651_v51, %v12650_v12  ;;  %v12653_v23 = vpop.f32.mrf.mxu1 }
 0x4d1   : > { %9017 = vst [vmem:[#allocation4 + $0x3ec] sm:$0xf] %v8944_v52  ;;  %v13768_v56 = vld [vmem:[#allocation4 + $0x218] ss:$36 sps:$4 sm:$0xff]   ;;  %v13769_v17 = vld [vmem:[#allocation4 + $0x260] ss:$36 sps:$4 sm:$0xff]   ;;  %v8948_v31 = vsel %vm14091_vm4, %v12250_v61, %v8947_v35  ;;  %v12766_v59 = vpop.f32.mrf.mxu0 }
 0x4d2   : > { %v8956_v63 = vrot.slane %v8813_v62, 5  ;;  %v8949_v14 = vrot.slane %v8947_v35, 4  ;;  %v8952_v48 = vrot.slane %v8950_v5, 4  ;;  %9018 = vst [vmem:[#allocation4 + $0x410] sm:$0xf] %v8948_v31  ;;  %v8955_v57 = vrot.slane %v8953_v40, 4  ;;  %v12654_v54 = vpop.f32.mrf.mxu1 }
 0x4d3   : > { %v12767_v53 = vadd.f32 %v12766_v59, %v12765_v29  ;;  %v16966_v21 = vadd.f32 %v12764_v55, %v12652_v39  ;;  %v12655_v45 = vadd.f32 %v12654_v54, %v12653_v23  ;;  %v13770_v58 = vld [vmem:[#allocation4 + $0x2a8] ss:$36 sps:$4 sm:$0xff]   ;;  %v13771_v47 = vld [vmem:[#allocation4 + $0x2f0] ss:$36 sps:$4 sm:$0xff]   ;;  %v13772_v26 = vld [vmem:[#allocation4 + $0x338] ss:$36 sps:$4 sm:$0xff]   ;;  %v12896_v61 = vpop.f32.mrf.mxu0 }
 0x4d4   : > { %v8951_v32 = vsel %vm14091_vm4, %v8949_v14, %v8950_v5  ;;  %v8954_v49 = vsel %vm14091_vm4, %v8952_v48, %v8953_v40  ;;  %v8957_v4 = vsel %vm14091_vm4, %v8955_v57, %v8956_v63  ;;  %v12784_v20 = vpop.f32.mrf.mxu1 }
 0x4d5   : > { %17504 = vst [vmem:[#allocation13_spill] sm:$0xff] %v16966_v21  ;;  %9019 = vst [vmem:[#allocation4 + $0x434] sm:$0xf] %v8951_v32  ;;  %v16970_v9 = vadd.f32 %v12767_v53, %v12655_v45  ;;  %v12897_v10 = vpop.f32.mrf.mxu0 }
 0x4d6   : > { %13101 = vmatmul.mubr.bf16.gmra.mxu1 %v13768_v56  ;;  %9020 = vst [vmem:[#allocation4 + $0x458] sm:$0xf] %v8954_v49  ;;  %9021 = vst [vmem:[#allocation4 + $0x47c] sm:$0xf] %v8957_v4  ;;  %v12785_v24 = vpop.f32.mrf.mxu1  ;;  %v12898_v5 = vadd.f32 %v12897_v10, %v12896_v61 }
 0x4d7   : > { %13104 = vmatprep.mubr.bf16.mxu1 %v13769_v17  ;;  %17505 = vst [vmem:[#allocation11_spill] sm:$0xff] %v16970_v9  ;;  %v12786_v11 = vadd.f32 %v12785_v24, %v12784_v20  ;;  %v13773_v52 = vld [vmem:[#allocation4 + $0x380] ss:$36 sps:$4 sm:$0xff]   ;;  %v12899_v12 = vpop.f32.mrf.mxu0 }
 0x4d8   : > { %v12787_v43 = vpop.f32.mrf.mxu1  ;;  %v13774_v56 = vld [vmem:[#allocation4 + $0x3c8] ss:$36 sps:$4 sm:$0xff]  }
 0x4d9   : > { %v10851_v25 = vadd.f32 %v12786_v11, %v16429_v38  ;;  %v12900_v17 = vpop.f32.mrf.mxu0 }
 0x4da   : > { %v12788_v19 = vpop.f32.mrf.mxu1  ;;  %v12901_v31 = vadd.f32 %v12900_v17, %v12899_v12 }
 0x4db   : > { %v12789_v13 = vadd.f32 %v12788_v19, %v12787_v43  ;;  %v16974_v55 = vadd.f32 %v12898_v5, %v10851_v25  ;;  %v16979_v51 = vpop.f32.mrf.mxu0 }
 0x4dc   : > { %v12790_v35 = vpop.f32.mrf.mxu1  ;;  %v13775_v29 = vld [vmem:[#allocation4 + $0x410] ss:$36 sps:$4 sm:$0xff]  }
 0x4dd   : > { %v10854_v36 = vadd.f32 %v12789_v13, %v16447_v42  ;;  %v16983_v39 = vpop.f32.mrf.mxu0 }
 0x4de   : > { %13105 = vmatmul.mubr.bf16.gmra.mxu1 %v13770_v58  ;;  %v12791_v62 = vpop.f32.mrf.mxu1 }
 0x4df   : > { %13108 = vmatprep.mubr.bf16.mxu1 %v13771_v47  ;;  %v12792_v40 = vadd.f32 %v12791_v62, %v12790_v35  ;;  %v16981_v48 = vadd.f32 %v12901_v31, %v10854_v36  ;;  %v16988_v23 = vpop.f32.mrf.mxu0 }
 0x4e0   : > { %v12793_v38 = vpop.f32.mrf.mxu1 }
 0x4e1   : > { %v16977_v63 = vadd.f32 %v12792_v40, %v16474_v34  ;;  %v13776_v34 = vld [vmem:[#allocation4 + $0x458] ss:$36 sps:$4 sm:$0xff]   ;;  %v16990_v4 = vpop.f32.mrf.mxu0 }
 0x4e2   : > { %v12794_v42 = vpop.f32.mrf.mxu1 }
 0x4e3   : > { %v12795_v14 = vadd.f32 %v12794_v42, %v12793_v38  ;;  %v16995_v47 = vpop.f32.mrf.mxu0  ;;  %v17507_v42 = vld [vmem:[#allocation16_spill] sm:$0xff] }
 0x4e4   : > { %v12796_v59 = vpop.f32.mrf.mxu1 }
 0x4e5   : > { %v16986_v57 = vadd.f32 %v12795_v14, %v16495_v22  ;;  %v17000_v22 = vpop.f32.mrf.mxu0 }
 0x4e6   : > { %13109 = vmatmul.mubr.bf16.gmra.mxu1 %v13772_v26  ;;  %v12797_v53 = vpop.f32.mrf.mxu1 }
 0x4e7   : > { %13112 = vmatprep.mubr.bf16.mxu1 %v13773_v52  ;;  %v12798_v32 = vadd.f32 %v12797_v53, %v12796_v59  ;;  %v17002_v11 = vpop.f32.mrf.mxu0 }
 0x4e8   : > { %v12799_v49 = vpop.f32.mrf.mxu1 }
 0x4e9   : > { %v16993_v54 = vadd.f32 %v12798_v32, %v16545_v37  ;;  %v17004_v25 = vpop.f32.mrf.mxu0 }
 0x4ea   : > { %v12800_v45 = vpop.f32.mrf.mxu1 }
 0x4eb   : > { %v12801_v58 = vadd.f32 %v12800_v45, %v12799_v49  ;;  %v17509_v45 = vld [vmem:[#allocation17_spill] sm:$0xff] }
 0x4ec   : > { %v12802_v24 = vpop.f32.mrf.mxu1  ;;  %v17009_v13 = vpop.f32.mrf.mxu0 }
 0x4ed   : > { %v16998_v20 = vadd.f32 %v12801_v58, %v16562_v7 }
 0x4ee   : > { %13113 = vmatmul.mubr.bf16.gmra.mxu1 %v13774_v56  ;;  %v12803_v43 = vpop.f32.mrf.mxu1  ;;  %v17011_v36 = vpop.f32.mrf.mxu0  ;;  %v17506_v56 = vld [vmem:[#allocation15_spill] sm:$0xff] }
 0x4ef   : > { %13116 = vmatprep.mubr.bf16.mxu1 %v13775_v29  ;;  %v12804_v19 = vadd.f32 %v12803_v43, %v12802_v24 }
 0x4f0   : > { %v12805_v26 = vpop.f32.mrf.mxu1  ;;  %v17016_v10 = vpop.f32.mrf.mxu0 }
 0x4f1   : > { %v17007_v37 = vadd.f32 %v12804_v19, %v16587_v60 }
 0x4f2   : > { %v12806_v52 = vpop.f32.mrf.mxu1  ;;  %v17018_v12 = vpop.f32.mrf.mxu0 }
 0x4f3   : > { %v12807_v61 = vadd.f32 %v12806_v52, %v12805_v26  ;;  %v17510_v52 = vld [vmem:[#allocation18_spill] sm:$0xff] }
 0x4f4   : > { %v12808_v35 = vpop.f32.mrf.mxu1 }
 0x4f5   : > { %v17014_v7 = vadd.f32 %v12807_v61, %v16604_v1 }
 0x4f6   : > { %13117 = vmatmul.mubr.bf16.gmra.mxu1 %v13776_v34  ;;  %v12809_v5 = vpop.f32.mrf.mxu1 }
 0x4f7   : > { %v12810_v62 = vadd.f32 %v12809_v5, %v12808_v35  ;;  %v17023_v38 = vpop.f32.mrf.mxu0 }
 0x4f8   : > { %v12811_v40 = vpop.f32.mrf.mxu1 }
 0x4f9   : > { %v17021_v60 = vadd.f32 %v12810_v62, %v17506_v56  ;;  %v17025_v31 = vpop.f32.mrf.mxu0 }
 0x4fa   : > { %v12812_v17 = vpop.f32.mrf.mxu1 }
 0x4fb   : > { %v12813_v29 = vadd.f32 %v12812_v17, %v12811_v40  ;;  %v17030_v14 = vpop.f32.mrf.mxu0 }
 0x4fc   : > { %v12814_v59 = vpop.f32.mrf.mxu1 }
 0x4fd   : > { %v17028_v1 = vadd.f32 %v12813_v29, %v17507_v42  ;;  %v17032_v53 = vpop.f32.mrf.mxu0  ;;  %v17511_v29 = vld [vmem:[#allocation19_spill] sm:$0xff] }
 0x4fe   : > { %v12815_v32 = vpop.f32.mrf.mxu1 }
 0x4ff   : > { %17508 = vst [vmem:[#allocation12_spill] sm:$0xff] %v17028_v1  ;;  %v12816_v34 = vadd.f32 %v12815_v32, %v12814_v59 }
 0x500   : > { %v12817_v49 = vpop.f32.mrf.mxu1 }
 0x501   : > { %v17035_v58 = vadd.f32 %v12816_v34, %v17509_v45 }
 0x502   : > { %v12818_v43 = vpop.f32.mrf.mxu1 }
 0x503   : > { %v12819_v19 = vadd.f32 %v12818_v43, %v12817_v49  ;;  %v17513_v49 = vld [vmem:[#allocation14_spill] sm:$0xff] }
 0x504   : > { %v17037_v24 = vpop.f32.mrf.mxu0 }
 0x505   : > { %v17042_v61 = vadd.f32 %v12819_v19, %v17510_v52 }
 0x506   : > { %v17039_v26 = vpop.f32.mrf.mxu0  ;;  %v12820_v35 = vpop.f32.mrf.mxu1 }
 0x508   : > { %v17044_v5 = vpop.f32.mrf.mxu0  ;;  %v12821_v62 = vpop.f32.mrf.mxu1 }
 0x509   : > { %v12822_v40 = vadd.f32 %v12821_v62, %v12820_v35 }
 0x50a   : > { %v12823_v56 = vpop.f32.mrf.mxu1  ;;  %v17046_v17 = vpop.f32.mrf.mxu0 }
 0x50b   : > { %v17049_v42 = vadd.f32 %v12822_v40, %v17511_v29 }
 0x50c   : > { %v12824_v59 = vpop.f32.mrf.mxu1 }
 0x50d   : > { %17512 = vst [vmem:[#allocation15_spill] sm:$0xff] %v17049_v42  ;;  %v12825_v32 = vadd.f32 %v12824_v59, %v12823_v56 }
 0x50f   : > { %v17054_v45 = vadd.f32 %v12825_v32, %v17513_v49 }
 0x510   : > { %v17051_v34 = vpop.f32.mrf.mxu0 }
 0x511   : > { %17514 = vst [vmem:[#allocation16_spill] sm:$0xff] %v17054_v45 }
 0x512   : > { %v17056_v43 = vpop.f32.mrf.mxu0 }
 0x513   : > { %v12826_v19 = vpop.f32.mrf.mxu1 }
 0x514   : > { %v17058_v52 = vpop.f32.mrf.mxu0 }
 0x515   : > { %17515 = vst [vmem:[#allocation17_spill] sm:$0xff] %v17058_v52  ;;  %v12827_v9 = vpop.f32.mrf.mxu1 }
 0x516   : > { %v12828_v35 = vadd.f32 %v12827_v9, %v12826_v19  ;;  %v17060_v62 = vpop.f32.mrf.mxu0 }
 0x517   : > { %17516 = vst [vmem:[#allocation18_spill] sm:$0xff] %v17060_v62  ;;  %v12829_v21 = vpop.f32.mrf.mxu1 }
 0x518   : > { %v17063_v40 = vadd.f32 %v12828_v35, %v16802_v18 }
 0x519   : > { %v12830_v29 = vpop.f32.mrf.mxu1 }
 0x51a   : > { %17517 = vst [vmem:[#allocation19_spill] sm:$0xff] %v17063_v40  ;;  %v12831_v59 = vadd.f32 %v12830_v29, %v12829_v21 }
 0x51b   : > { %v17065_v56 = vpop.f32.mrf.mxu0 }
 0x51c   : > { %v17070_v32 = vadd.f32 %v12831_v59, %v16820_v28 }
 0x51d   : > { %v17067_v42 = vpop.f32.mrf.mxu0 }
 0x51e   : > { %17518 = vst [vmem:[#allocation14_spill] sm:$0xff] %v17070_v32 }
 0x51f   : > { %v12832_v49 = vpop.f32.mrf.mxu1  ;;  %v17072_v45 = vpop.f32.mrf.mxu0 }
 0x520   : > { %17519 = vst [vmem:[#allocation20_spill] sm:$0xff] %v17072_v45 }
 0x521   : > { %v12833_v52 = vpop.f32.mrf.mxu1  ;;  %v17074_v19 = vpop.f32.mrf.mxu0 }
 0x522   : > { %v12834_v9 = vadd.f32 %v12833_v52, %v12832_v49 }
 0x523   : > { %v12835_v62 = vpop.f32.mrf.mxu1 }
 0x524   : > { %v17077_v18 = vadd.f32 %v12834_v9, %v16832_v46 }
 0x525   : > { %v12836_v35 = vpop.f32.mrf.mxu1 }
 0x526   : > { %17520 = vst [vmem:[#allocation21_spill] sm:$0xff] %v17077_v18  ;;  %v12837_v40 = vadd.f32 %v12836_v35, %v12835_v62 }
 0x527   : > { %v17079_v1 = vpop.f32.mrf.mxu0 }
 0x528   : > { %v17082_v21 = vadd.f32 %v12837_v40, %v16858_v6 }
 0x529   : > { %v17084_v28 = vpop.f32.mrf.mxu0 }
 0x52a   : > { %17521 = vst [vmem:[#allocation22_spill] sm:$0xff] %v17082_v21  ;;  %17522 = vst [vmem:[#allocation23_spill] sm:$0xff] %v17084_v28 }
 0x52b   : > { %v17086_v45 = vpop.f32.mrf.mxu0 }
 0x52c   : > { %17523 = vst [vmem:[#allocation24_spill] sm:$0xff] %v17086_v45 }
 0x52d   : > { %v12838_v29 = vpop.f32.mrf.mxu1  ;;  %v17091_v18 = vpop.f32.mrf.mxu0 }
 0x52e   : > { %17524 = vst [vmem:[#allocation25_spill] sm:$0xff] %v17091_v18 }
 0x52f   : > { %v12839_v59 = vpop.f32.mrf.mxu1 }
 0x530   : > { %v12840_v32 = vadd.f32 %v12839_v59, %v12838_v29 }
 0x531   : > { %v12841_v52 = vpop.f32.mrf.mxu1 }
 0x532   : > { %v17089_v49 = vadd.f32 %v12840_v32, %v16872_v16  ;;  %v17096_v21 = vpop.f32.mrf.mxu0 }
 0x533   : > { %v12842_v46 = vpop.f32.mrf.mxu1 }
 0x534   : > { %v12843_v9 = vadd.f32 %v12842_v46, %v12841_v52  ;;  %v17101_v16 = vpop.f32.mrf.mxu0 }
 0x535   : > { %v12844_v62 = vpop.f32.mrf.mxu1 }
 0x536   : > { %v17094_v35 = vadd.f32 %v12843_v9, %v16878_v30  ;;  %v17106_v52 = vpop.f32.mrf.mxu0 }
 0x537   : > { %v12845_v6 = vpop.f32.mrf.mxu1 }
 0x538   : > { %17525 = vst [vmem:[#allocation26_spill] sm:$0xff] %v17094_v35  ;;  %v12846_v40 = vadd.f32 %v12845_v6, %v12844_v62  ;;  %v17108_v35 = vpop.f32.mrf.mxu0 }
 0x539   : > { %v12847_v28 = vpop.f32.mrf.mxu1 }
 0x53a   : > { %v17099_v29 = vadd.f32 %v12846_v40, %v16898_v8 }
 0x53b   : > { %v12848_v59 = vpop.f32.mrf.mxu1 }
 0x53c   : > { %17526 = vst [vmem:[#allocation27_spill] sm:$0xff] %v17099_v29  ;;  %v12849_v45 = vadd.f32 %v12848_v59, %v12847_v28 }
 0x53e   : > { %v17104_v32 = vadd.f32 %v12849_v45, %v16902_v2 }
 0x53f   : > { %v17113_v29 = vpop.f32.mrf.mxu0 }
 0x540   : > { %17527 = vst [vmem:[#allocation28_spill] sm:$0xff] %v17104_v32 }
 0x541   : > { %v17118_v45 = vpop.f32.mrf.mxu0 }
 0x542   : > { %17530 = vst [vmem:[#allocation31_spill] sm:$0xff] %v17118_v45 }
 0x543   : > { %v12850_v46 = vpop.f32.mrf.mxu1 }
 0x545   : > { %v12851_v30 = vpop.f32.mrf.mxu1 }
 0x546   : > { %v12852_v9 = vadd.f32 %v12851_v30, %v12850_v46  ;;  %v17120_v46 = vpop.f32.mrf.mxu0 }
 0x547   : > { %v12853_v62 = vpop.f32.mrf.mxu1  ;;  %17531 = vst [vmem:[#allocation32_spill] sm:$0xff] %v17120_v46 }
 0x548   : > { %v17111_v6 = vadd.f32 %v12852_v9, %v16910_v41 }
 0x549   : > { %v12854_v8 = vpop.f32.mrf.mxu1 }
 0x54a   : > { %17528 = vst [vmem:[#allocation29_spill] sm:$0xff] %v17111_v6  ;;  %v12855_v40 = vadd.f32 %v12854_v8, %v12853_v62  ;;  %v17125_v6 = vpop.f32.mrf.mxu0 }
 0x54c   : > { %v17116_v28 = vadd.f32 %v12855_v40, %v16912_v44  ;;  %v17130_v40 = vpop.f32.mrf.mxu0 }
 0x54e   : > { %17529 = vst [vmem:[#allocation30_spill] sm:$0xff] %v17116_v28  ;;  %v17135_v46 = vpop.f32.mrf.mxu0 }
 0x551   : > { %v12856_v2 = vpop.f32.mrf.mxu1 }
 0x553   : > { %v12857_v59 = vpop.f32.mrf.mxu1 }
 0x554   : > { %v12858_v32 = vadd.f32 %v12857_v59, %v12856_v2 }
 0x555   : > { %v12859_v18 = vpop.f32.mrf.mxu1 }
 0x556   : > { %v17123_v30 = vadd.f32 %v12858_v32, %v16922_v0 }
 0x557   : > { %v12860_v41 = vpop.f32.mrf.mxu1 }
 0x558   : > { %17532 = vst [vmem:[#allocation33_spill] sm:$0xff] %v17123_v30  ;;  %v12861_v9 = vadd.f32 %v12860_v41, %v12859_v18  ;;  %v17140_v41 = vpop.f32.mrf.mxu0 }
 0x55a   : > { %v17128_v62 = vadd.f32 %v12861_v9, %v16926_v3 }
 0x55c   : > { %17533 = vst [vmem:[#allocation34_spill] sm:$0xff] %v17128_v62  ;;  %v12862_v44 = vpop.f32.mrf.mxu1 }
 0x55e   : > { %v12863_v8 = vpop.f32.mrf.mxu1 }
 0x55f   : > { %v12864_v28 = vadd.f32 %v12863_v8, %v12862_v44  ;;  %v17145_v44 = vpop.f32.mrf.mxu0 }
 0x560   : > { %v12865_v45 = vpop.f32.mrf.mxu1 }
 0x561   : > { %v17133_v2 = vadd.f32 %v12864_v28, %v16930_v15 }
 0x562   : > { %v12866_v59 = vpop.f32.mrf.mxu1 }
 0x563   : > { %17534 = vst [vmem:[#allocation35_spill] sm:$0xff] %v17133_v2  ;;  %v12867_v0 = vadd.f32 %v12866_v59, %v12865_v45  ;;  %v17150_v45 = vpop.f32.mrf.mxu0 }
 0x565   : > { %v17138_v18 = vadd.f32 %v12867_v0, %v16936_v50  ;;  %v12904_v0 = vadd.f32 %v16983_v39, %v16979_v51  ;;  %v17177_v39 = vld [vmem:[%s17449_s6] ss:$0 sm:$0xff] }
 0x567   : > { %17535 = vst [vmem:[#allocation36_spill] sm:$0xff] %v17138_v18  ;;  %v12868_v32 = vpop.f32.mrf.mxu1 }
 0x569   : > { %v12869_v3 = vpop.f32.mrf.mxu1 }
 0x56a   : > { %v12870_v9 = vadd.f32 %v12869_v3, %v12868_v32  ;;  %v17158_v32 = vpop.f32.mrf.mxu0 }
 0x56b   : > { %v12871_v62 = vpop.f32.mrf.mxu1 }
 0x56c   : > { %v17143_v30 = vadd.f32 %v12870_v9, %v16948_v27  ;;  %v11020_v9 = vadd.f32 %v12904_v0, %v16977_v63  ;;  %v12910_v0 = vadd.f32 %v17000_v22, %v16995_v47 }
 0x56d   : > { %v12872_v15 = vpop.f32.mrf.mxu1 }
 0x56e   : > { %17536 = vst [vmem:[#allocation37_spill] sm:$0xff] %v17143_v30  ;;  %v12873_v28 = vadd.f32 %v12872_v15, %v12871_v62  ;;  %v12907_v62 = vadd.f32 %v16990_v4, %v16988_v23 }
 0x570   : > { %v17148_v8 = vadd.f32 %v12873_v28, %v16952_v33  ;;  %v17166_v33 = vpop.f32.mrf.mxu0  ;;  %v17172_v28 = vld [vmem:[%s17448_s5] ss:$0 sm:$0xff]  ;;  %v11023_v63 = vadd.f32 %v12907_v62, %v16986_v57 }
 0x571   : > { %v11380_v62 = vld [vmem:[#allocation5 + $0x18] sm:$0xff] }
 0x572   : > { %17537 = vst [vmem:[#allocation38_spill] sm:$0xff] %v17148_v8  ;;  %v17179_v30 = vpop.f32.mrf.mxu0 }
 0x573   : > { %17540 = vst [vmem:[#allocation41_spill] sm:$0xff] %v17179_v30  ;;  %v11377_v30 = vld [vmem:[#allocation5 + $0xb0] sm:$0xff] }
 0x576   : > { %v17152_v50 = vpop.f32.mrf.mxu1 }
 0x578   : > { %v17154_v59 = vpop.f32.mrf.mxu1 }
 0x57a   : > { %v17160_v27 = vpop.f32.mrf.mxu1 }
 0x57b   : > { %17538 = vst [vmem:[#allocation39_spill] sm:$0xff] %v17160_v27 }
 0x57c   : > { %v17162_v3 = vpop.f32.mrf.mxu1 }
 0x57d   : > { %17539 = vst [vmem:[#allocation40_spill] sm:$0xff] %v17162_v3 }
 0x57e   : > { %v13090_v15 = vpop.f32.mrf.mxu1 }
 0x57f   : > { %v11181_v51 = vadd.f32 %v13090_v15, %v11020_v9  ;;  %v12916_v9 = vadd.f32 %v17011_v36, %v17009_v13  ;;  %v11379_v15 = vld [vmem:[#allocation5 + $0xd8] sm:$0xff]  ;;  %v12913_v36 = vadd.f32 %v17004_v25, %v17002_v11 }
 0x580   : > { %v11172_v8 = vpop.f32.mrf.mxu1 }
 0x581   : > { %v11308_v23 = vmul.f32 %v17172_v28, %v11181_v51  ;;  %v11173_v4 = vadd.f32 %v11172_v8, %v16974_v55  ;;  %v12919_v51 = vadd.f32 %v17018_v12, %v17016_v10  ;;  %v17192_v8 = vpop.f32.mrf.mxu0  ;;  %v11028_v10 = vadd.f32 %v12910_v0, %v16993_v54 }
 0x582   : > { %v13091_v3 = vpop.f32.mrf.mxu1 }
 0x583   : > { %v11347_v27 = vadd.f32 %v17177_v39, %v11308_v23  ;;  %v11306_v18 = vmul.f32 %v17172_v28, %v11173_v4  ;;  %v11184_v2 = vadd.f32 %v13091_v3, %v11023_v63  ;;  %v11036_v3 = vadd.f32 %v12916_v9, %v17007_v37  ;;  %v17206_v25 = vpop.f32.mrf.mxu0 }
 0x584   : > { %v11175_v55 = vpop.f32.mrf.mxu1  ;;  %v11039_v11 = vadd.f32 %v12919_v51, %v17014_v7 }
 0x585   : > { %v11411_v57 = vadd.f32 %v11379_v15, %v11347_v27  ;;  %v11345_v47 = vadd.f32 %v17177_v39, %v11306_v18  ;;  %v11309_v22 = vmul.f32 %v17172_v28, %v11184_v2  ;;  %v11176_v13 = vadd.f32 %v11175_v55, %v16981_v48  ;;  %v11378_v2 = vld [vmem:[#allocation5] sm:$0xff] }
 0x586   : > { %v13094_v23 = vpop.f32.mrf.mxu1  ;;  %v12928_v48 = vadd.f32 %v17039_v26, %v17037_v24 }
 0x587   : > { %v11443_v12 = vmax.f32 %v11411_v57, 0.0  ;;  %v11409_v4 = vadd.f32 %v11377_v30, %v11345_v47  ;;  %v11348_v27 = vadd.f32 %v17177_v39, %v11309_v22  ;;  %v11307_v18 = vmul.f32 %v17172_v28, %v11176_v13  ;;  %v11383_v47 = vld [vmem:[#allocation5 + $0x30] sm:$0xff] }
 0x588   : > { %v11197_v63 = vadd.f32 %v13094_v23, %v11036_v3  ;;  %v11188_v15 = vpop.f32.mrf.mxu1  ;;  %v11031_v57 = vadd.f32 %v12913_v36, %v16998_v20  ;;  %v12922_v22 = vadd.f32 %v17025_v31, %v17023_v38  ;;  %v12931_v13 = vadd.f32 %v17046_v17, %v17044_v5  ;;  %v11381_v3 = vld [vmem:[#allocation5 + $0x50] sm:$0xff]  ;;  %v17220_v36 = vpop.f32.mrf.mxu0  ;;  %v11384_v5 = vld [vmem:[#allocation5 + $0x48] sm:$0xff] }
 0x589   : > { %11475 = vst [vmem:[%s15936_s9 + $0x10] sm:$0xff] %v11443_v12  ;;  %v11441_v37 = vmax.f32 %v11409_v4, 0.0  ;;  %v11412_v54 = vadd.f32 %v11380_v62, %v11348_v27  ;;  %v11346_v30 = vadd.f32 %v17177_v39, %v11307_v18  ;;  %v11189_v0 = vadd.f32 %v11188_v15, %v11028_v10 }
 0x58a   : > { %v11312_v9 = vmul.f32 %v17172_v28, %v11197_v63  ;;  %v13095_v55 = vpop.f32.mrf.mxu1  ;;  %v11052_v20 = vadd.f32 %v12928_v48, %v17035_v58  ;;  %v12925_v38 = vadd.f32 %v17032_v53, %v17030_v14  ;;  %v12940_v63 = vadd.f32 %v17067_v42, %v17065_v56  ;;  %v11387_v56 = vld [vmem:[#allocation5 + $0xe8] sm:$0xff] }
 0x58b   : > { %11473 = vst [vmem:[%s15936_s9] sm:$0xff] %v11441_v37  ;;  %v11444_v24 = vmax.f32 %v11412_v54, 0.0  ;;  %v11410_v26 = vadd.f32 %v11378_v2, %v11346_v30  ;;  %v11310_v7 = vmul.f32 %v17172_v28, %v11189_v0  ;;  %v11200_v51 = vadd.f32 %v13095_v55, %v11039_v11  ;;  %v11382_v11 = vld [vmem:[#allocation5 + $0x68] sm:$0xff]  ;;  %v17234_v54 = vpop.f32.mrf.mxu0 }
 0x58c   : > { %v11351_v62 = vadd.f32 %v17177_v39, %v11312_v9  ;;  %v11191_v23 = vpop.f32.mrf.mxu1  ;;  %v11044_v37 = vadd.f32 %v12922_v22, %v17021_v60  ;;  %v11055_v53 = vadd.f32 %v12931_v13, %v17042_v61  ;;  %v12934_v42 = vadd.f32 %v17056_v43, %v17051_v34  ;;  %v17541_v60 = vld [vmem:[#allocation12_spill] sm:$0xff] }
 0x58d   : > { %11476 = vst [vmem:[%s15936_s9 + $0x18] sm:$0xff] %v11444_v24  ;;  %v11442_v10 = vmax.f32 %v11410_v26, 0.0  ;;  %v11349_v12 = vadd.f32 %v17177_v39, %v11310_v7  ;;  %v11313_v4 = vmul.f32 %v17172_v28, %v11200_v51  ;;  %v11192_v27 = vadd.f32 %v11191_v23, %v11031_v57  ;;  %v17246_v23 = vpop.f32.mrf.mxu0 }
 0x58e   : > { %v11415_v31 = vadd.f32 %v11383_v47, %v11351_v62  ;;  %v13098_v17 = vpop.f32.mrf.mxu1  ;;  %v11047_v26 = vadd.f32 %v12925_v38, %v17541_v60  ;;  %v17542_v62 = vld [vmem:[#allocation19_spill] sm:$0xff] }
 0x58f   : > { %11474 = vst [vmem:[%s15936_s9 + $0x8] sm:$0xff] %v11442_v10  ;;  %v11413_v18 = vadd.f32 %v11381_v3, %v11349_v12  ;;  %v11352_v58 = vadd.f32 %v17177_v39, %v11313_v4  ;;  %v11311_v48 = vmul.f32 %v17172_v28, %v11192_v27  ;;  %v11213_v2 = vadd.f32 %v13098_v17, %v11052_v20  ;;  %v11385_v20 = vld [vmem:[#allocation5 + $0x80] sm:$0xff]  ;;  %v17543_v4 = vld [vmem:[#allocation17_spill] sm:$0xff]  ;;  %v17544_v27 = vld [vmem:[#allocation18_spill] sm:$0xff] }
 0x590   : > { %v11447_v15 = vmax.f32 %v11415_v31, 0.0  ;;  %v11204_v14 = vpop.f32.mrf.mxu1  ;;  %v11068_v3 = vadd.f32 %v12940_v63, %v17542_v62  ;;  %v12937_v38 = vadd.f32 %v17544_v27, %v17543_v4  ;;  %v17545_v31 = vld [vmem:[#allocation20_spill] sm:$0xff] }
 0x591   : > { %v11445_v30 = vmax.f32 %v11413_v18, 0.0  ;;  %v11416_v0 = vadd.f32 %v11384_v5, %v11352_v58  ;;  %v11350_v9 = vadd.f32 %v17177_v39, %v11311_v48  ;;  %v11316_v55 = vmul.f32 %v17172_v28, %v11213_v2  ;;  %v11388_v18 = vld [vmem:[#allocation5 + $0xb8] sm:$0xff]  ;;  %v17546_v48 = vld [vmem:[#allocation15_spill] sm:$0xff] }
 0x592   : > { %11479 = vst [vmem:[%s15936_s9 + $0x30] sm:$0xff] %v11447_v15  ;;  %v11205_v57 = vadd.f32 %v11204_v14, %v11044_v37  ;;  %v13099_v24 = vpop.f32.mrf.mxu1  ;;  %v12943_v5 = vadd.f32 %v17074_v19, %v17545_v31  ;;  %v11060_v2 = vadd.f32 %v12934_v42, %v17546_v48  ;;  %v12952_v14 = vadd.f32 %v17101_v16, %v17096_v21  ;;  %v17261_v19 = vpop.f32.mrf.mxu0  ;;  %v17548_v21 = vld [vmem:[#allocation14_spill] sm:$0xff] }
 0x593   : > { %11477 = vst [vmem:[%s15936_s9 + $0x20] sm:$0xff] %v11445_v30  ;;  %v11448_v61 = vmax.f32 %v11416_v0, 0.0  ;;  %v11414_v47 = vadd.f32 %v11382_v11, %v11350_v9  ;;  %v11355_v7 = vadd.f32 %v17177_v39, %v11316_v55  ;;  %v11216_v51 = vadd.f32 %v13099_v24, %v11055_v53  ;;  %v11386_v30 = vld [vmem:[#allocation5 + $0x88] sm:$0xff] }
 0x594   : > { %v11314_v22 = vmul.f32 %v17172_v28, %v11205_v57  ;;  %v11207_v13 = vpop.f32.mrf.mxu1  ;;  %v17547_v57 = vld [vmem:[#allocation23_spill] sm:$0xff]  ;;  %v11071_v16 = vadd.f32 %v12943_v5, %v17548_v21 }
 0x595   : > { %11480 = vst [vmem:[%s15936_s9 + $0x38] sm:$0xff] %v11448_v61  ;;  %v11446_v34 = vmax.f32 %v11414_v47, 0.0  ;;  %v11419_v43 = vadd.f32 %v11387_v56, %v11355_v7  ;;  %v11317_v10 = vmul.f32 %v17172_v28, %v11216_v51  ;;  %v11208_v12 = vadd.f32 %v11207_v13, %v11047_v26  ;;  %v11391_v26 = vld [vmem:[#allocation5 + $0x8] sm:$0xff] }
 0x596   : > { %v11353_v17 = vadd.f32 %v17177_v39, %v11314_v22  ;;  %v13102_v58 = vpop.f32.mrf.mxu1  ;;  %v12946_v24 = vadd.f32 %v17547_v57, %v17079_v1  ;;  %v17549_v47 = vld [vmem:[#allocation16_spill] sm:$0xff]  ;;  %v11389_v1 = vld [vmem:[#allocation5 + $0x60] sm:$0xff] }
 0x597   : > { %11478 = vst [vmem:[%s15936_s9 + $0x28] sm:$0xff] %v11446_v34  ;;  %v11451_v63 = vmax.f32 %v11419_v43, 0.0  ;;  %v11356_v15 = vadd.f32 %v17177_v39, %v11317_v10  ;;  %v11315_v11 = vmul.f32 %v17172_v28, %v11208_v12  ;;  %v11229_v37 = vadd.f32 %v13102_v58, %v11068_v3  ;;  %v17276_v10 = vpop.f32.mrf.mxu0  ;;  %v11392_v58 = vld [vmem:[#allocation5 + $0x78] sm:$0xff] }
 0x598   : > { %v11417_v53 = vadd.f32 %v11385_v20, %v11353_v17  ;;  %v11220_v0 = vpop.f32.mrf.mxu1  ;;  %v11063_v7 = vadd.f32 %v12937_v38, %v17549_v47  ;;  %v12955_v3 = vadd.f32 %v17108_v35, %v17106_v52  ;;  %v11084_v20 = vadd.f32 %v12952_v14, %v17089_v49  ;;  %v17550_v17 = vld [vmem:[#allocation21_spill] sm:$0xff] }
 0x599   : > { %11483 = vst [vmem:[%s15936_s9 + $0x50] sm:$0xff] %v11451_v63  ;;  %v11420_v9 = vadd.f32 %v11388_v18, %v11356_v15  ;;  %v11354_v55 = vadd.f32 %v17177_v39, %v11315_v11  ;;  %v11320_v42 = vmul.f32 %v17172_v28, %v11229_v37  ;;  %v11221_v56 = vadd.f32 %v11220_v0, %v11060_v2  ;;  %v17551_v2 = vld [vmem:[#allocation24_spill] sm:$0xff]  ;;  %v17552_v63 = vld [vmem:[#allocation25_spill] sm:$0xff] }
 0x59a   : > { %v11449_v60 = vmax.f32 %v11417_v53, 0.0  ;;  %v13103_v61 = vpop.f32.mrf.mxu1  ;;  %v11076_v35 = vadd.f32 %v12946_v24, %v17550_v17  ;;  %v12949_v15 = vadd.f32 %v17552_v63, %v17551_v2  ;;  %v12964_v11 = vadd.f32 %v17135_v46, %v17130_v40  ;;  %v11390_v14 = vld [vmem:[#allocation5 + $0xf0] sm:$0xff]  ;;  %v17554_v24 = vld [vmem:[#allocation31_spill] sm:$0xff]  ;;  %v17559_v2 = vld [vmem:[#allocation30_spill] sm:$0xff] }
 0x59b   : > { %v11452_v51 = vmax.f32 %v11420_v9, 0.0  ;;  %v11418_v22 = vadd.f32 %v11386_v30, %v11354_v55  ;;  %v11359_v13 = vadd.f32 %v17177_v39, %v11320_v42  ;;  %v11318_v62 = vmul.f32 %v17172_v28, %v11221_v56  ;;  %v17553_v30 = vld [vmem:[#allocation26_spill] sm:$0xff]  ;;  %v17290_v9 = vpop.f32.mrf.mxu0  ;;  %v11395_v46 = vld [vmem:[#allocation5 + $0x40] sm:$0xff] }
 0x59c   : > { %11481 = vst [vmem:[%s15936_s9 + $0x40] sm:$0xff] %v11449_v60  ;;  %v11232_v34 = vadd.f32 %v13103_v61, %v11071_v16  ;;  %v11223_v43 = vpop.f32.mrf.mxu1  ;;  %v11087_v0 = vadd.f32 %v12955_v3, %v17553_v30  ;;  %v12958_v60 = vadd.f32 %v17554_v24, %v17113_v29  ;;  %v17556_v3 = vld [vmem:[#allocation29_spill] sm:$0xff] }
 0x59d   : > { %11484 = vst [vmem:[%s15936_s9 + $0x58] sm:$0xff] %v11452_v51  ;;  %v11450_v12 = vmax.f32 %v11418_v22, 0.0  ;;  %v11423_v4 = vadd.f32 %v11391_v26, %v11359_v13  ;;  %v11357_v27 = vadd.f32 %v17177_v39, %v11318_v62  ;;  %v11224_v38 = vadd.f32 %v11223_v43, %v11063_v7  ;;  %v11393_v22 = vld [vmem:[#allocation5 + $0x38] sm:$0xff] }
 0x59e   : > { %v11321_v31 = vmul.f32 %v17172_v28, %v11232_v34  ;;  %v13106_v5 = vpop.f32.mrf.mxu1  ;;  %v12967_v7 = vadd.f32 %v17145_v44, %v17140_v41  ;;  %v17555_v13 = vld [vmem:[#allocation22_spill] sm:$0xff]  ;;  %v12986_v34 = vpop.f32.mrf.mxu0  ;;  %v11396_v41 = vld [vmem:[#allocation5 + $0xc8] sm:$0xff] }
 0x59f   : > { %11482 = vst [vmem:[%s15936_s9 + $0x48] sm:$0xff] %v11450_v12  ;;  %v11455_v52 = vmax.f32 %v11423_v4, 0.0  ;;  %v11421_v18 = vadd.f32 %v11389_v1, %v11357_v27  ;;  %v11319_v49 = vmul.f32 %v17172_v28, %v11224_v38  ;;  %v11245_v48 = vadd.f32 %v13106_v5, %v11084_v20  ;;  %v17557_v27 = vld [vmem:[#allocation32_spill] sm:$0xff]  ;;  %v17558_v5 = vld [vmem:[#allocation27_spill] sm:$0xff] }
 0x5a0   : > { %v11360_v37 = vadd.f32 %v17177_v39, %v11321_v31  ;;  %v11236_v53 = vpop.f32.mrf.mxu1  ;;  %v11079_v62 = vadd.f32 %v12949_v15, %v17555_v13  ;;  %v11100_v1 = vadd.f32 %v12964_v11, %v17556_v3  ;;  %v12961_v38 = vadd.f32 %v17125_v6, %v17557_v27  ;;  %v12987_v15 = vpop.f32.mrf.mxu0 }
 0x5a1   : > { %11487 = vst [vmem:[%s15936_s9 + $0x70] sm:$0xff] %v11455_v52  ;;  %v11453_v55 = vmax.f32 %v11421_v18, 0.0  ;;  %v11358_v42 = vadd.f32 %v17177_v39, %v11319_v49  ;;  %v11324_v56 = vmul.f32 %v17172_v28, %v11245_v48  ;;  %v11237_v57 = vadd.f32 %v11236_v53, %v11076_v35 }
 0x5a2   : > { %v11424_v26 = vadd.f32 %v11392_v58, %v11360_v37  ;;  %v13107_v40 = vpop.f32.mrf.mxu1  ;;  %v11092_v17 = vadd.f32 %v12958_v60, %v17558_v5  ;;  %v12970_v49 = vadd.f32 %v17158_v32, %v17150_v45  ;;  %v11103_v63 = vadd.f32 %v12967_v7, %v17559_v2  ;;  %v17567_v5 = vld [vmem:[#allocation40_spill] sm:$0xff] }
 0x5a3   : > { %11485 = vst [vmem:[%s15936_s9 + $0x60] sm:$0xff] %v11453_v55  ;;  %v11422_v21 = vadd.f32 %v11390_v14, %v11358_v42  ;;  %v11363_v16 = vadd.f32 %v17177_v39, %v11324_v56  ;;  %v11322_v61 = vmul.f32 %v17172_v28, %v11237_v57  ;;  %v11248_v47 = vadd.f32 %v13107_v40, %v11087_v0  ;;  %v11394_v14 = vld [vmem:[#allocation5 + $0x58] sm:$0xff]  ;;  %v11399_v55 = vld [vmem:[#allocation5 + $0x70] sm:$0xff]  ;;  %v17560_v56 = vld [vmem:[#allocation28_spill] sm:$0xff] }
 0x5a4   : > { %v11456_v51 = vmax.f32 %v11424_v26, 0.0  ;;  %v11239_v29 = vpop.f32.mrf.mxu1  ;;  %v12976_v0 = vadd.f32 %v17206_v25, %v17192_v8  ;;  %v12979_v45 = vadd.f32 %v17234_v54, %v17220_v36  ;;  %v11095_v57 = vadd.f32 %v12961_v38, %v17560_v56  ;;  %v11397_v40 = vld [vmem:[#allocation5 + $0xe0] sm:$0xff]  ;;  %v17561_v54 = vld [vmem:[#allocation33_spill] sm:$0xff] }
 0x5a5   : > { %v11454_v43 = vmax.f32 %v11422_v21, 0.0  ;;  %v11427_v20 = vadd.f32 %v11395_v46, %v11363_v16  ;;  %v11361_v12 = vadd.f32 %v17177_v39, %v11322_v61  ;;  %v11325_v4 = vmul.f32 %v17172_v28, %v11248_v47  ;;  %v12989_v16 = vpop.f32.mrf.mxu0  ;;  %v17565_v38 = vld [vmem:[#allocation13_spill] sm:$0xff] }
 0x5a6   : > { %11488 = vst [vmem:[%s15936_s9 + $0x78] sm:$0xff] %v11456_v51  ;;  %v11240_v44 = vadd.f32 %v11239_v29, %v11079_v62  ;;  %v13110_v31 = vpop.f32.mrf.mxu1  ;;  %v12876_v8 = vadd.f32 %v17154_v59, %v17152_v50  ;;  %v11108_v21 = vadd.f32 %v12970_v49, %v17561_v54  ;;  %v11400_v29 = vld [vmem:[#allocation5 + $0xc0] sm:$0xff]  ;;  %v12982_v2 = vadd.f32 %v17261_v19, %v17246_v23  ;;  %v11401_v23 = vld [vmem:[#allocation5 + $0xa8] sm:$0xff] }
 0x5a7   : > { %11486 = vst [vmem:[%s15936_s9 + $0x68] sm:$0xff] %v11454_v43  ;;  %v11459_v35 = vmax.f32 %v11427_v20, 0.0  ;;  %v11425_v52 = vadd.f32 %v11393_v22, %v11361_v12  ;;  %v11364_v18 = vadd.f32 %v17177_v39, %v11325_v4  ;;  %v11261_v58 = vadd.f32 %v13110_v31, %v11100_v1  ;;  %v17562_v22 = vld [vmem:[#allocation41_spill] sm:$0xff]  ;;  %v17563_v50 = vld [vmem:[#allocation35_spill] sm:$0xff]  ;;  %v17564_v1 = vld [vmem:[#allocation36_spill] sm:$0xff] }
 0x5a8   : > { %v11323_v48 = vmul.f32 %v17172_v28, %v11240_v44  ;;  %v11252_v6 = vpop.f32.mrf.mxu1  ;;  %v12973_v13 = vadd.f32 %v17562_v22, %v17166_v33  ;;  %v11116_v59 = vadd.f32 %v12976_v0, %v17563_v50  ;;  %v11119_v43 = vadd.f32 %v12979_v45, %v17564_v1  ;;  %v17566_v31 = vld [vmem:[#allocation39_spill] sm:$0xff]  ;;  %v17571_v1 = vld [vmem:[#allocation38_spill] sm:$0xff] }
 0x5a9   : > { %11491 = vst [vmem:[%s15936_s9 + $0x90] sm:$0xff] %v11459_v35  ;;  %v11457_v11 = vmax.f32 %v11425_v52, 0.0  ;;  %v11428_v37 = vadd.f32 %v11396_v41, %v11364_v18  ;;  %v11328_v53 = vmul.f32 %v17172_v28, %v11261_v58  ;;  %v11253_v30 = vadd.f32 %v11252_v6, %v11092_v17  ;;  %v11398_v17 = vld [vmem:[#allocation5 + $0x90] sm:$0xff]  ;;  %v12990_v18 = vpop.f32.mrf.mxu0  ;;  %v17569_v45 = vld [vmem:[#allocation11_spill] sm:$0xff] }
 0x5aa   : > { %v11362_v32 = vadd.f32 %v17177_v39, %v11323_v48  ;;  %v13111_v42 = vpop.f32.mrf.mxu1  ;;  %v10971_v41 = vadd.f32 %v12876_v8, %v17565_v38  ;;  %v12988_v44 = vadd.f32 %v12987_v15, %v12986_v34  ;;  %v12879_v33 = vadd.f32 %v17567_v5, %v17566_v31  ;;  %v17568_v15 = vld [vmem:[#allocation34_spill] sm:$0xff]  ;;  %v11407_v50 = vld [vmem:[#allocation5 + $0x20] sm:$0xff] }
 0x5ab   : > { %11489 = vst [vmem:[%s15936_s9 + $0x80] sm:$0xff] %v11457_v11  ;;  %v11460_v24 = vmax.f32 %v11428_v37, 0.0  ;;  %v11367_v60 = vadd.f32 %v17177_v39, %v11328_v53  ;;  %v11326_v26 = vmul.f32 %v17172_v28, %v11253_v30  ;;  %v11264_v46 = vadd.f32 %v13111_v42, %v11103_v63  ;;  %v11403_v53 = vld [vmem:[#allocation5 + $0x10] sm:$0xff]  ;;  %v11405_v5 = vld [vmem:[#allocation5 + $0xa0] sm:$0xff] }
 0x5ac   : > { %v11426_v25 = vadd.f32 %v11394_v14, %v11362_v32  ;;  %v11255_v36 = vpop.f32.mrf.mxu1  ;;  %v11111_v11 = vadd.f32 %v12973_v13, %v17568_v15  ;;  %v10974_v32 = vadd.f32 %v12879_v33, %v17569_v45  ;;  %v11132_v56 = vadd.f32 %v12988_v44, %v10971_v41 }
 0x5ad   : > { %11492 = vst [vmem:[%s15936_s9 + $0x98] sm:$0xff] %v11460_v24  ;;  %v11431_v61 = vadd.f32 %v11399_v55, %v11367_v60  ;;  %v11365_v47 = vadd.f32 %v17177_v39, %v11326_v26  ;;  %v11329_v7 = vmul.f32 %v17172_v28, %v11264_v46  ;;  %v11256_v51 = vadd.f32 %v11255_v36, %v11095_v57 }
 0x5ae   : > { %v11458_v62 = vmax.f32 %v11426_v25, 0.0  ;;  %v13114_v3 = vpop.f32.mrf.mxu1  ;;  %v12991_v55 = vadd.f32 %v12990_v18, %v12989_v16  ;;  %v12985_v46 = vadd.f32 %v17290_v9, %v17276_v10  ;;  %v11404_v25 = vld [vmem:[#allocation5 + $0x28] sm:$0xff] }
 0x5af   : > { %v11463_v20 = vmax.f32 %v11431_v61, 0.0  ;;  %v11429_v12 = vadd.f32 %v11397_v40, %v11365_v47  ;;  %v11368_v4 = vadd.f32 %v17177_v39, %v11329_v7  ;;  %v11327_v27 = vmul.f32 %v17172_v28, %v11256_v51  ;;  %v11402_v47 = vld [vmem:[#allocation5 + $0xd0] sm:$0xff] }
 0x5b0   : > { %11490 = vst [vmem:[%s15936_s9 + $0x88] sm:$0xff] %v11458_v62  ;;  %v11277_v35 = vadd.f32 %v13114_v3, %v11116_v59  ;;  %v11268_v52 = vpop.f32.mrf.mxu1  ;;  %v17570_v7 = vld [vmem:[#allocation37_spill] sm:$0xff]  ;;  %v11135_v13 = vadd.f32 %v12991_v55, %v10974_v32 }
 0x5b1   : > { %11495 = vst [vmem:[%s15936_s9 + $0xb0] sm:$0xff] %v11463_v20  ;;  %v11461_v58 = vmax.f32 %v11429_v12, 0.0  ;;  %v11432_v49 = vadd.f32 %v11400_v29, %v11368_v4  ;;  %v11366_v48 = vadd.f32 %v17177_v39, %v11327_v27  ;;  %v11269_v6 = vadd.f32 %v11268_v52, %v11108_v21  ;;  %v11408_v52 = vld [vmem:[#allocation5 + $0x98] sm:$0xff] }
 0x5b2   : > { %v11332_v34 = vmul.f32 %v17172_v28, %v11277_v35  ;;  %v13115_v63 = vpop.f32.mrf.mxu1  ;;  %v11124_v51 = vadd.f32 %v12982_v2, %v17570_v7 }
 0x5b3   : > { %11493 = vst [vmem:[%s15936_s9 + $0xa0] sm:$0xff] %v11461_v58  ;;  %v11464_v37 = vmax.f32 %v11432_v49, 0.0  ;;  %v11430_v14 = vadd.f32 %v11398_v17, %v11366_v48  ;;  %v11330_v30 = vmul.f32 %v17172_v28, %v11269_v6  ;;  %v11280_v0 = vadd.f32 %v13115_v63, %v11119_v43  ;;  %v11406_v6 = vld [vmem:[#allocation5 + $0xf8] sm:$0xff] }
 0x5b4   : > { %v11371_v42 = vadd.f32 %v17177_v39, %v11332_v34  ;;  %v11271_v19 = vpop.f32.mrf.mxu1  ;;  %v11127_v43 = vadd.f32 %v12985_v46, %v17571_v1 }
 0x5b5   : > { %11496 = vst [vmem:[%s15936_s9 + $0xb8] sm:$0xff] %v11464_v37  ;;  %v11462_v57 = vmax.f32 %v11430_v14, 0.0  ;;  %v11369_v24 = vadd.f32 %v17177_v39, %v11330_v30  ;;  %v11333_v60 = vmul.f32 %v17172_v28, %v11280_v0  ;;  %v11272_v26 = vadd.f32 %v11271_v19, %v11111_v11 }
 0x5b6   : > { %v11435_v8 = vadd.f32 %v11403_v53, %v11371_v42  ;;  %v13118_v40 = vpop.f32.mrf.mxu1 }
 0x5b7   : > { %11494 = vst [vmem:[%s15936_s9 + $0xa8] sm:$0xff] %v11462_v57  ;;  %v11433_v36 = vadd.f32 %v11401_v23, %v11369_v24  ;;  %v11372_v54 = vadd.f32 %v17177_v39, %v11333_v60  ;;  %v11331_v21 = vmul.f32 %v17172_v28, %v11272_v26  ;;  %v11293_v16 = vadd.f32 %v13118_v40, %v11132_v56 }
 0x5b8   : > { %v11467_v61 = vmax.f32 %v11435_v8, 0.0  ;;  %v11284_v22 = vpop.f32.mrf.mxu1 }
 0x5b9   : > { %v11465_v62 = vmax.f32 %v11433_v36, 0.0  ;;  %v11436_v10 = vadd.f32 %v11404_v25, %v11372_v54  ;;  %v11370_v9 = vadd.f32 %v17177_v39, %v11331_v21  ;;  %v11336_v29 = vmul.f32 %v17172_v28, %v11293_v16 }
 0x5ba   : > { %11499 = vst [vmem:[%s15936_s9 + $0xd0] sm:$0xff] %v11467_v61  ;;  %v11285_v59 = vadd.f32 %v11284_v22, %v11124_v51  ;;  %v13119_v3 = vpop.f32.mrf.mxu1 }
 0x5bb   : > { %11497 = vst [vmem:[%s15936_s9 + $0xc0] sm:$0xff] %v11465_v62  ;;  %v11468_v20 = vmax.f32 %v11436_v10, 0.0  ;;  %v11434_v12 = vadd.f32 %v11402_v47, %v11370_v9  ;;  %v11375_v4 = vadd.f32 %v17177_v39, %v11336_v29  ;;  %v11296_v27 = vadd.f32 %v13119_v3, %v11135_v13 }
 0x5bc   : > { %v11334_v38 = vmul.f32 %v17172_v28, %v11285_v59  ;;  %v11287_v41 = vpop.f32.mrf.mxu1 }
 0x5bd   : > { %11500 = vst [vmem:[%s15936_s9 + $0xd8] sm:$0xff] %v11468_v20  ;;  %v11466_v44 = vmax.f32 %v11434_v12, 0.0  ;;  %v11439_v31 = vadd.f32 %v11407_v50, %v11375_v4  ;;  %v11337_v33 = vmul.f32 %v17172_v28, %v11296_v27  ;;  %v11288_v17 = vadd.f32 %v11287_v41, %v11127_v43 }
 0x5be   : > { %v11373_v35 = vadd.f32 %v17177_v39, %v11334_v38 }
 0x5bf   : > { %11498 = vst [vmem:[%s15936_s9 + $0xc8] sm:$0xff] %v11466_v44  ;;  %v11471_v18 = vmax.f32 %v11439_v31, 0.0  ;;  %v11376_v58 = vadd.f32 %v17177_v39, %v11337_v33  ;;  %v11335_v49 = vmul.f32 %v17172_v28, %v11288_v17 }
 0x5c0   : > { %v11437_v48 = vadd.f32 %v11405_v5, %v11373_v35 }
 0x5c1   : > { %11503 = vst [vmem:[%s15936_s9 + $0xf0] sm:$0xff] %v11471_v18  ;;  %v11440_v2 = vadd.f32 %v11408_v52, %v11376_v58  ;;  %v11374_v34 = vadd.f32 %v17177_v39, %v11335_v49 }
 0x5c2   : > { %v11469_v63 = vmax.f32 %v11437_v48, 0.0 }
 0x5c3   : > { %v11472_v15 = vmax.f32 %v11440_v2, 0.0  ;;  %v11438_v11 = vadd.f32 %v11406_v6, %v11374_v34 }
 0x5c4   : > { %11501 = vst [vmem:[%s15936_s9 + $0xe0] sm:$0xff] %v11469_v63 }
 0x5c5   : > { %11504 = vst [vmem:[%s15936_s9 + $0xf8] sm:$0xff] %v11472_v15  ;;  %v11470_v28 = vmax.f32 %v11438_v11, 0.0 }
 0x5c7   : > { %11502 = vst [vmem:[%s15936_s9 + $0xe8] sm:$0xff] %v11470_v28 }
 0x5c8   : > { %13790 = shalt.err (!%p13787_p9)
}
 0x5c9   : > { %s13791_s9 = scalar_lea.hbm %s17387_s17, 4096  ;;  %s13795_s18 = scalar_lea.hbm %s17450_s7, 32768 }
 0x5ca   : > { %p13792_p10 = scmp.ne.s32.totalorder %s17387_s17, %s13791_s9  ;;  %p13796_p13 = scmp.lt.s32.totalorder %s17387_s17, %s17450_s7 }
 0x5cb   : > { %p13797_p0 = scmp.lt.s32.totalorder %s13795_s18, %s13791_s9 }
 0x5cc   : > { %p13793_p11 = pnand %p13792_p10, %p13968_p3 }
 0x5cd   : > { %p13798_p1 = por %p13797_p0, %p13796_p13 }
 0x5ce   : > { %p13794_p12 = pneg %p13793_p11 }
 0x5d0   : > { %p13799_p2 = pnand %p13798_p1, %p13794_p12 }
 0x5d2   : > { %13802 = shalt.err (!%p13799_p2)
}
 0x5d3   : > { %s13875_s21 = smov 128   ;;  %s13876_s11 = smov 8  }
 0x5d4   : > { %13121 = dma.vmem_to_hbm [thread:$0]  (%p13968_p3), %s17381_s28, 4096, %s17387_s17, %s17392_s16, %s13875_s21, %s13875_s21, %s13876_s11  }
 0x5d5 PF: > { %p13127_p4 = scmp.ge.s32.totalorder %s13869_s8, 2  ;;  %s11536_s13 = sand.u32 1, %s13841_s24  }
 0x5d6   : > { %s11537_s12 = scalar_lea.sflag [#allocation7], %s11536_s13 }
 0x5d7   : > { %p13124_p5 = pnand %p13127_p4, %p13977_p8 }
 0x5d9   : > { %p13125_p6 = pneg %p13124_p5 }
 0x5db   : > { %13836 = dma.done.wait (%p13125_p6), %s11537_s12, 4096  }
 0x5dc   : > { %13838 = vsyncadd (%p13125_p6), %s11537_s12, 4294963200  ;;  %s20_s8 = sadd.s32 1, %s13869_s8   ;;  %s17573_s14 = sld [smem:[#allocation9_spill]] }
 0x5dd   : > { %p17_p7 = scmp.ge.s32.totalorder %s20_s8, 10   ;;  %s17574_s17 = sld [smem:[#allocation10_spill]] }
 0x5de   : > { %s17575_s24 = smov %s13845_s25  ;;  %s17576_s25 = smov %s13849_s26 }
 0x5df   : > { %s17577_s26 = smov %s13986_s19  ;;  %s17578_s27 = smov %s13861_s29 }
 0x5e0   : > { %s17579_s28 = smov %s13865_s30  ;;  %19 = sbr.rel (!%p17_p7) target bundleno = 5 (0x5), region = 97 }
 0x5e2   : > { %s17580_s29 = smov %s17573_s14 }
 0x5e3   : > { %s17581_s30 = smov %s17574_s17 }
 0x5e5   :  { %11542 = vsyncpa [#allocation7], 1 }
 0x5e6   :  { %11544 = vsyncpa [#allocation7 + $0x1], 1 }

</bundles_post_ra>
